<compile_context>
chip_gen: v7x
topology: tpu7x:2x2x1
jax: 0.10.0
libtpu: 0.0.40
codegen_flags: <defaults>
</compile_context>

<pallas_src>
import functools
import math

import jax
import jax.numpy as jnp
from jax.experimental import pallas as pl
from jax.experimental.pallas import tpu as pltpu


# ----------------------------- Pallas kernels ------------------------------ #

def _conv_bn_lrelu_kernel(w_ref, g_ref, b_ref, p_ref, o_ref, ssum_ref, ssq_ref,
                          *, tm, n_tiles, inv_m, eps, neg_slope):
    """Fused conv (im2col matmul) + training-mode BatchNorm + LeakyReLU.

    w_ref : (OC, K)  bf16  resident weights
    g_ref : (OC, 1)  f32   BN gamma
    b_ref : (OC, 1)  f32   BN beta
    p_ref : (K, tm)  bf16  streamed im2col patch tile
    o_ref : (OC, M)  f32   VMEM-resident output (flushed to HBM once)
    ssum_ref / ssq_ref : (OC, 1) f32 scratch accumulators for batch stats
    """
    i = pl.program_id(0)

    @pl.when(i == 0)
    def _init():
        ssum_ref[...] = jnp.zeros_like(ssum_ref)
        ssq_ref[...] = jnp.zeros_like(ssq_ref)

    # Weight-stationary MXU matmul: (OC, K) @ (K, tm) -> (OC, tm), f32 acc.
    y = jnp.dot(w_ref[...], p_ref[...], preferred_element_type=jnp.float32)

    # Per-channel batch statistics accumulated across the (arbitrary) M axis.
    ssum_ref[...] += jnp.sum(y, axis=1, keepdims=True)
    ssq_ref[...] += jnp.sum(y * y, axis=1, keepdims=True)

    if n_tiles == 1:
        o_ref[...] = y
    else:
        start = pl.multiple_of(i * tm, tm)
        o_ref[:, pl.ds(start, tm)] = y

    @pl.when(i == n_tiles - 1)
    def _finalize():
        mean = ssum_ref[...] * inv_m                              # (OC, 1)
        var = jnp.maximum(ssq_ref[...] * inv_m - mean * mean, 0.0)
        scale = g_ref[...] * jax.lax.rsqrt(var + eps)             # (OC, 1)
        shift = b_ref[...] - mean * scale
        # BN + LeakyReLU applied in place on the resident output, tile by tile
        # (static Python loop: n_tiles is small; bounds register pressure).
        for j in range(n_tiles):
            sl = pl.ds(j * tm, tm)                                # static slice
            z = o_ref[:, sl] * scale + shift
            o_ref[:, sl] = jnp.where(z >= 0, z, neg_slope * z)


def _head_conv_kernel(w_ref, p_ref, o_ref):
    """Final single-output-channel conv: (K, 1) x (K, M) -> (1, M).

    Shapes are tiny (M == batch), so use a VPU multiply + reduce and avoid a
    degenerate 1-row MXU matmul.  Math in f32 (v5e has no bf16 VALU).
    """
    w = w_ref[...].astype(jnp.float32)
    p = p_ref[...].astype(jnp.float32)
    o_ref[...] = jnp.sum(w * p, axis=0, keepdims=True)


# --------------------------------- glue ------------------------------------ #

def _pick_tm(m, cap=4096):
    """Largest power-of-two tile <= cap that divides m exactly.

    Guarantees either tm == m (single grid step, block == full extent) or tm is
    a multiple of 128 (aligned lane-offset stores) -- never drops rows.
    """
    tm = math.gcd(m, cap)
    if tm < 128:
        tm = m
    return tm


def _im2col_cfirst(a, kh, kw, stride, pad, dtype=jnp.bfloat16):
    """(C, N, H, W) -> (K, M) patches. K ordered (ki, kj, c); M ordered (n, oh, ow)."""
    a = a.astype(dtype)
    C, N, H, W = a.shape
    if pad:
        a = jnp.pad(a, ((0, 0), (0, 0), (pad, pad), (pad, pad)))
    OH = (H + 2 * pad - kh) // stride + 1
    OW = (W + 2 * pad - kw) // stride + 1
    slices = []
    for ki in range(kh):
        for kj in range(kw):
            slices.append(a[:, :,
                            ki:ki + stride * (OH - 1) + 1:stride,
                            kj:kj + stride * (OW - 1) + 1:stride])
    p = jnp.stack(slices, axis=0)                        # (kh*kw, C, N, OH, OW)
    return p.reshape(kh * kw * C, N * OH * OW), OH, OW


def conv_bn_lrelu(a, w, gamma, beta, *, stride, pad, eps=1e-5, neg_slope=0.2):
    """One Conv2d(bias=False) + BatchNorm2d + LeakyReLU(0.2) layer.

    a: (C, N, H, W) channels-first activation; returns (OC, N, OH, OW).
    """
    OC, _, kh, kw = w.shape
    C, N, H, W = a.shape
    patches, OH, OW = _im2col_cfirst(a, kh, kw, stride, pad)
    K, M = patches.shape
    # (OC, C, kh, kw) -> (OC, kh, kw, C) -> (OC, K): matches the patch row order.
    w2d = w.transpose(0, 2, 3, 1).reshape(OC, K).astype(jnp.bfloat16)
    tm = _pick_tm(M)
    n_tiles = M // tm

    kernel = functools.partial(_conv_bn_lrelu_kernel, tm=tm, n_tiles=n_tiles,
                               inv_m=1.0 / M, eps=eps, neg_slope=neg_slope)
    out = pl.pallas_call(
        kernel,
        out_shape=jax.ShapeDtypeStruct((OC, M), jnp.float32),
        grid_spec=pltpu.PrefetchScalarGridSpec(
            num_scalar_prefetch=0,
            grid=(n_tiles,),
            in_specs=[
                pl.BlockSpec((OC, K), lambda i: (0, 0)),   # weights (resident)
                pl.BlockSpec((OC, 1), lambda i: (0, 0)),   # gamma
                pl.BlockSpec((OC, 1), lambda i: (0, 0)),   # beta
                pl.BlockSpec((K, tm), lambda i: (0, i)),   # patch tile (streamed)
            ],
            out_specs=pl.BlockSpec((OC, M), lambda i: (0, 0)),  # resident output
            scratch_shapes=[pltpu.VMEM((OC, 1), jnp.float32),
                            pltpu.VMEM((OC, 1), jnp.float32)],
        ),
        compiler_params=pltpu.CompilerParams(
            # M axis carries resident output + stat accumulation -> arbitrary.
            dimension_semantics=("arbitrary",),
            vmem_limit_bytes=32 * 1024 * 1024),
    )(w2d, gamma.reshape(OC, 1), beta.reshape(OC, 1), patches)
    return out.reshape(OC, N, OH, OW)


def conv_head(a, w, *, stride, pad):
    """Final Conv2d(bias=False), OC == 1, no BN / activation."""
    OC, _, kh, kw = w.shape
    C, N, H, W = a.shape
    patches, OH, OW = _im2col_cfirst(a, kh, kw, stride, pad)
    K, M = patches.shape
    w2d = w.transpose(0, 2, 3, 1).reshape(OC, K).T.astype(jnp.bfloat16)  # (K, 1)
    out = pl.pallas_call(
        _head_conv_kernel,
        out_shape=jax.ShapeDtypeStruct((OC, M), jnp.float32),
        grid_spec=pltpu.PrefetchScalarGridSpec(
            num_scalar_prefetch=0,
            grid=(1,),
            in_specs=[pl.BlockSpec((K, OC), lambda i: (0, 0)),
                      pl.BlockSpec((K, M), lambda i: (0, 0))],
            out_specs=pl.BlockSpec((OC, M), lambda i: (0, 0)),
        ),
        compiler_params=pltpu.CompilerParams(
            dimension_semantics=("arbitrary",),
            vmem_limit_bytes=32 * 1024 * 1024),
    )(w2d, patches)
    return out.reshape(OC, N, OH, OW)


def init_params(key, nfilter=8, nChannels=4):
    chans = [nChannels, nfilter, nfilter * 2, nfilter * 4, nfilter * 8,
             nfilter * 16, 1]
    params = {}
    for i in range(6):
        key, sub = jax.random.split(key)
        oc, ic = chans[i + 1], chans[i]
        params[f"w{i + 1}"] = (0.02 * jax.random.normal(
            sub, (oc, ic, 4, 4))).astype(jnp.float32)
        if i < 5:  # BatchNorm affine params for layers 1..5 (layer 6 has no BN)
            params[f"g{i + 1}"] = jnp.ones((oc,), jnp.float32)
            params[f"b{i + 1}"] = jnp.zeros((oc,), jnp.float32)
    return params


@functools.partial(jax.jit, static_argnames=("isLSGAN",))
def discriminator_forward(x, params, isLSGAN=True):
    # Single layout change at the boundary: NCHW -> (C, N, H, W).  Every layer
    # afterwards produces its successor's layout directly (no transposes).
    a = jnp.transpose(x, (1, 0, 2, 3))
    for i in range(1, 6):
        a = conv_bn_lrelu(a, params[f"w{i}"], params[f"g{i}"], params[f"b{i}"],
                          stride=2, pad=1)
    y = conv_head(a, params["w6"], stride=1, pad=0)     # (1, N, 1, 1)
    out = y.reshape(-1)                                  # == .view(-1,1).squeeze(1)
    if not isLSGAN:
        out = jax.nn.sigmoid(out)
    return out


if __name__ == "__main__":
    key = jax.random.PRNGKey(0)
    kx, kp = jax.random.split(key)
    # Small config: nfilter=8, nChannels=4.  Spatial 128 is the minimum the
    # architecture supports (5 stride-2 convs -> 4x4, then a 4x4 valid conv -> 1x1).
    batch, nChannels, spatial = 2, 4, 128
    x = jax.random.normal(kx, (batch, nChannels, spatial, spatial),
                          dtype=jnp.float32)
    params = init_params(kp, nfilter=8, nChannels=nChannels)

    out = discriminator_forward(x, params, isLSGAN=True)
    out = jax.block_until_ready(out)
    assert out.shape == (batch,), out.shape
    assert bool(jnp.all(jnp.isfinite(out))), "non-finite output"
    print("KERNEL_OK")
</pallas_src>

<mosaic_0001>
module attributes {stable_mosaic.version = 11 : i64} {
  func.func @_conv_bn_lrelu_kernel(%arg0: i32, %arg1: memref<8x64xbf16, #tpu.memory_space<vmem>>, %arg2: memref<8x1xf32, #tpu.memory_space<vmem>>, %arg3: memref<8x1xf32, #tpu.memory_space<vmem>>, %arg4: memref<64x4096xbf16, #tpu.memory_space<vmem>>, %arg5: memref<8x8192xf32, #tpu.memory_space<vmem>>, %arg6: memref<8x1xf32, #tpu.memory_space<vmem>>, %arg7: memref<8x1xf32, #tpu.memory_space<vmem>>) attributes {dimension_semantics = [#tpu.dimension_semantics<arbitrary>], iteration_bounds = array<i64: 2>, scalar_prefetch = 0 : i64, scratch_operands = 2 : i64, tpu.core_type = #tpu.core_type<tc>, window_params = [{pipeline_mode = #tpu.pipeline_mode<synchronous>, transform_indices = @transform_0, window_bounds = array<i64: 8, 64>}, {pipeline_mode = #tpu.pipeline_mode<synchronous>, transform_indices = @transform_1, window_bounds = array<i64: 8, 1>}, {pipeline_mode = #tpu.pipeline_mode<synchronous>, transform_indices = @transform_2, window_bounds = array<i64: 8, 1>}, {transform_indices = @transform_3, window_bounds = array<i64: 64, 4096>}, {pipeline_mode = #tpu.pipeline_mode<synchronous>, transform_indices = @transform_4, window_bounds = array<i64: 8, 8192>}]} {
    %c0_i32 = arith.constant 0 : i32
    %0 = arith.cmpi eq, %arg0, %c0_i32 : i32
    %1 = arith.extui %0 : i1 to i32
    %c0_i32_0 = arith.constant 0 : i32
    %2 = arith.cmpi ne, %1, %c0_i32_0 : i32
    scf.if %2 {
      %cst_16 = arith.constant 0.000000e+00 : f32
      %24 = vector.broadcast %cst_16 : f32 to vector<8x1xf32>
      %c0_17 = arith.constant 0 : index
      %c0_18 = arith.constant 0 : index
      %25 = vector.load %arg6[%c0_17, %c0_18] : memref<8x1xf32, #tpu.memory_space<vmem>>, vector<8x1xf32>
      tpu.vector_store %arg6[%c0_17, %c0_18], %24 {strides = array<i32>} : memref<8x1xf32, #tpu.memory_space<vmem>>, vector<8x1xf32>,
      %cst_19 = arith.constant 0.000000e+00 : f32
      %26 = vector.broadcast %cst_19 : f32 to vector<8x1xf32>
      %c0_20 = arith.constant 0 : index
      %c0_21 = arith.constant 0 : index
      %27 = vector.load %arg7[%c0_20, %c0_21] : memref<8x1xf32, #tpu.memory_space<vmem>>, vector<8x1xf32>
      tpu.vector_store %arg7[%c0_20, %c0_21], %26 {strides = array<i32>} : memref<8x1xf32, #tpu.memory_space<vmem>>, vector<8x1xf32>,
    } else {
    }
    %c0 = arith.constant 0 : index
    %c0_1 = arith.constant 0 : index
    %3 = vector.load %arg1[%c0, %c0_1] : memref<8x64xbf16, #tpu.memory_space<vmem>>, vector<8x64xbf16>
    %c0_2 = arith.constant 0 : index
    %c0_3 = arith.constant 0 : index
    %4 = vector.load %arg4[%c0_2, %c0_3] : memref<64x4096xbf16, #tpu.memory_space<vmem>>, vector<64x4096xbf16>
    %cst = arith.constant dense<0.000000e+00> : vector<8x4096xf32>
    %5 = tpu.matmul %3, %4, %cst {dimension_numbers = #tpu.dot_dimension_numbers<[1], [0], [0], [1], [0, 0, 1, 1], [], []>} : vector<8x64xbf16>, vector<64x4096xbf16>, vector<8x4096xf32> -> vector<8x4096xf32>
    %c0_4 = arith.constant 0 : index
    %c0_5 = arith.constant 0 : index
    %6 = vector.load %arg6[%c0_4, %c0_5] : memref<8x1xf32, #tpu.memory_space<vmem>>, vector<8x1xf32>
    %cst_6 = arith.constant dense<0.000000e+00> : vector<8xf32>
    %7 = vector.multi_reduction <add>, %5, %cst_6 [1] : vector<8x4096xf32> to vector<8xf32>
    %8 = vector.shape_cast %7 : vector<8xf32> to vector<8x1xf32>
    %9 = arith.addf %6, %8 : vector<8x1xf32>
    %c0_7 = arith.constant 0 : index
    %c0_8 = arith.constant 0 : index
    %10 = vector.load %arg6[%c0_7, %c0_8] : memref<8x1xf32, #tpu.memory_space<vmem>>, vector<8x1xf32>
    tpu.vector_store %arg6[%c0_7, %c0_8], %9 {strides = array<i32>} : memref<8x1xf32, #tpu.memory_space<vmem>>, vector<8x1xf32>,
    %c0_9 = arith.constant 0 : index
    %c0_10 = arith.constant 0 : index
    %11 = vector.load %arg7[%c0_9, %c0_10] : memref<8x1xf32, #tpu.memory_space<vmem>>, vector<8x1xf32>
    %12 = arith.mulf %5, %5 : vector<8x4096xf32>
    %cst_11 = arith.constant dense<0.000000e+00> : vector<8xf32>
    %13 = vector.multi_reduction <add>, %12, %cst_11 [1] : vector<8x4096xf32> to vector<8xf32>
    %14 = vector.shape_cast %13 : vector<8xf32> to vector<8x1xf32>
    %15 = arith.addf %11, %14 : vector<8x1xf32>
    %c0_12 = arith.constant 0 : index
    %c0_13 = arith.constant 0 : index
    %16 = vector.load %arg7[%c0_12, %c0_13] : memref<8x1xf32, #tpu.memory_space<vmem>>, vector<8x1xf32>
    tpu.vector_store %arg7[%c0_12, %c0_13], %15 {strides = array<i32>} : memref<8x1xf32, #tpu.memory_space<vmem>>, vector<8x1xf32>,
    %c4096_i32 = arith.constant 4096 : i32
    %17 = arith.muli %arg0, %c4096_i32 : i32
    %18 = tpu.assume_multiple %17, 4096 : i32
    %c0_14 = arith.constant 0 : index
    %19 = arith.index_cast %18 : i32 to index
    %20 = vector.load %arg5[%c0_14, %19] : memref<8x8192xf32, #tpu.memory_space<vmem>>, vector<8x4096xf32>
    tpu.vector_store %arg5[%c0_14, %19], %5 {strides = array<i32>} : memref<8x8192xf32, #tpu.memory_space<vmem>>, vector<8x4096xf32>,
    %c1_i32 = arith.constant 1 : i32
    %21 = arith.cmpi eq, %arg0, %c1_i32 : i32
    %22 = arith.extui %21 : i1 to i32
    %c0_i32_15 = arith.constant 0 : i32
    %23 = arith.cmpi ne, %22, %c0_i32_15 : i32
    scf.if %23 {
      %c0_16 = arith.constant 0 : index
      %c0_17 = arith.constant 0 : index
      %24 = vector.load %arg6[%c0_16, %c0_17] : memref<8x1xf32, #tpu.memory_space<vmem>>, vector<8x1xf32>
      %cst_18 = arith.constant 1.22070313E-4 : f32
      %25 = vector.broadcast %cst_18 : f32 to vector<8x1xf32>
      %26 = arith.mulf %24, %25 : vector<8x1xf32>
      %c0_19 = arith.constant 0 : index
      %c0_20 = arith.constant 0 : index
      %27 = vector.load %arg7[%c0_19, %c0_20] : memref<8x1xf32, #tpu.memory_space<vmem>>, vector<8x1xf32>
      %cst_21 = arith.constant 1.22070313E-4 : f32
      %28 = vector.broadcast %cst_21 : f32 to vector<8x1xf32>
      %29 = arith.mulf %27, %28 : vector<8x1xf32>
      %30 = arith.mulf %26, %26 : vector<8x1xf32>
      %31 = arith.subf %29, %30 : vector<8x1xf32>
      %cst_22 = arith.constant 0.000000e+00 : f32
      %32 = vector.broadcast %cst_22 : f32 to vector<8x1xf32>
      %33 = arith.maximumf %31, %32 : vector<8x1xf32>
      %c0_23 = arith.constant 0 : index
      %c0_24 = arith.constant 0 : index
      %34 = vector.load %arg2[%c0_23, %c0_24] : memref<8x1xf32, #tpu.memory_space<vmem>>, vector<8x1xf32>
      %cst_25 = arith.constant 9.99999974E-6 : f32
      %35 = vector.broadcast %cst_25 : f32 to vector<8x1xf32>
      %36 = arith.addf %33, %35 : vector<8x1xf32>
      %37 = math.rsqrt %36 : vector<8x1xf32>
      %38 = arith.mulf %34, %37 : vector<8x1xf32>
      %c0_26 = arith.constant 0 : index
      %c0_27 = arith.constant 0 : index
      %39 = vector.load %arg3[%c0_26, %c0_27] : memref<8x1xf32, #tpu.memory_space<vmem>>, vector<8x1xf32>
      %40 = arith.mulf %26, %38 : vector<8x1xf32>
      %41 = arith.subf %39, %40 : vector<8x1xf32>
      %c0_28 = arith.constant 0 : index
      %c0_29 = arith.constant 0 : index
      %42 = vector.load %arg5[%c0_28, %c0_29] : memref<8x8192xf32, #tpu.memory_space<vmem>>, vector<8x4096xf32>
      %43 = vector.broadcast %38 : vector<8x1xf32> to vector<8x4096xf32>
      %44 = arith.mulf %42, %43 : vector<8x4096xf32>
      %45 = vector.broadcast %41 : vector<8x1xf32> to vector<8x4096xf32>
      %46 = arith.addf %44, %45 : vector<8x4096xf32>
      %cst_30 = arith.constant 0.000000e+00 : f32
      %47 = vector.broadcast %cst_30 : f32 to vector<8x4096xf32>
      %48 = arith.cmpf oge, %46, %47 : vector<8x4096xf32>
      %cst_31 = arith.constant 2.000000e-01 : f32
      %49 = vector.broadcast %cst_31 : f32 to vector<8x4096xf32>
      %50 = arith.mulf %49, %46 : vector<8x4096xf32>
      %51 = arith.select %48, %46, %50 : vector<8x4096xi1>, vector<8x4096xf32>
      %c0_32 = arith.constant 0 : index
      %c0_33 = arith.constant 0 : index
      %52 = vector.load %arg5[%c0_32, %c0_33] : memref<8x8192xf32, #tpu.memory_space<vmem>>, vector<8x4096xf32>
      tpu.vector_store %arg5[%c0_32, %c0_33], %51 {strides = array<i32>} : memref<8x8192xf32, #tpu.memory_space<vmem>>, vector<8x4096xf32>,
      %c0_34 = arith.constant 0 : index
      %c4096 = arith.constant 4096 : index
      %53 = vector.load %arg5[%c0_34, %c4096] : memref<8x8192xf32, #tpu.memory_space<vmem>>, vector<8x4096xf32>
      %54 = vector.broadcast %38 : vector<8x1xf32> to vector<8x4096xf32>
      %55 = arith.mulf %53, %54 : vector<8x4096xf32>
      %56 = vector.broadcast %41 : vector<8x1xf32> to vector<8x4096xf32>
      %57 = arith.addf %55, %56 : vector<8x4096xf32>
      %cst_35 = arith.constant 0.000000e+00 : f32
      %58 = vector.broadcast %cst_35 : f32 to vector<8x4096xf32>
      %59 = arith.cmpf oge, %57, %58 : vector<8x4096xf32>
      %cst_36 = arith.constant 2.000000e-01 : f32
      %60 = vector.broadcast %cst_36 : f32 to vector<8x4096xf32>
      %61 = arith.mulf %60, %57 : vector<8x4096xf32>
      %62 = arith.select %59, %57, %61 : vector<8x4096xi1>, vector<8x4096xf32>
      %c0_37 = arith.constant 0 : index
      %c4096_38 = arith.constant 4096 : index
      %63 = vector.load %arg5[%c0_37, %c4096_38] : memref<8x8192xf32, #tpu.memory_space<vmem>>, vector<8x4096xf32>
      tpu.vector_store %arg5[%c0_37, %c4096_38], %62 {strides = array<i32>} : memref<8x8192xf32, #tpu.memory_space<vmem>>, vector<8x4096xf32>,
    } else {
    }
    return
  }
  func.func @transform_0(%arg0: i32) -> (i32, i32) {
    %c0_i32 = arith.constant 0 : i32
    %c0_i32_0 = arith.constant 0 : i32
    %c0_i32_1 = arith.constant 0 : i32
    return %c0_i32, %c0_i32_0 : i32, i32
  }
  func.func @transform_1(%arg0: i32) -> (i32, i32) {
    %c0_i32 = arith.constant 0 : i32
    %c0_i32_0 = arith.constant 0 : i32
    %c0_i32_1 = arith.constant 0 : i32
    return %c0_i32, %c0_i32_0 : i32, i32
  }
  func.func @transform_2(%arg0: i32) -> (i32, i32) {
    %c0_i32 = arith.constant 0 : i32
    %c0_i32_0 = arith.constant 0 : i32
    %c0_i32_1 = arith.constant 0 : i32
    return %c0_i32, %c0_i32_0 : i32, i32
  }
  func.func @transform_3(%arg0: i32) -> (i32, i32) {
    %c0_i32 = arith.constant 0 : i32
    %c0_i32_0 = arith.constant 0 : i32
    return %c0_i32, %arg0 : i32, i32
  }
  func.func @transform_4(%arg0: i32) -> (i32, i32) {
    %c0_i32 = arith.constant 0 : i32
    %c0_i32_0 = arith.constant 0 : i32
    %c0_i32_1 = arith.constant 0 : i32
    return %c0_i32, %c0_i32_0 : i32, i32
  }
}

module attributes {stable_mosaic.version = 11 : i64} {
  func.func @_conv_bn_lrelu_kernel(%arg0: i32, %arg1: memref<16x128xbf16, #tpu.memory_space<vmem>>, %arg2: memref<16x1xf32, #tpu.memory_space<vmem>>, %arg3: memref<16x1xf32, #tpu.memory_space<vmem>>, %arg4: memref<128x2048xbf16, #tpu.memory_space<vmem>>, %arg5: memref<16x2048xf32, #tpu.memory_space<vmem>>, %arg6: memref<16x1xf32, #tpu.memory_space<vmem>>, %arg7: memref<16x1xf32, #tpu.memory_space<vmem>>) attributes {dimension_semantics = [#tpu.dimension_semantics<arbitrary>], iteration_bounds = array<i64: 1>, scalar_prefetch = 0 : i64, scratch_operands = 2 : i64, tpu.core_type = #tpu.core_type<tc>, window_params = [{pipeline_mode = #tpu.pipeline_mode<synchronous>, transform_indices = @transform_0, window_bounds = array<i64: 16, 128>}, {pipeline_mode = #tpu.pipeline_mode<synchronous>, transform_indices = @transform_1, window_bounds = array<i64: 16, 1>}, {pipeline_mode = #tpu.pipeline_mode<synchronous>, transform_indices = @transform_2, window_bounds = array<i64: 16, 1>}, {transform_indices = @transform_3, window_bounds = array<i64: 128, 2048>}, {pipeline_mode = #tpu.pipeline_mode<synchronous>, transform_indices = @transform_4, window_bounds = array<i64: 16, 2048>}]} {
    %c0_i32 = arith.constant 0 : i32
    %0 = arith.cmpi eq, %arg0, %c0_i32 : i32
    %1 = arith.extui %0 : i1 to i32
    %c0_i32_0 = arith.constant 0 : i32
    %2 = arith.cmpi ne, %1, %c0_i32_0 : i32
    scf.if %2 {
      %cst_18 = arith.constant 0.000000e+00 : f32
      %21 = vector.broadcast %cst_18 : f32 to vector<16x1xf32>
      %c0_19 = arith.constant 0 : index
      %c0_20 = arith.constant 0 : index
      %22 = vector.load %arg6[%c0_19, %c0_20] : memref<16x1xf32, #tpu.memory_space<vmem>>, vector<16x1xf32>
      tpu.vector_store %arg6[%c0_19, %c0_20], %21 {strides = array<i32>} : memref<16x1xf32, #tpu.memory_space<vmem>>, vector<16x1xf32>,
      %cst_21 = arith.constant 0.000000e+00 : f32
      %23 = vector.broadcast %cst_21 : f32 to vector<16x1xf32>
      %c0_22 = arith.constant 0 : index
      %c0_23 = arith.constant 0 : index
      %24 = vector.load %arg7[%c0_22, %c0_23] : memref<16x1xf32, #tpu.memory_space<vmem>>, vector<16x1xf32>
      tpu.vector_store %arg7[%c0_22, %c0_23], %23 {strides = array<i32>} : memref<16x1xf32, #tpu.memory_space<vmem>>, vector<16x1xf32>,
    } else {
    }
    %c0 = arith.constant 0 : index
    %c0_1 = arith.constant 0 : index
    %3 = vector.load %arg1[%c0, %c0_1] : memref<16x128xbf16, #tpu.memory_space<vmem>>, vector<16x128xbf16>
    %c0_2 = arith.constant 0 : index
    %c0_3 = arith.constant 0 : index
    %4 = vector.load %arg4[%c0_2, %c0_3] : memref<128x2048xbf16, #tpu.memory_space<vmem>>, vector<128x2048xbf16>
    %cst = arith.constant dense<0.000000e+00> : vector<16x2048xf32>
    %5 = tpu.matmul %3, %4, %cst {dimension_numbers = #tpu.dot_dimension_numbers<[1], [0], [0], [1], [0, 0, 1, 1], [], []>} : vector<16x128xbf16>, vector<128x2048xbf16>, vector<16x2048xf32> -> vector<16x2048xf32>
    %c0_4 = arith.constant 0 : index
    %c0_5 = arith.constant 0 : index
    %6 = vector.load %arg6[%c0_4, %c0_5] : memref<16x1xf32, #tpu.memory_space<vmem>>, vector<16x1xf32>
    %cst_6 = arith.constant dense<0.000000e+00> : vector<16xf32>
    %7 = vector.multi_reduction <add>, %5, %cst_6 [1] : vector<16x2048xf32> to vector<16xf32>
    %8 = vector.shape_cast %7 : vector<16xf32> to vector<16x1xf32>
    %9 = arith.addf %6, %8 : vector<16x1xf32>
    %c0_7 = arith.constant 0 : index
    %c0_8 = arith.constant 0 : index
    %10 = vector.load %arg6[%c0_7, %c0_8] : memref<16x1xf32, #tpu.memory_space<vmem>>, vector<16x1xf32>
    tpu.vector_store %arg6[%c0_7, %c0_8], %9 {strides = array<i32>} : memref<16x1xf32, #tpu.memory_space<vmem>>, vector<16x1xf32>,
    %c0_9 = arith.constant 0 : index
    %c0_10 = arith.constant 0 : index
    %11 = vector.load %arg7[%c0_9, %c0_10] : memref<16x1xf32, #tpu.memory_space<vmem>>, vector<16x1xf32>
    %12 = arith.mulf %5, %5 : vector<16x2048xf32>
    %cst_11 = arith.constant dense<0.000000e+00> : vector<16xf32>
    %13 = vector.multi_reduction <add>, %12, %cst_11 [1] : vector<16x2048xf32> to vector<16xf32>
    %14 = vector.shape_cast %13 : vector<16xf32> to vector<16x1xf32>
    %15 = arith.addf %11, %14 : vector<16x1xf32>
    %c0_12 = arith.constant 0 : index
    %c0_13 = arith.constant 0 : index
    %16 = vector.load %arg7[%c0_12, %c0_13] : memref<16x1xf32, #tpu.memory_space<vmem>>, vector<16x1xf32>
    tpu.vector_store %arg7[%c0_12, %c0_13], %15 {strides = array<i32>} : memref<16x1xf32, #tpu.memory_space<vmem>>, vector<16x1xf32>,
    %c0_14 = arith.constant 0 : index
    %c0_15 = arith.constant 0 : index
    %17 = vector.load %arg5[%c0_14, %c0_15] : memref<16x2048xf32, #tpu.memory_space<vmem>>, vector<16x2048xf32>
    tpu.vector_store %arg5[%c0_14, %c0_15], %5 {strides = array<i32>} : memref<16x2048xf32, #tpu.memory_space<vmem>>, vector<16x2048xf32>,
    %c0_i32_16 = arith.constant 0 : i32
    %18 = arith.cmpi eq, %arg0, %c0_i32_16 : i32
    %19 = arith.extui %18 : i1 to i32
    %c0_i32_17 = arith.constant 0 : i32
    %20 = arith.cmpi ne, %19, %c0_i32_17 : i32
    scf.if %20 {
      %c0_18 = arith.constant 0 : index
      %c0_19 = arith.constant 0 : index
      %21 = vector.load %arg6[%c0_18, %c0_19] : memref<16x1xf32, #tpu.memory_space<vmem>>, vector<16x1xf32>
      %cst_20 = arith.constant 4.8828125E-4 : f32
      %22 = vector.broadcast %cst_20 : f32 to vector<16x1xf32>
      %23 = arith.mulf %21, %22 : vector<16x1xf32>
      %c0_21 = arith.constant 0 : index
      %c0_22 = arith.constant 0 : index
      %24 = vector.load %arg7[%c0_21, %c0_22] : memref<16x1xf32, #tpu.memory_space<vmem>>, vector<16x1xf32>
      %cst_23 = arith.constant 4.8828125E-4 : f32
      %25 = vector.broadcast %cst_23 : f32 to vector<16x1xf32>
      %26 = arith.mulf %24, %25 : vector<16x1xf32>
      %27 = arith.mulf %23, %23 : vector<16x1xf32>
      %28 = arith.subf %26, %27 : vector<16x1xf32>
      %cst_24 = arith.constant 0.000000e+00 : f32
      %29 = vector.broadcast %cst_24 : f32 to vector<16x1xf32>
      %30 = arith.maximumf %28, %29 : vector<16x1xf32>
      %c0_25 = arith.constant 0 : index
      %c0_26 = arith.constant 0 : index
      %31 = vector.load %arg2[%c0_25, %c0_26] : memref<16x1xf32, #tpu.memory_space<vmem>>, vector<16x1xf32>
      %cst_27 = arith.constant 9.99999974E-6 : f32
      %32 = vector.broadcast %cst_27 : f32 to vector<16x1xf32>
      %33 = arith.addf %30, %32 : vector<16x1xf32>
      %34 = math.rsqrt %33 : vector<16x1xf32>
      %35 = arith.mulf %31, %34 : vector<16x1xf32>
      %c0_28 = arith.constant 0 : index
      %c0_29 = arith.constant 0 : index
      %36 = vector.load %arg3[%c0_28, %c0_29] : memref<16x1xf32, #tpu.memory_space<vmem>>, vector<16x1xf32>
      %37 = arith.mulf %23, %35 : vector<16x1xf32>
      %38 = arith.subf %36, %37 : vector<16x1xf32>
      %c0_30 = arith.constant 0 : index
      %c0_31 = arith.constant 0 : index
      %39 = vector.load %arg5[%c0_30, %c0_31] : memref<16x2048xf32, #tpu.memory_space<vmem>>, vector<16x2048xf32>
      %40 = vector.broadcast %35 : vector<16x1xf32> to vector<16x2048xf32>
      %41 = arith.mulf %39, %40 : vector<16x2048xf32>
      %42 = vector.broadcast %38 : vector<16x1xf32> to vector<16x2048xf32>
      %43 = arith.addf %41, %42 : vector<16x2048xf32>
      %cst_32 = arith.constant 0.000000e+00 : f32
      %44 = vector.broadcast %cst_32 : f32 to vector<16x2048xf32>
      %45 = arith.cmpf oge, %43, %44 : vector<16x2048xf32>
      %cst_33 = arith.constant 2.000000e-01 : f32
      %46 = vector.broadcast %cst_33 : f32 to vector<16x2048xf32>
      %47 = arith.mulf %46, %43 : vector<16x2048xf32>
      %48 = arith.select %45, %43, %47 : vector<16x2048xi1>, vector<16x2048xf32>
      %c0_34 = arith.constant 0 : index
      %c0_35 = arith.constant 0 : index
      %49 = vector.load %arg5[%c0_34, %c0_35] : memref<16x2048xf32, #tpu.memory_space<vmem>>, vector<16x2048xf32>
      tpu.vector_store %arg5[%c0_34, %c0_35], %48 {strides = array<i32>} : memref<16x2048xf32, #tpu.memory_space<vmem>>, vector<16x2048xf32>,
    } else {
    }
    return
  }
  func.func @transform_0(%arg0: i32) -> (i32, i32) {
    %c0_i32 = arith.constant 0 : i32
    %c0_i32_0 = arith.constant 0 : i32
    %c0_i32_1 = arith.constant 0 : i32
    return %c0_i32, %c0_i32_0 : i32, i32
  }
  func.func @transform_1(%arg0: i32) -> (i32, i32) {
    %c0_i32 = arith.constant 0 : i32
    %c0_i32_0 = arith.constant 0 : i32
    %c0_i32_1 = arith.constant 0 : i32
    return %c0_i32, %c0_i32_0 : i32, i32
  }
  func.func @transform_2(%arg0: i32) -> (i32, i32) {
    %c0_i32 = arith.constant 0 : i32
    %c0_i32_0 = arith.constant 0 : i32
    %c0_i32_1 = arith.constant 0 : i32
    return %c0_i32, %c0_i32_0 : i32, i32
  }
  func.func @transform_3(%arg0: i32) -> (i32, i32) {
    %c0_i32 = arith.constant 0 : i32
    %c0_i32_0 = arith.constant 0 : i32
    return %c0_i32, %arg0 : i32, i32
  }
  func.func @transform_4(%arg0: i32) -> (i32, i32) {
    %c0_i32 = arith.constant 0 : i32
    %c0_i32_0 = arith.constant 0 : i32
    %c0_i32_1 = arith.constant 0 : i32
    return %c0_i32, %c0_i32_0 : i32, i32
  }
}

module attributes {stable_mosaic.version = 11 : i64} {
  func.func @_conv_bn_lrelu_kernel(%arg0: i32, %arg1: memref<32x256xbf16, #tpu.memory_space<vmem>>, %arg2: memref<32x1xf32, #tpu.memory_space<vmem>>, %arg3: memref<32x1xf32, #tpu.memory_space<vmem>>, %arg4: memref<256x512xbf16, #tpu.memory_space<vmem>>, %arg5: memref<32x512xf32, #tpu.memory_space<vmem>>, %arg6: memref<32x1xf32, #tpu.memory_space<vmem>>, %arg7: memref<32x1xf32, #tpu.memory_space<vmem>>) attributes {dimension_semantics = [#tpu.dimension_semantics<arbitrary>], iteration_bounds = array<i64: 1>, scalar_prefetch = 0 : i64, scratch_operands = 2 : i64, tpu.core_type = #tpu.core_type<tc>, window_params = [{pipeline_mode = #tpu.pipeline_mode<synchronous>, transform_indices = @transform_0, window_bounds = array<i64: 32, 256>}, {pipeline_mode = #tpu.pipeline_mode<synchronous>, transform_indices = @transform_1, window_bounds = array<i64: 32, 1>}, {pipeline_mode = #tpu.pipeline_mode<synchronous>, transform_indices = @transform_2, window_bounds = array<i64: 32, 1>}, {transform_indices = @transform_3, window_bounds = array<i64: 256, 512>}, {pipeline_mode = #tpu.pipeline_mode<synchronous>, transform_indices = @transform_4, window_bounds = array<i64: 32, 512>}]} {
    %c0_i32 = arith.constant 0 : i32
    %0 = arith.cmpi eq, %arg0, %c0_i32 : i32
    %1 = arith.extui %0 : i1 to i32
    %c0_i32_0 = arith.constant 0 : i32
    %2 = arith.cmpi ne, %1, %c0_i32_0 : i32
    scf.if %2 {
      %cst_18 = arith.constant 0.000000e+00 : f32
      %21 = vector.broadcast %cst_18 : f32 to vector<32x1xf32>
      %c0_19 = arith.constant 0 : index
      %c0_20 = arith.constant 0 : index
      %22 = vector.load %arg6[%c0_19, %c0_20] : memref<32x1xf32, #tpu.memory_space<vmem>>, vector<32x1xf32>
      tpu.vector_store %arg6[%c0_19, %c0_20], %21 {strides = array<i32>} : memref<32x1xf32, #tpu.memory_space<vmem>>, vector<32x1xf32>,
      %cst_21 = arith.constant 0.000000e+00 : f32
      %23 = vector.broadcast %cst_21 : f32 to vector<32x1xf32>
      %c0_22 = arith.constant 0 : index
      %c0_23 = arith.constant 0 : index
      %24 = vector.load %arg7[%c0_22, %c0_23] : memref<32x1xf32, #tpu.memory_space<vmem>>, vector<32x1xf32>
      tpu.vector_store %arg7[%c0_22, %c0_23], %23 {strides = array<i32>} : memref<32x1xf32, #tpu.memory_space<vmem>>, vector<32x1xf32>,
    } else {
    }
    %c0 = arith.constant 0 : index
    %c0_1 = arith.constant 0 : index
    %3 = vector.load %arg1[%c0, %c0_1] : memref<32x256xbf16, #tpu.memory_space<vmem>>, vector<32x256xbf16>
    %c0_2 = arith.constant 0 : index
    %c0_3 = arith.constant 0 : index
    %4 = vector.load %arg4[%c0_2, %c0_3] : memref<256x512xbf16, #tpu.memory_space<vmem>>, vector<256x512xbf16>
    %cst = arith.constant dense<0.000000e+00> : vector<32x512xf32>
    %5 = tpu.matmul %3, %4, %cst {dimension_numbers = #tpu.dot_dimension_numbers<[1], [0], [0], [1], [0, 0, 1, 1], [], []>} : vector<32x256xbf16>, vector<256x512xbf16>, vector<32x512xf32> -> vector<32x512xf32>
    %c0_4 = arith.constant 0 : index
    %c0_5 = arith.constant 0 : index
    %6 = vector.load %arg6[%c0_4, %c0_5] : memref<32x1xf32, #tpu.memory_space<vmem>>, vector<32x1xf32>
    %cst_6 = arith.constant dense<0.000000e+00> : vector<32xf32>
    %7 = vector.multi_reduction <add>, %5, %cst_6 [1] : vector<32x512xf32> to vector<32xf32>
    %8 = vector.shape_cast %7 : vector<32xf32> to vector<32x1xf32>
    %9 = arith.addf %6, %8 : vector<32x1xf32>
    %c0_7 = arith.constant 0 : index
    %c0_8 = arith.constant 0 : index
    %10 = vector.load %arg6[%c0_7, %c0_8] : memref<32x1xf32, #tpu.memory_space<vmem>>, vector<32x1xf32>
    tpu.vector_store %arg6[%c0_7, %c0_8], %9 {strides = array<i32>} : memref<32x1xf32, #tpu.memory_space<vmem>>, vector<32x1xf32>,
    %c0_9 = arith.constant 0 : index
    %c0_10 = arith.constant 0 : index
    %11 = vector.load %arg7[%c0_9, %c0_10] : memref<32x1xf32, #tpu.memory_space<vmem>>, vector<32x1xf32>
    %12 = arith.mulf %5, %5 : vector<32x512xf32>
    %cst_11 = arith.constant dense<0.000000e+00> : vector<32xf32>
    %13 = vector.multi_reduction <add>, %12, %cst_11 [1] : vector<32x512xf32> to vector<32xf32>
    %14 = vector.shape_cast %13 : vector<32xf32> to vector<32x1xf32>
    %15 = arith.addf %11, %14 : vector<32x1xf32>
    %c0_12 = arith.constant 0 : index
    %c0_13 = arith.constant 0 : index
    %16 = vector.load %arg7[%c0_12, %c0_13] : memref<32x1xf32, #tpu.memory_space<vmem>>, vector<32x1xf32>
    tpu.vector_store %arg7[%c0_12, %c0_13], %15 {strides = array<i32>} : memref<32x1xf32, #tpu.memory_space<vmem>>, vector<32x1xf32>,
    %c0_14 = arith.constant 0 : index
    %c0_15 = arith.constant 0 : index
    %17 = vector.load %arg5[%c0_14, %c0_15] : memref<32x512xf32, #tpu.memory_space<vmem>>, vector<32x512xf32>
    tpu.vector_store %arg5[%c0_14, %c0_15], %5 {strides = array<i32>} : memref<32x512xf32, #tpu.memory_space<vmem>>, vector<32x512xf32>,
    %c0_i32_16 = arith.constant 0 : i32
    %18 = arith.cmpi eq, %arg0, %c0_i32_16 : i32
    %19 = arith.extui %18 : i1 to i32
    %c0_i32_17 = arith.constant 0 : i32
    %20 = arith.cmpi ne, %19, %c0_i32_17 : i32
    scf.if %20 {
      %c0_18 = arith.constant 0 : index
      %c0_19 = arith.constant 0 : index
      %21 = vector.load %arg6[%c0_18, %c0_19] : memref<32x1xf32, #tpu.memory_space<vmem>>, vector<32x1xf32>
      %cst_20 = arith.constant 0.001953125 : f32
      %22 = vector.broadcast %cst_20 : f32 to vector<32x1xf32>
      %23 = arith.mulf %21, %22 : vector<32x1xf32>
      %c0_21 = arith.constant 0 : index
      %c0_22 = arith.constant 0 : index
      %24 = vector.load %arg7[%c0_21, %c0_22] : memref<32x1xf32, #tpu.memory_space<vmem>>, vector<32x1xf32>
      %cst_23 = arith.constant 0.001953125 : f32
      %25 = vector.broadcast %cst_23 : f32 to vector<32x1xf32>
      %26 = arith.mulf %24, %25 : vector<32x1xf32>
      %27 = arith.mulf %23, %23 : vector<32x1xf32>
      %28 = arith.subf %26, %27 : vector<32x1xf32>
      %cst_24 = arith.constant 0.000000e+00 : f32
      %29 = vector.broadcast %cst_24 : f32 to vector<32x1xf32>
      %30 = arith.maximumf %28, %29 : vector<32x1xf32>
      %c0_25 = arith.constant 0 : index
      %c0_26 = arith.constant 0 : index
      %31 = vector.load %arg2[%c0_25, %c0_26] : memref<32x1xf32, #tpu.memory_space<vmem>>, vector<32x1xf32>
      %cst_27 = arith.constant 9.99999974E-6 : f32
      %32 = vector.broadcast %cst_27 : f32 to vector<32x1xf32>
      %33 = arith.addf %30, %32 : vector<32x1xf32>
      %34 = math.rsqrt %33 : vector<32x1xf32>
      %35 = arith.mulf %31, %34 : vector<32x1xf32>
      %c0_28 = arith.constant 0 : index
      %c0_29 = arith.constant 0 : index
      %36 = vector.load %arg3[%c0_28, %c0_29] : memref<32x1xf32, #tpu.memory_space<vmem>>, vector<32x1xf32>
      %37 = arith.mulf %23, %35 : vector<32x1xf32>
      %38 = arith.subf %36, %37 : vector<32x1xf32>
      %c0_30 = arith.constant 0 : index
      %c0_31 = arith.constant 0 : index
      %39 = vector.load %arg5[%c0_30, %c0_31] : memref<32x512xf32, #tpu.memory_space<vmem>>, vector<32x512xf32>
      %40 = vector.broadcast %35 : vector<32x1xf32> to vector<32x512xf32>
      %41 = arith.mulf %39, %40 : vector<32x512xf32>
      %42 = vector.broadcast %38 : vector<32x1xf32> to vector<32x512xf32>
      %43 = arith.addf %41, %42 : vector<32x512xf32>
      %cst_32 = arith.constant 0.000000e+00 : f32
      %44 = vector.broadcast %cst_32 : f32 to vector<32x512xf32>
      %45 = arith.cmpf oge, %43, %44 : vector<32x512xf32>
      %cst_33 = arith.constant 2.000000e-01 : f32
      %46 = vector.broadcast %cst_33 : f32 to vector<32x512xf32>
      %47 = arith.mulf %46, %43 : vector<32x512xf32>
      %48 = arith.select %45, %43, %47 : vector<32x512xi1>, vector<32x512xf32>
      %c0_34 = arith.constant 0 : index
      %c0_35 = arith.constant 0 : index
      %49 = vector.load %arg5[%c0_34, %c0_35] : memref<32x512xf32, #tpu.memory_space<vmem>>, vector<32x512xf32>
      tpu.vector_store %arg5[%c0_34, %c0_35], %48 {strides = array<i32>} : memref<32x512xf32, #tpu.memory_space<vmem>>, vector<32x512xf32>,
    } else {
    }
    return
  }
  func.func @transform_0(%arg0: i32) -> (i32, i32) {
    %c0_i32 = arith.constant 0 : i32
    %c0_i32_0 = arith.constant 0 : i32
    %c0_i32_1 = arith.constant 0 : i32
    return %c0_i32, %c0_i32_0 : i32, i32
  }
  func.func @transform_1(%arg0: i32) -> (i32, i32) {
    %c0_i32 = arith.constant 0 : i32
    %c0_i32_0 = arith.constant 0 : i32
    %c0_i32_1 = arith.constant 0 : i32
    return %c0_i32, %c0_i32_0 : i32, i32
  }
  func.func @transform_2(%arg0: i32) -> (i32, i32) {
    %c0_i32 = arith.constant 0 : i32
    %c0_i32_0 = arith.constant 0 : i32
    %c0_i32_1 = arith.constant 0 : i32
    return %c0_i32, %c0_i32_0 : i32, i32
  }
  func.func @transform_3(%arg0: i32) -> (i32, i32) {
    %c0_i32 = arith.constant 0 : i32
    %c0_i32_0 = arith.constant 0 : i32
    return %c0_i32, %arg0 : i32, i32
  }
  func.func @transform_4(%arg0: i32) -> (i32, i32) {
    %c0_i32 = arith.constant 0 : i32
    %c0_i32_0 = arith.constant 0 : i32
    %c0_i32_1 = arith.constant 0 : i32
    return %c0_i32, %c0_i32_0 : i32, i32
  }
}

module attributes {stable_mosaic.version = 11 : i64} {
  func.func @_conv_bn_lrelu_kernel(%arg0: i32, %arg1: memref<64x512xbf16, #tpu.memory_space<vmem>>, %arg2: memref<64x1xf32, #tpu.memory_space<vmem>>, %arg3: memref<64x1xf32, #tpu.memory_space<vmem>>, %arg4: memref<512x128xbf16, #tpu.memory_space<vmem>>, %arg5: memref<64x128xf32, #tpu.memory_space<vmem>>, %arg6: memref<64x1xf32, #tpu.memory_space<vmem>>, %arg7: memref<64x1xf32, #tpu.memory_space<vmem>>) attributes {dimension_semantics = [#tpu.dimension_semantics<arbitrary>], iteration_bounds = array<i64: 1>, scalar_prefetch = 0 : i64, scratch_operands = 2 : i64, tpu.core_type = #tpu.core_type<tc>, window_params = [{pipeline_mode = #tpu.pipeline_mode<synchronous>, transform_indices = @transform_0, window_bounds = array<i64: 64, 512>}, {pipeline_mode = #tpu.pipeline_mode<synchronous>, transform_indices = @transform_1, window_bounds = array<i64: 64, 1>}, {pipeline_mode = #tpu.pipeline_mode<synchronous>, transform_indices = @transform_2, window_bounds = array<i64: 64, 1>}, {transform_indices = @transform_3, window_bounds = array<i64: 512, 128>}, {pipeline_mode = #tpu.pipeline_mode<synchronous>, transform_indices = @transform_4, window_bounds = array<i64: 64, 128>}]} {
    %c0_i32 = arith.constant 0 : i32
    %0 = arith.cmpi eq, %arg0, %c0_i32 : i32
    %1 = arith.extui %0 : i1 to i32
    %c0_i32_0 = arith.constant 0 : i32
    %2 = arith.cmpi ne, %1, %c0_i32_0 : i32
    scf.if %2 {
      %cst_18 = arith.constant 0.000000e+00 : f32
      %21 = vector.broadcast %cst_18 : f32 to vector<64x1xf32>
      %c0_19 = arith.constant 0 : index
      %c0_20 = arith.constant 0 : index
      %22 = vector.load %arg6[%c0_19, %c0_20] : memref<64x1xf32, #tpu.memory_space<vmem>>, vector<64x1xf32>
      tpu.vector_store %arg6[%c0_19, %c0_20], %21 {strides = array<i32>} : memref<64x1xf32, #tpu.memory_space<vmem>>, vector<64x1xf32>,
      %cst_21 = arith.constant 0.000000e+00 : f32
      %23 = vector.broadcast %cst_21 : f32 to vector<64x1xf32>
      %c0_22 = arith.constant 0 : index
      %c0_23 = arith.constant 0 : index
      %24 = vector.load %arg7[%c0_22, %c0_23] : memref<64x1xf32, #tpu.memory_space<vmem>>, vector<64x1xf32>
      tpu.vector_store %arg7[%c0_22, %c0_23], %23 {strides = array<i32>} : memref<64x1xf32, #tpu.memory_space<vmem>>, vector<64x1xf32>,
    } else {
    }
    %c0 = arith.constant 0 : index
    %c0_1 = arith.constant 0 : index
    %3 = vector.load %arg1[%c0, %c0_1] : memref<64x512xbf16, #tpu.memory_space<vmem>>, vector<64x512xbf16>
    %c0_2 = arith.constant 0 : index
    %c0_3 = arith.constant 0 : index
    %4 = vector.load %arg4[%c0_2, %c0_3] : memref<512x128xbf16, #tpu.memory_space<vmem>>, vector<512x128xbf16>
    %cst = arith.constant dense<0.000000e+00> : vector<64x128xf32>
    %5 = tpu.matmul %3, %4, %cst {dimension_numbers = #tpu.dot_dimension_numbers<[1], [0], [0], [1], [0, 0, 1, 1], [], []>} : vector<64x512xbf16>, vector<512x128xbf16>, vector<64x128xf32> -> vector<64x128xf32>
    %c0_4 = arith.constant 0 : index
    %c0_5 = arith.constant 0 : index
    %6 = vector.load %arg6[%c0_4, %c0_5] : memref<64x1xf32, #tpu.memory_space<vmem>>, vector<64x1xf32>
    %cst_6 = arith.constant dense<0.000000e+00> : vector<64xf32>
    %7 = vector.multi_reduction <add>, %5, %cst_6 [1] : vector<64x128xf32> to vector<64xf32>
    %8 = vector.shape_cast %7 : vector<64xf32> to vector<64x1xf32>
    %9 = arith.addf %6, %8 : vector<64x1xf32>
    %c0_7 = arith.constant 0 : index
    %c0_8 = arith.constant 0 : index
    %10 = vector.load %arg6[%c0_7, %c0_8] : memref<64x1xf32, #tpu.memory_space<vmem>>, vector<64x1xf32>
    tpu.vector_store %arg6[%c0_7, %c0_8], %9 {strides = array<i32>} : memref<64x1xf32, #tpu.memory_space<vmem>>, vector<64x1xf32>,
    %c0_9 = arith.constant 0 : index
    %c0_10 = arith.constant 0 : index
    %11 = vector.load %arg7[%c0_9, %c0_10] : memref<64x1xf32, #tpu.memory_space<vmem>>, vector<64x1xf32>
    %12 = arith.mulf %5, %5 : vector<64x128xf32>
    %cst_11 = arith.constant dense<0.000000e+00> : vector<64xf32>
    %13 = vector.multi_reduction <add>, %12, %cst_11 [1] : vector<64x128xf32> to vector<64xf32>
    %14 = vector.shape_cast %13 : vector<64xf32> to vector<64x1xf32>
    %15 = arith.addf %11, %14 : vector<64x1xf32>
    %c0_12 = arith.constant 0 : index
    %c0_13 = arith.constant 0 : index
    %16 = vector.load %arg7[%c0_12, %c0_13] : memref<64x1xf32, #tpu.memory_space<vmem>>, vector<64x1xf32>
    tpu.vector_store %arg7[%c0_12, %c0_13], %15 {strides = array<i32>} : memref<64x1xf32, #tpu.memory_space<vmem>>, vector<64x1xf32>,
    %c0_14 = arith.constant 0 : index
    %c0_15 = arith.constant 0 : index
    %17 = vector.load %arg5[%c0_14, %c0_15] : memref<64x128xf32, #tpu.memory_space<vmem>>, vector<64x128xf32>
    tpu.vector_store %arg5[%c0_14, %c0_15], %5 {strides = array<i32>} : memref<64x128xf32, #tpu.memory_space<vmem>>, vector<64x128xf32>,
    %c0_i32_16 = arith.constant 0 : i32
    %18 = arith.cmpi eq, %arg0, %c0_i32_16 : i32
    %19 = arith.extui %18 : i1 to i32
    %c0_i32_17 = arith.constant 0 : i32
    %20 = arith.cmpi ne, %19, %c0_i32_17 : i32
    scf.if %20 {
      %c0_18 = arith.constant 0 : index
      %c0_19 = arith.constant 0 : index
      %21 = vector.load %arg6[%c0_18, %c0_19] : memref<64x1xf32, #tpu.memory_space<vmem>>, vector<64x1xf32>
      %cst_20 = arith.constant 7.812500e-03 : f32
      %22 = vector.broadcast %cst_20 : f32 to vector<64x1xf32>
      %23 = arith.mulf %21, %22 : vector<64x1xf32>
      %c0_21 = arith.constant 0 : index
      %c0_22 = arith.constant 0 : index
      %24 = vector.load %arg7[%c0_21, %c0_22] : memref<64x1xf32, #tpu.memory_space<vmem>>, vector<64x1xf32>
      %cst_23 = arith.constant 7.812500e-03 : f32
      %25 = vector.broadcast %cst_23 : f32 to vector<64x1xf32>
      %26 = arith.mulf %24, %25 : vector<64x1xf32>
      %27 = arith.mulf %23, %23 : vector<64x1xf32>
      %28 = arith.subf %26, %27 : vector<64x1xf32>
      %cst_24 = arith.constant 0.000000e+00 : f32
      %29 = vector.broadcast %cst_24 : f32 to vector<64x1xf32>
      %30 = arith.maximumf %28, %29 : vector<64x1xf32>
      %c0_25 = arith.constant 0 : index
      %c0_26 = arith.constant 0 : index
      %31 = vector.load %arg2[%c0_25, %c0_26] : memref<64x1xf32, #tpu.memory_space<vmem>>, vector<64x1xf32>
      %cst_27 = arith.constant 9.99999974E-6 : f32
      %32 = vector.broadcast %cst_27 : f32 to vector<64x1xf32>
      %33 = arith.addf %30, %32 : vector<64x1xf32>
      %34 = math.rsqrt %33 : vector<64x1xf32>
      %35 = arith.mulf %31, %34 : vector<64x1xf32>
      %c0_28 = arith.constant 0 : index
      %c0_29 = arith.constant 0 : index
      %36 = vector.load %arg3[%c0_28, %c0_29] : memref<64x1xf32, #tpu.memory_space<vmem>>, vector<64x1xf32>
      %37 = arith.mulf %23, %35 : vector<64x1xf32>
      %38 = arith.subf %36, %37 : vector<64x1xf32>
      %c0_30 = arith.constant 0 : index
      %c0_31 = arith.constant 0 : index
      %39 = vector.load %arg5[%c0_30, %c0_31] : memref<64x128xf32, #tpu.memory_space<vmem>>, vector<64x128xf32>
      %40 = vector.broadcast %35 : vector<64x1xf32> to vector<64x128xf32>
      %41 = arith.mulf %39, %40 : vector<64x128xf32>
      %42 = vector.broadcast %38 : vector<64x1xf32> to vector<64x128xf32>
      %43 = arith.addf %41, %42 : vector<64x128xf32>
      %cst_32 = arith.constant 0.000000e+00 : f32
      %44 = vector.broadcast %cst_32 : f32 to vector<64x128xf32>
      %45 = arith.cmpf oge, %43, %44 : vector<64x128xf32>
      %cst_33 = arith.constant 2.000000e-01 : f32
      %46 = vector.broadcast %cst_33 : f32 to vector<64x128xf32>
      %47 = arith.mulf %46, %43 : vector<64x128xf32>
      %48 = arith.select %45, %43, %47 : vector<64x128xi1>, vector<64x128xf32>
      %c0_34 = arith.constant 0 : index
      %c0_35 = arith.constant 0 : index
      %49 = vector.load %arg5[%c0_34, %c0_35] : memref<64x128xf32, #tpu.memory_space<vmem>>, vector<64x128xf32>
      tpu.vector_store %arg5[%c0_34, %c0_35], %48 {strides = array<i32>} : memref<64x128xf32, #tpu.memory_space<vmem>>, vector<64x128xf32>,
    } else {
    }
    return
  }
  func.func @transform_0(%arg0: i32) -> (i32, i32) {
    %c0_i32 = arith.constant 0 : i32
    %c0_i32_0 = arith.constant 0 : i32
    %c0_i32_1 = arith.constant 0 : i32
    return %c0_i32, %c0_i32_0 : i32, i32
  }
  func.func @transform_1(%arg0: i32) -> (i32, i32) {
    %c0_i32 = arith.constant 0 : i32
    %c0_i32_0 = arith.constant 0 : i32
    %c0_i32_1 = arith.constant 0 : i32
    return %c0_i32, %c0_i32_0 : i32, i32
  }
  func.func @transform_2(%arg0: i32) -> (i32, i32) {
    %c0_i32 = arith.constant 0 : i32
    %c0_i32_0 = arith.constant 0 : i32
    %c0_i32_1 = arith.constant 0 : i32
    return %c0_i32, %c0_i32_0 : i32, i32
  }
  func.func @transform_3(%arg0: i32) -> (i32, i32) {
    %c0_i32 = arith.constant 0 : i32
    %c0_i32_0 = arith.constant 0 : i32
    return %c0_i32, %arg0 : i32, i32
  }
  func.func @transform_4(%arg0: i32) -> (i32, i32) {
    %c0_i32 = arith.constant 0 : i32
    %c0_i32_0 = arith.constant 0 : i32
    %c0_i32_1 = arith.constant 0 : i32
    return %c0_i32, %c0_i32_0 : i32, i32
  }
}

module attributes {stable_mosaic.version = 11 : i64} {
  func.func @_conv_bn_lrelu_kernel(%arg0: i32, %arg1: memref<128x1024xbf16, #tpu.memory_space<vmem>>, %arg2: memref<128x1xf32, #tpu.memory_space<vmem>>, %arg3: memref<128x1xf32, #tpu.memory_space<vmem>>, %arg4: memref<1024x32xbf16, #tpu.memory_space<vmem>>, %arg5: memref<128x32xf32, #tpu.memory_space<vmem>>, %arg6: memref<128x1xf32, #tpu.memory_space<vmem>>, %arg7: memref<128x1xf32, #tpu.memory_space<vmem>>) attributes {dimension_semantics = [#tpu.dimension_semantics<arbitrary>], iteration_bounds = array<i64: 1>, scalar_prefetch = 0 : i64, scratch_operands = 2 : i64, tpu.core_type = #tpu.core_type<tc>, window_params = [{pipeline_mode = #tpu.pipeline_mode<synchronous>, transform_indices = @transform_0, window_bounds = array<i64: 128, 1024>}, {pipeline_mode = #tpu.pipeline_mode<synchronous>, transform_indices = @transform_1, window_bounds = array<i64: 128, 1>}, {pipeline_mode = #tpu.pipeline_mode<synchronous>, transform_indices = @transform_2, window_bounds = array<i64: 128, 1>}, {transform_indices = @transform_3, window_bounds = array<i64: 1024, 32>}, {pipeline_mode = #tpu.pipeline_mode<synchronous>, transform_indices = @transform_4, window_bounds = array<i64: 128, 32>}]} {
    %c0_i32 = arith.constant 0 : i32
    %0 = arith.cmpi eq, %arg0, %c0_i32 : i32
    %1 = arith.extui %0 : i1 to i32
    %c0_i32_0 = arith.constant 0 : i32
    %2 = arith.cmpi ne, %1, %c0_i32_0 : i32
    scf.if %2 {
      %cst_18 = arith.constant 0.000000e+00 : f32
      %21 = vector.broadcast %cst_18 : f32 to vector<128x1xf32>
      %c0_19 = arith.constant 0 : index
      %c0_20 = arith.constant 0 : index
      %22 = vector.load %arg6[%c0_19, %c0_20] : memref<128x1xf32, #tpu.memory_space<vmem>>, vector<128x1xf32>
      tpu.vector_store %arg6[%c0_19, %c0_20], %21 {strides = array<i32>} : memref<128x1xf32, #tpu.memory_space<vmem>>, vector<128x1xf32>,
      %cst_21 = arith.constant 0.000000e+00 : f32
      %23 = vector.broadcast %cst_21 : f32 to vector<128x1xf32>
      %c0_22 = arith.constant 0 : index
      %c0_23 = arith.constant 0 : index
      %24 = vector.load %arg7[%c0_22, %c0_23] : memref<128x1xf32, #tpu.memory_space<vmem>>, vector<128x1xf32>
      tpu.vector_store %arg7[%c0_22, %c0_23], %23 {strides = array<i32>} : memref<128x1xf32, #tpu.memory_space<vmem>>, vector<128x1xf32>,
    } else {
    }
    %c0 = arith.constant 0 : index
    %c0_1 = arith.constant 0 : index
    %3 = vector.load %arg1[%c0, %c0_1] : memref<128x1024xbf16, #tpu.memory_space<vmem>>, vector<128x1024xbf16>
    %c0_2 = arith.constant 0 : index
    %c0_3 = arith.constant 0 : index
    %4 = vector.load %arg4[%c0_2, %c0_3] : memref<1024x32xbf16, #tpu.memory_space<vmem>>, vector<1024x32xbf16>
    %cst = arith.constant dense<0.000000e+00> : vector<128x32xf32>
    %5 = tpu.matmul %3, %4, %cst {dimension_numbers = #tpu.dot_dimension_numbers<[1], [0], [0], [1], [0, 0, 1, 1], [], []>} : vector<128x1024xbf16>, vector<1024x32xbf16>, vector<128x32xf32> -> vector<128x32xf32>
    %c0_4 = arith.constant 0 : index
    %c0_5 = arith.constant 0 : index
    %6 = vector.load %arg6[%c0_4, %c0_5] : memref<128x1xf32, #tpu.memory_space<vmem>>, vector<128x1xf32>
    %cst_6 = arith.constant dense<0.000000e+00> : vector<128xf32>
    %7 = vector.multi_reduction <add>, %5, %cst_6 [1] : vector<128x32xf32> to vector<128xf32>
    %8 = vector.shape_cast %7 : vector<128xf32> to vector<128x1xf32>
    %9 = arith.addf %6, %8 : vector<128x1xf32>
    %c0_7 = arith.constant 0 : index
    %c0_8 = arith.constant 0 : index
    %10 = vector.load %arg6[%c0_7, %c0_8] : memref<128x1xf32, #tpu.memory_space<vmem>>, vector<128x1xf32>
    tpu.vector_store %arg6[%c0_7, %c0_8], %9 {strides = array<i32>} : memref<128x1xf32, #tpu.memory_space<vmem>>, vector<128x1xf32>,
    %c0_9 = arith.constant 0 : index
    %c0_10 = arith.constant 0 : index
    %11 = vector.load %arg7[%c0_9, %c0_10] : memref<128x1xf32, #tpu.memory_space<vmem>>, vector<128x1xf32>
    %12 = arith.mulf %5, %5 : vector<128x32xf32>
    %cst_11 = arith.constant dense<0.000000e+00> : vector<128xf32>
    %13 = vector.multi_reduction <add>, %12, %cst_11 [1] : vector<128x32xf32> to vector<128xf32>
    %14 = vector.shape_cast %13 : vector<128xf32> to vector<128x1xf32>
    %15 = arith.addf %11, %14 : vector<128x1xf32>
    %c0_12 = arith.constant 0 : index
    %c0_13 = arith.constant 0 : index
    %16 = vector.load %arg7[%c0_12, %c0_13] : memref<128x1xf32, #tpu.memory_space<vmem>>, vector<128x1xf32>
    tpu.vector_store %arg7[%c0_12, %c0_13], %15 {strides = array<i32>} : memref<128x1xf32, #tpu.memory_space<vmem>>, vector<128x1xf32>,
    %c0_14 = arith.constant 0 : index
    %c0_15 = arith.constant 0 : index
    %17 = vector.load %arg5[%c0_14, %c0_15] : memref<128x32xf32, #tpu.memory_space<vmem>>, vector<128x32xf32>
    tpu.vector_store %arg5[%c0_14, %c0_15], %5 {strides = array<i32>} : memref<128x32xf32, #tpu.memory_space<vmem>>, vector<128x32xf32>,
    %c0_i32_16 = arith.constant 0 : i32
    %18 = arith.cmpi eq, %arg0, %c0_i32_16 : i32
    %19 = arith.extui %18 : i1 to i32
    %c0_i32_17 = arith.constant 0 : i32
    %20 = arith.cmpi ne, %19, %c0_i32_17 : i32
    scf.if %20 {
      %c0_18 = arith.constant 0 : index
      %c0_19 = arith.constant 0 : index
      %21 = vector.load %arg6[%c0_18, %c0_19] : memref<128x1xf32, #tpu.memory_space<vmem>>, vector<128x1xf32>
      %cst_20 = arith.constant 3.125000e-02 : f32
      %22 = vector.broadcast %cst_20 : f32 to vector<128x1xf32>
      %23 = arith.mulf %21, %22 : vector<128x1xf32>
      %c0_21 = arith.constant 0 : index
      %c0_22 = arith.constant 0 : index
      %24 = vector.load %arg7[%c0_21, %c0_22] : memref<128x1xf32, #tpu.memory_space<vmem>>, vector<128x1xf32>
      %cst_23 = arith.constant 3.125000e-02 : f32
      %25 = vector.broadcast %cst_23 : f32 to vector<128x1xf32>
      %26 = arith.mulf %24, %25 : vector<128x1xf32>
      %27 = arith.mulf %23, %23 : vector<128x1xf32>
      %28 = arith.subf %26, %27 : vector<128x1xf32>
      %cst_24 = arith.constant 0.000000e+00 : f32
      %29 = vector.broadcast %cst_24 : f32 to vector<128x1xf32>
      %30 = arith.maximumf %28, %29 : vector<128x1xf32>
      %c0_25 = arith.constant 0 : index
      %c0_26 = arith.constant 0 : index
      %31 = vector.load %arg2[%c0_25, %c0_26] : memref<128x1xf32, #tpu.memory_space<vmem>>, vector<128x1xf32>
      %cst_27 = arith.constant 9.99999974E-6 : f32
      %32 = vector.broadcast %cst_27 : f32 to vector<128x1xf32>
      %33 = arith.addf %30, %32 : vector<128x1xf32>
      %34 = math.rsqrt %33 : vector<128x1xf32>
      %35 = arith.mulf %31, %34 : vector<128x1xf32>
      %c0_28 = arith.constant 0 : index
      %c0_29 = arith.constant 0 : index
      %36 = vector.load %arg3[%c0_28, %c0_29] : memref<128x1xf32, #tpu.memory_space<vmem>>, vector<128x1xf32>
      %37 = arith.mulf %23, %35 : vector<128x1xf32>
      %38 = arith.subf %36, %37 : vector<128x1xf32>
      %c0_30 = arith.constant 0 : index
      %c0_31 = arith.constant 0 : index
      %39 = vector.load %arg5[%c0_30, %c0_31] : memref<128x32xf32, #tpu.memory_space<vmem>>, vector<128x32xf32>
      %40 = vector.broadcast %35 : vector<128x1xf32> to vector<128x32xf32>
      %41 = arith.mulf %39, %40 : vector<128x32xf32>
      %42 = vector.broadcast %38 : vector<128x1xf32> to vector<128x32xf32>
      %43 = arith.addf %41, %42 : vector<128x32xf32>
      %cst_32 = arith.constant 0.000000e+00 : f32
      %44 = vector.broadcast %cst_32 : f32 to vector<128x32xf32>
      %45 = arith.cmpf oge, %43, %44 : vector<128x32xf32>
      %cst_33 = arith.constant 2.000000e-01 : f32
      %46 = vector.broadcast %cst_33 : f32 to vector<128x32xf32>
      %47 = arith.mulf %46, %43 : vector<128x32xf32>
      %48 = arith.select %45, %43, %47 : vector<128x32xi1>, vector<128x32xf32>
      %c0_34 = arith.constant 0 : index
      %c0_35 = arith.constant 0 : index
      %49 = vector.load %arg5[%c0_34, %c0_35] : memref<128x32xf32, #tpu.memory_space<vmem>>, vector<128x32xf32>
      tpu.vector_store %arg5[%c0_34, %c0_35], %48 {strides = array<i32>} : memref<128x32xf32, #tpu.memory_space<vmem>>, vector<128x32xf32>,
    } else {
    }
    return
  }
  func.func @transform_0(%arg0: i32) -> (i32, i32) {
    %c0_i32 = arith.constant 0 : i32
    %c0_i32_0 = arith.constant 0 : i32
    %c0_i32_1 = arith.constant 0 : i32
    return %c0_i32, %c0_i32_0 : i32, i32
  }
  func.func @transform_1(%arg0: i32) -> (i32, i32) {
    %c0_i32 = arith.constant 0 : i32
    %c0_i32_0 = arith.constant 0 : i32
    %c0_i32_1 = arith.constant 0 : i32
    return %c0_i32, %c0_i32_0 : i32, i32
  }
  func.func @transform_2(%arg0: i32) -> (i32, i32) {
    %c0_i32 = arith.constant 0 : i32
    %c0_i32_0 = arith.constant 0 : i32
    %c0_i32_1 = arith.constant 0 : i32
    return %c0_i32, %c0_i32_0 : i32, i32
  }
  func.func @transform_3(%arg0: i32) -> (i32, i32) {
    %c0_i32 = arith.constant 0 : i32
    %c0_i32_0 = arith.constant 0 : i32
    return %c0_i32, %arg0 : i32, i32
  }
  func.func @transform_4(%arg0: i32) -> (i32, i32) {
    %c0_i32 = arith.constant 0 : i32
    %c0_i32_0 = arith.constant 0 : i32
    %c0_i32_1 = arith.constant 0 : i32
    return %c0_i32, %c0_i32_0 : i32, i32
  }
}

module attributes {stable_mosaic.version = 11 : i64} {
  func.func @_head_conv_kernel(%arg0: i32, %arg1: memref<2048x1xbf16, #tpu.memory_space<vmem>>, %arg2: memref<2048x2xbf16, #tpu.memory_space<vmem>>, %arg3: memref<1x2xf32, #tpu.memory_space<vmem>>) attributes {dimension_semantics = [#tpu.dimension_semantics<arbitrary>], iteration_bounds = array<i64: 1>, scalar_prefetch = 0 : i64, scratch_operands = 0 : i64, tpu.core_type = #tpu.core_type<tc>, window_params = [{pipeline_mode = #tpu.pipeline_mode<synchronous>, transform_indices = @transform_0, window_bounds = array<i64: 2048, 1>}, {pipeline_mode = #tpu.pipeline_mode<synchronous>, transform_indices = @transform_1, window_bounds = array<i64: 2048, 2>}, {pipeline_mode = #tpu.pipeline_mode<synchronous>, transform_indices = @transform_2, window_bounds = array<i64: 1, 2>}]} {
    %c0 = arith.constant 0 : index
    %c0_0 = arith.constant 0 : index
    %0 = vector.load %arg1[%c0, %c0_0] : memref<2048x1xbf16, #tpu.memory_space<vmem>>, vector<2048x1xbf16>
    %1 = arith.extf %0 : vector<2048x1xbf16> to vector<2048x1xf32>
    %c0_1 = arith.constant 0 : index
    %c0_2 = arith.constant 0 : index
    %2 = vector.load %arg2[%c0_1, %c0_2] : memref<2048x2xbf16, #tpu.memory_space<vmem>>, vector<2048x2xbf16>
    %3 = arith.extf %2 : vector<2048x2xbf16> to vector<2048x2xf32>
    %4 = vector.broadcast %1 : vector<2048x1xf32> to vector<2048x2xf32>
    %5 = arith.mulf %4, %3 : vector<2048x2xf32>
    %cst = arith.constant dense<0.000000e+00> : vector<2xf32>
    %6 = vector.multi_reduction <add>, %5, %cst [0] : vector<2048x2xf32> to vector<2xf32>
    %7 = vector.shape_cast %6 : vector<2xf32> to vector<1x2xf32>
    %c0_3 = arith.constant 0 : index
    %c0_4 = arith.constant 0 : index
    %8 = vector.load %arg3[%c0_3, %c0_4] : memref<1x2xf32, #tpu.memory_space<vmem>>, vector<1x2xf32>
    tpu.vector_store %arg3[%c0_3, %c0_4], %7 {strides = array<i32>} : memref<1x2xf32, #tpu.memory_space<vmem>>, vector<1x2xf32>,
    return
  }
  func.func @transform_0(%arg0: i32) -> (i32, i32) {
    %c0_i32 = arith.constant 0 : i32
    %c0_i32_0 = arith.constant 0 : i32
    %c0_i32_1 = arith.constant 0 : i32
    return %c0_i32, %c0_i32_0 : i32, i32
  }
  func.func @transform_1(%arg0: i32) -> (i32, i32) {
    %c0_i32 = arith.constant 0 : i32
    %c0_i32_0 = arith.constant 0 : i32
    %c0_i32_1 = arith.constant 0 : i32
    return %c0_i32, %c0_i32_0 : i32, i32
  }
  func.func @transform_2(%arg0: i32) -> (i32, i32) {
    %c0_i32 = arith.constant 0 : i32
    %c0_i32_0 = arith.constant 0 : i32
    %c0_i32_1 = arith.constant 0 : i32
    return %c0_i32, %c0_i32_0 : i32, i32
  }
}

</mosaic_0001>

<bundles_post_ra>
// kernel: discriminator_forward.6
= control target key start
LH: loop header
LB: loop body
LE: loop exit
PB: predicated region body
PF: predicated region fallthrough
CT: control target
= control target key end

     0   :  { %s2790_s15 = smov 0   ;;  %s2792_s16 = smov 0   ;;  %s4292_s0 = inlined_call_operand.vmem [shape: bf16[8,64], index: 0, kind: input, shape index: {}]   ;;  %s4293_s1 = inlined_call_operand.vmem [shape: f32[8,1], index: 1, kind: input, shape index: {}]   ;;  %s4294_s2 = inlined_call_operand.vmem [shape: f32[8,1], index: 2, kind: input, shape index: {}]   ;;  %s4295_s3 = inlined_call_operand.vmem [shape: bf16[64,8192], index: 3, kind: input, shape index: {}]   ;;  %s4296_s4 = inlined_call_operand.vmem [shape: f32[8,8192], index: 4, kind: output, shape index: {}]  }
   0x1   :  { %s2794_s17 = smov 0  }
   0x2 LB: > { %s2806_s18 = sadd.s32 4294967295, %s2760_s17   ;;  %s2809_s19 = sadd.s32 1, %s2760_s17   ;;  %s2760_s17 = sphi %s2794_s17, %s4327_s17   ;;  %s2756_s16 = sphi %s2792_s16, %s4326_s16   ;;  %s2752_s15 = sphi %s2790_s15, %s4325_s15  }
   0x3   : > { %s81_s20 = ssub.s32 %s2760_s17, %s2809_s19  ;;  %s84_s21 = sadd.s32 1, %s2756_s16 }
   0x4   : > { %p82_p0 = scmp.eq.s32.totalorder %s81_s20, 0  ;;  %p91_p1 = scmp.ne.s32.totalorder %s2756_s16, %s2752_s15 }
   0x5   : > { %p92_p2 = scmp.eq.s32.totalorder %s2760_s17, 0  ;;  %p2551_p4 = scmp.ge.s32.totalorder %s2760_s17, 2 }
   0x6   : > { %s2818_s22 = scalar_select %p82_p0, %s2756_s16, %s84_s21  }
   0x7   : > { %p93_p3 = por %p92_p2, %p91_p1  ;;  %147 = sbr.rel (%p2551_p4) target bundleno = 82 (0x52), region = 28 }
   0xe   : > { %150 = sbr.rel (!%p93_p3) target bundleno = 82 (0x52), region = 32  ;;  %s152_s23 = sand.u32 (%p93_p3), 1, %s2756_s16  }
   0xf   : > { %s2707_s24 = sshll.u32 (%p93_p3), %s2760_s17, 7  ;;  %s2552_s25 = sshll.u32 (%p93_p3), %s152_s23, 10 }
  0x10   : > { %s2826_s28 = scalar_lea.vmem (%p93_p3), %s4295_s3, %s2707_s24  ;;  %s2831_s29 = scalar_lea.vmem (%p93_p3), [#allocation4], %s2552_s25 }
  0x11   : > { %v170_v0 = vld [vmem:[%s2826_s28] sm:$0xff] (%p93_p3)  ;;  %v172_v1 = vld [vmem:[%s2826_s28 + $0x8] sm:$0xff] (%p93_p3)  ;;  %v174_v2 = vld [vmem:[%s2826_s28 + $0x10] sm:$0xff] (%p93_p3) }
  0x12   : > { %171 = vst [vmem:[%s2831_s29] sm:$0xff] (%p93_p3), %v170_v0  ;;  %173 = vst [vmem:[%s2831_s29 + $0x8] sm:$0xff] (%p93_p3), %v172_v1  ;;  %v176_v3 = vld [vmem:[%s2826_s28 + $0x18] sm:$0xff] (%p93_p3)  ;;  %v178_v4 = vld [vmem:[%s2826_s28 + $0x20] sm:$0xff] (%p93_p3) }
  0x13   : > { %175 = vst [vmem:[%s2831_s29 + $0x10] sm:$0xff] (%p93_p3), %v174_v2  ;;  %v180_v5 = vld [vmem:[%s2826_s28 + $0x28] sm:$0xff] (%p93_p3)  ;;  %177 = vst [vmem:[%s2831_s29 + $0x18] sm:$0xff] (%p93_p3), %v176_v3  ;;  %v182_v6 = vld [vmem:[%s2826_s28 + $0x30] sm:$0xff] (%p93_p3) }
  0x14   : > { %179 = vst [vmem:[%s2831_s29 + $0x20] sm:$0xff] (%p93_p3), %v178_v4  ;;  %181 = vst [vmem:[%s2831_s29 + $0x28] sm:$0xff] (%p93_p3), %v180_v5  ;;  %v184_v7 = vld [vmem:[%s2826_s28 + $0x38] sm:$0xff] (%p93_p3)  ;;  %v186_v8 = vld [vmem:[%s2826_s28 + $0x40] sm:$0xff] (%p93_p3) }
  0x15   : > { %183 = vst [vmem:[%s2831_s29 + $0x30] sm:$0xff] %v182_v6  ;;  %185 = vst [vmem:[%s2831_s29 + $0x38] sm:$0xff] %v184_v7  ;;  %v188_v9 = vld [vmem:[%s2826_s28 + $0x48] sm:$0xff]  ;;  %v190_v10 = vld [vmem:[%s2826_s28 + $0x50] sm:$0xff] }
  0x16   : > { %187 = vst [vmem:[%s2831_s29 + $0x40] sm:$0xff] %v186_v8  ;;  %v192_v11 = vld [vmem:[%s2826_s28 + $0x58] sm:$0xff]  ;;  %189 = vst [vmem:[%s2831_s29 + $0x48] sm:$0xff] %v188_v9  ;;  %v194_v12 = vld [vmem:[%s2826_s28 + $0x60] sm:$0xff] }
  0x17   : > { %191 = vst [vmem:[%s2831_s29 + $0x50] sm:$0xff] %v190_v10  ;;  %193 = vst [vmem:[%s2831_s29 + $0x58] sm:$0xff] %v192_v11  ;;  %v196_v13 = vld [vmem:[%s2826_s28 + $0x68] sm:$0xff]  ;;  %v198_v14 = vld [vmem:[%s2826_s28 + $0x70] sm:$0xff] }
  0x18   : > { %195 = vst [vmem:[%s2831_s29 + $0x60] sm:$0xff] %v194_v12  ;;  %197 = vst [vmem:[%s2831_s29 + $0x68] sm:$0xff] %v196_v13  ;;  %v200_v15 = vld [vmem:[%s2826_s28 + $0x78] sm:$0xff]  ;;  %v202_v16 = vld [vmem:[%s2826_s28 + $0x100] sm:$0xff] }
  0x19   : > { %199 = vst [vmem:[%s2831_s29 + $0x70] sm:$0xff] %v198_v14  ;;  %v204_v17 = vld [vmem:[%s2826_s28 + $0x108] sm:$0xff]  ;;  %201 = vst [vmem:[%s2831_s29 + $0x78] sm:$0xff] %v200_v15  ;;  %v206_v18 = vld [vmem:[%s2826_s28 + $0x110] sm:$0xff] }
  0x1a   : > { %203 = vst [vmem:[%s2831_s29 + $0x80] sm:$0xff] %v202_v16  ;;  %205 = vst [vmem:[%s2831_s29 + $0x88] sm:$0xff] %v204_v17  ;;  %v208_v19 = vld [vmem:[%s2826_s28 + $0x118] sm:$0xff]  ;;  %v210_v20 = vld [vmem:[%s2826_s28 + $0x120] sm:$0xff] }
  0x1b   : > { %207 = vst [vmem:[%s2831_s29 + $0x90] sm:$0xff] %v206_v18  ;;  %209 = vst [vmem:[%s2831_s29 + $0x98] sm:$0xff] %v208_v19  ;;  %v212_v21 = vld [vmem:[%s2826_s28 + $0x128] sm:$0xff]  ;;  %v214_v22 = vld [vmem:[%s2826_s28 + $0x130] sm:$0xff] }
  0x1c   : > { %211 = vst [vmem:[%s2831_s29 + $0xa0] sm:$0xff] %v210_v20  ;;  %v216_v23 = vld [vmem:[%s2826_s28 + $0x138] sm:$0xff]  ;;  %213 = vst [vmem:[%s2831_s29 + $0xa8] sm:$0xff] %v212_v21  ;;  %v218_v24 = vld [vmem:[%s2826_s28 + $0x140] sm:$0xff] }
  0x1d   : > { %215 = vst [vmem:[%s2831_s29 + $0xb0] sm:$0xff] %v214_v22  ;;  %217 = vst [vmem:[%s2831_s29 + $0xb8] sm:$0xff] %v216_v23  ;;  %v220_v25 = vld [vmem:[%s2826_s28 + $0x148] sm:$0xff]  ;;  %v222_v26 = vld [vmem:[%s2826_s28 + $0x150] sm:$0xff] }
  0x1e   : > { %219 = vst [vmem:[%s2831_s29 + $0xc0] sm:$0xff] %v218_v24  ;;  %221 = vst [vmem:[%s2831_s29 + $0xc8] sm:$0xff] %v220_v25  ;;  %v224_v27 = vld [vmem:[%s2826_s28 + $0x158] sm:$0xff]  ;;  %v226_v28 = vld [vmem:[%s2826_s28 + $0x160] sm:$0xff] }
  0x1f   : > { %223 = vst [vmem:[%s2831_s29 + $0xd0] sm:$0xff] %v222_v26  ;;  %v228_v29 = vld [vmem:[%s2826_s28 + $0x168] sm:$0xff]  ;;  %225 = vst [vmem:[%s2831_s29 + $0xd8] sm:$0xff] %v224_v27  ;;  %v230_v30 = vld [vmem:[%s2826_s28 + $0x170] sm:$0xff] }
  0x20   : > { %227 = vst [vmem:[%s2831_s29 + $0xe0] sm:$0xff] %v226_v28  ;;  %229 = vst [vmem:[%s2831_s29 + $0xe8] sm:$0xff] %v228_v29  ;;  %v232_v31 = vld [vmem:[%s2826_s28 + $0x178] sm:$0xff]  ;;  %v234_v32 = vld [vmem:[%s2826_s28 + $0x200] sm:$0xff] }
  0x21   : > { %231 = vst [vmem:[%s2831_s29 + $0xf0] sm:$0xff] %v230_v30  ;;  %233 = vst [vmem:[%s2831_s29 + $0xf8] sm:$0xff] %v232_v31  ;;  %v236_v33 = vld [vmem:[%s2826_s28 + $0x208] sm:$0xff]  ;;  %v238_v34 = vld [vmem:[%s2826_s28 + $0x210] sm:$0xff] }
  0x22   : > { %235 = vst [vmem:[%s2831_s29 + $0x100] sm:$0xff] %v234_v32  ;;  %v240_v35 = vld [vmem:[%s2826_s28 + $0x218] sm:$0xff]  ;;  %237 = vst [vmem:[%s2831_s29 + $0x108] sm:$0xff] %v236_v33  ;;  %v242_v36 = vld [vmem:[%s2826_s28 + $0x220] sm:$0xff] }
  0x23   : > { %239 = vst [vmem:[%s2831_s29 + $0x110] sm:$0xff] %v238_v34  ;;  %241 = vst [vmem:[%s2831_s29 + $0x118] sm:$0xff] %v240_v35  ;;  %v244_v37 = vld [vmem:[%s2826_s28 + $0x228] sm:$0xff]  ;;  %v246_v38 = vld [vmem:[%s2826_s28 + $0x230] sm:$0xff] }
  0x24   : > { %243 = vst [vmem:[%s2831_s29 + $0x120] sm:$0xff] %v242_v36  ;;  %245 = vst [vmem:[%s2831_s29 + $0x128] sm:$0xff] %v244_v37  ;;  %v248_v39 = vld [vmem:[%s2826_s28 + $0x238] sm:$0xff]  ;;  %v250_v40 = vld [vmem:[%s2826_s28 + $0x240] sm:$0xff] }
  0x25   : > { %247 = vst [vmem:[%s2831_s29 + $0x130] sm:$0xff] %v246_v38  ;;  %v252_v41 = vld [vmem:[%s2826_s28 + $0x248] sm:$0xff]  ;;  %249 = vst [vmem:[%s2831_s29 + $0x138] sm:$0xff] %v248_v39  ;;  %v254_v42 = vld [vmem:[%s2826_s28 + $0x250] sm:$0xff] }
  0x26   : > { %251 = vst [vmem:[%s2831_s29 + $0x140] sm:$0xff] %v250_v40  ;;  %253 = vst [vmem:[%s2831_s29 + $0x148] sm:$0xff] %v252_v41  ;;  %v256_v43 = vld [vmem:[%s2826_s28 + $0x258] sm:$0xff]  ;;  %v258_v44 = vld [vmem:[%s2826_s28 + $0x260] sm:$0xff] }
  0x27   : > { %255 = vst [vmem:[%s2831_s29 + $0x150] sm:$0xff] %v254_v42  ;;  %257 = vst [vmem:[%s2831_s29 + $0x158] sm:$0xff] %v256_v43  ;;  %v260_v45 = vld [vmem:[%s2826_s28 + $0x268] sm:$0xff]  ;;  %v262_v46 = vld [vmem:[%s2826_s28 + $0x270] sm:$0xff] }
  0x28   : > { %259 = vst [vmem:[%s2831_s29 + $0x160] sm:$0xff] %v258_v44  ;;  %v264_v47 = vld [vmem:[%s2826_s28 + $0x278] sm:$0xff]  ;;  %261 = vst [vmem:[%s2831_s29 + $0x168] sm:$0xff] %v260_v45  ;;  %v266_v48 = vld [vmem:[%s2826_s28 + $0x300] sm:$0xff] }
  0x29   : > { %263 = vst [vmem:[%s2831_s29 + $0x170] sm:$0xff] %v262_v46  ;;  %265 = vst [vmem:[%s2831_s29 + $0x178] sm:$0xff] %v264_v47  ;;  %v268_v49 = vld [vmem:[%s2826_s28 + $0x308] sm:$0xff]  ;;  %v270_v50 = vld [vmem:[%s2826_s28 + $0x310] sm:$0xff] }
  0x2a   : > { %267 = vst [vmem:[%s2831_s29 + $0x180] sm:$0xff] %v266_v48  ;;  %269 = vst [vmem:[%s2831_s29 + $0x188] sm:$0xff] %v268_v49  ;;  %v272_v51 = vld [vmem:[%s2826_s28 + $0x318] sm:$0xff]  ;;  %v274_v52 = vld [vmem:[%s2826_s28 + $0x320] sm:$0xff] }
  0x2b   : > { %271 = vst [vmem:[%s2831_s29 + $0x190] sm:$0xff] %v270_v50  ;;  %v276_v53 = vld [vmem:[%s2826_s28 + $0x328] sm:$0xff]  ;;  %273 = vst [vmem:[%s2831_s29 + $0x198] sm:$0xff] %v272_v51  ;;  %v278_v54 = vld [vmem:[%s2826_s28 + $0x330] sm:$0xff] }
  0x2c   : > { %275 = vst [vmem:[%s2831_s29 + $0x1a0] sm:$0xff] %v274_v52  ;;  %277 = vst [vmem:[%s2831_s29 + $0x1a8] sm:$0xff] %v276_v53  ;;  %v280_v55 = vld [vmem:[%s2826_s28 + $0x338] sm:$0xff]  ;;  %v282_v56 = vld [vmem:[%s2826_s28 + $0x340] sm:$0xff] }
  0x2d   : > { %279 = vst [vmem:[%s2831_s29 + $0x1b0] sm:$0xff] %v278_v54  ;;  %281 = vst [vmem:[%s2831_s29 + $0x1b8] sm:$0xff] %v280_v55  ;;  %v284_v57 = vld [vmem:[%s2826_s28 + $0x348] sm:$0xff]  ;;  %v286_v58 = vld [vmem:[%s2826_s28 + $0x350] sm:$0xff] }
  0x2e   : > { %283 = vst [vmem:[%s2831_s29 + $0x1c0] sm:$0xff] %v282_v56  ;;  %v288_v59 = vld [vmem:[%s2826_s28 + $0x358] sm:$0xff]  ;;  %285 = vst [vmem:[%s2831_s29 + $0x1c8] sm:$0xff] %v284_v57  ;;  %v290_v60 = vld [vmem:[%s2826_s28 + $0x360] sm:$0xff] }
  0x2f   : > { %287 = vst [vmem:[%s2831_s29 + $0x1d0] sm:$0xff] %v286_v58  ;;  %289 = vst [vmem:[%s2831_s29 + $0x1d8] sm:$0xff] %v288_v59  ;;  %v292_v61 = vld [vmem:[%s2826_s28 + $0x368] sm:$0xff]  ;;  %v294_v62 = vld [vmem:[%s2826_s28 + $0x370] sm:$0xff] }
  0x30   : > { %291 = vst [vmem:[%s2831_s29 + $0x1e0] sm:$0xff] %v290_v60  ;;  %293 = vst [vmem:[%s2831_s29 + $0x1e8] sm:$0xff] %v292_v61  ;;  %v296_v63 = vld [vmem:[%s2826_s28 + $0x378] sm:$0xff]  ;;  %v298_v0 = vld [vmem:[%s2826_s28 + $0x400] sm:$0xff] }
  0x31   : > { %295 = vst [vmem:[%s2831_s29 + $0x1f0] sm:$0xff] %v294_v62  ;;  %v300_v1 = vld [vmem:[%s2826_s28 + $0x408] sm:$0xff]  ;;  %297 = vst [vmem:[%s2831_s29 + $0x1f8] sm:$0xff] %v296_v63  ;;  %v302_v2 = vld [vmem:[%s2826_s28 + $0x410] sm:$0xff] }
  0x32   : > { %299 = vst [vmem:[%s2831_s29 + $0x200] sm:$0xff] %v298_v0  ;;  %301 = vst [vmem:[%s2831_s29 + $0x208] sm:$0xff] %v300_v1  ;;  %v304_v3 = vld [vmem:[%s2826_s28 + $0x418] sm:$0xff]  ;;  %v306_v4 = vld [vmem:[%s2826_s28 + $0x420] sm:$0xff] }
  0x33   : > { %303 = vst [vmem:[%s2831_s29 + $0x210] sm:$0xff] %v302_v2  ;;  %305 = vst [vmem:[%s2831_s29 + $0x218] sm:$0xff] %v304_v3  ;;  %v308_v5 = vld [vmem:[%s2826_s28 + $0x428] sm:$0xff]  ;;  %v310_v6 = vld [vmem:[%s2826_s28 + $0x430] sm:$0xff] }
  0x34   : > { %307 = vst [vmem:[%s2831_s29 + $0x220] sm:$0xff] %v306_v4  ;;  %v312_v7 = vld [vmem:[%s2826_s28 + $0x438] sm:$0xff]  ;;  %309 = vst [vmem:[%s2831_s29 + $0x228] sm:$0xff] %v308_v5  ;;  %v314_v8 = vld [vmem:[%s2826_s28 + $0x440] sm:$0xff] }
  0x35   : > { %311 = vst [vmem:[%s2831_s29 + $0x230] sm:$0xff] %v310_v6  ;;  %313 = vst [vmem:[%s2831_s29 + $0x238] sm:$0xff] %v312_v7  ;;  %v316_v9 = vld [vmem:[%s2826_s28 + $0x448] sm:$0xff]  ;;  %v318_v10 = vld [vmem:[%s2826_s28 + $0x450] sm:$0xff] }
  0x36   : > { %315 = vst [vmem:[%s2831_s29 + $0x240] sm:$0xff] %v314_v8  ;;  %317 = vst [vmem:[%s2831_s29 + $0x248] sm:$0xff] %v316_v9  ;;  %v320_v11 = vld [vmem:[%s2826_s28 + $0x458] sm:$0xff]  ;;  %v322_v12 = vld [vmem:[%s2826_s28 + $0x460] sm:$0xff] }
  0x37   : > { %319 = vst [vmem:[%s2831_s29 + $0x250] sm:$0xff] %v318_v10  ;;  %v324_v13 = vld [vmem:[%s2826_s28 + $0x468] sm:$0xff]  ;;  %321 = vst [vmem:[%s2831_s29 + $0x258] sm:$0xff] %v320_v11  ;;  %v326_v14 = vld [vmem:[%s2826_s28 + $0x470] sm:$0xff] }
  0x38   : > { %323 = vst [vmem:[%s2831_s29 + $0x260] sm:$0xff] %v322_v12  ;;  %325 = vst [vmem:[%s2831_s29 + $0x268] sm:$0xff] %v324_v13  ;;  %v328_v15 = vld [vmem:[%s2826_s28 + $0x478] sm:$0xff]  ;;  %v330_v16 = vld [vmem:[%s2826_s28 + $0x500] sm:$0xff] }
  0x39   : > { %327 = vst [vmem:[%s2831_s29 + $0x270] sm:$0xff] %v326_v14  ;;  %329 = vst [vmem:[%s2831_s29 + $0x278] sm:$0xff] %v328_v15  ;;  %v332_v17 = vld [vmem:[%s2826_s28 + $0x508] sm:$0xff]  ;;  %v334_v18 = vld [vmem:[%s2826_s28 + $0x510] sm:$0xff] }
  0x3a   : > { %331 = vst [vmem:[%s2831_s29 + $0x280] sm:$0xff] %v330_v16  ;;  %v336_v19 = vld [vmem:[%s2826_s28 + $0x518] sm:$0xff]  ;;  %333 = vst [vmem:[%s2831_s29 + $0x288] sm:$0xff] %v332_v17  ;;  %v338_v20 = vld [vmem:[%s2826_s28 + $0x520] sm:$0xff] }
  0x3b   : > { %335 = vst [vmem:[%s2831_s29 + $0x290] sm:$0xff] %v334_v18  ;;  %337 = vst [vmem:[%s2831_s29 + $0x298] sm:$0xff] %v336_v19  ;;  %v340_v21 = vld [vmem:[%s2826_s28 + $0x528] sm:$0xff]  ;;  %v342_v22 = vld [vmem:[%s2826_s28 + $0x530] sm:$0xff] }
  0x3c   : > { %339 = vst [vmem:[%s2831_s29 + $0x2a0] sm:$0xff] %v338_v20  ;;  %341 = vst [vmem:[%s2831_s29 + $0x2a8] sm:$0xff] %v340_v21  ;;  %v344_v23 = vld [vmem:[%s2826_s28 + $0x538] sm:$0xff]  ;;  %v346_v24 = vld [vmem:[%s2826_s28 + $0x540] sm:$0xff] }
  0x3d   : > { %343 = vst [vmem:[%s2831_s29 + $0x2b0] sm:$0xff] %v342_v22  ;;  %v348_v25 = vld [vmem:[%s2826_s28 + $0x548] sm:$0xff]  ;;  %345 = vst [vmem:[%s2831_s29 + $0x2b8] sm:$0xff] %v344_v23  ;;  %v350_v26 = vld [vmem:[%s2826_s28 + $0x550] sm:$0xff] }
  0x3e   : > { %347 = vst [vmem:[%s2831_s29 + $0x2c0] sm:$0xff] %v346_v24  ;;  %349 = vst [vmem:[%s2831_s29 + $0x2c8] sm:$0xff] %v348_v25  ;;  %v352_v27 = vld [vmem:[%s2826_s28 + $0x558] sm:$0xff]  ;;  %v354_v28 = vld [vmem:[%s2826_s28 + $0x560] sm:$0xff] }
  0x3f   : > { %351 = vst [vmem:[%s2831_s29 + $0x2d0] sm:$0xff] %v350_v26  ;;  %353 = vst [vmem:[%s2831_s29 + $0x2d8] sm:$0xff] %v352_v27  ;;  %v356_v29 = vld [vmem:[%s2826_s28 + $0x568] sm:$0xff]  ;;  %v358_v30 = vld [vmem:[%s2826_s28 + $0x570] sm:$0xff] }
  0x40   : > { %355 = vst [vmem:[%s2831_s29 + $0x2e0] sm:$0xff] %v354_v28  ;;  %v360_v31 = vld [vmem:[%s2826_s28 + $0x578] sm:$0xff]  ;;  %357 = vst [vmem:[%s2831_s29 + $0x2e8] sm:$0xff] %v356_v29  ;;  %v362_v32 = vld [vmem:[%s2826_s28 + $0x600] sm:$0xff] }
  0x41   : > { %359 = vst [vmem:[%s2831_s29 + $0x2f0] sm:$0xff] %v358_v30  ;;  %361 = vst [vmem:[%s2831_s29 + $0x2f8] sm:$0xff] %v360_v31  ;;  %v364_v33 = vld [vmem:[%s2826_s28 + $0x608] sm:$0xff]  ;;  %v366_v34 = vld [vmem:[%s2826_s28 + $0x610] sm:$0xff] }
  0x42   : > { %363 = vst [vmem:[%s2831_s29 + $0x300] sm:$0xff] %v362_v32  ;;  %365 = vst [vmem:[%s2831_s29 + $0x308] sm:$0xff] %v364_v33  ;;  %v368_v35 = vld [vmem:[%s2826_s28 + $0x618] sm:$0xff]  ;;  %v370_v36 = vld [vmem:[%s2826_s28 + $0x620] sm:$0xff] }
  0x43   : > { %367 = vst [vmem:[%s2831_s29 + $0x310] sm:$0xff] %v366_v34  ;;  %v372_v37 = vld [vmem:[%s2826_s28 + $0x628] sm:$0xff]  ;;  %369 = vst [vmem:[%s2831_s29 + $0x318] sm:$0xff] %v368_v35  ;;  %v374_v38 = vld [vmem:[%s2826_s28 + $0x630] sm:$0xff] }
  0x44   : > { %371 = vst [vmem:[%s2831_s29 + $0x320] sm:$0xff] %v370_v36  ;;  %373 = vst [vmem:[%s2831_s29 + $0x328] sm:$0xff] %v372_v37  ;;  %v376_v39 = vld [vmem:[%s2826_s28 + $0x638] sm:$0xff]  ;;  %v378_v40 = vld [vmem:[%s2826_s28 + $0x640] sm:$0xff] }
  0x45   : > { %375 = vst [vmem:[%s2831_s29 + $0x330] sm:$0xff] %v374_v38  ;;  %377 = vst [vmem:[%s2831_s29 + $0x338] sm:$0xff] %v376_v39  ;;  %v380_v41 = vld [vmem:[%s2826_s28 + $0x648] sm:$0xff]  ;;  %v382_v42 = vld [vmem:[%s2826_s28 + $0x650] sm:$0xff] }
  0x46   : > { %379 = vst [vmem:[%s2831_s29 + $0x340] sm:$0xff] %v378_v40  ;;  %v384_v43 = vld [vmem:[%s2826_s28 + $0x658] sm:$0xff]  ;;  %381 = vst [vmem:[%s2831_s29 + $0x348] sm:$0xff] %v380_v41  ;;  %v386_v44 = vld [vmem:[%s2826_s28 + $0x660] sm:$0xff] }
  0x47   : > { %383 = vst [vmem:[%s2831_s29 + $0x350] sm:$0xff] %v382_v42  ;;  %385 = vst [vmem:[%s2831_s29 + $0x358] sm:$0xff] %v384_v43  ;;  %v388_v45 = vld [vmem:[%s2826_s28 + $0x668] sm:$0xff]  ;;  %v390_v46 = vld [vmem:[%s2826_s28 + $0x670] sm:$0xff] }
  0x48   : > { %387 = vst [vmem:[%s2831_s29 + $0x360] sm:$0xff] %v386_v44  ;;  %389 = vst [vmem:[%s2831_s29 + $0x368] sm:$0xff] %v388_v45  ;;  %v392_v47 = vld [vmem:[%s2826_s28 + $0x678] sm:$0xff]  ;;  %v394_v48 = vld [vmem:[%s2826_s28 + $0x700] sm:$0xff] }
  0x49   : > { %391 = vst [vmem:[%s2831_s29 + $0x370] sm:$0xff] %v390_v46  ;;  %v396_v49 = vld [vmem:[%s2826_s28 + $0x708] sm:$0xff]  ;;  %393 = vst [vmem:[%s2831_s29 + $0x378] sm:$0xff] %v392_v47  ;;  %v398_v50 = vld [vmem:[%s2826_s28 + $0x710] sm:$0xff] }
  0x4a   : > { %395 = vst [vmem:[%s2831_s29 + $0x380] sm:$0xff] %v394_v48  ;;  %397 = vst [vmem:[%s2831_s29 + $0x388] sm:$0xff] %v396_v49  ;;  %v400_v51 = vld [vmem:[%s2826_s28 + $0x718] sm:$0xff]  ;;  %v402_v52 = vld [vmem:[%s2826_s28 + $0x720] sm:$0xff] }
  0x4b   : > { %399 = vst [vmem:[%s2831_s29 + $0x390] sm:$0xff] %v398_v50  ;;  %401 = vst [vmem:[%s2831_s29 + $0x398] sm:$0xff] %v400_v51  ;;  %v404_v53 = vld [vmem:[%s2826_s28 + $0x728] sm:$0xff]  ;;  %v406_v54 = vld [vmem:[%s2826_s28 + $0x730] sm:$0xff] }
  0x4c   : > { %403 = vst [vmem:[%s2831_s29 + $0x3a0] sm:$0xff] %v402_v52  ;;  %v408_v55 = vld [vmem:[%s2826_s28 + $0x738] sm:$0xff]  ;;  %405 = vst [vmem:[%s2831_s29 + $0x3a8] sm:$0xff] %v404_v53  ;;  %v410_v56 = vld [vmem:[%s2826_s28 + $0x740] sm:$0xff] }
  0x4d   : > { %407 = vst [vmem:[%s2831_s29 + $0x3b0] sm:$0xff] %v406_v54  ;;  %409 = vst [vmem:[%s2831_s29 + $0x3b8] sm:$0xff] %v408_v55  ;;  %v412_v57 = vld [vmem:[%s2826_s28 + $0x748] sm:$0xff]  ;;  %v414_v58 = vld [vmem:[%s2826_s28 + $0x750] sm:$0xff] }
  0x4e   : > { %411 = vst [vmem:[%s2831_s29 + $0x3c0] sm:$0xff] %v410_v56  ;;  %413 = vst [vmem:[%s2831_s29 + $0x3c8] sm:$0xff] %v412_v57  ;;  %v416_v59 = vld [vmem:[%s2826_s28 + $0x758] sm:$0xff]  ;;  %v418_v60 = vld [vmem:[%s2826_s28 + $0x760] sm:$0xff] }
  0x4f   : > { %415 = vst [vmem:[%s2831_s29 + $0x3d0] sm:$0xff] %v414_v58  ;;  %v420_v61 = vld [vmem:[%s2826_s28 + $0x768] sm:$0xff]  ;;  %417 = vst [vmem:[%s2831_s29 + $0x3d8] sm:$0xff] %v416_v59  ;;  %v422_v62 = vld [vmem:[%s2826_s28 + $0x770] sm:$0xff] }
  0x50   : > { %419 = vst [vmem:[%s2831_s29 + $0x3e0] sm:$0xff] %v418_v60  ;;  %421 = vst [vmem:[%s2831_s29 + $0x3e8] sm:$0xff] %v420_v61  ;;  %v424_v63 = vld [vmem:[%s2826_s28 + $0x778] sm:$0xff] }
  0x51   : > { %423 = vst [vmem:[%s2831_s29 + $0x3f0] sm:$0xff] %v422_v62  ;;  %425 = vst [vmem:[%s2831_s29 + $0x3f8] sm:$0xff] %v424_v63 }
  0x52 PF: > { %p2555_p5 = scmp.ge.s32.totalorder %s2760_s17, 1  ;;  %p430_p6 = scmp.lt.s32.totalorder %s2760_s17, 3 }
  0x54   : > { %p431_p7 = pnand %p2555_p5, %p430_p6 }
  0x55   : > { %s437_s30 = sand.u32 (!%p431_p7), 1, %s2752_s15   ;;  %p2557_p8 = scmp.ne.s32.totalorder (!%p431_p7), %s2806_s18, 0 }
  0x56   : > { %434 = sbr.rel (%p431_p7) target bundleno = 844 (0x34c), region = 55  ;;  %s2556_s5 = sshll.u32 (!%p431_p7), %s437_s30, 10 }
  0x57   : > { %s3089_s6 = scalar_lea.vmem (!%p431_p7), [#allocation4], %s2556_s5 }
  0x5d   : > { %462 = sbr.rel (%p2557_p8) target bundleno = 100 (0x64), region = 63  ;;  %vm463_vm0 = vcmask (!%p2557_p8), 7168   ;;  %v2762_v0 = vmov (!%p2557_p8), 0.0  }
  0x5e   : > { %464 = vst.msk [vmem:[#allocation2] sm:$0xff] (!%p2557_p8), %vm463_vm0, %v2762_v0  ;;  %465 = vst.msk [vmem:[#allocation3] sm:$0xff] (!%p2557_p8), %vm463_vm0, %v2762_v0 }
  0x64 PF: > { %v467_v1 = vld [vmem:[%s3089_s6] sm:$0xff]  ;;  %v468_v3 = vld [vmem:[%s3089_s6 + $0x8] sm:$0xff]  ;;  %v2763_v9 = vmov 0   ;;  %v469_v32 = vld [vmem:[%s3089_s6 + $0x10] sm:$0xff]  ;;  %vm1235_vm1 = vcmask 523264   ;;  %s2702_s9 = sshll.u32 %s2806_s18, 12 }
  0x65   : > { %v483_v2 = vld [vmem:[%s3089_s6 + $0x80] sm:$0xff]  ;;  %v484_v6 = vld [vmem:[%s3089_s6 + $0x88] sm:$0xff]  ;;  %1271 = vmatprep.mubr.bf16.mxu0 %v2763_v9  ;;  %1312 = vmatprep.mubr.bf16.mxu1 %v2763_v9  ;;  %v485_v33 = vld [vmem:[%s3089_s6 + $0x90] sm:$0xff]  ;;  %s2001_s10 = sshra.s32 %s2702_s9, 7  ;;  %vm1930_vm2 = vcmask 7168   ;;  %p2704_p9 = scmp.ne.s32.totalorder %s2806_s18, 1 }
  0x66   : > { %v2559_v4 = vcombine.high %v467_v1, %v483_v2  ;;  %v2558_v5 = vcombine.low %v467_v1, %v483_v2  ;;  %v499_v7 = vld [vmem:[%s3089_s6 + $0x100] sm:$0xff]  ;;  %v2561_v10 = vcombine.high %v468_v3, %v484_v6  ;;  %v2560_v11 = vcombine.low %v468_v3, %v484_v6  ;;  %v500_v13 = vld [vmem:[%s3089_s6 + $0x108] sm:$0xff]  ;;  %v470_v34 = vld [vmem:[%s3089_s6 + $0x18] sm:$0xff]  ;;  %s2703_s11 = sshll.u32 %s2001_s10, 3 }
  0x67   : > { %v515_v8 = vld [vmem:[%s3089_s6 + $0x180] sm:$0xff]  ;;  %v516_v14 = vld [vmem:[%s3089_s6 + $0x188] sm:$0xff]  ;;  %v486_v35 = vld [vmem:[%s3089_s6 + $0x98] sm:$0xff]  ;;  %v2563_v38 = vcombine.high %v469_v32, %v485_v33  ;;  %v2562_v45 = vcombine.low %v469_v32, %v485_v33  ;;  %s3277_s14 = scalar_lea.vmem %s4296_s4, %s2703_s11 }
  0x68   : > { %v2591_v12 = vcombine.high %v499_v7, %v515_v8  ;;  %v531_v15 = vld [vmem:[%s3089_s6 + $0x200] sm:$0xff]  ;;  %1239 = vmatprep.subr.bf16.mxu0 %v2559_v4  ;;  %v2593_v16 = vcombine.high %v500_v13, %v516_v14  ;;  %v532_v18 = vld [vmem:[%s3089_s6 + $0x208] sm:$0xff]  ;;  %1280 = vmatprep.subr.bf16.mxu1 %v2561_v10  ;;  %v2590_v20 = vcombine.low %v499_v7, %v515_v8  ;;  %v501_v40 = vld [vmem:[%s3089_s6 + $0x110] sm:$0xff] }
  0x69   : > { %v547_v17 = vld [vmem:[%s3089_s6 + $0x280] sm:$0xff]  ;;  %v548_v19 = vld [vmem:[%s3089_s6 + $0x288] sm:$0xff]  ;;  %1240 = vmatpush1.bf16.msra.mxu0 %v2558_v5  ;;  %1281 = vmatpush1.bf16.msra.mxu1 %v2560_v11  ;;  %v2592_v21 = vcombine.low %v500_v13, %v516_v14  ;;  %v2565_v39 = vcombine.high %v470_v34, %v486_v35  ;;  %v517_v41 = vld [vmem:[%s3089_s6 + $0x190] sm:$0xff]  ;;  %v2564_v46 = vcombine.low %v470_v34, %v486_v35 }
  0x6a   : > { %1241 = vmatprep.subr.bf16.mxu0 %v2591_v12  ;;  %v2623_v22 = vcombine.high %v531_v15, %v547_v17  ;;  %1282 = vmatprep.subr.bf16.mxu1 %v2593_v16  ;;  %v2625_v23 = vcombine.high %v532_v18, %v548_v19  ;;  %v563_v24 = vld [vmem:[%s3089_s6 + $0x300] sm:$0xff]  ;;  %v564_v26 = vld [vmem:[%s3089_s6 + $0x308] sm:$0xff]  ;;  %v2622_v28 = vcombine.low %v531_v15, %v547_v17  ;;  %v502_v42 = vld [vmem:[%s3089_s6 + $0x118] sm:$0xff] }
  0x6b   : > { %v579_v25 = vld [vmem:[%s3089_s6 + $0x380] sm:$0xff]  ;;  %v580_v27 = vld [vmem:[%s3089_s6 + $0x388] sm:$0xff]  ;;  %v2624_v29 = vcombine.low %v532_v18, %v548_v19  ;;  %v518_v43 = vld [vmem:[%s3089_s6 + $0x198] sm:$0xff]  ;;  %v2595_v47 = vcombine.high %v501_v40, %v517_v41  ;;  %v2594_v53 = vcombine.low %v501_v40, %v517_v41 }
  0x6c   : > { %v2655_v30 = vcombine.high %v563_v24, %v579_v25  ;;  %v2657_v31 = vcombine.high %v564_v26, %v580_v27  ;;  %v2654_v36 = vcombine.low %v563_v24, %v579_v25  ;;  %v2656_v37 = vcombine.low %v564_v26, %v580_v27  ;;  %v3121_v44 = vld [vmem:[%s4292_s0] sm:$0xf]  ;;  %v534_v51 = vld [vmem:[%s3089_s6 + $0x218] sm:$0xff]  ;;  %v471_v1 = vld [vmem:[%s3089_s6 + $0x20] sm:$0xff] }
  0x6d   : > { %1242 = vmatpush1.bf16.msra.mxu0 %v2590_v20  ;;  %1283 = vmatpush1.bf16.msra.mxu1 %v2592_v21  ;;  %v2597_v48 = vcombine.high %v502_v42, %v518_v43  ;;  %v533_v49 = vld [vmem:[%s3089_s6 + $0x210] sm:$0xff]  ;;  %v550_v52 = vld [vmem:[%s3089_s6 + $0x298] sm:$0xff]  ;;  %v2596_v54 = vcombine.low %v502_v42, %v518_v43  ;;  %v487_v2 = vld [vmem:[%s3089_s6 + $0xa0] sm:$0xff] }
  0x6e   : > { %1243 = vmatprep.subr.bf16.mxu0 %v2623_v22  ;;  %1284 = vmatprep.subr.bf16.mxu1 %v2625_v23  ;;  %v549_v50 = vld [vmem:[%s3089_s6 + $0x290] sm:$0xff]  ;;  %v2629_v56 = vcombine.high %v534_v51, %v550_v52  ;;  %v566_v59 = vld [vmem:[%s3089_s6 + $0x318] sm:$0xff]  ;;  %v2628_v62 = vcombine.low %v534_v51, %v550_v52  ;;  %v472_v3 = vld [vmem:[%s3089_s6 + $0x28] sm:$0xff]  ;;  %v2567_v7 = vcombine.high %v471_v1, %v487_v2 }
  0x6f   : > { %v2627_v55 = vcombine.high %v533_v49, %v549_v50  ;;  %v565_v57 = vld [vmem:[%s3089_s6 + $0x310] sm:$0xff]  ;;  %v582_v60 = vld [vmem:[%s3089_s6 + $0x398] sm:$0xff]  ;;  %v2626_v61 = vcombine.low %v533_v49, %v549_v50  ;;  %v488_v4 = vld [vmem:[%s3089_s6 + $0xa8] sm:$0xff]  ;;  %v2566_v14 = vcombine.low %v471_v1, %v487_v2 }
  0x70   : > { %v581_v58 = vld [vmem:[%s3089_s6 + $0x390] sm:$0xff]  ;;  %v2661_v0 = vcombine.high %v566_v59, %v582_v60  ;;  %v2660_v6 = vcombine.low %v566_v59, %v582_v60  ;;  %v2569_v8 = vcombine.high %v472_v3, %v488_v4  ;;  %v503_v10 = vld [vmem:[%s3089_s6 + $0x120] sm:$0xff]  ;;  %v504_v12 = vld [vmem:[%s3089_s6 + $0x128] sm:$0xff]  ;;  %v2568_v15 = vcombine.low %v472_v3, %v488_v4 }
  0x71   : > { %1244 = vmatpush1.bf16.msra.mxu0 %v2622_v28  ;;  %1285 = vmatpush1.bf16.msra.mxu1 %v2624_v29  ;;  %v2659_v63 = vcombine.high %v565_v57, %v581_v58  ;;  %v2658_v5 = vcombine.low %v565_v57, %v581_v58  ;;  %v519_v11 = vld [vmem:[%s3089_s6 + $0x1a0] sm:$0xff]  ;;  %v520_v13 = vld [vmem:[%s3089_s6 + $0x1a8] sm:$0xff]  ;;  %v473_v34 = vld [vmem:[%s3089_s6 + $0x30] sm:$0xff] }
  0x72   : > { %1245 = vmatprep.subr.bf16.mxu0 %v2655_v30  ;;  %1286 = vmatprep.subr.bf16.mxu1 %v2657_v31  ;;  %v2599_v16 = vcombine.high %v503_v10, %v519_v11  ;;  %v2601_v17 = vcombine.high %v504_v12, %v520_v13  ;;  %v535_v18 = vld [vmem:[%s3089_s6 + $0x220] sm:$0xff]  ;;  %v536_v20 = vld [vmem:[%s3089_s6 + $0x228] sm:$0xff]  ;;  %v2598_v22 = vcombine.low %v503_v10, %v519_v11  ;;  %v489_v35 = vld [vmem:[%s3089_s6 + $0xb0] sm:$0xff] }
  0x73   : > { %v551_v19 = vld [vmem:[%s3089_s6 + $0x2a0] sm:$0xff]  ;;  %v552_v21 = vld [vmem:[%s3089_s6 + $0x2a8] sm:$0xff]  ;;  %v2600_v23 = vcombine.low %v504_v12, %v520_v13  ;;  %v2571_v40 = vcombine.high %v473_v34, %v489_v35  ;;  %v505_v42 = vld [vmem:[%s3089_s6 + $0x130] sm:$0xff] }
  0x74   : > { %v2631_v24 = vcombine.high %v535_v18, %v551_v19  ;;  %v2633_v25 = vcombine.high %v536_v20, %v552_v21  ;;  %v567_v26 = vld [vmem:[%s3089_s6 + $0x320] sm:$0xff]  ;;  %v568_v28 = vld [vmem:[%s3089_s6 + $0x328] sm:$0xff]  ;;  %v2630_v30 = vcombine.low %v535_v18, %v551_v19  ;;  %v2632_v31 = vcombine.low %v536_v20, %v552_v21  ;;  %v521_v43 = vld [vmem:[%s3089_s6 + $0x1b0] sm:$0xff] }
  0x75   : > { %1246 = vmatpush1.bf16.msra.mxu0 %v2654_v36  ;;  %1287 = vmatpush1.bf16.msra.mxu1 %v2656_v37  ;;  %v583_v27 = vld [vmem:[%s3089_s6 + $0x3a0] sm:$0xff]  ;;  %v584_v29 = vld [vmem:[%s3089_s6 + $0x3a8] sm:$0xff]  ;;  %v474_v36 = vld [vmem:[%s3089_s6 + $0x38] sm:$0xff]  ;;  %v2603_v49 = vcombine.high %v505_v42, %v521_v43 }
  0x76   : > { %1321 = vmatprep.subr.bf16.mxu0 %v2563_v38  ;;  %1362 = vmatprep.subr.bf16.mxu1 %v2565_v39  ;;  %v2663_v32 = vcombine.high %v567_v26, %v583_v27  ;;  %v2665_v33 = vcombine.high %v568_v28, %v584_v29  ;;  %v490_v37 = vld [vmem:[%s3089_s6 + $0xb8] sm:$0xff]  ;;  %v2662_v38 = vcombine.low %v567_v26, %v583_v27  ;;  %v537_v51 = vld [vmem:[%s3089_s6 + $0x230] sm:$0xff]  ;;  %v475_v3 = vld [vmem:[%s3089_s6 + $0x40] sm:$0xff] }
  0x77   : > { %v2664_v39 = vcombine.low %v568_v28, %v584_v29  ;;  %v2573_v41 = vcombine.high %v474_v36, %v490_v37  ;;  %v553_v52 = vld [vmem:[%s3089_s6 + $0x2b0] sm:$0xff]  ;;  %v491_v4 = vld [vmem:[%s3089_s6 + $0xc0] sm:$0xff] }
  0x78   : > { %2686 = vmatmul.mubr.msk.bf16.vlgmr.msra.gmra.mrb[0].mxu0 %vm1235_vm1, %v3121_v44  ;;  %2687 = vmatmul.mubr.msk.bf16.vlgmr.msra.gmra.mrb[0].mxu1 %vm1235_vm1, %v3121_v44  ;;  %v2635_v57 = vcombine.high %v537_v51, %v553_v52  ;;  %v569_v59 = vld [vmem:[%s3089_s6 + $0x330] sm:$0xff]  ;;  %v2575_v10 = vcombine.high %v475_v3, %v491_v4  ;;  %v507_v12 = vld [vmem:[%s3089_s6 + $0x140] sm:$0xff] }
  0x79   : > { %1322 = vmatpush1.bf16.msra.mxu0 %v2562_v45  ;;  %1363 = vmatpush1.bf16.msra.mxu1 %v2564_v46  ;;  %v506_v45 = vld [vmem:[%s3089_s6 + $0x138] sm:$0xff]  ;;  %v585_v60 = vld [vmem:[%s3089_s6 + $0x3b0] sm:$0xff]  ;;  %v523_v13 = vld [vmem:[%s3089_s6 + $0x1c0] sm:$0xff] }
  0x7a   : > { %1323 = vmatprep.subr.bf16.mxu0 %v2595_v47  ;;  %1364 = vmatprep.subr.bf16.mxu1 %v2597_v48  ;;  %v522_v46 = vld [vmem:[%s3089_s6 + $0x1b8] sm:$0xff]  ;;  %v2570_v47 = vcombine.low %v473_v34, %v489_v35  ;;  %v2572_v48 = vcombine.low %v474_v36, %v490_v37  ;;  %v2667_v1 = vcombine.high %v569_v59, %v585_v60  ;;  %v539_v20 = vld [vmem:[%s3089_s6 + $0x240] sm:$0xff]  ;;  %v477_v36 = vld [vmem:[%s3089_s6 + $0x50] sm:$0xff] }
  0x7b   : > { %1353 = vmatprep.mubr.bf16.mxu0 %v2763_v9  ;;  %1394 = vmatprep.mubr.bf16.mxu1 %v2763_v9  ;;  %v2605_v50 = vcombine.high %v506_v45, %v522_v46  ;;  %v2607_v18 = vcombine.high %v507_v12, %v523_v13  ;;  %v555_v21 = vld [vmem:[%s3089_s6 + $0x2c0] sm:$0xff]  ;;  %v493_v37 = vld [vmem:[%s3089_s6 + $0xd0] sm:$0xff] }
  0x7c   : > { %v2639_v26 = vcombine.high %v539_v20, %v555_v21  ;;  %v571_v28 = vld [vmem:[%s3089_s6 + $0x340] sm:$0xff] }
  0x7d   : > { %1324 = vmatpush1.bf16.msra.mxu0 %v2594_v53  ;;  %1365 = vmatpush1.bf16.msra.mxu1 %v2596_v54  ;;  %v538_v53 = vld [vmem:[%s3089_s6 + $0x238] sm:$0xff]  ;;  %v587_v29 = vld [vmem:[%s3089_s6 + $0x3c0] sm:$0xff] }
  0x7e   : > { %1325 = vmatprep.subr.bf16.mxu0 %v2627_v55  ;;  %1366 = vmatprep.subr.bf16.mxu1 %v2629_v56  ;;  %v554_v54 = vld [vmem:[%s3089_s6 + $0x2b8] sm:$0xff]  ;;  %v2602_v55 = vcombine.low %v505_v42, %v521_v43  ;;  %v2604_v56 = vcombine.low %v506_v45, %v522_v46  ;;  %v2671_v34 = vcombine.high %v571_v28, %v587_v29  ;;  %v509_v45 = vld [vmem:[%s3089_s6 + $0x150] sm:$0xff] }
  0x7f   : > { %v2637_v58 = vcombine.high %v538_v53, %v554_v54  ;;  %v2579_v42 = vcombine.high %v477_v36, %v493_v37  ;;  %v525_v46 = vld [vmem:[%s3089_s6 + $0x1d0] sm:$0xff] }
  0x81   : > { %1326 = vmatpush1.bf16.msra.mxu0 %v2626_v61  ;;  %1367 = vmatpush1.bf16.msra.mxu1 %v2628_v62  ;;  %v570_v61 = vld [vmem:[%s3089_s6 + $0x338] sm:$0xff] }
  0x82   : > { %1327 = vmatprep.subr.bf16.mxu0 %v2659_v63  ;;  %1368 = vmatprep.subr.bf16.mxu1 %v2661_v0  ;;  %v586_v62 = vld [vmem:[%s3089_s6 + $0x3b8] sm:$0xff]  ;;  %v2634_v63 = vcombine.low %v537_v51, %v553_v52  ;;  %v2636_v0 = vcombine.low %v538_v53, %v554_v54  ;;  %v2611_v51 = vcombine.high %v509_v45, %v525_v46  ;;  %v541_v53 = vld [vmem:[%s3089_s6 + $0x250] sm:$0xff] }
  0x83   : > { %v2669_v2 = vcombine.high %v570_v61, %v586_v62  ;;  %v557_v54 = vld [vmem:[%s3089_s6 + $0x2d0] sm:$0xff] }
  0x85   : > { %1328 = vmatpush1.bf16.msra.mxu0 %v2658_v5  ;;  %1369 = vmatpush1.bf16.msra.mxu1 %v2660_v6  ;;  %v476_v5 = vld [vmem:[%s3089_s6 + $0x48] sm:$0xff] }
  0x86   : > { %1403 = vmatprep.subr.bf16.mxu0 %v2567_v7  ;;  %1444 = vmatprep.subr.bf16.mxu1 %v2569_v8  ;;  %v492_v6 = vld [vmem:[%s3089_s6 + $0xc8] sm:$0xff]  ;;  %v2666_v7 = vcombine.low %v569_v59, %v585_v60  ;;  %v2668_v8 = vcombine.low %v570_v61, %v586_v62  ;;  %v2643_v59 = vcombine.high %v541_v53, %v557_v54  ;;  %v573_v61 = vld [vmem:[%s3089_s6 + $0x350] sm:$0xff] }
  0x87   : > { %v2577_v11 = vcombine.high %v476_v5, %v492_v6  ;;  %v589_v62 = vld [vmem:[%s3089_s6 + $0x3d0] sm:$0xff] }
  0x88   : > { %2688 = vmatmul.mubr.msk.bf16.vlgmr.msra.gmra.mrb[4].mxu0 %vm1235_vm1, %v3121_v44  ;;  %2689 = vmatmul.mubr.msk.bf16.vlgmr.msra.gmra.mrb[4].mxu1 %vm1235_vm1, %v3121_v44 }
  0x89   : > { %1404 = vmatpush1.bf16.msra.mxu0 %v2566_v14  ;;  %1445 = vmatpush1.bf16.msra.mxu1 %v2568_v15  ;;  %v508_v14 = vld [vmem:[%s3089_s6 + $0x148] sm:$0xff] }
  0x8a   : > { %1405 = vmatprep.subr.bf16.mxu0 %v2599_v16  ;;  %1446 = vmatprep.subr.bf16.mxu1 %v2601_v17  ;;  %v524_v15 = vld [vmem:[%s3089_s6 + $0x1c8] sm:$0xff]  ;;  %v2574_v16 = vcombine.low %v475_v3, %v491_v4  ;;  %v2576_v17 = vcombine.low %v476_v5, %v492_v6  ;;  %v2675_v3 = vcombine.high %v573_v61, %v589_v62  ;;  %v479_v5 = vld [vmem:[%s3089_s6 + $0x60] sm:$0xff] }
  0x8b   : > { %1435 = vmatprep.mubr.bf16.mxu0 %v2763_v9  ;;  %1476 = vmatprep.mubr.bf16.mxu1 %v2763_v9  ;;  %v2609_v19 = vcombine.high %v508_v14, %v524_v15  ;;  %v495_v6 = vld [vmem:[%s3089_s6 + $0xe0] sm:$0xff] }
  0x8d   : > { %1406 = vmatpush1.bf16.msra.mxu0 %v2598_v22  ;;  %1447 = vmatpush1.bf16.msra.mxu1 %v2600_v23  ;;  %v540_v22 = vld [vmem:[%s3089_s6 + $0x248] sm:$0xff] }
  0x8e   : > { %1407 = vmatprep.subr.bf16.mxu0 %v2631_v24  ;;  %1448 = vmatprep.subr.bf16.mxu1 %v2633_v25  ;;  %v556_v23 = vld [vmem:[%s3089_s6 + $0x2c8] sm:$0xff]  ;;  %v2606_v24 = vcombine.low %v507_v12, %v523_v13  ;;  %v2608_v25 = vcombine.low %v508_v14, %v524_v15  ;;  %v2583_v12 = vcombine.high %v479_v5, %v495_v6  ;;  %v511_v14 = vld [vmem:[%s3089_s6 + $0x160] sm:$0xff] }
  0x8f   : > { %v2641_v27 = vcombine.high %v540_v22, %v556_v23  ;;  %v527_v15 = vld [vmem:[%s3089_s6 + $0x1e0] sm:$0xff] }
  0x91   : > { %1408 = vmatpush1.bf16.msra.mxu0 %v2630_v30  ;;  %1449 = vmatpush1.bf16.msra.mxu1 %v2632_v31  ;;  %v572_v30 = vld [vmem:[%s3089_s6 + $0x348] sm:$0xff] }
  0x92   : > { %1409 = vmatprep.subr.bf16.mxu0 %v2663_v32  ;;  %1450 = vmatprep.subr.bf16.mxu1 %v2665_v33  ;;  %v588_v31 = vld [vmem:[%s3089_s6 + $0x3c8] sm:$0xff]  ;;  %v2638_v32 = vcombine.low %v539_v20, %v555_v21  ;;  %v2640_v33 = vcombine.low %v540_v22, %v556_v23  ;;  %v2615_v20 = vcombine.high %v511_v14, %v527_v15  ;;  %v543_v22 = vld [vmem:[%s3089_s6 + $0x260] sm:$0xff] }
  0x93   : > { %v2673_v35 = vcombine.high %v572_v30, %v588_v31  ;;  %v559_v23 = vld [vmem:[%s3089_s6 + $0x2e0] sm:$0xff] }
  0x95   : > { %1410 = vmatpush1.bf16.msra.mxu0 %v2662_v38  ;;  %1451 = vmatpush1.bf16.msra.mxu1 %v2664_v39  ;;  %v478_v38 = vld [vmem:[%s3089_s6 + $0x58] sm:$0xff] }
  0x96   : > { %1485 = vmatprep.subr.bf16.mxu0 %v2571_v40  ;;  %1526 = vmatprep.subr.bf16.mxu1 %v2573_v41  ;;  %v494_v39 = vld [vmem:[%s3089_s6 + $0xd8] sm:$0xff]  ;;  %v2670_v40 = vcombine.low %v571_v28, %v587_v29  ;;  %v2672_v41 = vcombine.low %v572_v30, %v588_v31  ;;  %v2647_v28 = vcombine.high %v543_v22, %v559_v23  ;;  %v575_v30 = vld [vmem:[%s3089_s6 + $0x360] sm:$0xff] }
  0x97   : > { %v2581_v43 = vcombine.high %v478_v38, %v494_v39  ;;  %v591_v31 = vld [vmem:[%s3089_s6 + $0x3e0] sm:$0xff] }
  0x98   : > { %2690 = vmatmul.mubr.msk.bf16.vlgmr.msra.gmra.mrb[8].mxu0 %vm1235_vm1, %v3121_v44  ;;  %2691 = vmatmul.mubr.msk.bf16.vlgmr.msra.gmra.mrb[8].mxu1 %vm1235_vm1, %v3121_v44 }
  0x99   : > { %1486 = vmatpush1.bf16.msra.mxu0 %v2570_v47  ;;  %1527 = vmatpush1.bf16.msra.mxu1 %v2572_v48  ;;  %v510_v47 = vld [vmem:[%s3089_s6 + $0x158] sm:$0xff] }
  0x9a   : > { %1487 = vmatprep.subr.bf16.mxu0 %v2603_v49  ;;  %1528 = vmatprep.subr.bf16.mxu1 %v2605_v50  ;;  %v526_v48 = vld [vmem:[%s3089_s6 + $0x1d8] sm:$0xff]  ;;  %v2578_v49 = vcombine.low %v477_v36, %v493_v37  ;;  %v2580_v50 = vcombine.low %v478_v38, %v494_v39  ;;  %v2679_v36 = vcombine.high %v575_v30, %v591_v31  ;;  %v481_v38 = vld [vmem:[%s3089_s6 + $0x70] sm:$0xff] }
  0x9b   : > { %1517 = vmatprep.mubr.bf16.mxu0 %v2763_v9  ;;  %1558 = vmatprep.mubr.bf16.mxu1 %v2763_v9  ;;  %v2613_v52 = vcombine.high %v510_v47, %v526_v48  ;;  %v497_v39 = vld [vmem:[%s3089_s6 + $0xf0] sm:$0xff] }
  0x9d   : > { %1488 = vmatpush1.bf16.msra.mxu0 %v2602_v55  ;;  %1529 = vmatpush1.bf16.msra.mxu1 %v2604_v56  ;;  %v542_v55 = vld [vmem:[%s3089_s6 + $0x258] sm:$0xff] }
  0x9e   : > { %1489 = vmatprep.subr.bf16.mxu0 %v2635_v57  ;;  %1530 = vmatprep.subr.bf16.mxu1 %v2637_v58  ;;  %v558_v56 = vld [vmem:[%s3089_s6 + $0x2d8] sm:$0xff]  ;;  %v2610_v57 = vcombine.low %v509_v45, %v525_v46  ;;  %v2612_v58 = vcombine.low %v510_v47, %v526_v48  ;;  %v2587_v45 = vcombine.high %v481_v38, %v497_v39  ;;  %v513_v47 = vld [vmem:[%s3089_s6 + $0x170] sm:$0xff] }
  0x9f   : > { %v2645_v60 = vcombine.high %v542_v55, %v558_v56  ;;  %v529_v48 = vld [vmem:[%s3089_s6 + $0x1f0] sm:$0xff] }
  0xa1   : > { %1490 = vmatpush1.bf16.msra.mxu0 %v2634_v63  ;;  %1531 = vmatpush1.bf16.msra.mxu1 %v2636_v0  ;;  %v574_v63 = vld [vmem:[%s3089_s6 + $0x358] sm:$0xff] }
  0xa2   : > { %1491 = vmatprep.subr.bf16.mxu0 %v2667_v1  ;;  %1532 = vmatprep.subr.bf16.mxu1 %v2669_v2  ;;  %v590_v0 = vld [vmem:[%s3089_s6 + $0x3d8] sm:$0xff]  ;;  %v2642_v1 = vcombine.low %v541_v53, %v557_v54  ;;  %v2644_v2 = vcombine.low %v542_v55, %v558_v56  ;;  %v2619_v53 = vcombine.high %v513_v47, %v529_v48  ;;  %v545_v55 = vld [vmem:[%s3089_s6 + $0x270] sm:$0xff] }
  0xa3   : > { %v2677_v4 = vcombine.high %v574_v63, %v590_v0  ;;  %v561_v56 = vld [vmem:[%s3089_s6 + $0x2f0] sm:$0xff] }
  0xa5   : > { %1492 = vmatpush1.bf16.msra.mxu0 %v2666_v7  ;;  %1533 = vmatpush1.bf16.msra.mxu1 %v2668_v8  ;;  %v480_v7 = vld [vmem:[%s3089_s6 + $0x68] sm:$0xff] }
  0xa6   : > { %1567 = vmatprep.subr.bf16.mxu0 %v2575_v10  ;;  %1608 = vmatprep.subr.bf16.mxu1 %v2577_v11  ;;  %v496_v8 = vld [vmem:[%s3089_s6 + $0xe8] sm:$0xff]  ;;  %v2674_v10 = vcombine.low %v573_v61, %v589_v62  ;;  %v2676_v11 = vcombine.low %v574_v63, %v590_v0  ;;  %v2651_v61 = vcombine.high %v545_v55, %v561_v56  ;;  %v577_v63 = vld [vmem:[%s3089_s6 + $0x370] sm:$0xff] }
  0xa7   : > { %v2585_v13 = vcombine.high %v480_v7, %v496_v8  ;;  %v593_v0 = vld [vmem:[%s3089_s6 + $0x3f0] sm:$0xff] }
  0xa8   : > { %2692 = vmatmul.mubr.msk.bf16.vlgmr.msra.gmra.mrb[12].mxu0 %vm1235_vm1, %v3121_v44  ;;  %2693 = vmatmul.mubr.msk.bf16.vlgmr.msra.gmra.mrb[12].mxu1 %vm1235_vm1, %v3121_v44 }
  0xa9   : > { %1568 = vmatpush1.bf16.msra.mxu0 %v2574_v16  ;;  %1609 = vmatpush1.bf16.msra.mxu1 %v2576_v17  ;;  %v512_v16 = vld [vmem:[%s3089_s6 + $0x168] sm:$0xff] }
  0xaa   : > { %1569 = vmatprep.subr.bf16.mxu0 %v2607_v18  ;;  %1610 = vmatprep.subr.bf16.mxu1 %v2609_v19  ;;  %v528_v17 = vld [vmem:[%s3089_s6 + $0x1e8] sm:$0xff]  ;;  %v2582_v18 = vcombine.low %v479_v5, %v495_v6  ;;  %v2584_v19 = vcombine.low %v480_v7, %v496_v8  ;;  %v2683_v5 = vcombine.high %v577_v63, %v593_v0 }
  0xab   : > { %1599 = vmatprep.mubr.bf16.mxu0 %v2763_v9  ;;  %1640 = vmatprep.mubr.bf16.mxu1 %v2763_v9  ;;  %v2617_v21 = vcombine.high %v512_v16, %v528_v17  ;;  %v2682_v7 = vcombine.low %v577_v63, %v593_v0 }
  0xad   : > { %1570 = vmatpush1.bf16.msra.mxu0 %v2606_v24  ;;  %1611 = vmatpush1.bf16.msra.mxu1 %v2608_v25  ;;  %v544_v24 = vld [vmem:[%s3089_s6 + $0x268] sm:$0xff] }
  0xae   : > { %1571 = vmatprep.subr.bf16.mxu0 %v2639_v26  ;;  %1612 = vmatprep.subr.bf16.mxu1 %v2641_v27  ;;  %v560_v25 = vld [vmem:[%s3089_s6 + $0x2e8] sm:$0xff]  ;;  %v2614_v26 = vcombine.low %v511_v14, %v527_v15  ;;  %v2616_v27 = vcombine.low %v512_v16, %v528_v17 }
  0xaf   : > { %v2649_v29 = vcombine.high %v544_v24, %v560_v25 }
  0xb1   : > { %1572 = vmatpush1.bf16.msra.mxu0 %v2638_v32  ;;  %1613 = vmatpush1.bf16.msra.mxu1 %v2640_v33  ;;  %v576_v32 = vld [vmem:[%s3089_s6 + $0x368] sm:$0xff] }
  0xb2   : > { %1573 = vmatprep.subr.bf16.mxu0 %v2671_v34  ;;  %1614 = vmatprep.subr.bf16.mxu1 %v2673_v35  ;;  %v592_v33 = vld [vmem:[%s3089_s6 + $0x3e8] sm:$0xff]  ;;  %v2646_v34 = vcombine.low %v543_v22, %v559_v23  ;;  %v2648_v35 = vcombine.low %v544_v24, %v560_v25 }
  0xb3   : > { %v2681_v37 = vcombine.high %v576_v32, %v592_v33 }
  0xb5   : > { %1574 = vmatpush1.bf16.msra.mxu0 %v2670_v40  ;;  %1615 = vmatpush1.bf16.msra.mxu1 %v2672_v41  ;;  %v482_v40 = vld [vmem:[%s3089_s6 + $0x78] sm:$0xff] }
  0xb6   : > { %1649 = vmatprep.subr.bf16.mxu0 %v2579_v42  ;;  %1690 = vmatprep.subr.bf16.mxu1 %v2581_v43  ;;  %v498_v41 = vld [vmem:[%s3089_s6 + $0xf8] sm:$0xff]  ;;  %v2678_v42 = vcombine.low %v575_v30, %v591_v31  ;;  %v2680_v43 = vcombine.low %v576_v32, %v592_v33 }
  0xb7   : > { %v2589_v46 = vcombine.high %v482_v40, %v498_v41 }
  0xb8   : > { %2694 = vmatmul.mubr.msk.bf16.vlgmr.msra.gmra.mrb[16].mxu0 %vm1235_vm1, %v3121_v44  ;;  %2695 = vmatmul.mubr.msk.bf16.vlgmr.msra.gmra.mrb[16].mxu1 %vm1235_vm1, %v3121_v44 }
  0xb9   : > { %1650 = vmatpush1.bf16.msra.mxu0 %v2578_v49  ;;  %1691 = vmatpush1.bf16.msra.mxu1 %v2580_v50  ;;  %v514_v49 = vld [vmem:[%s3089_s6 + $0x178] sm:$0xff] }
  0xba   : > { %1651 = vmatprep.subr.bf16.mxu0 %v2611_v51  ;;  %1692 = vmatprep.subr.bf16.mxu1 %v2613_v52  ;;  %v530_v50 = vld [vmem:[%s3089_s6 + $0x1f8] sm:$0xff]  ;;  %v2586_v51 = vcombine.low %v481_v38, %v497_v39  ;;  %v2588_v52 = vcombine.low %v482_v40, %v498_v41 }
  0xbb   : > { %1681 = vmatprep.mubr.bf16.mxu0 %v2763_v9  ;;  %1722 = vmatprep.mubr.bf16.mxu1 %v2763_v9  ;;  %v2621_v54 = vcombine.high %v514_v49, %v530_v50 }
  0xbd   : > { %1652 = vmatpush1.bf16.msra.mxu0 %v2610_v57  ;;  %1693 = vmatpush1.bf16.msra.mxu1 %v2612_v58  ;;  %v546_v57 = vld [vmem:[%s3089_s6 + $0x278] sm:$0xff] }
  0xbe   : > { %1653 = vmatprep.subr.bf16.mxu0 %v2643_v59  ;;  %1694 = vmatprep.subr.bf16.mxu1 %v2645_v60  ;;  %v562_v58 = vld [vmem:[%s3089_s6 + $0x2f8] sm:$0xff]  ;;  %v2618_v59 = vcombine.low %v513_v47, %v529_v48  ;;  %v2620_v60 = vcombine.low %v514_v49, %v530_v50 }
  0xbf   : > { %v2653_v62 = vcombine.high %v546_v57, %v562_v58 }
  0xc1   : > { %1654 = vmatpush1.bf16.msra.mxu0 %v2642_v1  ;;  %1695 = vmatpush1.bf16.msra.mxu1 %v2644_v2  ;;  %v578_v1 = vld [vmem:[%s3089_s6 + $0x378] sm:$0xff] }
  0xc2   : > { %1655 = vmatprep.subr.bf16.mxu0 %v2675_v3  ;;  %1696 = vmatprep.subr.bf16.mxu1 %v2677_v4  ;;  %v594_v2 = vld [vmem:[%s3089_s6 + $0x3f8] sm:$0xff]  ;;  %v2650_v3 = vcombine.low %v545_v55, %v561_v56  ;;  %v2652_v4 = vcombine.low %v546_v57, %v562_v58 }
  0xc3   : > { %v2685_v6 = vcombine.high %v578_v1, %v594_v2  ;;  %v2684_v8 = vcombine.low %v578_v1, %v594_v2 }
  0xc5   : > { %1656 = vmatpush1.bf16.msra.mxu0 %v2674_v10  ;;  %1697 = vmatpush1.bf16.msra.mxu1 %v2676_v11 }
  0xc6   : > { %1731 = vmatprep.subr.bf16.mxu0 %v2583_v12  ;;  %1772 = vmatprep.subr.bf16.mxu1 %v2585_v13 }
  0xc8   : > { %2696 = vmatmul.mubr.msk.bf16.vlgmr.msra.gmra.mrb[20].mxu0 %vm1235_vm1, %v3121_v44  ;;  %2697 = vmatmul.mubr.msk.bf16.vlgmr.msra.gmra.mrb[20].mxu1 %vm1235_vm1, %v3121_v44 }
  0xc9   : > { %1732 = vmatpush1.bf16.msra.mxu0 %v2582_v18  ;;  %1773 = vmatpush1.bf16.msra.mxu1 %v2584_v19 }
  0xca   : > { %1733 = vmatprep.subr.bf16.mxu0 %v2615_v20  ;;  %1774 = vmatprep.subr.bf16.mxu1 %v2617_v21 }
  0xcb   : > { %1763 = vmatprep.mubr.bf16.mxu0 %v2763_v9  ;;  %1804 = vmatprep.mubr.bf16.mxu1 %v2763_v9 }
  0xcd   : > { %1734 = vmatpush1.bf16.msra.mxu0 %v2614_v26  ;;  %1775 = vmatpush1.bf16.msra.mxu1 %v2616_v27 }
  0xce   : > { %1735 = vmatprep.subr.bf16.mxu0 %v2647_v28  ;;  %1776 = vmatprep.subr.bf16.mxu1 %v2649_v29 }
  0xd1   : > { %1736 = vmatpush1.bf16.msra.mxu0 %v2646_v34  ;;  %1777 = vmatpush1.bf16.msra.mxu1 %v2648_v35 }
  0xd2   : > { %1737 = vmatprep.subr.bf16.mxu0 %v2679_v36  ;;  %1778 = vmatprep.subr.bf16.mxu1 %v2681_v37 }
  0xd5   : > { %1738 = vmatpush1.bf16.msra.mxu0 %v2678_v42  ;;  %1779 = vmatpush1.bf16.msra.mxu1 %v2680_v43 }
  0xd6   : > { %1813 = vmatprep.subr.bf16.mxu0 %v2587_v45  ;;  %1854 = vmatprep.subr.bf16.mxu1 %v2589_v46 }
  0xd8   : > { %2698 = vmatmul.mubr.msk.bf16.vlgmr.msra.gmra.mrb[24].mxu0 %vm1235_vm1, %v3121_v44  ;;  %2699 = vmatmul.mubr.msk.bf16.vlgmr.msra.gmra.mrb[24].mxu1 %vm1235_vm1, %v3121_v44 }
  0xd9   : > { %1814 = vmatpush1.bf16.msra.mxu0 %v2586_v51  ;;  %1855 = vmatpush1.bf16.msra.mxu1 %v2588_v52 }
  0xda   : > { %1815 = vmatprep.subr.bf16.mxu0 %v2619_v53  ;;  %1856 = vmatprep.subr.bf16.mxu1 %v2621_v54 }
  0xdb   : > { %1845 = vmatprep.mubr.bf16.mxu0 %v2763_v9  ;;  %1886 = vmatprep.mubr.bf16.mxu1 %v2763_v9 }
  0xdd   : > { %1816 = vmatpush1.bf16.msra.mxu0 %v2618_v59  ;;  %1857 = vmatpush1.bf16.msra.mxu1 %v2620_v60 }
  0xde   : > { %1817 = vmatprep.subr.bf16.mxu0 %v2651_v61  ;;  %1858 = vmatprep.subr.bf16.mxu1 %v2653_v62 }
  0xe1   : > { %1818 = vmatpush1.bf16.msra.mxu0 %v2650_v3  ;;  %1859 = vmatpush1.bf16.msra.mxu1 %v2652_v4 }
  0xe2   : > { %1819 = vmatprep.subr.bf16.mxu0 %v2683_v5  ;;  %1860 = vmatprep.subr.bf16.mxu1 %v2685_v6 }
  0xe5   : > { %1820 = vmatpush1.bf16.msra.mxu0 %v2682_v7  ;;  %1861 = vmatpush1.bf16.msra.mxu1 %v2684_v8 }
  0xe8   : > { %2700 = vmatmul.mubr.msk.bf16.vlgmr.msra.gmra.mrb[28].mxu0 %vm1235_vm1, %v3121_v44  ;;  %2701 = vmatmul.mubr.msk.bf16.vlgmr.msra.gmra.mrb[28].mxu1 %vm1235_vm1, %v3121_v44 }
 0x14b   : > { %v1273_v9 = vpop.f32.mrb[0].mxu0  ;;  %v1314_v12 = vpop.f32.mrb[0].mxu1 }
 0x14c   : > { %v1933_v10 = vmul.f32 %v1273_v9, %v1273_v9  ;;  %2005 = vst [vmem:[%s3277_s14] sm:$0xff] %v1273_v9  ;;  %v1275_v11 = vpop.f32.mrb[1].mxu0  ;;  %v1935_v15 = vmul.f32 %v1314_v12, %v1314_v12  ;;  %2007 = vst [vmem:[%s3277_s14 + $0x10] sm:$0xff] %v1314_v12  ;;  %v1316_v16 = vpop.f32.mrb[1].mxu1 }
 0x14d   : > { %v1896_v13 = vadd.f32 %v1275_v11, %v1273_v9  ;;  %v1934_v14 = vmul.f32 %v1275_v11, %v1275_v11  ;;  %2006 = vst [vmem:[%s3277_s14 + $0x8] sm:$0xff] %v1275_v11  ;;  %v1277_v44 = vpop.f32.mrb[2].mxu0  ;;  %2008 = vst [vmem:[%s3277_s14 + $0x18] sm:$0xff] %v1316_v16  ;;  %v1318_v18 = vpop.f32.mrb[2].mxu1  ;;  %v1936_v21 = vmul.f32 %v1316_v16, %v1316_v16 }
 0x14e   : > { %v1278_v17 = vpop.f32.mrb[3].mxu0  ;;  %v1319_v22 = vpop.f32.mrb[3].mxu1 }
 0x14f   : > { %v1965_v19 = vadd.f32 %v1934_v14, %v1933_v10  ;;  %v1897_v20 = vadd.f32 %v1896_v13, %v1314_v12 }
 0x151   : > { %v1966_v23 = vadd.f32 %v1965_v19, %v1935_v15  ;;  %v1898_v24 = vadd.f32 %v1897_v20, %v1316_v16 }
 0x153   : > { %v1967_v25 = vadd.f32 %v1966_v23, %v1936_v21 }
 0x15b   : > { %v1355_v26 = vpop.f32.mrb[4].mxu0  ;;  %v1396_v30 = vpop.f32.mrb[4].mxu1 }
 0x15c   : > { %v1899_v27 = vadd.f32 %v1898_v24, %v1355_v26  ;;  %v1937_v28 = vmul.f32 %v1355_v26, %v1355_v26  ;;  %2009 = vst [vmem:[%s3277_s14 + $0x20] sm:$0xff] %v1355_v26  ;;  %v1357_v29 = vpop.f32.mrb[5].mxu0  ;;  %2011 = vst [vmem:[%s3277_s14 + $0x30] sm:$0xff] %v1396_v30  ;;  %v1398_v33 = vpop.f32.mrb[5].mxu1  ;;  %v1939_v36 = vmul.f32 %v1396_v30, %v1396_v30 }
 0x15d   : > { %v1938_v31 = vmul.f32 %v1357_v29, %v1357_v29  ;;  %2010 = vst [vmem:[%s3277_s14 + $0x28] sm:$0xff] %v1357_v29  ;;  %v1359_v32 = vpop.f32.mrb[6].mxu0  ;;  %2012 = vst [vmem:[%s3277_s14 + $0x38] sm:$0xff] %v1398_v33  ;;  %v1400_v38 = vpop.f32.mrb[6].mxu1  ;;  %v1940_v42 = vmul.f32 %v1398_v33, %v1398_v33 }
 0x15e   : > { %v1968_v34 = vadd.f32 %v1967_v25, %v1937_v28  ;;  %v1900_v35 = vadd.f32 %v1899_v27, %v1357_v29  ;;  %v1360_v37 = vpop.f32.mrb[7].mxu0  ;;  %v1401_v39 = vpop.f32.mrb[7].mxu1 }
 0x160   : > { %v1969_v40 = vadd.f32 %v1968_v34, %v1938_v31  ;;  %v1901_v41 = vadd.f32 %v1900_v35, %v1396_v30 }
 0x162   : > { %v1970_v43 = vadd.f32 %v1969_v40, %v1939_v36  ;;  %v1902_v45 = vadd.f32 %v1901_v41, %v1398_v33 }
 0x164   : > { %v1971_v46 = vadd.f32 %v1970_v43, %v1940_v42 }
 0x16b   : > { %v1437_v47 = vpop.f32.mrb[8].mxu0  ;;  %v1478_v51 = vpop.f32.mrb[8].mxu1 }
 0x16c   : > { %v1903_v48 = vadd.f32 %v1902_v45, %v1437_v47  ;;  %v1941_v49 = vmul.f32 %v1437_v47, %v1437_v47  ;;  %2013 = vst [vmem:[%s3277_s14 + $0x40] sm:$0xff] %v1437_v47  ;;  %v1439_v50 = vpop.f32.mrb[9].mxu0  ;;  %2015 = vst [vmem:[%s3277_s14 + $0x50] sm:$0xff] %v1478_v51  ;;  %v1480_v54 = vpop.f32.mrb[9].mxu1  ;;  %v1943_v57 = vmul.f32 %v1478_v51, %v1478_v51 }
 0x16d   : > { %v1942_v52 = vmul.f32 %v1439_v50, %v1439_v50  ;;  %2014 = vst [vmem:[%s3277_s14 + $0x48] sm:$0xff] %v1439_v50  ;;  %v1441_v53 = vpop.f32.mrb[10].mxu0  ;;  %2016 = vst [vmem:[%s3277_s14 + $0x58] sm:$0xff] %v1480_v54  ;;  %v1482_v59 = vpop.f32.mrb[10].mxu1  ;;  %v1944_v63 = vmul.f32 %v1480_v54, %v1480_v54 }
 0x16e   : > { %v1972_v55 = vadd.f32 %v1971_v46, %v1941_v49  ;;  %v1904_v56 = vadd.f32 %v1903_v48, %v1439_v50  ;;  %v1442_v58 = vpop.f32.mrb[11].mxu0  ;;  %v1483_v60 = vpop.f32.mrb[11].mxu1 }
 0x170   : > { %v1973_v61 = vadd.f32 %v1972_v55, %v1942_v52  ;;  %v1905_v62 = vadd.f32 %v1904_v56, %v1478_v51 }
 0x172   : > { %v1974_v0 = vadd.f32 %v1973_v61, %v1943_v57  ;;  %v1906_v1 = vadd.f32 %v1905_v62, %v1480_v54 }
 0x174   : > { %v1975_v2 = vadd.f32 %v1974_v0, %v1944_v63 }
 0x17b   : > { %v1519_v3 = vpop.f32.mrb[12].mxu0  ;;  %v1560_v7 = vpop.f32.mrb[12].mxu1 }
 0x17c   : > { %v1907_v4 = vadd.f32 %v1906_v1, %v1519_v3  ;;  %v1945_v5 = vmul.f32 %v1519_v3, %v1519_v3  ;;  %2017 = vst [vmem:[%s3277_s14 + $0x60] sm:$0xff] %v1519_v3  ;;  %v1521_v6 = vpop.f32.mrb[13].mxu0  ;;  %2019 = vst [vmem:[%s3277_s14 + $0x70] sm:$0xff] %v1560_v7  ;;  %v1562_v10 = vpop.f32.mrb[13].mxu1  ;;  %v1947_v13 = vmul.f32 %v1560_v7, %v1560_v7 }
 0x17d   : > { %v1946_v8 = vmul.f32 %v1521_v6, %v1521_v6  ;;  %2018 = vst [vmem:[%s3277_s14 + $0x68] sm:$0xff] %v1521_v6  ;;  %v1523_v9 = vpop.f32.mrb[14].mxu0  ;;  %2020 = vst [vmem:[%s3277_s14 + $0x78] sm:$0xff] %v1562_v10  ;;  %v1564_v44 = vpop.f32.mrb[14].mxu1  ;;  %v1948_v18 = vmul.f32 %v1562_v10, %v1562_v10 }
 0x17e   : > { %v1976_v11 = vadd.f32 %v1975_v2, %v1945_v5  ;;  %v1908_v12 = vadd.f32 %v1907_v4, %v1521_v6  ;;  %v1524_v14 = vpop.f32.mrb[15].mxu0  ;;  %v1565_v15 = vpop.f32.mrb[15].mxu1 }
 0x180   : > { %v1977_v16 = vadd.f32 %v1976_v11, %v1946_v8  ;;  %v1909_v17 = vadd.f32 %v1908_v12, %v1560_v7 }
 0x182   : > { %v1978_v19 = vadd.f32 %v1977_v16, %v1947_v13  ;;  %v1910_v20 = vadd.f32 %v1909_v17, %v1562_v10 }
 0x184   : > { %v1979_v21 = vadd.f32 %v1978_v19, %v1948_v18 }
 0x18b   : > { %v1601_v22 = vpop.f32.mrb[16].mxu0  ;;  %v1642_v26 = vpop.f32.mrb[16].mxu1 }
 0x18c   : > { %v1911_v23 = vadd.f32 %v1910_v20, %v1601_v22  ;;  %v1949_v24 = vmul.f32 %v1601_v22, %v1601_v22  ;;  %2021 = vst [vmem:[%s3277_s14 + $0x80] sm:$0xff] %v1601_v22  ;;  %v1603_v25 = vpop.f32.mrb[17].mxu0  ;;  %2023 = vst [vmem:[%s3277_s14 + $0x90] sm:$0xff] %v1642_v26  ;;  %v1644_v29 = vpop.f32.mrb[17].mxu1  ;;  %v1951_v32 = vmul.f32 %v1642_v26, %v1642_v26 }
 0x18d   : > { %v1950_v27 = vmul.f32 %v1603_v25, %v1603_v25  ;;  %2022 = vst [vmem:[%s3277_s14 + $0x88] sm:$0xff] %v1603_v25  ;;  %v1605_v28 = vpop.f32.mrb[18].mxu0  ;;  %2024 = vst [vmem:[%s3277_s14 + $0x98] sm:$0xff] %v1644_v29  ;;  %v1646_v34 = vpop.f32.mrb[18].mxu1  ;;  %v1952_v38 = vmul.f32 %v1644_v29, %v1644_v29 }
 0x18e   : > { %v1980_v30 = vadd.f32 %v1979_v21, %v1949_v24  ;;  %v1912_v31 = vadd.f32 %v1911_v23, %v1603_v25  ;;  %v1606_v33 = vpop.f32.mrb[19].mxu0  ;;  %v1647_v35 = vpop.f32.mrb[19].mxu1 }
 0x190   : > { %v1981_v36 = vadd.f32 %v1980_v30, %v1950_v27  ;;  %v1913_v37 = vadd.f32 %v1912_v31, %v1642_v26 }
 0x192   : > { %v1982_v39 = vadd.f32 %v1981_v36, %v1951_v32  ;;  %v1914_v40 = vadd.f32 %v1913_v37, %v1644_v29 }
 0x194   : > { %v1983_v41 = vadd.f32 %v1982_v39, %v1952_v38  ;;  %v1895_v38 = vld [vmem:[#allocation2] sm:$0xff] }
 0x19b   : > { %v1683_v42 = vpop.f32.mrb[20].mxu0  ;;  %v1724_v47 = vpop.f32.mrb[20].mxu1 }
 0x19c   : > { %v1915_v43 = vadd.f32 %v1914_v40, %v1683_v42  ;;  %v1953_v45 = vmul.f32 %v1683_v42, %v1683_v42  ;;  %2025 = vst [vmem:[%s3277_s14 + $0xa0] sm:$0xff] %v1683_v42  ;;  %v1685_v46 = vpop.f32.mrb[21].mxu0  ;;  %2027 = vst [vmem:[%s3277_s14 + $0xb0] sm:$0xff] %v1724_v47  ;;  %v1726_v50 = vpop.f32.mrb[21].mxu1  ;;  %v1955_v53 = vmul.f32 %v1724_v47, %v1724_v47 }
 0x19d   : > { %v1954_v48 = vmul.f32 %v1685_v46, %v1685_v46  ;;  %2026 = vst [vmem:[%s3277_s14 + $0xa8] sm:$0xff] %v1685_v46  ;;  %v1687_v49 = vpop.f32.mrb[22].mxu0  ;;  %2028 = vst [vmem:[%s3277_s14 + $0xb8] sm:$0xff] %v1726_v50  ;;  %v1728_v55 = vpop.f32.mrb[22].mxu1  ;;  %v1956_v59 = vmul.f32 %v1726_v50, %v1726_v50 }
 0x19e   : > { %v1984_v51 = vadd.f32 %v1983_v41, %v1953_v45  ;;  %v1916_v52 = vadd.f32 %v1915_v43, %v1685_v46  ;;  %v1688_v54 = vpop.f32.mrb[23].mxu0  ;;  %v1729_v56 = vpop.f32.mrb[23].mxu1  ;;  %v1932_v41 = vld [vmem:[#allocation3] sm:$0xff] }
 0x19f   : > { %v2048_v54 = vld [vmem:[%s4293_s1] sm:$0xff] (!%p2704_p9) }
 0x1a0   : > { %v1985_v57 = vadd.f32 %v1984_v51, %v1954_v48  ;;  %v1917_v58 = vadd.f32 %v1916_v52, %v1724_v47  ;;  %v2764_v47 = vmov (!%p2704_p9), 0  }
 0x1a1   : > { %2735 = vset.pattern.permute.xlu0 (!%p2704_p9), %v2764_v47 }
 0x1a2   : > { %v1986_v60 = vadd.f32 %v1985_v57, %v1955_v53  ;;  %v1918_v61 = vadd.f32 %v1917_v58, %v1726_v50  ;;  %v2052_v57 = vld [vmem:[%s4294_s2] sm:$0xff] (!%p2704_p9) }
 0x1a4   : > { %v1987_v62 = vadd.f32 %v1986_v60, %v1956_v59 }
 0x1ab   : > { %v1765_v63 = vpop.f32.mrb[24].mxu0  ;;  %v1806_v3 = vpop.f32.mrb[24].mxu1 }
 0x1ac   : > { %v1919_v0 = vadd.f32 %v1918_v61, %v1765_v63  ;;  %v1957_v1 = vmul.f32 %v1765_v63, %v1765_v63  ;;  %2029 = vst [vmem:[%s3277_s14 + $0xc0] sm:$0xff] %v1765_v63  ;;  %v1767_v2 = vpop.f32.mrb[25].mxu0  ;;  %2031 = vst [vmem:[%s3277_s14 + $0xd0] sm:$0xff] %v1806_v3  ;;  %v1808_v6 = vpop.f32.mrb[25].mxu1  ;;  %v1959_v9 = vmul.f32 %v1806_v3, %v1806_v3 }
 0x1ad   : > { %v1958_v4 = vmul.f32 %v1767_v2, %v1767_v2  ;;  %2030 = vst [vmem:[%s3277_s14 + $0xc8] sm:$0xff] %v1767_v2  ;;  %v1769_v5 = vpop.f32.mrb[26].mxu0  ;;  %2032 = vst [vmem:[%s3277_s14 + $0xd8] sm:$0xff] %v1808_v6  ;;  %v1810_v11 = vpop.f32.mrb[26].mxu1  ;;  %v1960_v44 = vmul.f32 %v1808_v6, %v1808_v6 }
 0x1ae   : > { %v1988_v7 = vadd.f32 %v1987_v62, %v1957_v1  ;;  %v1920_v8 = vadd.f32 %v1919_v0, %v1767_v2  ;;  %v1770_v10 = vpop.f32.mrb[27].mxu0  ;;  %v1811_v12 = vpop.f32.mrb[27].mxu1 }
 0x1b0   : > { %v1989_v13 = vadd.f32 %v1988_v7, %v1958_v4  ;;  %v1921_v14 = vadd.f32 %v1920_v8, %v1806_v3 }
 0x1b2   : > { %v1990_v15 = vadd.f32 %v1989_v13, %v1959_v9  ;;  %v1922_v16 = vadd.f32 %v1921_v14, %v1808_v6 }
 0x1b4   : > { %v1991_v17 = vadd.f32 %v1990_v15, %v1960_v44 }
 0x1bb   : > { %v1847_v18 = vpop.f32.mrb[28].mxu0  ;;  %v1888_v22 = vpop.f32.mrb[28].mxu1 }
 0x1bc   : > { %v1923_v19 = vadd.f32 %v1922_v16, %v1847_v18  ;;  %v1961_v20 = vmul.f32 %v1847_v18, %v1847_v18  ;;  %2033 = vst [vmem:[%s3277_s14 + $0xe0] sm:$0xff] %v1847_v18  ;;  %v1849_v21 = vpop.f32.mrb[29].mxu0  ;;  %2035 = vst [vmem:[%s3277_s14 + $0xf0] sm:$0xff] %v1888_v22  ;;  %v1890_v25 = vpop.f32.mrb[29].mxu1  ;;  %v1963_v28 = vmul.f32 %v1888_v22, %v1888_v22 }
 0x1bd   : > { %v1962_v23 = vmul.f32 %v1849_v21, %v1849_v21  ;;  %2034 = vst [vmem:[%s3277_s14 + $0xe8] sm:$0xff] %v1849_v21  ;;  %v1851_v24 = vpop.f32.mrb[30].mxu0  ;;  %2036 = vst [vmem:[%s3277_s14 + $0xf8] sm:$0xff] %v1890_v25  ;;  %v1892_v30 = vpop.f32.mrb[30].mxu1  ;;  %v1964_v35 = vmul.f32 %v1890_v25, %v1890_v25 }
 0x1be   : > { %v1992_v26 = vadd.f32 %v1991_v17, %v1961_v20  ;;  %v1924_v27 = vadd.f32 %v1923_v19, %v1849_v21  ;;  %v1852_v29 = vpop.f32.mrb[31].mxu0  ;;  %v1893_v31 = vpop.f32.mrb[31].mxu1 }
 0x1c0   : > { %v1925_v32 = vadd.f32 %v1924_v27, %v1888_v22  ;;  %v1993_v33 = vadd.f32 %v1992_v26, %v1962_v23 }
 0x1c2   : > { %v1926_v34 = vadd.f32 %v1925_v32, %v1890_v25  ;;  %v1994_v36 = vadd.f32 %v1993_v33, %v1963_v28 }
 0x1c4   : > { %1927 = vadd.xlane.f32.xlu0 %v1926_v34  ;;  %v1995_v37 = vadd.f32 %v1994_v36, %v1964_v35  ;;  %v2055_v60 = vld [vmem:[%s4296_s4] sm:$0xff] (!%p2704_p9)  ;;  %v2056_v61 = vld [vmem:[%s4296_s4 + $0x8] sm:$0xff] (!%p2704_p9)  ;;  %v2057_v62 = vld [vmem:[%s4296_s4 + $0x10] sm:$0xff] (!%p2704_p9) }
 0x1c5   : > { %v2058_v63 = vld [vmem:[%s4296_s4 + $0x18] sm:$0xff] (!%p2704_p9)  ;;  %v2059_v0 = vld [vmem:[%s4296_s4 + $0x20] sm:$0xff] (!%p2704_p9)  ;;  %v2060_v1 = vld [vmem:[%s4296_s4 + $0x28] sm:$0xff] (!%p2704_p9) }
 0x1c6   : > { %v2061_v2 = vld [vmem:[%s4296_s4 + $0x30] sm:$0xff] (!%p2704_p9)  ;;  %v2062_v3 = vld [vmem:[%s4296_s4 + $0x38] sm:$0xff] (!%p2704_p9)  ;;  %v2063_v5 = vld [vmem:[%s4296_s4 + $0x40] sm:$0xff] (!%p2704_p9) }
 0x1c7   : > { %v2064_v6 = vld [vmem:[%s4296_s4 + $0x48] sm:$0xff] (!%p2704_p9)  ;;  %v2065_v7 = vld [vmem:[%s4296_s4 + $0x50] sm:$0xff] (!%p2704_p9)  ;;  %v2066_v8 = vld [vmem:[%s4296_s4 + $0x58] sm:$0xff] (!%p2704_p9) }
 0x1c8   : > { %1996 = vadd.xlane.f32.xlu0 %v1995_v37  ;;  %v2067_v9 = vld [vmem:[%s4296_s4 + $0x60] sm:$0xff] (!%p2704_p9)  ;;  %v2068_v10 = vld [vmem:[%s4296_s4 + $0x68] sm:$0xff] (!%p2704_p9)  ;;  %v2069_v11 = vld [vmem:[%s4296_s4 + $0x70] sm:$0xff] (!%p2704_p9) }
 0x1c9   : > { %v2070_v12 = vld [vmem:[%s4296_s4 + $0x78] sm:$0xff] (!%p2704_p9)  ;;  %v2071_v13 = vld [vmem:[%s4296_s4 + $0x80] sm:$0xff] (!%p2704_p9)  ;;  %v2072_v14 = vld [vmem:[%s4296_s4 + $0x88] sm:$0xff] (!%p2704_p9) }
 0x1ca   : > { %v2073_v44 = vld [vmem:[%s4296_s4 + $0x90] sm:$0xff] (!%p2704_p9)  ;;  %v2074_v15 = vld [vmem:[%s4296_s4 + $0x98] sm:$0xff] (!%p2704_p9)  ;;  %v2075_v20 = vld [vmem:[%s4296_s4 + $0xa0] sm:$0xff] (!%p2704_p9) }
 0x1cb   : > { %v2076_v21 = vld [vmem:[%s4296_s4 + $0xa8] sm:$0xff] (!%p2704_p9)  ;;  %v2077_v22 = vld [vmem:[%s4296_s4 + $0xb0] sm:$0xff] (!%p2704_p9)  ;;  %v2078_v27 = vld [vmem:[%s4296_s4 + $0xb8] sm:$0xff] (!%p2704_p9) }
 0x1cc   : > { %v2079_v28 = vld [vmem:[%s4296_s4 + $0xc0] sm:$0xff] (!%p2704_p9)  ;;  %v2080_v29 = vld [vmem:[%s4296_s4 + $0xc8] sm:$0xff] (!%p2704_p9)  ;;  %v2081_v34 = vld [vmem:[%s4296_s4 + $0xd0] sm:$0xff] (!%p2704_p9) }
 0x1cd   : > { %v2082_v35 = vld [vmem:[%s4296_s4 + $0xd8] sm:$0xff] (!%p2704_p9)  ;;  %v2083_v36 = vld [vmem:[%s4296_s4 + $0xe0] sm:$0xff] (!%p2704_p9) }
 0x251   : > { %v1928_v39 = vpop.xlane.xlu0 %1927 }
 0x252   : > { %v1929_v40 = vadd.f32 %v1928_v39, %v1895_v38  ;;  %2040 = sbr.rel (%p2704_p9) target bundleno = 844 (0x34c), region = 67 }
 0x254   : > { %1931 = vst.msk [vmem:[#allocation2] sm:$0xff] %vm1930_vm2, %v1929_v40 }
 0x255   : > { %v1997_v42 = vpop.xlane.xlu0 %1996 }
 0x256   : > { %v1998_v43 = vadd.f32 %v1997_v42, %v1932_v41  ;;  %v2084_v41 = vld [vmem:[%s4296_s4 + $0xe8] sm:$0xff] (!%p2704_p9)  ;;  %v2085_v42 = vld [vmem:[%s4296_s4 + $0xf0] sm:$0xff] (!%p2704_p9) }
 0x258   : > { %1999 = vst.msk [vmem:[#allocation3] sm:$0xff] %vm1930_vm2, %v1998_v43  ;;  %v2086_v43 = vld [vmem:[%s4296_s4 + $0xf8] sm:$0xff] (!%p2704_p9) }
 0x25b   : > { %v2041_v45 = vld [vmem:[#allocation2] sm:$0xff] }
 0x25c   : > { %v2042_v48 = vmul.f32 0.00012207031, %v2041_v45 }
 0x25e   : > { %v2045_v50 = vmul.f32 %v2042_v48, %v2042_v48 }
 0x25f   : > { %v2043_v46 = vld [vmem:[#allocation3] sm:$0xff] }
 0x260   : > { %v2044_v49 = vmul.f32 0.00012207031, %v2043_v46 }
 0x262   : > { %v2046_v51 = vsub.f32 %v2044_v49, %v2045_v50 }
 0x264   : > { %v2047_v52 = vmax.f32 %v2046_v51, 0.0 }
 0x266   : > { %v2049_v53 = vadd.f32 1e-05, %v2047_v52 }
 0x268   : > { %2736 = vrsqrt.f32 %v2049_v53 }
 0x272   : > { %v2737_v55 = vpop.eup %2736 }
 0x273   : > { %v2051_v56 = vmul.f32 %v2737_v55, %v2048_v54 }
 0x275   : > { %2089 = vperm.xlu0 %2735, %v2051_v56   ;;  %v2053_v58 = vmul.f32 %v2051_v56, %v2042_v48 }
 0x277   : > { %v2054_v59 = vsub.f32 %v2052_v57, %v2053_v58 }
 0x279   : > { %2126 = vperm.xlu0 %2735, %v2054_v59  }
 0x2f4   : > { %v3342_v4 = vpop.permute.xlu0 %2089 }
 0x2f5   : > { %v2092_v16 = vmul.f32 %v3342_v4, %v2055_v60  ;;  %v2093_v17 = vmul.f32 %v3342_v4, %v2056_v61  ;;  %v2094_v18 = vmul.f32 %v3342_v4, %v2057_v62  ;;  %v2095_v19 = vmul.f32 %v3342_v4, %v2058_v63 }
 0x2f6   : > { %v2096_v23 = vmul.f32 %v3342_v4, %v2059_v0  ;;  %v2097_v24 = vmul.f32 %v3342_v4, %v2060_v1  ;;  %v2098_v25 = vmul.f32 %v3342_v4, %v2061_v2  ;;  %v2099_v26 = vmul.f32 %v3342_v4, %v2062_v3 }
 0x2f7   : > { %v2100_v30 = vmul.f32 %v3342_v4, %v2063_v5  ;;  %v2101_v31 = vmul.f32 %v3342_v4, %v2064_v6  ;;  %v2102_v32 = vmul.f32 %v3342_v4, %v2065_v7  ;;  %v2103_v33 = vmul.f32 %v3342_v4, %v2066_v8 }
 0x2f8   : > { %v2104_v37 = vmul.f32 %v3342_v4, %v2067_v9  ;;  %v2105_v38 = vmul.f32 %v3342_v4, %v2068_v10  ;;  %v2106_v39 = vmul.f32 %v3342_v4, %v2069_v11  ;;  %v2107_v40 = vmul.f32 %v3342_v4, %v2070_v12  ;;  %v3436_v49 = vpop.permute.xlu0 %2126 }
 0x2f9   : > { %v2108_v45 = vmul.f32 %v3342_v4, %v2071_v13  ;;  %v2109_v46 = vmul.f32 %v3342_v4, %v2072_v14  ;;  %v2110_v47 = vmul.f32 %v3342_v4, %v2073_v44  ;;  %v2111_v48 = vmul.f32 %v3342_v4, %v2074_v15 }
 0x2fa   : > { %v2112_v50 = vmul.f32 %v3342_v4, %v2075_v20  ;;  %v2113_v51 = vmul.f32 %v3342_v4, %v2076_v21  ;;  %v2114_v52 = vmul.f32 %v3342_v4, %v2077_v22  ;;  %v2115_v53 = vmul.f32 %v3342_v4, %v2078_v27 }
 0x2fb   : > { %v2116_v54 = vmul.f32 %v3342_v4, %v2079_v28  ;;  %v2117_v55 = vmul.f32 %v3342_v4, %v2080_v29  ;;  %v2118_v56 = vmul.f32 %v3342_v4, %v2081_v34  ;;  %v2119_v57 = vmul.f32 %v3342_v4, %v2082_v35 }
 0x2fc   : > { %v2120_v58 = vmul.f32 %v3342_v4, %v2083_v36  ;;  %v2121_v59 = vmul.f32 %v3342_v4, %v2084_v41  ;;  %v2122_v60 = vmul.f32 %v3342_v4, %v2085_v42  ;;  %v2123_v61 = vmul.f32 %v3342_v4, %v2086_v43 }
 0x2fd   : > { %v3451_v62 = vadd.f32 %v3436_v49, %v2092_v16  ;;  %v3454_v63 = vadd.f32 %v3436_v49, %v2093_v17  ;;  %v3457_v0 = vadd.f32 %v3436_v49, %v2094_v18  ;;  %v3460_v1 = vadd.f32 %v3436_v49, %v2095_v19 }
 0x2fe   : > { %v3463_v2 = vadd.f32 %v3436_v49, %v2096_v23  ;;  %v3466_v3 = vadd.f32 %v3436_v49, %v2097_v24  ;;  %v3469_v5 = vadd.f32 %v3436_v49, %v2098_v25  ;;  %v3472_v6 = vadd.f32 %v3436_v49, %v2099_v26 }
 0x2ff   : > { %v3475_v7 = vadd.f32 %v3436_v49, %v2100_v30  ;;  %v3478_v8 = vadd.f32 %v3436_v49, %v2101_v31  ;;  %v3481_v9 = vadd.f32 %v3436_v49, %v2102_v32  ;;  %v3484_v10 = vadd.f32 %v3436_v49, %v2103_v33 }
 0x300   : > { %v3487_v11 = vadd.f32 %v3436_v49, %v2104_v37  ;;  %v3490_v12 = vadd.f32 %v3436_v49, %v2105_v38  ;;  %v3493_v13 = vadd.f32 %v3436_v49, %v2106_v39  ;;  %v3496_v14 = vadd.f32 %v3436_v49, %v2107_v40 }
 0x301   : > { %v3499_v44 = vadd.f32 %v3436_v49, %v2108_v45  ;;  %v3502_v15 = vadd.f32 %v3436_v49, %v2109_v46  ;;  %v3505_v16 = vadd.f32 %v3436_v49, %v2110_v47  ;;  %v3508_v17 = vadd.f32 %v3436_v49, %v2111_v48 }
 0x302   : > { %v3511_v18 = vadd.f32 %v3436_v49, %v2112_v50  ;;  %v3514_v19 = vadd.f32 %v3436_v49, %v2113_v51  ;;  %v3517_v20 = vadd.f32 %v3436_v49, %v2114_v52  ;;  %v3520_v21 = vadd.f32 %v3436_v49, %v2115_v53 }
 0x303   : > { %v3523_v22 = vadd.f32 %v3436_v49, %v2116_v54  ;;  %v3526_v23 = vadd.f32 %v3436_v49, %v2117_v55  ;;  %v3529_v24 = vadd.f32 %v3436_v49, %v2118_v56  ;;  %v3532_v25 = vadd.f32 %v3436_v49, %v2119_v57 }
 0x304   : > { %v3535_v26 = vadd.f32 %v3436_v49, %v2120_v58  ;;  %v3538_v27 = vadd.f32 %v3436_v49, %v2121_v59  ;;  %vm2161_vm3 = vcmp.ge.f32.partialorder %v3451_v62, 0.0  ;;  %vm2162_vm4 = vcmp.ge.f32.partialorder %v3454_v63, 0.0 }
 0x305   : > { %vm2163_vm5 = vcmp.ge.f32.partialorder %v3457_v0, 0.0  ;;  %vm2164_vm6 = vcmp.ge.f32.partialorder %v3460_v1, 0.0  ;;  %vm2165_vm7 = vcmp.ge.f32.partialorder %v3463_v2, 0.0  ;;  %vm2166_vm8 = vcmp.ge.f32.partialorder %v3466_v3, 0.0 }
 0x306   : > { %vm2167_vm9 = vcmp.ge.f32.partialorder %v3469_v5, 0.0  ;;  %vm2168_vm10 = vcmp.ge.f32.partialorder %v3472_v6, 0.0  ;;  %vm2169_vm11 = vcmp.ge.f32.partialorder %v3475_v7, 0.0  ;;  %v3551_v28 = vadd.f32 %v3436_v49, %v2122_v60 }
 0x307   : > { %v2193_v29 = vmul.f32 0.2, %v3451_v62  ;;  %v2194_v30 = vmul.f32 0.2, %v3454_v63  ;;  %v2195_v31 = vmul.f32 0.2, %v3457_v0  ;;  %v3561_v32 = vadd.f32 %v3436_v49, %v2123_v61 }
 0x308   : > { %vm2176_vm2 = vcmp.ge.f32.partialorder %v3496_v14, 0.0  ;;  %vm2177_vm13 = vcmp.ge.f32.partialorder %v3499_v44, 0.0  ;;  %v2196_v33 = vmul.f32 0.2, %v3460_v1  ;;  %v2197_v34 = vmul.f32 0.2, %v3463_v2 }
 0x309   : > { %v2198_v35 = vmul.f32 0.2, %v3466_v3  ;;  %vm2182_vm1 = vcmp.ge.f32.partialorder %v3514_v19, 0.0  ;;  %v2199_v36 = vmul.f32 0.2, %v3469_v5  ;;  %v2225_v39 = vsel %vm2161_vm3, %v3451_v62, %v2193_v29 }
 0x30a   : > { %v2200_v37 = vmul.f32 0.2, %v3472_v6  ;;  %v2201_v38 = vmul.f32 0.2, %v3475_v7  ;;  %vm2183_vm14 = vcmp.ge.f32.partialorder %v3517_v20, 0.0  ;;  %v2226_v43 = vsel %vm2162_vm4, %v3454_v63, %v2194_v30  ;;  %2257 = vst [vmem:[%s4296_s4] sm:$0xff] %v2225_v39  ;;  %v2296_v39 = vld [vmem:[%s4296_s4 + $0x138] sm:$0xff] }
 0x30b   : > { %v2202_v40 = vmul.f32 0.2, %v3478_v8  ;;  %v2203_v41 = vmul.f32 0.2, %v3481_v9  ;;  %v2204_v42 = vmul.f32 0.2, %v3484_v10  ;;  %v2227_v48 = vsel %vm2163_vm5, %v3457_v0, %v2195_v31 }
 0x30c   : > { %vm2187_vm3 = vcmp.ge.f32.partialorder %v3529_v24, 0.0  ;;  %vm2188_vm15 = vcmp.ge.f32.partialorder %v3532_v25, 0.0  ;;  %vm2190_vm0 = vcmp.ge.f32.partialorder %v3538_v27, 0.0  ;;  %v2205_v45 = vmul.f32 0.2, %v3487_v11  ;;  %2258 = vst [vmem:[%s4296_s4 + $0x8] sm:$0xff] %v2226_v43 }
 0x30d   : > { %v2206_v46 = vmul.f32 0.2, %v3490_v12  ;;  %v2207_v47 = vmul.f32 0.2, %v3493_v13  ;;  %vm2191_vm4 = vcmp.ge.f32.partialorder %v3551_v28, 0.0  ;;  %vm2192_vm12 = vcmp.ge.f32.partialorder %v3561_v32, 0.0 }
 0x30e   : > { %v2208_v50 = vmul.f32 0.2, %v3496_v14  ;;  %v2209_v51 = vmul.f32 0.2, %v3499_v44  ;;  %v2210_v52 = vmul.f32 0.2, %v3502_v15  ;;  %v2228_v53 = vsel %vm2164_vm6, %v3460_v1, %v2196_v33 }
 0x30f   : > { %2259 = vst [vmem:[%s4296_s4 + $0x10] sm:$0xff] %v2227_v48  ;;  %v2211_v54 = vmul.f32 0.2, %v3505_v16  ;;  %v2212_v55 = vmul.f32 0.2, %v3508_v17  ;;  %v2229_v57 = vsel %vm2165_vm7, %v3463_v2, %v2197_v34  ;;  %2260 = vst [vmem:[%s4296_s4 + $0x18] sm:$0xff] %v2228_v53  ;;  %v2230_v61 = vsel %vm2166_vm8, %v3466_v3, %v2198_v35 }
 0x310   : > { %v2213_v56 = vmul.f32 0.2, %v3511_v18  ;;  %v2214_v58 = vmul.f32 0.2, %v3514_v19  ;;  %v2215_v59 = vmul.f32 0.2, %v3517_v20  ;;  %v2231_v1 = vsel %vm2167_vm9, %v3469_v5, %v2199_v36 }
 0x311   : > { %v2216_v60 = vmul.f32 0.2, %v3520_v21  ;;  %2261 = vst [vmem:[%s4296_s4 + $0x20] sm:$0xff] %v2229_v57  ;;  %v2217_v62 = vmul.f32 0.2, %v3523_v22  ;;  %2262 = vst [vmem:[%s4296_s4 + $0x28] sm:$0xff] %v2230_v61  ;;  %v2232_v30 = vsel %vm2168_vm10, %v3472_v6, %v2200_v37  ;;  %v2233_v33 = vsel %vm2169_vm11, %v3475_v7, %v2201_v38 }
 0x312   : > { %v2218_v63 = vmul.f32 0.2, %v3526_v23  ;;  %v2219_v0 = vmul.f32 0.2, %v3529_v24  ;;  %v2220_v2 = vmul.f32 0.2, %v3532_v25 }
 0x313   : > { %v2221_v3 = vmul.f32 0.2, %v3535_v26  ;;  %v2222_v29 = vmul.f32 0.2, %v3538_v27  ;;  %2263 = vst [vmem:[%s4296_s4 + $0x30] sm:$0xff] %v2231_v1  ;;  %vm4297_vm5 = vcmp.ge.f32.partialorder %v3478_v8, 0.0 }
 0x314   : > { %v2223_v5 = vmul.f32 0.2, %v3551_v28  ;;  %v2224_v31 = vmul.f32 0.2, %v3561_v32  ;;  %v2234_v34 = vsel %vm4297_vm5, %v3478_v8, %v2202_v40  ;;  %2264 = vst [vmem:[%s4296_s4 + $0x38] sm:$0xff] %v2232_v30  ;;  %vm4298_vm6 = vcmp.ge.f32.partialorder %v3481_v9, 0.0 }
 0x315   : > { %v2235_v6 = vsel %vm4298_vm6, %v3481_v9, %v2203_v41  ;;  %vm4299_vm7 = vcmp.ge.f32.partialorder %v3484_v10, 0.0  ;;  %vm4300_vm8 = vcmp.ge.f32.partialorder %v3487_v11, 0.0  ;;  %vm4301_vm9 = vcmp.ge.f32.partialorder %v3490_v12, 0.0  ;;  %2265 = vst [vmem:[%s4296_s4 + $0x40] sm:$0xff] %v2233_v33  ;;  %2266 = vst [vmem:[%s4296_s4 + $0x48] sm:$0xff] %v2234_v34  ;;  %v2293_v36 = vld [vmem:[%s4296_s4 + $0x120] sm:$0xff] }
 0x316   : > { %v2236_v35 = vsel %vm4299_vm7, %v3484_v10, %v2204_v42  ;;  %v2237_v7 = vsel %vm4300_vm8, %v3487_v11, %v2205_v45  ;;  %v2238_v8 = vsel %vm4301_vm9, %v3490_v12, %v2206_v46  ;;  %vm4302_vm10 = vcmp.ge.f32.partialorder %v3493_v13, 0.0  ;;  %2267 = vst [vmem:[%s4296_s4 + $0x50] sm:$0xff] %v2235_v6  ;;  %v2294_v37 = vld [vmem:[%s4296_s4 + $0x128] sm:$0xff]  ;;  %v2295_v38 = vld [vmem:[%s4296_s4 + $0x130] sm:$0xff]  ;;  %v2297_v40 = vld [vmem:[%s4296_s4 + $0x140] sm:$0xff] }
 0x317   : > { %v2239_v9 = vsel %vm4302_vm10, %v3493_v13, %v2207_v47  ;;  %v2240_v10 = vsel %vm2176_vm2, %v3496_v14, %v2208_v50  ;;  %v2241_v11 = vsel %vm2177_vm13, %v3499_v44, %v2209_v51  ;;  %vm4303_vm11 = vcmp.ge.f32.partialorder %v3502_v15, 0.0  ;;  %2268 = vst [vmem:[%s4296_s4 + $0x58] sm:$0xff] %v2236_v35  ;;  %2269 = vst [vmem:[%s4296_s4 + $0x60] sm:$0xff] %v2237_v7  ;;  %v2298_v41 = vld [vmem:[%s4296_s4 + $0x148] sm:$0xff]  ;;  %v2299_v42 = vld [vmem:[%s4296_s4 + $0x150] sm:$0xff] }
 0x318   : > { %v2242_v12 = vsel %vm4303_vm11, %v3502_v15, %v2210_v52  ;;  %2270 = vst [vmem:[%s4296_s4 + $0x68] sm:$0xff] %v2238_v8  ;;  %vm4304_vm13 = vcmp.ge.f32.partialorder %v3505_v16, 0.0  ;;  %vm4305_vm2 = vcmp.ge.f32.partialorder %v3508_v17, 0.0  ;;  %vm4306_vm5 = vcmp.ge.f32.partialorder %v3511_v18, 0.0  ;;  %2271 = vst [vmem:[%s4296_s4 + $0x70] sm:$0xff] %v2239_v9  ;;  %v2300_v43 = vld [vmem:[%s4296_s4 + $0x158] sm:$0xff] }
 0x319   : > { %v2243_v13 = vsel %vm4304_vm13, %v3505_v16, %v2211_v54  ;;  %v2244_v14 = vsel %vm4305_vm2, %v3508_v17, %v2212_v55  ;;  %v2245_v44 = vsel %vm4306_vm5, %v3511_v18, %v2213_v56  ;;  %v2246_v15 = vsel %vm2182_vm1, %v3514_v19, %v2214_v58  ;;  %2272 = vst [vmem:[%s4296_s4 + $0x78] sm:$0xff] %v2240_v10  ;;  %v2301_v45 = vld [vmem:[%s4296_s4 + $0x160] sm:$0xff]  ;;  %v2302_v46 = vld [vmem:[%s4296_s4 + $0x168] sm:$0xff]  ;;  %v2303_v47 = vld [vmem:[%s4296_s4 + $0x170] sm:$0xff] }
 0x31a   : > { %2273 = vst [vmem:[%s4296_s4 + $0x80] sm:$0xff] %v2241_v11  ;;  %2274 = vst [vmem:[%s4296_s4 + $0x88] sm:$0xff] %v2242_v12  ;;  %v2247_v16 = vsel %vm2183_vm14, %v3517_v20, %v2215_v59  ;;  %vm4307_vm1 = vcmp.ge.f32.partialorder %v3520_v21, 0.0  ;;  %vm4308_vm6 = vcmp.ge.f32.partialorder %v3523_v22, 0.0  ;;  %vm4309_vm7 = vcmp.ge.f32.partialorder %v3526_v23, 0.0  ;;  %v2304_v48 = vld [vmem:[%s4296_s4 + $0x178] sm:$0xff] }
 0x31b   : > { %v2248_v17 = vsel %vm4307_vm1, %v3520_v21, %v2216_v60  ;;  %v2249_v18 = vsel %vm4308_vm6, %v3523_v22, %v2217_v62  ;;  %v2250_v19 = vsel %vm4309_vm7, %v3526_v23, %v2218_v63  ;;  %2275 = vst [vmem:[%s4296_s4 + $0x90] sm:$0xff] %v2243_v13  ;;  %2276 = vst [vmem:[%s4296_s4 + $0x98] sm:$0xff] %v2244_v14  ;;  %vm4310_vm14 = vcmp.ge.f32.partialorder %v3535_v26, 0.0  ;;  %v2305_v50 = vld [vmem:[%s4296_s4 + $0x180] sm:$0xff]  ;;  %v2306_v51 = vld [vmem:[%s4296_s4 + $0x188] sm:$0xff] }
 0x31c   : > { %2277 = vst [vmem:[%s4296_s4 + $0xa0] sm:$0xff] %v2245_v44  ;;  %2278 = vst [vmem:[%s4296_s4 + $0xa8] sm:$0xff] %v2246_v15  ;;  %v2251_v20 = vsel %vm2187_vm3, %v3529_v24, %v2219_v0  ;;  %v2252_v21 = vsel %vm2188_vm15, %v3532_v25, %v2220_v2  ;;  %v2253_v22 = vsel %vm4310_vm14, %v3535_v26, %v2221_v3  ;;  %v2289_v26 = vld [vmem:[%s4296_s4 + $0x100] sm:$0xff]  ;;  %v2307_v52 = vld [vmem:[%s4296_s4 + $0x190] sm:$0xff] }
 0x31d   : > { %v2254_v23 = vsel %vm2190_vm0, %v3538_v27, %v2222_v29  ;;  %2279 = vst [vmem:[%s4296_s4 + $0xb0] sm:$0xff] %v2247_v16  ;;  %2280 = vst [vmem:[%s4296_s4 + $0xb8] sm:$0xff] %v2248_v17  ;;  %v2255_v24 = vsel %vm2191_vm4, %v3551_v28, %v2223_v5  ;;  %v2256_v25 = vsel %vm2192_vm12, %v3561_v32, %v2224_v31  ;;  %v2290_v27 = vld [vmem:[%s4296_s4 + $0x108] sm:$0xff]  ;;  %v2291_v28 = vld [vmem:[%s4296_s4 + $0x110] sm:$0xff] }
 0x31e   : > { %2281 = vst [vmem:[%s4296_s4 + $0xc0] sm:$0xff] %v2249_v18  ;;  %2282 = vst [vmem:[%s4296_s4 + $0xc8] sm:$0xff] %v2250_v19  ;;  %v2292_v32 = vld [vmem:[%s4296_s4 + $0x118] sm:$0xff]  ;;  %v2321_v54 = vmul.f32 %v2289_v26, %v3342_v4  ;;  %v2322_v55 = vmul.f32 %v2290_v27, %v3342_v4  ;;  %v2323_v56 = vmul.f32 %v2291_v28, %v3342_v4  ;;  %v2309_v58 = vld [vmem:[%s4296_s4 + $0x1a0] sm:$0xff] }
 0x31f   : > { %2283 = vst [vmem:[%s4296_s4 + $0xd0] sm:$0xff] %v2251_v20  ;;  %2284 = vst [vmem:[%s4296_s4 + $0xd8] sm:$0xff] %v2252_v21  ;;  %v2308_v53 = vld [vmem:[%s4296_s4 + $0x198] sm:$0xff]  ;;  %v2324_v57 = vmul.f32 %v2292_v32, %v3342_v4  ;;  %v2310_v59 = vld [vmem:[%s4296_s4 + $0x1a8] sm:$0xff]  ;;  %v2325_v61 = vmul.f32 %v2293_v36, %v3342_v4  ;;  %v2326_v62 = vmul.f32 %v2294_v37, %v3342_v4 }
 0x320   : > { %2285 = vst [vmem:[%s4296_s4 + $0xe0] sm:$0xff] %v2253_v22  ;;  %2286 = vst [vmem:[%s4296_s4 + $0xe8] sm:$0xff] %v2254_v23  ;;  %v2311_v60 = vld [vmem:[%s4296_s4 + $0x1b0] sm:$0xff]  ;;  %v2327_v63 = vmul.f32 %v2295_v38, %v3342_v4  ;;  %v2328_v0 = vmul.f32 %v2296_v39, %v3342_v4  ;;  %v2312_v1 = vld [vmem:[%s4296_s4 + $0x1b8] sm:$0xff]  ;;  %v2329_v29 = vmul.f32 %v2297_v40, %v3342_v4 }
 0x321   : > { %2287 = vst [vmem:[%s4296_s4 + $0xf0] sm:$0xff] %v2255_v24  ;;  %2288 = vst [vmem:[%s4296_s4 + $0xf8] sm:$0xff] %v2256_v25  ;;  %v2313_v2 = vld [vmem:[%s4296_s4 + $0x1c0] sm:$0xff]  ;;  %v2314_v3 = vld [vmem:[%s4296_s4 + $0x1c8] sm:$0xff]  ;;  %v2330_v30 = vmul.f32 %v2298_v41, %v3342_v4  ;;  %v2331_v5 = vmul.f32 %v2299_v42, %v3342_v4  ;;  %v2332_v31 = vmul.f32 %v2300_v43, %v3342_v4 }
 0x322   : > { %v2315_v33 = vld [vmem:[%s4296_s4 + $0x1d0] sm:$0xff]  ;;  %v2316_v34 = vld [vmem:[%s4296_s4 + $0x1d8] sm:$0xff]  ;;  %v2317_v6 = vld [vmem:[%s4296_s4 + $0x1e0] sm:$0xff]  ;;  %v2333_v35 = vmul.f32 %v2301_v45, %v3342_v4  ;;  %v2334_v7 = vmul.f32 %v2302_v46, %v3342_v4  ;;  %v2335_v8 = vmul.f32 %v2303_v47, %v3342_v4  ;;  %v2336_v9 = vmul.f32 %v2304_v48, %v3342_v4 }
 0x323   : > { %v2318_v10 = vld [vmem:[%s4296_s4 + $0x1e8] sm:$0xff]  ;;  %v2319_v11 = vld [vmem:[%s4296_s4 + $0x1f0] sm:$0xff]  ;;  %v2320_v12 = vld [vmem:[%s4296_s4 + $0x1f8] sm:$0xff]  ;;  %v2337_v13 = vmul.f32 %v2305_v50, %v3342_v4  ;;  %v2338_v14 = vmul.f32 %v2306_v51, %v3342_v4  ;;  %v2339_v44 = vmul.f32 %v2307_v52, %v3342_v4  ;;  %v2340_v15 = vmul.f32 %v2308_v53, %v3342_v4 }
 0x324   : > { %v2341_v16 = vmul.f32 %v2309_v58, %v3342_v4  ;;  %v2342_v17 = vmul.f32 %v2310_v59, %v3342_v4  ;;  %v2343_v18 = vmul.f32 %v2311_v60, %v3342_v4  ;;  %v2344_v19 = vmul.f32 %v2312_v1, %v3342_v4 }
 0x325   : > { %v2345_v20 = vmul.f32 %v2313_v2, %v3342_v4  ;;  %v2346_v21 = vmul.f32 %v2314_v3, %v3342_v4  ;;  %v2347_v22 = vmul.f32 %v2315_v33, %v3342_v4  ;;  %v2348_v23 = vmul.f32 %v2316_v34, %v3342_v4 }
 0x326   : > { %v2349_v24 = vmul.f32 %v2317_v6, %v3342_v4  ;;  %v2350_v25 = vmul.f32 %v2318_v10, %v3342_v4  ;;  %v2351_v26 = vmul.f32 %v2319_v11, %v3342_v4  ;;  %v2352_v27 = vmul.f32 %v2320_v12, %v3342_v4 }
 0x327   : > { %v3931_v28 = vadd.f32 %v2321_v54, %v3436_v49  ;;  %v3934_v32 = vadd.f32 %v2322_v55, %v3436_v49  ;;  %v3937_v36 = vadd.f32 %v2323_v56, %v3436_v49  ;;  %v3940_v37 = vadd.f32 %v2324_v57, %v3436_v49 }
 0x328   : > { %v3943_v38 = vadd.f32 %v2325_v61, %v3436_v49  ;;  %v3946_v39 = vadd.f32 %v2326_v62, %v3436_v49  ;;  %v3949_v4 = vadd.f32 %v2327_v63, %v3436_v49  ;;  %v3952_v40 = vadd.f32 %v2328_v0, %v3436_v49 }
 0x329   : > { %v3955_v41 = vadd.f32 %v2329_v29, %v3436_v49  ;;  %v3958_v42 = vadd.f32 %v2330_v30, %v3436_v49  ;;  %v3961_v43 = vadd.f32 %v2331_v5, %v3436_v49  ;;  %v3964_v45 = vadd.f32 %v2332_v31, %v3436_v49 }
 0x32a   : > { %v3967_v46 = vadd.f32 %v2333_v35, %v3436_v49  ;;  %v3970_v47 = vadd.f32 %v2334_v7, %v3436_v49  ;;  %v3973_v48 = vadd.f32 %v2335_v8, %v3436_v49  ;;  %v3976_v50 = vadd.f32 %v2336_v9, %v3436_v49 }
 0x32b   : > { %v3979_v51 = vadd.f32 %v2337_v13, %v3436_v49  ;;  %v3982_v52 = vadd.f32 %v2338_v14, %v3436_v49  ;;  %v3985_v53 = vadd.f32 %v2339_v44, %v3436_v49  ;;  %v3988_v54 = vadd.f32 %v2340_v15, %v3436_v49 }
 0x32c   : > { %v3991_v55 = vadd.f32 %v2341_v16, %v3436_v49  ;;  %v3994_v56 = vadd.f32 %v2342_v17, %v3436_v49  ;;  %v3997_v57 = vadd.f32 %v2343_v18, %v3436_v49  ;;  %v4000_v58 = vadd.f32 %v2344_v19, %v3436_v49 }
 0x32d   : > { %v4003_v59 = vadd.f32 %v2345_v20, %v3436_v49  ;;  %v4006_v60 = vadd.f32 %v2346_v21, %v3436_v49  ;;  %v4009_v61 = vadd.f32 %v2347_v22, %v3436_v49  ;;  %v4012_v62 = vadd.f32 %v2348_v23, %v3436_v49 }
 0x32e   : > { %v4015_v63 = vadd.f32 %v2349_v24, %v3436_v49  ;;  %v4018_v0 = vadd.f32 %v2350_v25, %v3436_v49  ;;  %vm2385_vm12 = vcmp.ge.f32.partialorder %v3931_v28, 0.0  ;;  %vm2386_vm15 = vcmp.ge.f32.partialorder %v3934_v32, 0.0 }
 0x32f   : > { %vm2387_vm0 = vcmp.ge.f32.partialorder %v3937_v36, 0.0  ;;  %vm2388_vm3 = vcmp.ge.f32.partialorder %v3940_v37, 0.0  ;;  %vm2389_vm4 = vcmp.ge.f32.partialorder %v3943_v38, 0.0  ;;  %vm2390_vm8 = vcmp.ge.f32.partialorder %v3946_v39, 0.0 }
 0x330   : > { %vm2391_vm9 = vcmp.ge.f32.partialorder %v3949_v4, 0.0  ;;  %vm2392_vm10 = vcmp.ge.f32.partialorder %v3952_v40, 0.0  ;;  %vm2393_vm11 = vcmp.ge.f32.partialorder %v3955_v41, 0.0  ;;  %v4031_v1 = vadd.f32 %v2351_v26, %v3436_v49 }
 0x331   : > { %v2417_v2 = vmul.f32 0.2, %v3931_v28  ;;  %v2418_v3 = vmul.f32 0.2, %v3934_v32  ;;  %v2419_v29 = vmul.f32 0.2, %v3937_v36  ;;  %v4041_v30 = vadd.f32 %v2352_v27, %v3436_v49 }
 0x332   : > { %vm2400_vm14 = vcmp.ge.f32.partialorder %v3976_v50, 0.0  ;;  %vm2401_vm2 = vcmp.ge.f32.partialorder %v3979_v51, 0.0  ;;  %v2420_v5 = vmul.f32 0.2, %v3940_v37  ;;  %v2421_v31 = vmul.f32 0.2, %v3943_v38 }
 0x333   : > { %v2422_v33 = vmul.f32 0.2, %v3946_v39  ;;  %vm2406_vm7 = vcmp.ge.f32.partialorder %v3994_v56, 0.0  ;;  %v2423_v49 = vmul.f32 0.2, %v3949_v4  ;;  %v2449_v35 = vsel %vm2385_vm12, %v3931_v28, %v2417_v2 }
 0x334   : > { %v2424_v34 = vmul.f32 0.2, %v3952_v40  ;;  %v2425_v6 = vmul.f32 0.2, %v3955_v41  ;;  %vm2407_vm5 = vcmp.ge.f32.partialorder %v3997_v57, 0.0  ;;  %v2450_v10 = vsel %vm2386_vm15, %v3934_v32, %v2418_v3  ;;  %2481 = vst [vmem:[%s4296_s4 + $0x100] sm:$0xff] %v2449_v35 }
 0x335   : > { %v2426_v7 = vmul.f32 0.2, %v3958_v42  ;;  %v2427_v8 = vmul.f32 0.2, %v3961_v43  ;;  %v2428_v9 = vmul.f32 0.2, %v3964_v45  ;;  %v2451_v14 = vsel %vm2387_vm0, %v3937_v36, %v2419_v29 }
 0x336   : > { %vm2411_vm12 = vcmp.ge.f32.partialorder %v4009_v61, 0.0  ;;  %vm2412_vm1 = vcmp.ge.f32.partialorder %v4012_v62, 0.0  ;;  %vm2414_vm6 = vcmp.ge.f32.partialorder %v4018_v0, 0.0  ;;  %v2429_v11 = vmul.f32 0.2, %v3967_v46  ;;  %2482 = vst [vmem:[%s4296_s4 + $0x108] sm:$0xff] %v2450_v10 }
 0x337   : > { %v2430_v12 = vmul.f32 0.2, %v3970_v47  ;;  %v2431_v13 = vmul.f32 0.2, %v3973_v48  ;;  %vm2415_vm15 = vcmp.ge.f32.partialorder %v4031_v1, 0.0  ;;  %vm2416_vm13 = vcmp.ge.f32.partialorder %v4041_v30, 0.0 }
 0x338   : > { %v2432_v44 = vmul.f32 0.2, %v3976_v50  ;;  %v2433_v15 = vmul.f32 0.2, %v3979_v51  ;;  %v2434_v16 = vmul.f32 0.2, %v3982_v52  ;;  %v2452_v17 = vsel %vm2388_vm3, %v3940_v37, %v2420_v5 }
 0x339   : > { %2483 = vst [vmem:[%s4296_s4 + $0x110] sm:$0xff] %v2451_v14  ;;  %v2435_v18 = vmul.f32 0.2, %v3985_v53  ;;  %v2436_v19 = vmul.f32 0.2, %v3988_v54  ;;  %v2453_v21 = vsel %vm2389_vm4, %v3943_v38, %v2421_v31  ;;  %2484 = vst [vmem:[%s4296_s4 + $0x118] sm:$0xff] %v2452_v17  ;;  %v2454_v25 = vsel %vm2390_vm8, %v3946_v39, %v2422_v33 }
 0x33a   : > { %v2437_v20 = vmul.f32 0.2, %v3991_v55  ;;  %v2438_v22 = vmul.f32 0.2, %v3994_v56  ;;  %v2439_v23 = vmul.f32 0.2, %v3997_v57  ;;  %v2455_v32 = vsel %vm2391_vm9, %v3949_v4, %v2423_v49 }
 0x33b   : > { %v2440_v24 = vmul.f32 0.2, %v4000_v58  ;;  %2485 = vst [vmem:[%s4296_s4 + $0x120] sm:$0xff] %v2453_v21  ;;  %v2441_v26 = vmul.f32 0.2, %v4003_v59  ;;  %2486 = vst [vmem:[%s4296_s4 + $0x128] sm:$0xff] %v2454_v25  ;;  %v2456_v39 = vsel %vm2392_vm10, %v3952_v40, %v2424_v34  ;;  %v2457_v3 = vsel %vm2393_vm11, %v3955_v41, %v2425_v6 }
 0x33c   : > { %v2442_v27 = vmul.f32 0.2, %v4006_v60  ;;  %v2443_v28 = vmul.f32 0.2, %v4009_v61  ;;  %v2444_v36 = vmul.f32 0.2, %v4012_v62 }
 0x33d   : > { %v2445_v37 = vmul.f32 0.2, %v4015_v63  ;;  %v2446_v38 = vmul.f32 0.2, %v4018_v0  ;;  %2487 = vst [vmem:[%s4296_s4 + $0x130] sm:$0xff] %v2455_v32  ;;  %vm4311_vm0 = vcmp.ge.f32.partialorder %v3958_v42, 0.0 }
 0x33e   : > { %v2447_v4 = vmul.f32 0.2, %v4031_v1  ;;  %v2448_v2 = vmul.f32 0.2, %v4041_v30  ;;  %v2458_v29 = vsel %vm4311_vm0, %v3958_v42, %v2426_v7  ;;  %2488 = vst [vmem:[%s4296_s4 + $0x138] sm:$0xff] %v2456_v39  ;;  %vm4312_vm3 = vcmp.ge.f32.partialorder %v3961_v43, 0.0 }
 0x33f   : > { %v2459_v40 = vsel %vm4312_vm3, %v3961_v43, %v2427_v8  ;;  %vm4313_vm4 = vcmp.ge.f32.partialorder %v3964_v45, 0.0  ;;  %vm4314_vm8 = vcmp.ge.f32.partialorder %v3967_v46, 0.0  ;;  %vm4315_vm9 = vcmp.ge.f32.partialorder %v3970_v47, 0.0  ;;  %2489 = vst [vmem:[%s4296_s4 + $0x140] sm:$0xff] %v2457_v3  ;;  %2490 = vst [vmem:[%s4296_s4 + $0x148] sm:$0xff] %v2458_v29 }
 0x340   : > { %v2460_v5 = vsel %vm4313_vm4, %v3964_v45, %v2428_v9  ;;  %v2461_v41 = vsel %vm4314_vm8, %v3967_v46, %v2429_v11  ;;  %v2462_v42 = vsel %vm4315_vm9, %v3970_v47, %v2430_v12  ;;  %vm4316_vm10 = vcmp.ge.f32.partialorder %v3973_v48, 0.0  ;;  %2491 = vst [vmem:[%s4296_s4 + $0x150] sm:$0xff] %v2459_v40 }
 0x341   : > { %v2463_v43 = vsel %vm4316_vm10, %v3973_v48, %v2431_v13  ;;  %v2464_v45 = vsel %vm2400_vm14, %v3976_v50, %v2432_v44  ;;  %v2465_v46 = vsel %vm2401_vm2, %v3979_v51, %v2433_v15  ;;  %vm4317_vm11 = vcmp.ge.f32.partialorder %v3982_v52, 0.0  ;;  %2492 = vst [vmem:[%s4296_s4 + $0x158] sm:$0xff] %v2460_v5  ;;  %2493 = vst [vmem:[%s4296_s4 + $0x160] sm:$0xff] %v2461_v41 }
 0x342   : > { %v2466_v47 = vsel %vm4317_vm11, %v3982_v52, %v2434_v16  ;;  %2494 = vst [vmem:[%s4296_s4 + $0x168] sm:$0xff] %v2462_v42  ;;  %vm4318_vm2 = vcmp.ge.f32.partialorder %v3985_v53, 0.0  ;;  %vm4319_vm14 = vcmp.ge.f32.partialorder %v3988_v54, 0.0  ;;  %vm4320_vm0 = vcmp.ge.f32.partialorder %v3991_v55, 0.0  ;;  %2495 = vst [vmem:[%s4296_s4 + $0x170] sm:$0xff] %v2463_v43 }
 0x343   : > { %v2467_v48 = vsel %vm4318_vm2, %v3985_v53, %v2435_v18  ;;  %v2468_v50 = vsel %vm4319_vm14, %v3988_v54, %v2436_v19  ;;  %v2469_v51 = vsel %vm4320_vm0, %v3991_v55, %v2437_v20  ;;  %v2470_v52 = vsel %vm2406_vm7, %v3994_v56, %v2438_v22  ;;  %2496 = vst [vmem:[%s4296_s4 + $0x178] sm:$0xff] %v2464_v45 }
 0x344   : > { %2497 = vst [vmem:[%s4296_s4 + $0x180] sm:$0xff] %v2465_v46  ;;  %2498 = vst [vmem:[%s4296_s4 + $0x188] sm:$0xff] %v2466_v47  ;;  %v2471_v53 = vsel %vm2407_vm5, %v3997_v57, %v2439_v23  ;;  %vm4321_vm7 = vcmp.ge.f32.partialorder %v4000_v58, 0.0  ;;  %vm4322_vm3 = vcmp.ge.f32.partialorder %v4003_v59, 0.0  ;;  %vm4323_vm4 = vcmp.ge.f32.partialorder %v4006_v60, 0.0 }
 0x345   : > { %v2472_v54 = vsel %vm4321_vm7, %v4000_v58, %v2440_v24  ;;  %v2473_v55 = vsel %vm4322_vm3, %v4003_v59, %v2441_v26  ;;  %v2474_v56 = vsel %vm4323_vm4, %v4006_v60, %v2442_v27  ;;  %2499 = vst [vmem:[%s4296_s4 + $0x190] sm:$0xff] %v2467_v48  ;;  %2500 = vst [vmem:[%s4296_s4 + $0x198] sm:$0xff] %v2468_v50  ;;  %vm4324_vm5 = vcmp.ge.f32.partialorder %v4015_v63, 0.0 }
 0x346   : > { %2501 = vst [vmem:[%s4296_s4 + $0x1a0] sm:$0xff] %v2469_v51  ;;  %2502 = vst [vmem:[%s4296_s4 + $0x1a8] sm:$0xff] %v2470_v52  ;;  %v2475_v57 = vsel %vm2411_vm12, %v4009_v61, %v2443_v28  ;;  %v2476_v58 = vsel %vm2412_vm1, %v4012_v62, %v2444_v36  ;;  %v2477_v59 = vsel %vm4324_vm5, %v4015_v63, %v2445_v37 }
 0x347   : > { %v2478_v60 = vsel %vm2414_vm6, %v4018_v0, %v2446_v38  ;;  %2503 = vst [vmem:[%s4296_s4 + $0x1b0] sm:$0xff] %v2471_v53  ;;  %2504 = vst [vmem:[%s4296_s4 + $0x1b8] sm:$0xff] %v2472_v54  ;;  %v2479_v61 = vsel %vm2415_vm15, %v4031_v1, %v2447_v4  ;;  %v2480_v62 = vsel %vm2416_vm13, %v4041_v30, %v2448_v2 }
 0x348   : > { %2505 = vst [vmem:[%s4296_s4 + $0x1c0] sm:$0xff] %v2473_v55  ;;  %2506 = vst [vmem:[%s4296_s4 + $0x1c8] sm:$0xff] %v2474_v56 }
 0x349   : > { %2507 = vst [vmem:[%s4296_s4 + $0x1d0] sm:$0xff] %v2475_v57  ;;  %2508 = vst [vmem:[%s4296_s4 + $0x1d8] sm:$0xff] %v2476_v58 }
 0x34a   : > { %2509 = vst [vmem:[%s4296_s4 + $0x1e0] sm:$0xff] %v2477_v59  ;;  %2510 = vst [vmem:[%s4296_s4 + $0x1e8] sm:$0xff] %v2478_v60 }
 0x34b   : > { %2511 = vst [vmem:[%s4296_s4 + $0x1f0] sm:$0xff] %v2479_v61  ;;  %2512 = vst [vmem:[%s4296_s4 + $0x1f8] sm:$0xff] %v2480_v62 }
 0x34c PF: > { %p11_p10 = scmp.ge.s32.totalorder %s2809_s19, 4   ;;  %s4325_s15 = smov %s2756_s16 }
 0x34d   : > { %s4326_s16 = smov %s2818_s22  ;;  %s4327_s17 = smov %s2809_s19 }
 0x34e   :  { %13 = sbr.rel (!%p11_p10) target bundleno = 2 (0x2), region = 99 }

// kernel: discriminator_forward.7
= control target key start
LH: loop header
LB: loop body
LE: loop exit
PB: predicated region body
PF: predicated region fallthrough
CT: control target
= control target key end

     0   :  { %v1709_v3 = vmov 0   ;;  %vm22_vm0 = vcmask 7168   ;;  %s2567_s3 = inlined_call_operand.vmem [shape: bf16[128,2048], index: 3, kind: input, shape index: {}]   ;;  %s2568_s0 = inlined_call_operand.vmem [shape: bf16[16,128], index: 0, kind: input, shape index: {}]   ;;  %s2569_s1 = inlined_call_operand.vmem [shape: f32[16,1], index: 1, kind: input, shape index: {}]   ;;  %s2570_s2 = inlined_call_operand.vmem [shape: f32[16,1], index: 2, kind: input, shape index: {}]   ;;  %s2571_s4 = inlined_call_operand.vmem [shape: f32[16,2048], index: 4, kind: output, shape index: {}]  }
   0x1   :  { %v29_v0 = vld [vmem:[%s2567_s3] sm:$0xff]  ;;  %v30_v2 = vld [vmem:[%s2567_s3 + $0x8] sm:$0xff]  ;;  %835 = vmatprep.mubr.bf16.mxu0 %v1709_v3  ;;  %878 = vmatprep.mubr.bf16.mxu1 %v1709_v3  ;;  %v31_v63 = vld [vmem:[%s2567_s3 + $0x10] sm:$0xff] }
   0x2   :  { %v37_v1 = vld [vmem:[%s2567_s3 + $0x40] sm:$0xff]  ;;  %v38_v6 = vld [vmem:[%s2567_s3 + $0x48] sm:$0xff]  ;;  %1702 = vset.pattern.permute.xlu0 %v1709_v3  ;;  %1703 = vset.pattern.permute.xlu1 %v1709_v3 }
   0x3   :  { %v1573_v4 = vcombine.high %v29_v0, %v37_v1  ;;  %v1572_v5 = vcombine.low %v29_v0, %v37_v1  ;;  %v45_v7 = vld [vmem:[%s2567_s3 + $0x80] sm:$0xff]  ;;  %v1575_v9 = vcombine.high %v30_v2, %v38_v6  ;;  %v1574_v10 = vcombine.low %v30_v2, %v38_v6  ;;  %v46_v12 = vld [vmem:[%s2567_s3 + $0x88] sm:$0xff]  ;;  %v39_v0 = vld [vmem:[%s2567_s3 + $0x50] sm:$0xff] }
   0x4   :  { %v53_v8 = vld [vmem:[%s2567_s3 + $0xc0] sm:$0xff]  ;;  %v54_v13 = vld [vmem:[%s2567_s3 + $0xc8] sm:$0xff]  ;;  %v32_v1 = vld [vmem:[%s2567_s3 + $0x18] sm:$0xff]  ;;  %v1577_v6 = vcombine.high %v31_v63, %v39_v0 }
   0x5   :  { %v1589_v11 = vcombine.high %v45_v7, %v53_v8  ;;  %v61_v14 = vld [vmem:[%s2567_s3 + $0x100] sm:$0xff]  ;;  %803 = vmatprep.subr.bf16.mxu0 %v1573_v4  ;;  %v1591_v15 = vcombine.high %v46_v12, %v54_v13  ;;  %v62_v17 = vld [vmem:[%s2567_s3 + $0x108] sm:$0xff]  ;;  %846 = vmatprep.subr.bf16.mxu1 %v1575_v9  ;;  %v1588_v19 = vcombine.low %v45_v7, %v53_v8  ;;  %v40_v2 = vld [vmem:[%s2567_s3 + $0x58] sm:$0xff] }
   0x6   :  { %v69_v16 = vld [vmem:[%s2567_s3 + $0x140] sm:$0xff]  ;;  %v70_v18 = vld [vmem:[%s2567_s3 + $0x148] sm:$0xff]  ;;  %804 = vmatpush1.bf16.msra.mxu0 %v1572_v5  ;;  %847 = vmatpush1.bf16.msra.mxu1 %v1574_v10  ;;  %v1590_v20 = vcombine.low %v46_v12, %v54_v13  ;;  %v1579_v7 = vcombine.high %v32_v1, %v40_v2  ;;  %v47_v8 = vld [vmem:[%s2567_s3 + $0x90] sm:$0xff]  ;;  %v1576_v13 = vcombine.low %v31_v63, %v39_v0 }
   0x7   :  { %805 = vmatprep.subr.bf16.mxu0 %v1589_v11  ;;  %v1605_v21 = vcombine.high %v61_v14, %v69_v16  ;;  %848 = vmatprep.subr.bf16.mxu1 %v1591_v15  ;;  %v1607_v22 = vcombine.high %v62_v17, %v70_v18  ;;  %v77_v23 = vld [vmem:[%s2567_s3 + $0x180] sm:$0xff]  ;;  %v78_v25 = vld [vmem:[%s2567_s3 + $0x188] sm:$0xff]  ;;  %v1604_v27 = vcombine.low %v61_v14, %v69_v16  ;;  %v55_v9 = vld [vmem:[%s2567_s3 + $0xd0] sm:$0xff] }
   0x8   :  { %v85_v24 = vld [vmem:[%s2567_s3 + $0x1c0] sm:$0xff]  ;;  %v86_v26 = vld [vmem:[%s2567_s3 + $0x1c8] sm:$0xff]  ;;  %v1606_v28 = vcombine.low %v62_v17, %v70_v18  ;;  %v48_v11 = vld [vmem:[%s2567_s3 + $0x98] sm:$0xff]  ;;  %v1578_v14 = vcombine.low %v32_v1, %v40_v2  ;;  %v1593_v15 = vcombine.high %v47_v8, %v55_v9 }
   0x9   :  { %v1621_v29 = vcombine.high %v77_v23, %v85_v24  ;;  %v1623_v30 = vcombine.high %v78_v25, %v86_v26  ;;  %v93_v31 = vld [vmem:[%s2567_s3 + $0x200] sm:$0xff]  ;;  %v94_v33 = vld [vmem:[%s2567_s3 + $0x208] sm:$0xff]  ;;  %v1620_v35 = vcombine.low %v77_v23, %v85_v24  ;;  %v1622_v36 = vcombine.low %v78_v25, %v86_v26  ;;  %v56_v12 = vld [vmem:[%s2567_s3 + $0xd8] sm:$0xff] }
   0xa   :  { %806 = vmatpush1.bf16.msra.mxu0 %v1588_v19  ;;  %849 = vmatpush1.bf16.msra.mxu1 %v1590_v20  ;;  %v101_v32 = vld [vmem:[%s2567_s3 + $0x240] sm:$0xff]  ;;  %v102_v34 = vld [vmem:[%s2567_s3 + $0x248] sm:$0xff]  ;;  %v1595_v16 = vcombine.high %v48_v11, %v56_v12  ;;  %v63_v17 = vld [vmem:[%s2567_s3 + $0x110] sm:$0xff] }
   0xb   :  { %807 = vmatprep.subr.bf16.mxu0 %v1605_v21  ;;  %850 = vmatprep.subr.bf16.mxu1 %v1607_v22  ;;  %v1637_v37 = vcombine.high %v93_v31, %v101_v32  ;;  %v1639_v38 = vcombine.high %v94_v33, %v102_v34  ;;  %v109_v39 = vld [vmem:[%s2567_s3 + $0x280] sm:$0xff]  ;;  %v110_v41 = vld [vmem:[%s2567_s3 + $0x288] sm:$0xff]  ;;  %v1636_v43 = vcombine.low %v93_v31, %v101_v32  ;;  %v71_v18 = vld [vmem:[%s2567_s3 + $0x150] sm:$0xff] }
   0xc   :  { %v117_v40 = vld [vmem:[%s2567_s3 + $0x2c0] sm:$0xff]  ;;  %v118_v42 = vld [vmem:[%s2567_s3 + $0x2c8] sm:$0xff]  ;;  %v1638_v44 = vcombine.low %v94_v33, %v102_v34  ;;  %v64_v19 = vld [vmem:[%s2567_s3 + $0x118] sm:$0xff]  ;;  %v1592_v21 = vcombine.low %v47_v8, %v55_v9  ;;  %v1594_v22 = vcombine.low %v48_v11, %v56_v12  ;;  %v1609_v23 = vcombine.high %v63_v17, %v71_v18 }
   0xd   :  { %v1653_v45 = vcombine.high %v109_v39, %v117_v40  ;;  %v1655_v46 = vcombine.high %v110_v41, %v118_v42  ;;  %v125_v47 = vld [vmem:[%s2567_s3 + $0x300] sm:$0xff]  ;;  %v126_v49 = vld [vmem:[%s2567_s3 + $0x308] sm:$0xff]  ;;  %v1652_v51 = vcombine.low %v109_v39, %v117_v40  ;;  %v1654_v52 = vcombine.low %v110_v41, %v118_v42  ;;  %v72_v20 = vld [vmem:[%s2567_s3 + $0x158] sm:$0xff] }
   0xe   :  { %808 = vmatpush1.bf16.msra.mxu0 %v1604_v27  ;;  %851 = vmatpush1.bf16.msra.mxu1 %v1606_v28  ;;  %v133_v48 = vld [vmem:[%s2567_s3 + $0x340] sm:$0xff]  ;;  %v134_v50 = vld [vmem:[%s2567_s3 + $0x348] sm:$0xff]  ;;  %v1611_v24 = vcombine.high %v64_v19, %v72_v20  ;;  %v79_v25 = vld [vmem:[%s2567_s3 + $0x190] sm:$0xff] }
   0xf   :  { %809 = vmatprep.subr.bf16.mxu0 %v1621_v29  ;;  %852 = vmatprep.subr.bf16.mxu1 %v1623_v30  ;;  %v1669_v53 = vcombine.high %v125_v47, %v133_v48  ;;  %v1671_v54 = vcombine.high %v126_v49, %v134_v50  ;;  %v141_v55 = vld [vmem:[%s2567_s3 + $0x380] sm:$0xff]  ;;  %v142_v57 = vld [vmem:[%s2567_s3 + $0x388] sm:$0xff]  ;;  %v1668_v59 = vcombine.low %v125_v47, %v133_v48  ;;  %v87_v26 = vld [vmem:[%s2567_s3 + $0x1d0] sm:$0xff] }
  0x10   :  { %v149_v56 = vld [vmem:[%s2567_s3 + $0x3c0] sm:$0xff]  ;;  %v150_v58 = vld [vmem:[%s2567_s3 + $0x3c8] sm:$0xff]  ;;  %v1670_v60 = vcombine.low %v126_v49, %v134_v50  ;;  %v80_v27 = vld [vmem:[%s2567_s3 + $0x198] sm:$0xff]  ;;  %v1608_v29 = vcombine.low %v63_v17, %v71_v18  ;;  %v1610_v30 = vcombine.low %v64_v19, %v72_v20  ;;  %v1625_v31 = vcombine.high %v79_v25, %v87_v26 }
  0x11   :  { %v1685_v61 = vcombine.high %v141_v55, %v149_v56  ;;  %v1687_v62 = vcombine.high %v142_v57, %v150_v58  ;;  %v1684_v4 = vcombine.low %v141_v55, %v149_v56  ;;  %v1686_v5 = vcombine.low %v142_v57, %v150_v58  ;;  %v1857_v10 = vld [vmem:[%s2568_s0] sm:$0xff]   ;;  %v88_v28 = vld [vmem:[%s2567_s3 + $0x1d8] sm:$0xff]  ;;  %v95_v33 = vld [vmem:[%s2567_s3 + $0x210] sm:$0xff] }
  0x12   :  { %810 = vmatpush1.bf16.msra.mxu0 %v1620_v35  ;;  %853 = vmatpush1.bf16.msra.mxu1 %v1622_v36  ;;  %v1627_v32 = vcombine.high %v80_v27, %v88_v28  ;;  %v103_v34 = vld [vmem:[%s2567_s3 + $0x250] sm:$0xff]  ;;  %v96_v35 = vld [vmem:[%s2567_s3 + $0x218] sm:$0xff]  ;;  %v33_v1 = vld [vmem:[%s2567_s3 + $0x20] sm:$0xff] }
  0x13   :  { %811 = vmatprep.subr.bf16.mxu0 %v1637_v37  ;;  %854 = vmatprep.subr.bf16.mxu1 %v1639_v38  ;;  %v104_v36 = vld [vmem:[%s2567_s3 + $0x258] sm:$0xff]  ;;  %v1624_v37 = vcombine.low %v79_v25, %v87_v26  ;;  %v1626_v38 = vcombine.low %v80_v27, %v88_v28  ;;  %v1641_v39 = vcombine.high %v95_v33, %v103_v34  ;;  %v111_v41 = vld [vmem:[%s2567_s3 + $0x290] sm:$0xff]  ;;  %v41_v2 = vld [vmem:[%s2567_s3 + $0x60] sm:$0xff] }
  0x14   :  { %v1643_v40 = vcombine.high %v96_v35, %v104_v36  ;;  %v119_v42 = vld [vmem:[%s2567_s3 + $0x2d0] sm:$0xff]  ;;  %v1581_v8 = vcombine.high %v33_v1, %v41_v2  ;;  %v49_v11 = vld [vmem:[%s2567_s3 + $0xa0] sm:$0xff] }
  0x15   :  { %v1657_v47 = vcombine.high %v111_v41, %v119_v42  ;;  %v127_v49 = vld [vmem:[%s2567_s3 + $0x310] sm:$0xff]  ;;  %v57_v12 = vld [vmem:[%s2567_s3 + $0xe0] sm:$0xff] }
  0x16   :  { %812 = vmatpush1.bf16.msra.mxu0 %v1636_v43  ;;  %855 = vmatpush1.bf16.msra.mxu1 %v1638_v44  ;;  %v112_v43 = vld [vmem:[%s2567_s3 + $0x298] sm:$0xff]  ;;  %v135_v50 = vld [vmem:[%s2567_s3 + $0x350] sm:$0xff]  ;;  %v1597_v17 = vcombine.high %v49_v11, %v57_v12  ;;  %v65_v19 = vld [vmem:[%s2567_s3 + $0x120] sm:$0xff] }
  0x17   :  { %813 = vmatprep.subr.bf16.mxu0 %v1653_v45  ;;  %856 = vmatprep.subr.bf16.mxu1 %v1655_v46  ;;  %v120_v44 = vld [vmem:[%s2567_s3 + $0x2d8] sm:$0xff]  ;;  %v1640_v45 = vcombine.low %v95_v33, %v103_v34  ;;  %v1642_v46 = vcombine.low %v96_v35, %v104_v36  ;;  %v1673_v55 = vcombine.high %v127_v49, %v135_v50  ;;  %v143_v57 = vld [vmem:[%s2567_s3 + $0x390] sm:$0xff]  ;;  %v73_v20 = vld [vmem:[%s2567_s3 + $0x160] sm:$0xff] }
  0x18   :  { %v1659_v48 = vcombine.high %v112_v43, %v120_v44  ;;  %v151_v58 = vld [vmem:[%s2567_s3 + $0x3d0] sm:$0xff]  ;;  %v1613_v25 = vcombine.high %v65_v19, %v73_v20  ;;  %v81_v27 = vld [vmem:[%s2567_s3 + $0x1a0] sm:$0xff] }
  0x19   :  { %v1689_v63 = vcombine.high %v143_v57, %v151_v58  ;;  %v89_v28 = vld [vmem:[%s2567_s3 + $0x1e0] sm:$0xff] }
  0x1a   :  { %814 = vmatpush1.bf16.msra.mxu0 %v1652_v51  ;;  %857 = vmatpush1.bf16.msra.mxu1 %v1654_v52  ;;  %v128_v51 = vld [vmem:[%s2567_s3 + $0x318] sm:$0xff]  ;;  %v1629_v33 = vcombine.high %v81_v27, %v89_v28  ;;  %v97_v35 = vld [vmem:[%s2567_s3 + $0x220] sm:$0xff] }
  0x1b   :  { %815 = vmatprep.subr.bf16.mxu0 %v1669_v53  ;;  %858 = vmatprep.subr.bf16.mxu1 %v1671_v54  ;;  %v136_v52 = vld [vmem:[%s2567_s3 + $0x358] sm:$0xff]  ;;  %v1656_v53 = vcombine.low %v111_v41, %v119_v42  ;;  %v1658_v54 = vcombine.low %v112_v43, %v120_v44  ;;  %v105_v36 = vld [vmem:[%s2567_s3 + $0x260] sm:$0xff] }
  0x1c   :  { %v1675_v56 = vcombine.high %v128_v51, %v136_v52  ;;  %v1645_v41 = vcombine.high %v97_v35, %v105_v36  ;;  %v113_v43 = vld [vmem:[%s2567_s3 + $0x2a0] sm:$0xff] }
  0x1d   :  { %v121_v44 = vld [vmem:[%s2567_s3 + $0x2e0] sm:$0xff] }
  0x1e   :  { %816 = vmatpush1.bf16.msra.mxu0 %v1668_v59  ;;  %859 = vmatpush1.bf16.msra.mxu1 %v1670_v60  ;;  %v144_v59 = vld [vmem:[%s2567_s3 + $0x398] sm:$0xff] }
  0x1f   :  { %817 = vmatprep.subr.bf16.mxu0 %v1685_v61  ;;  %860 = vmatprep.subr.bf16.mxu1 %v1687_v62  ;;  %v152_v60 = vld [vmem:[%s2567_s3 + $0x3d8] sm:$0xff]  ;;  %v1672_v61 = vcombine.low %v127_v49, %v135_v50  ;;  %v1674_v62 = vcombine.low %v128_v51, %v136_v52  ;;  %v1661_v49 = vcombine.high %v113_v43, %v121_v44  ;;  %v129_v51 = vld [vmem:[%s2567_s3 + $0x320] sm:$0xff] }
  0x20   :  { %v1691_v0 = vcombine.high %v144_v59, %v152_v60  ;;  %v137_v52 = vld [vmem:[%s2567_s3 + $0x360] sm:$0xff] }
  0x22   :  { %818 = vmatpush1.bf16.msra.mxu0 %v1684_v4  ;;  %861 = vmatpush1.bf16.msra.mxu1 %v1686_v5  ;;  %v34_v4 = vld [vmem:[%s2567_s3 + $0x28] sm:$0xff] }
  0x23   :  { %889 = vmatprep.subr.bf16.mxu0 %v1577_v6  ;;  %932 = vmatprep.subr.bf16.mxu1 %v1579_v7  ;;  %v42_v5 = vld [vmem:[%s2567_s3 + $0x68] sm:$0xff]  ;;  %v1688_v6 = vcombine.low %v143_v57, %v151_v58  ;;  %v1690_v7 = vcombine.low %v144_v59, %v152_v60  ;;  %v1677_v57 = vcombine.high %v129_v51, %v137_v52  ;;  %v145_v59 = vld [vmem:[%s2567_s3 + $0x3a0] sm:$0xff] }
  0x24   :  { %v1583_v9 = vcombine.high %v34_v4, %v42_v5  ;;  %v153_v60 = vld [vmem:[%s2567_s3 + $0x3e0] sm:$0xff] }
  0x25   :  { %836 = vmatmul.mubr.bf16.vlgmr.msra.gmra.mrb[0].mxu0 %v1857_v10  ;;  %879 = vmatmul.mubr.bf16.vlgmr.msra.gmra.mrb[0].mxu1 %v1857_v10 }
  0x26   :  { %890 = vmatpush1.bf16.msra.mxu0 %v1576_v13  ;;  %933 = vmatpush1.bf16.msra.mxu1 %v1578_v14  ;;  %v50_v13 = vld [vmem:[%s2567_s3 + $0xa8] sm:$0xff] }
  0x27   :  { %891 = vmatprep.subr.bf16.mxu0 %v1593_v15  ;;  %934 = vmatprep.subr.bf16.mxu1 %v1595_v16  ;;  %v58_v14 = vld [vmem:[%s2567_s3 + $0xe8] sm:$0xff]  ;;  %v1580_v15 = vcombine.low %v33_v1, %v41_v2  ;;  %v1582_v16 = vcombine.low %v34_v4, %v42_v5  ;;  %v1693_v1 = vcombine.high %v145_v59, %v153_v60  ;;  %v35_v4 = vld [vmem:[%s2567_s3 + $0x30] sm:$0xff] }
  0x28   :  { %921 = vmatprep.mubr.bf16.mxu0 %v1709_v3  ;;  %964 = vmatprep.mubr.bf16.mxu1 %v1709_v3  ;;  %v1599_v18 = vcombine.high %v50_v13, %v58_v14  ;;  %v43_v5 = vld [vmem:[%s2567_s3 + $0x70] sm:$0xff] }
  0x2a   :  { %892 = vmatpush1.bf16.msra.mxu0 %v1592_v21  ;;  %935 = vmatpush1.bf16.msra.mxu1 %v1594_v22  ;;  %v66_v21 = vld [vmem:[%s2567_s3 + $0x128] sm:$0xff] }
  0x2b   :  { %893 = vmatprep.subr.bf16.mxu0 %v1609_v23  ;;  %936 = vmatprep.subr.bf16.mxu1 %v1611_v24  ;;  %v74_v22 = vld [vmem:[%s2567_s3 + $0x168] sm:$0xff]  ;;  %v1596_v23 = vcombine.low %v49_v11, %v57_v12  ;;  %v1598_v24 = vcombine.low %v50_v13, %v58_v14  ;;  %v1585_v11 = vcombine.high %v35_v4, %v43_v5  ;;  %v51_v13 = vld [vmem:[%s2567_s3 + $0xb0] sm:$0xff] }
  0x2c   :  { %v1615_v26 = vcombine.high %v66_v21, %v74_v22  ;;  %v59_v14 = vld [vmem:[%s2567_s3 + $0xf0] sm:$0xff] }
  0x2e   :  { %894 = vmatpush1.bf16.msra.mxu0 %v1608_v29  ;;  %937 = vmatpush1.bf16.msra.mxu1 %v1610_v30  ;;  %v82_v29 = vld [vmem:[%s2567_s3 + $0x1a8] sm:$0xff] }
  0x2f   :  { %895 = vmatprep.subr.bf16.mxu0 %v1625_v31  ;;  %938 = vmatprep.subr.bf16.mxu1 %v1627_v32  ;;  %v90_v30 = vld [vmem:[%s2567_s3 + $0x1e8] sm:$0xff]  ;;  %v1612_v31 = vcombine.low %v65_v19, %v73_v20  ;;  %v1614_v32 = vcombine.low %v66_v21, %v74_v22  ;;  %v1601_v19 = vcombine.high %v51_v13, %v59_v14  ;;  %v67_v21 = vld [vmem:[%s2567_s3 + $0x130] sm:$0xff] }
  0x30   :  { %v1631_v34 = vcombine.high %v82_v29, %v90_v30  ;;  %v75_v22 = vld [vmem:[%s2567_s3 + $0x170] sm:$0xff] }
  0x32   :  { %896 = vmatpush1.bf16.msra.mxu0 %v1624_v37  ;;  %939 = vmatpush1.bf16.msra.mxu1 %v1626_v38  ;;  %v98_v37 = vld [vmem:[%s2567_s3 + $0x228] sm:$0xff] }
  0x33   :  { %897 = vmatprep.subr.bf16.mxu0 %v1641_v39  ;;  %940 = vmatprep.subr.bf16.mxu1 %v1643_v40  ;;  %v106_v38 = vld [vmem:[%s2567_s3 + $0x268] sm:$0xff]  ;;  %v1628_v39 = vcombine.low %v81_v27, %v89_v28  ;;  %v1630_v40 = vcombine.low %v82_v29, %v90_v30  ;;  %v1617_v27 = vcombine.high %v67_v21, %v75_v22  ;;  %v83_v29 = vld [vmem:[%s2567_s3 + $0x1b0] sm:$0xff] }
  0x34   :  { %v1647_v42 = vcombine.high %v98_v37, %v106_v38  ;;  %v91_v30 = vld [vmem:[%s2567_s3 + $0x1f0] sm:$0xff] }
  0x36   :  { %898 = vmatpush1.bf16.msra.mxu0 %v1640_v45  ;;  %941 = vmatpush1.bf16.msra.mxu1 %v1642_v46  ;;  %v114_v45 = vld [vmem:[%s2567_s3 + $0x2a8] sm:$0xff] }
  0x37   :  { %899 = vmatprep.subr.bf16.mxu0 %v1657_v47  ;;  %942 = vmatprep.subr.bf16.mxu1 %v1659_v48  ;;  %v122_v46 = vld [vmem:[%s2567_s3 + $0x2e8] sm:$0xff]  ;;  %v1644_v47 = vcombine.low %v97_v35, %v105_v36  ;;  %v1646_v48 = vcombine.low %v98_v37, %v106_v38  ;;  %v1633_v35 = vcombine.high %v83_v29, %v91_v30  ;;  %v99_v37 = vld [vmem:[%s2567_s3 + $0x230] sm:$0xff] }
  0x38   :  { %v1663_v50 = vcombine.high %v114_v45, %v122_v46  ;;  %v107_v38 = vld [vmem:[%s2567_s3 + $0x270] sm:$0xff] }
  0x3a   :  { %900 = vmatpush1.bf16.msra.mxu0 %v1656_v53  ;;  %943 = vmatpush1.bf16.msra.mxu1 %v1658_v54  ;;  %v130_v53 = vld [vmem:[%s2567_s3 + $0x328] sm:$0xff] }
  0x3b   :  { %901 = vmatprep.subr.bf16.mxu0 %v1673_v55  ;;  %944 = vmatprep.subr.bf16.mxu1 %v1675_v56  ;;  %v138_v54 = vld [vmem:[%s2567_s3 + $0x368] sm:$0xff]  ;;  %v1660_v55 = vcombine.low %v113_v43, %v121_v44  ;;  %v1662_v56 = vcombine.low %v114_v45, %v122_v46  ;;  %v115_v44 = vld [vmem:[%s2567_s3 + $0x2b0] sm:$0xff]  ;;  %v116_v46 = vld [vmem:[%s2567_s3 + $0x2b8] sm:$0xff] }
  0x3c   :  { %v1679_v58 = vcombine.high %v130_v53, %v138_v54  ;;  %v123_v45 = vld [vmem:[%s2567_s3 + $0x2f0] sm:$0xff] }
  0x3e   :  { %902 = vmatpush1.bf16.msra.mxu0 %v1672_v61  ;;  %945 = vmatpush1.bf16.msra.mxu1 %v1674_v62  ;;  %v146_v61 = vld [vmem:[%s2567_s3 + $0x3a8] sm:$0xff] }
  0x3f   :  { %903 = vmatprep.subr.bf16.mxu0 %v1689_v63  ;;  %946 = vmatprep.subr.bf16.mxu1 %v1691_v0  ;;  %v154_v62 = vld [vmem:[%s2567_s3 + $0x3e8] sm:$0xff]  ;;  %v1676_v63 = vcombine.low %v129_v51, %v137_v52  ;;  %v1678_v0 = vcombine.low %v130_v53, %v138_v54  ;;  %v131_v52 = vld [vmem:[%s2567_s3 + $0x330] sm:$0xff]  ;;  %v132_v54 = vld [vmem:[%s2567_s3 + $0x338] sm:$0xff] }
  0x40   :  { %v1695_v2 = vcombine.high %v146_v61, %v154_v62  ;;  %v139_v53 = vld [vmem:[%s2567_s3 + $0x370] sm:$0xff] }
  0x42   :  { %904 = vmatpush1.bf16.msra.mxu0 %v1688_v6  ;;  %947 = vmatpush1.bf16.msra.mxu1 %v1690_v7  ;;  %v36_v6 = vld [vmem:[%s2567_s3 + $0x38] sm:$0xff] }
  0x43   :  { %975 = vmatprep.subr.bf16.mxu0 %v1581_v8  ;;  %1018 = vmatprep.subr.bf16.mxu1 %v1583_v9  ;;  %v44_v7 = vld [vmem:[%s2567_s3 + $0x78] sm:$0xff]  ;;  %v1692_v8 = vcombine.low %v145_v59, %v153_v60  ;;  %v1694_v9 = vcombine.low %v146_v61, %v154_v62  ;;  %v147_v60 = vld [vmem:[%s2567_s3 + $0x3b0] sm:$0xff] }
  0x44   :  { %v1587_v12 = vcombine.high %v36_v6, %v44_v7  ;;  %v155_v61 = vld [vmem:[%s2567_s3 + $0x3f0] sm:$0xff]  ;;  %v148_v62 = vld [vmem:[%s2567_s3 + $0x3b8] sm:$0xff] }
  0x45   :  { %922 = vmatmul.mubr.bf16.vlgmr.msra.gmra.mrb[4].mxu0 %v1857_v10  ;;  %965 = vmatmul.mubr.bf16.vlgmr.msra.gmra.mrb[4].mxu1 %v1857_v10 }
  0x46   :  { %976 = vmatpush1.bf16.msra.mxu0 %v1580_v15  ;;  %1019 = vmatpush1.bf16.msra.mxu1 %v1582_v16  ;;  %v52_v15 = vld [vmem:[%s2567_s3 + $0xb8] sm:$0xff] }
  0x47   :  { %977 = vmatprep.subr.bf16.mxu0 %v1597_v17  ;;  %1020 = vmatprep.subr.bf16.mxu1 %v1599_v18  ;;  %v60_v16 = vld [vmem:[%s2567_s3 + $0xf8] sm:$0xff]  ;;  %v1584_v17 = vcombine.low %v35_v4, %v43_v5  ;;  %v1586_v18 = vcombine.low %v36_v6, %v44_v7  ;;  %v1696_v5 = vcombine.low %v147_v60, %v155_v61  ;;  %v1710_v7 = vmov 0.0  }
  0x48   :  { %1007 = vmatprep.mubr.bf16.mxu0 %v1709_v3  ;;  %1050 = vmatprep.mubr.bf16.mxu1 %v1709_v3  ;;  %v1603_v20 = vcombine.high %v52_v15, %v60_v16  ;;  %23 = vst.msk [vmem:[#allocation2] sm:$0xff] %vm22_vm0, %v1710_v7  ;;  %24 = vst.msk [vmem:[#allocation2 + $0x8] sm:$0xff] %vm22_vm0, %v1710_v7 }
  0x49   :  { %25 = vst.msk [vmem:[#allocation3] sm:$0xff] %vm22_vm0, %v1710_v7  ;;  %26 = vst.msk [vmem:[#allocation3 + $0x8] sm:$0xff] %vm22_vm0, %v1710_v7 }
  0x4a   :  { %978 = vmatpush1.bf16.msra.mxu0 %v1596_v23  ;;  %1021 = vmatpush1.bf16.msra.mxu1 %v1598_v24  ;;  %v68_v23 = vld [vmem:[%s2567_s3 + $0x138] sm:$0xff] }
  0x4b   :  { %979 = vmatprep.subr.bf16.mxu0 %v1613_v25  ;;  %1022 = vmatprep.subr.bf16.mxu1 %v1615_v26  ;;  %v76_v24 = vld [vmem:[%s2567_s3 + $0x178] sm:$0xff]  ;;  %v1600_v25 = vcombine.low %v51_v13, %v59_v14  ;;  %v1602_v26 = vcombine.low %v52_v15, %v60_v16 }
  0x4c   :  { %v1619_v28 = vcombine.high %v68_v23, %v76_v24 }
  0x4e   :  { %980 = vmatpush1.bf16.msra.mxu0 %v1612_v31  ;;  %1023 = vmatpush1.bf16.msra.mxu1 %v1614_v32  ;;  %v84_v31 = vld [vmem:[%s2567_s3 + $0x1b8] sm:$0xff] }
  0x4f   :  { %981 = vmatprep.subr.bf16.mxu0 %v1629_v33  ;;  %1024 = vmatprep.subr.bf16.mxu1 %v1631_v34  ;;  %v92_v32 = vld [vmem:[%s2567_s3 + $0x1f8] sm:$0xff]  ;;  %v1616_v33 = vcombine.low %v67_v21, %v75_v22  ;;  %v1618_v34 = vcombine.low %v68_v23, %v76_v24 }
  0x50   :  { %v1635_v36 = vcombine.high %v84_v31, %v92_v32 }
  0x52   :  { %982 = vmatpush1.bf16.msra.mxu0 %v1628_v39  ;;  %1025 = vmatpush1.bf16.msra.mxu1 %v1630_v40  ;;  %v108_v39 = vld [vmem:[%s2567_s3 + $0x278] sm:$0xff]  ;;  %v1632_v40 = vcombine.low %v83_v29, %v91_v30 }
  0x53   :  { %983 = vmatprep.subr.bf16.mxu0 %v1645_v41  ;;  %1026 = vmatprep.subr.bf16.mxu1 %v1647_v42  ;;  %v1634_v41 = vcombine.low %v84_v31, %v92_v32  ;;  %v1649_v42 = vcombine.high %v99_v37, %v107_v38 }
  0x56   :  { %984 = vmatpush1.bf16.msra.mxu0 %v1644_v47  ;;  %1027 = vmatpush1.bf16.msra.mxu1 %v1646_v48  ;;  %v124_v47 = vld [vmem:[%s2567_s3 + $0x2f8] sm:$0xff]  ;;  %v1648_v48 = vcombine.low %v99_v37, %v107_v38 }
  0x57   :  { %985 = vmatprep.subr.bf16.mxu0 %v1661_v49  ;;  %1028 = vmatprep.subr.bf16.mxu1 %v1663_v50  ;;  %v1665_v50 = vcombine.high %v115_v44, %v123_v45  ;;  %v1667_v51 = vcombine.high %v116_v46, %v124_v47 }
  0x5a   :  { %986 = vmatpush1.bf16.msra.mxu0 %v1660_v55  ;;  %1029 = vmatpush1.bf16.msra.mxu1 %v1662_v56  ;;  %v140_v55 = vld [vmem:[%s2567_s3 + $0x378] sm:$0xff]  ;;  %v1664_v56 = vcombine.low %v115_v44, %v123_v45 }
  0x5b   :  { %987 = vmatprep.subr.bf16.mxu0 %v1677_v57  ;;  %1030 = vmatprep.subr.bf16.mxu1 %v1679_v58  ;;  %v1666_v57 = vcombine.low %v116_v46, %v124_v47  ;;  %v1681_v58 = vcombine.high %v131_v52, %v139_v53  ;;  %v1683_v59 = vcombine.high %v132_v54, %v140_v55 }
  0x5e   :  { %988 = vmatpush1.bf16.msra.mxu0 %v1676_v63  ;;  %1031 = vmatpush1.bf16.msra.mxu1 %v1678_v0  ;;  %v156_v63 = vld [vmem:[%s2567_s3 + $0x3f8] sm:$0xff]  ;;  %v1680_v0 = vcombine.low %v131_v52, %v139_v53 }
  0x5f   :  { %989 = vmatprep.subr.bf16.mxu0 %v1693_v1  ;;  %1032 = vmatprep.subr.bf16.mxu1 %v1695_v2  ;;  %v1682_v1 = vcombine.low %v132_v54, %v140_v55  ;;  %v1697_v2 = vcombine.high %v147_v60, %v155_v61  ;;  %v1699_v4 = vcombine.high %v148_v62, %v156_v63 }
  0x60   :  { %v1698_v6 = vcombine.low %v148_v62, %v156_v63 }
  0x62   :  { %990 = vmatpush1.bf16.msra.mxu0 %v1692_v8  ;;  %1033 = vmatpush1.bf16.msra.mxu1 %v1694_v9 }
  0x63   :  { %1061 = vmatprep.subr.bf16.mxu0 %v1585_v11  ;;  %1104 = vmatprep.subr.bf16.mxu1 %v1587_v12 }
  0x65   :  { %1008 = vmatmul.mubr.bf16.vlgmr.msra.gmra.mrb[8].mxu0 %v1857_v10  ;;  %1051 = vmatmul.mubr.bf16.vlgmr.msra.gmra.mrb[8].mxu1 %v1857_v10 }
  0x66   :  { %1062 = vmatpush1.bf16.msra.mxu0 %v1584_v17  ;;  %1105 = vmatpush1.bf16.msra.mxu1 %v1586_v18 }
  0x67   :  { %1063 = vmatprep.subr.bf16.mxu0 %v1601_v19  ;;  %1106 = vmatprep.subr.bf16.mxu1 %v1603_v20 }
  0x68   :  { %1093 = vmatprep.mubr.bf16.mxu0 %v1709_v3  ;;  %1136 = vmatprep.mubr.bf16.mxu1 %v1709_v3  ;;  %v100_v3 = vld [vmem:[%s2567_s3 + $0x238] sm:$0xff] }
  0x69   :  { %v1651_v43 = vcombine.high %v100_v3, %v108_v39  ;;  %v1650_v49 = vcombine.low %v100_v3, %v108_v39 }
  0x6a   :  { %1064 = vmatpush1.bf16.msra.mxu0 %v1600_v25  ;;  %1107 = vmatpush1.bf16.msra.mxu1 %v1602_v26 }
  0x6b   :  { %1065 = vmatprep.subr.bf16.mxu0 %v1617_v27  ;;  %1108 = vmatprep.subr.bf16.mxu1 %v1619_v28 }
  0x6e   :  { %1066 = vmatpush1.bf16.msra.mxu0 %v1616_v33  ;;  %1109 = vmatpush1.bf16.msra.mxu1 %v1618_v34 }
  0x6f   :  { %1067 = vmatprep.subr.bf16.mxu0 %v1633_v35  ;;  %1110 = vmatprep.subr.bf16.mxu1 %v1635_v36 }
  0x72   :  { %1068 = vmatpush1.bf16.msra.mxu0 %v1632_v40  ;;  %1111 = vmatpush1.bf16.msra.mxu1 %v1634_v41 }
  0x73   :  { %1069 = vmatprep.subr.bf16.mxu0 %v1649_v42  ;;  %1112 = vmatprep.subr.bf16.mxu1 %v1651_v43 }
  0x76   :  { %1070 = vmatpush1.bf16.msra.mxu0 %v1648_v48  ;;  %1113 = vmatpush1.bf16.msra.mxu1 %v1650_v49 }
  0x77   :  { %1071 = vmatprep.subr.bf16.mxu0 %v1665_v50  ;;  %1114 = vmatprep.subr.bf16.mxu1 %v1667_v51 }
  0x7a   :  { %1072 = vmatpush1.bf16.msra.mxu0 %v1664_v56  ;;  %1115 = vmatpush1.bf16.msra.mxu1 %v1666_v57 }
  0x7b   :  { %1073 = vmatprep.subr.bf16.mxu0 %v1681_v58  ;;  %1116 = vmatprep.subr.bf16.mxu1 %v1683_v59 }
  0x7e   :  { %1074 = vmatpush1.bf16.msra.mxu0 %v1680_v0  ;;  %1117 = vmatpush1.bf16.msra.mxu1 %v1682_v1 }
  0x7f   :  { %1075 = vmatprep.subr.bf16.mxu0 %v1697_v2  ;;  %1118 = vmatprep.subr.bf16.mxu1 %v1699_v4 }
  0x82   :  { %1076 = vmatpush1.bf16.msra.mxu0 %v1696_v5  ;;  %1119 = vmatpush1.bf16.msra.mxu1 %v1698_v6 }
  0x85   :  { %1094 = vmatmul.mubr.bf16.vlgmr.msra.gmra.mrb[12].mxu0 %v1857_v10  ;;  %1137 = vmatmul.mubr.bf16.vlgmr.msra.gmra.mrb[12].mxu1 %v1857_v10 }
  0xf8   :  { %v2147_v8 = vpop.f32.mrb[0].mxu0  ;;  %v2153_v12 = vpop.f32.mrb[0].mxu1 }
  0xf9   :  { %v1190_v9 = vmul.f32 %v2147_v8, %v2147_v8  ;;  %v2151_v11 = vpop.f32.mrb[1].mxu0  ;;  %v1192_v15 = vmul.f32 %v2153_v12, %v2153_v12  ;;  %v2163_v16 = vpop.f32.mrb[1].mxu1 }
  0xfa   :  { %v1149_v10 = vadd.f32 %v2151_v11, %v2147_v8  ;;  %v1191_v13 = vmul.f32 %v2151_v11, %v2151_v11  ;;  %v2159_v14 = vpop.f32.mrb[2].mxu0  ;;  %v1193_v19 = vmul.f32 %v2163_v16, %v2163_v16  ;;  %v2171_v20 = vpop.f32.mrb[2].mxu1 }
  0xfb   :  { %v1206_v17 = vmul.f32 %v2159_v14, %v2159_v14  ;;  %v2167_v18 = vpop.f32.mrb[3].mxu0  ;;  %v2178_v25 = vpop.f32.mrb[3].mxu1  ;;  %v1208_v26 = vmul.f32 %v2171_v20, %v2171_v20 }
  0xfc   :  { %v1222_v21 = vadd.f32 %v1191_v13, %v1190_v9  ;;  %v1150_v22 = vadd.f32 %v1149_v10, %v2153_v12  ;;  %v1166_v23 = vadd.f32 %v2167_v18, %v2159_v14  ;;  %v1207_v24 = vmul.f32 %v2167_v18, %v2167_v18 }
  0xfd   :  { %v1209_v34 = vmul.f32 %v2178_v25, %v2178_v25 }
  0xfe   :  { %v1223_v27 = vadd.f32 %v1222_v21, %v1192_v15  ;;  %v1239_v28 = vadd.f32 %v1207_v24, %v1206_v17  ;;  %v1151_v29 = vadd.f32 %v1150_v22, %v2163_v16  ;;  %v1167_v30 = vadd.f32 %v1166_v23, %v2171_v20 }
 0x100   :  { %v1224_v31 = vadd.f32 %v1223_v27, %v1193_v19  ;;  %v1240_v32 = vadd.f32 %v1239_v28, %v1208_v26  ;;  %v1168_v33 = vadd.f32 %v1167_v30, %v2178_v25 }
 0x102   :  { %v1241_v35 = vadd.f32 %v1240_v32, %v1209_v34 }
 0x118   :  { %v2187_v36 = vpop.f32.mrb[4].mxu0  ;;  %v2194_v39 = vpop.f32.mrb[4].mxu1 }
 0x119   :  { %v1152_v37 = vadd.f32 %v1151_v29, %v2187_v36  ;;  %v1194_v38 = vmul.f32 %v2187_v36, %v2187_v36  ;;  %v2192_v3 = vpop.f32.mrb[5].mxu0  ;;  %v1196_v42 = vmul.f32 %v2194_v39, %v2194_v39  ;;  %v2202_v43 = vpop.f32.mrb[5].mxu1 }
 0x11a   :  { %v1195_v40 = vmul.f32 %v2192_v3, %v2192_v3  ;;  %v2198_v41 = vpop.f32.mrb[6].mxu0  ;;  %v2210_v49 = vpop.f32.mrb[6].mxu1  ;;  %v1197_v51 = vmul.f32 %v2202_v43, %v2202_v43 }
 0x11b   :  { %v1225_v44 = vadd.f32 %v1224_v31, %v1194_v38  ;;  %v1153_v45 = vadd.f32 %v1152_v37, %v2192_v3  ;;  %v1169_v46 = vadd.f32 %v1168_v33, %v2198_v41  ;;  %v1210_v47 = vmul.f32 %v2198_v41, %v2198_v41  ;;  %v2208_v48 = vpop.f32.mrb[7].mxu0  ;;  %v2218_v53 = vpop.f32.mrb[7].mxu1 }
 0x11c   :  { %v1211_v50 = vmul.f32 %v2208_v48, %v2208_v48  ;;  %v1212_v52 = vmul.f32 %v2210_v49, %v2210_v49  ;;  %v1213_v1 = vmul.f32 %v2218_v53, %v2218_v53 }
 0x11d   :  { %v1226_v54 = vadd.f32 %v1225_v44, %v1195_v40  ;;  %v1242_v55 = vadd.f32 %v1241_v35, %v1210_v47  ;;  %v1154_v56 = vadd.f32 %v1153_v45, %v2194_v39  ;;  %v1170_v57 = vadd.f32 %v1169_v46, %v2208_v48 }
 0x11f   :  { %v1227_v58 = vadd.f32 %v1226_v54, %v1196_v42  ;;  %v1243_v59 = vadd.f32 %v1242_v55, %v1211_v50  ;;  %v1155_v60 = vadd.f32 %v1154_v56, %v2202_v43  ;;  %v1171_v61 = vadd.f32 %v1170_v57, %v2210_v49 }
 0x121   :  { %v1228_v62 = vadd.f32 %v1227_v58, %v1197_v51  ;;  %v1244_v63 = vadd.f32 %v1243_v59, %v1212_v52  ;;  %v1172_v0 = vadd.f32 %v1171_v61, %v2218_v53 }
 0x123   :  { %v1245_v2 = vadd.f32 %v1244_v63, %v1213_v1 }
 0x138   :  { %v2227_v4 = vpop.f32.mrb[8].mxu0  ;;  %v2234_v9 = vpop.f32.mrb[8].mxu1 }
 0x139   :  { %v1156_v5 = vadd.f32 %v1155_v60, %v2227_v4  ;;  %v1198_v6 = vmul.f32 %v2227_v4, %v2227_v4  ;;  %v2232_v7 = vpop.f32.mrb[9].mxu0  ;;  %v1200_v15 = vmul.f32 %v2234_v9, %v2234_v9  ;;  %v2242_v17 = vpop.f32.mrb[9].mxu1 }
 0x13a   :  { %v1199_v10 = vmul.f32 %v2232_v7, %v2232_v7  ;;  %v2238_v13 = vpop.f32.mrb[10].mxu0  ;;  %v2250_v26 = vpop.f32.mrb[10].mxu1  ;;  %v1201_v28 = vmul.f32 %v2242_v17, %v2242_v17 }
 0x13b   :  { %v1229_v19 = vadd.f32 %v1228_v62, %v1198_v6  ;;  %v1157_v21 = vadd.f32 %v1156_v5, %v2232_v7  ;;  %v1173_v22 = vadd.f32 %v1172_v0, %v2238_v13  ;;  %v1214_v23 = vmul.f32 %v2238_v13, %v2238_v13  ;;  %v2248_v24 = vpop.f32.mrb[11].mxu0  ;;  %v2258_v30 = vpop.f32.mrb[11].mxu1 }
 0x13c   :  { %v1215_v27 = vmul.f32 %v2248_v24, %v2248_v24  ;;  %v1216_v29 = vmul.f32 %v2250_v26, %v2250_v26  ;;  %v1217_v46 = vmul.f32 %v2258_v30, %v2258_v30 }
 0x13d   :  { %v1230_v31 = vadd.f32 %v1229_v19, %v1199_v10  ;;  %v1246_v32 = vadd.f32 %v1245_v2, %v1214_v23  ;;  %v1158_v33 = vadd.f32 %v1157_v21, %v2234_v9  ;;  %v1174_v34 = vadd.f32 %v1173_v22, %v2248_v24 }
 0x13f   :  { %v1231_v35 = vadd.f32 %v1230_v31, %v1200_v15  ;;  %v1247_v37 = vadd.f32 %v1246_v32, %v1215_v27  ;;  %v1159_v38 = vadd.f32 %v1158_v33, %v2242_v17  ;;  %v1175_v40 = vadd.f32 %v1174_v34, %v2250_v26 }
 0x141   :  { %v1232_v42 = vadd.f32 %v1231_v35, %v1201_v28  ;;  %v1248_v44 = vadd.f32 %v1247_v37, %v1216_v29  ;;  %v1176_v45 = vadd.f32 %v1175_v40, %v2258_v30  ;;  %v1147_v37 = vld [vmem:[#allocation2] sm:$0xff] }
 0x143   :  { %v1249_v47 = vadd.f32 %v1248_v44, %v1217_v46  ;;  %v1148_v44 = vld [vmem:[#allocation2 + $0x8] sm:$0xff] }
 0x158   :  { %v2267_v50 = vpop.f32.mrb[12].mxu0  ;;  %v2274_v55 = vpop.f32.mrb[12].mxu1 }
 0x159   :  { %v1160_v51 = vadd.f32 %v1159_v38, %v2267_v50  ;;  %v1202_v52 = vmul.f32 %v2267_v50, %v2267_v50  ;;  %v2272_v54 = vpop.f32.mrb[13].mxu0  ;;  %v2280_v58 = vpop.f32.mrb[13].mxu1  ;;  %v1204_v1 = vmul.f32 %v2274_v55, %v2274_v55 }
 0x15a   :  { %v1203_v56 = vmul.f32 %v2272_v54, %v2272_v54  ;;  %v2278_v57 = vpop.f32.mrb[14].mxu0  ;;  %v2288_v0 = vpop.f32.mrb[14].mxu1  ;;  %v1205_v28 = vmul.f32 %v2280_v58, %v2280_v58 }
 0x15b   :  { %v1233_v59 = vadd.f32 %v1232_v42, %v1202_v52  ;;  %v1161_v60 = vadd.f32 %v1160_v51, %v2272_v54  ;;  %v1177_v61 = vadd.f32 %v1176_v45, %v2278_v57  ;;  %v1218_v62 = vmul.f32 %v2278_v57, %v2278_v57  ;;  %v2286_v63 = vpop.f32.mrb[15].mxu0  ;;  %v2294_v5 = vpop.f32.mrb[15].mxu1  ;;  %v1188_v42 = vld [vmem:[#allocation3] sm:$0xff]  ;;  %v1189_v52 = vld [vmem:[#allocation3 + $0x8] sm:$0xff] }
 0x15c   :  { %v1219_v2 = vmul.f32 %v2286_v63, %v2286_v63  ;;  %v1220_v22 = vmul.f32 %v2288_v0, %v2288_v0  ;;  %v1221_v31 = vmul.f32 %v2294_v5, %v2294_v5 }
 0x15d   :  { %v1250_v6 = vadd.f32 %v1249_v47, %v1218_v62  ;;  %v1178_v10 = vadd.f32 %v1177_v61, %v2286_v63  ;;  %v1162_v15 = vadd.f32 %v1161_v60, %v2274_v55  ;;  %v1234_v19 = vadd.f32 %v1233_v59, %v1203_v56 }
 0x15f   :  { %v1251_v21 = vadd.f32 %v1250_v6, %v1219_v2  ;;  %v1163_v23 = vadd.f32 %v1162_v15, %v2280_v58  ;;  %v1179_v27 = vadd.f32 %v1178_v10, %v2288_v0  ;;  %v1235_v29 = vadd.f32 %v1234_v19, %v1204_v1 }
 0x161   :  { %1164 = vadd.xlane.f32.xlu0 %v1163_v23  ;;  %v1180_v32 = vadd.f32 %v1179_v27, %v2294_v5  ;;  %v1252_v33 = vadd.f32 %v1251_v21, %v1220_v22  ;;  %v1236_v34 = vadd.f32 %v1235_v29, %v1205_v28 }
 0x163   :  { %v1253_v35 = vadd.f32 %v1252_v33, %v1221_v31  ;;  %1237 = vadd.xlane.f32.xlu1 %v1236_v34 }
 0x165   :  { %1181 = vadd.xlane.f32.xlu0 %v1180_v32  ;;  %v1309_v32 = vld [vmem:[%s2569_s1] sm:$0xff] }
 0x167   :  { %1254 = vadd.xlane.f32.xlu1 %v1253_v35  ;;  %v1310_v35 = vld [vmem:[%s2569_s1 + $0x8] sm:$0xff] }
 0x1ee   :  { %v1165_v38 = vpop.xlane.xlu0 %1164 }
 0x1ef   :  { %v1183_v40 = vadd.f32 %v1165_v38, %v1147_v37 }
 0x1f0   :  { %v1238_v45 = vpop.xlane.xlu1 %1237 }
 0x1f1   :  { %1186 = vst.msk [vmem:[#allocation2] sm:$0xff] %vm22_vm0, %v1183_v40  ;;  %v1256_v46 = vadd.f32 %v1238_v45, %v1188_v42  ;;  %v1317_v42 = vld [vmem:[%s2570_s2] sm:$0xff] }
 0x1f2   :  { %v1182_v47 = vpop.xlane.xlu0 %1181 }
 0x1f3   :  { %v1184_v51 = vadd.f32 %v1182_v47, %v1148_v44  ;;  %1258 = vst.msk [vmem:[#allocation3] sm:$0xff] %vm22_vm0, %v1256_v46  ;;  %v1318_v46 = vld [vmem:[%s2570_s2 + $0x8] sm:$0xff] }
 0x1f4   :  { %v1255_v56 = vpop.xlane.xlu1 %1254 }
 0x1f5   :  { %1187 = vst.msk [vmem:[#allocation2 + $0x8] sm:$0xff] %vm22_vm0, %v1184_v51  ;;  %v1257_v59 = vadd.f32 %v1255_v56, %v1189_v52 }
 0x1f7   :  { %1259 = vst.msk [vmem:[#allocation3 + $0x8] sm:$0xff] %vm22_vm0, %v1257_v59 }
 0x1f8   :  { %v1295_v60 = vld [vmem:[#allocation2] sm:$0xff] }
 0x1f9   :  { %v1297_v61 = vmul.f32 0.00048828125, %v1295_v60 }
 0x1fa   :  { %v1299_v62 = vld [vmem:[#allocation3] sm:$0xff] }
 0x1fb   :  { %v1303_v1 = vmul.f32 %v1297_v61, %v1297_v61  ;;  %v1301_v2 = vmul.f32 0.00048828125, %v1299_v62 }
 0x1fc   :  { %v1296_v6 = vld [vmem:[#allocation2 + $0x8] sm:$0xff] }
 0x1fd   :  { %v1298_v10 = vmul.f32 0.00048828125, %v1296_v6  ;;  %v1305_v15 = vsub.f32 %v1301_v2, %v1303_v1 }
 0x1fe   :  { %v1300_v19 = vld [vmem:[#allocation3 + $0x8] sm:$0xff] }
 0x1ff   :  { %v1304_v21 = vmul.f32 %v1298_v10, %v1298_v10  ;;  %v1307_v22 = vmax.f32 %v1305_v15, 0.0  ;;  %v1302_v23 = vmul.f32 0.00048828125, %v1300_v19 }
 0x201   :  { %v1311_v27 = vadd.f32 1e-05, %v1307_v22  ;;  %v1306_v28 = vsub.f32 %v1302_v23, %v1304_v21 }
 0x203   :  { %1705 = vrsqrt.f32 %v1311_v27  ;;  %v1308_v29 = vmax.f32 %v1306_v28, 0.0 }
 0x205   :  { %v1312_v31 = vadd.f32 1e-05, %v1308_v29 }
 0x207   :  { %1707 = vrsqrt.f32 %v1312_v31 }
 0x20d   :  { %v1706_v33 = vpop.eup %1705 }
 0x20e   :  { %v1315_v34 = vmul.f32 %v1706_v33, %v1309_v32 }
 0x210   :  { %1357 = vperm.xlu0 %1702, %v1315_v34   ;;  %v1319_v40 = vmul.f32 %v1315_v34, %v1297_v61 }
 0x211   :  { %v1708_v37 = vpop.eup %1707 }
 0x212   :  { %v1316_v38 = vmul.f32 %v1708_v37, %v1310_v35  ;;  %v1321_v44 = vsub.f32 %v1317_v42, %v1319_v40 }
 0x214   :  { %1362 = vperm.xlu1 %1703, %v1316_v38   ;;  %v1320_v45 = vmul.f32 %v1316_v38, %v1298_v10 }
 0x216   :  { %v1322_v47 = vsub.f32 %v1318_v46, %v1320_v45 }
 0x218   :  { %1399 = vperm.xlu1 %1703, %v1321_v44  }
 0x21c   :  { %1404 = vperm.xlu1 %1703, %v1322_v47  }
 0x28f   :  { %v1358_v51 = vpop.permute.xlu0 %1357 }
 0x290   :  { %v1365_v52 = vmul.f32 %v1358_v51, %v2147_v8  ;;  %v1366_v56 = vmul.f32 %v1358_v51, %v2151_v11  ;;  %v1367_v59 = vmul.f32 %v1358_v51, %v2153_v12  ;;  %v1368_v60 = vmul.f32 %v1358_v51, %v2163_v16 }
 0x291   :  { %v1369_v61 = vmul.f32 %v1358_v51, %v2187_v36  ;;  %v1370_v62 = vmul.f32 %v1358_v51, %v2192_v3  ;;  %v1371_v1 = vmul.f32 %v1358_v51, %v2194_v39  ;;  %v1372_v2 = vmul.f32 %v1358_v51, %v2202_v43 }
 0x292   :  { %v1373_v6 = vmul.f32 %v1358_v51, %v2227_v4  ;;  %v1374_v10 = vmul.f32 %v1358_v51, %v2232_v7  ;;  %v1375_v8 = vmul.f32 %v1358_v51, %v2234_v9  ;;  %v1376_v11 = vmul.f32 %v1358_v51, %v2242_v17 }
 0x293   :  { %v1377_v12 = vmul.f32 %v1358_v51, %v2267_v50  ;;  %v1378_v16 = vmul.f32 %v1358_v51, %v2272_v54  ;;  %v1379_v36 = vmul.f32 %v1358_v51, %v2274_v55  ;;  %v1380_v3 = vmul.f32 %v1358_v51, %v2280_v58  ;;  %v1363_v15 = vpop.permute.xlu1 %1362 }
 0x294   :  { %v1381_v39 = vmul.f32 %v1363_v15, %v2159_v14  ;;  %v1382_v43 = vmul.f32 %v1363_v15, %v2167_v18  ;;  %v2342_v4 = vmul.f32 %v1363_v15, %v2171_v20  ;;  %v2345_v7 = vmul.f32 %v1363_v15, %v2178_v25 }
 0x295   :  { %v2348_v9 = vmul.f32 %v1363_v15, %v2198_v41  ;;  %v2351_v17 = vmul.f32 %v1363_v15, %v2208_v48  ;;  %v2354_v50 = vmul.f32 %v1363_v15, %v2210_v49  ;;  %v2357_v54 = vmul.f32 %v1363_v15, %v2218_v53 }
 0x296   :  { %v2360_v14 = vmul.f32 %v1363_v15, %v2238_v13  ;;  %v2363_v18 = vmul.f32 %v1363_v15, %v2248_v24  ;;  %v2366_v20 = vmul.f32 %v1363_v15, %v2250_v26  ;;  %v2369_v25 = vmul.f32 %v1363_v15, %v2258_v30 }
 0x297   :  { %v1400_v41 = vpop.permute.xlu1 %1399  ;;  %v2372_v48 = vmul.f32 %v1363_v15, %v2278_v57  ;;  %v2375_v49 = vmul.f32 %v1363_v15, %v2286_v63  ;;  %v2378_v53 = vmul.f32 %v1363_v15, %v2288_v0  ;;  %v2381_v13 = vmul.f32 %v1363_v15, %v2294_v5 }
 0x298   :  { %v1407_v24 = vadd.f32 %v1400_v41, %v1365_v52  ;;  %v1408_v55 = vadd.f32 %v1400_v41, %v1366_v56  ;;  %v1409_v26 = vadd.f32 %v1400_v41, %v1367_v59  ;;  %v1410_v58 = vadd.f32 %v1400_v41, %v1368_v60 }
 0x299   :  { %v1411_v19 = vadd.f32 %v1400_v41, %v1369_v61  ;;  %v1412_v30 = vadd.f32 %v1400_v41, %v1370_v62  ;;  %v1413_v21 = vadd.f32 %v1400_v41, %v1371_v1  ;;  %v1414_v22 = vadd.f32 %v1400_v41, %v1372_v2 }
 0x29a   :  { %v1415_v23 = vadd.f32 %v1400_v41, %v1373_v6  ;;  %v1416_v57 = vadd.f32 %v1400_v41, %v1374_v10  ;;  %v1417_v27 = vadd.f32 %v1400_v41, %v1375_v8  ;;  %v1418_v28 = vadd.f32 %v1400_v41, %v1376_v11 }
 0x29b   :  { %v1419_v63 = vadd.f32 %v1400_v41, %v1377_v12  ;;  %v1420_v29 = vadd.f32 %v1400_v41, %v1378_v16  ;;  %v2383_v31 = vadd.f32 %v1400_v41, %v1379_v36  ;;  %v2385_v0 = vadd.f32 %v1400_v41, %v1380_v3  ;;  %v2387_v5 = vpop.permute.xlu1 %1404 }
 0x29c   :  { %vm1439_vm1 = vcmp.ge.f32.partialorder %v1407_v24, 0.0  ;;  %vm1440_vm2 = vcmp.ge.f32.partialorder %v1408_v55, 0.0  ;;  %vm1441_vm3 = vcmp.ge.f32.partialorder %v1409_v26, 0.0  ;;  %vm1442_vm4 = vcmp.ge.f32.partialorder %v1410_v58, 0.0 }
 0x29d   :  { %vm1443_vm5 = vcmp.ge.f32.partialorder %v1411_v19, 0.0  ;;  %vm1444_vm6 = vcmp.ge.f32.partialorder %v1412_v30, 0.0  ;;  %vm1445_vm7 = vcmp.ge.f32.partialorder %v1413_v21, 0.0  ;;  %vm1446_vm8 = vcmp.ge.f32.partialorder %v1414_v22, 0.0 }
 0x29e   :  { %vm1447_vm9 = vcmp.ge.f32.partialorder %v1415_v23, 0.0  ;;  %vm1448_vm10 = vcmp.ge.f32.partialorder %v1416_v57, 0.0  ;;  %vm1449_vm11 = vcmp.ge.f32.partialorder %v1417_v27, 0.0  ;;  %vm1450_vm12 = vcmp.ge.f32.partialorder %v1418_v28, 0.0 }
 0x29f   :  { %vm1451_vm13 = vcmp.ge.f32.partialorder %v1419_v63, 0.0  ;;  %vm1452_vm14 = vcmp.ge.f32.partialorder %v1420_v29, 0.0  ;;  %vm1453_vm15 = vcmp.ge.f32.partialorder %v2383_v31, 0.0  ;;  %vm1454_vm0 = vcmp.ge.f32.partialorder %v2385_v0, 0.0 }
 0x2a0   :  { %v1471_v32 = vmul.f32 0.2, %v1407_v24  ;;  %v1472_v33 = vmul.f32 0.2, %v1408_v55  ;;  %v1473_v34 = vmul.f32 0.2, %v1409_v26  ;;  %v2392_v35 = vadd.f32 %v2387_v5, %v1381_v39 }
 0x2a1   :  { %v1474_v37 = vmul.f32 0.2, %v1410_v58  ;;  %v1475_v38 = vmul.f32 0.2, %v1411_v19  ;;  %v1476_v40 = vmul.f32 0.2, %v1412_v30  ;;  %v2395_v42 = vadd.f32 %v2387_v5, %v1382_v43 }
 0x2a2   :  { %v1477_v44 = vmul.f32 0.2, %v1413_v21  ;;  %v1478_v45 = vmul.f32 0.2, %v1414_v22  ;;  %v1479_v46 = vmul.f32 0.2, %v1415_v23  ;;  %v1503_v47 = vsel %vm1439_vm1, %v1407_v24, %v1471_v32 }
 0x2a3   :  { %v1480_v51 = vmul.f32 0.2, %v1416_v57  ;;  %v1481_v52 = vmul.f32 0.2, %v1417_v27  ;;  %v1482_v56 = vmul.f32 0.2, %v1418_v28  ;;  %v1504_v59 = vsel %vm1440_vm2, %v1408_v55, %v1472_v33  ;;  %1535 = vst [vmem:[%s2571_s4] sm:$0xff] %v1503_v47 }
 0x2a4   :  { %v1483_v60 = vmul.f32 0.2, %v1419_v63  ;;  %v1484_v61 = vmul.f32 0.2, %v1420_v29  ;;  %v1485_v62 = vmul.f32 0.2, %v2383_v31  ;;  %v1505_v1 = vsel %vm1441_vm3, %v1409_v26, %v1473_v34 }
 0x2a5   :  { %1536 = vst [vmem:[%s2571_s4 + $0x8] sm:$0xff] %v1504_v59  ;;  %v1486_v2 = vmul.f32 0.2, %v2385_v0  ;;  %v1506_v6 = vsel %vm1442_vm4, %v1410_v58, %v1474_v37  ;;  %v1507_v10 = vsel %vm1443_vm5, %v1411_v19, %v1475_v38  ;;  %v1508_v8 = vsel %vm1444_vm6, %v1412_v30, %v1476_v40  ;;  %1537 = vst [vmem:[%s2571_s4 + $0x10] sm:$0xff] %v1505_v1 }
 0x2a6   :  { %v1509_v11 = vsel %vm1445_vm7, %v1413_v21, %v1477_v44  ;;  %v1510_v12 = vsel %vm1446_vm8, %v1414_v22, %v1478_v45  ;;  %v1511_v16 = vsel %vm1447_vm9, %v1415_v23, %v1479_v46  ;;  %v1512_v36 = vsel %vm1448_vm10, %v1416_v57, %v1480_v51  ;;  %1538 = vst [vmem:[%s2571_s4 + $0x18] sm:$0xff] %v1506_v6 }
 0x2a7   :  { %1539 = vst [vmem:[%s2571_s4 + $0x20] sm:$0xff] %v1507_v10  ;;  %1540 = vst [vmem:[%s2571_s4 + $0x28] sm:$0xff] %v1508_v8  ;;  %v1513_v3 = vsel %vm1449_vm11, %v1417_v27, %v1481_v52  ;;  %v1514_v15 = vsel %vm1450_vm12, %v1418_v28, %v1482_v56  ;;  %v1515_v39 = vsel %vm1451_vm13, %v1419_v63, %v1483_v60  ;;  %vm1455_vm1 = vcmp.ge.f32.partialorder %v2392_v35, 0.0 }
 0x2a8   :  { %v1516_v43 = vsel %vm1452_vm14, %v1420_v29, %v1484_v61  ;;  %1541 = vst [vmem:[%s2571_s4 + $0x30] sm:$0xff] %v1509_v11  ;;  %1542 = vst [vmem:[%s2571_s4 + $0x38] sm:$0xff] %v1510_v12  ;;  %v1517_v41 = vsel %vm1453_vm15, %v2383_v31, %v1485_v62  ;;  %v1518_v24 = vsel %vm1454_vm0, %v2385_v0, %v1486_v2  ;;  %vm1456_vm2 = vcmp.ge.f32.partialorder %v2395_v42, 0.0 }
 0x2a9   :  { %1543 = vst [vmem:[%s2571_s4 + $0x40] sm:$0xff] %v1511_v16  ;;  %1544 = vst [vmem:[%s2571_s4 + $0x48] sm:$0xff] %v1512_v36  ;;  %v1425_v55 = vadd.f32 %v2387_v5, %v2342_v4  ;;  %v1426_v26 = vadd.f32 %v2387_v5, %v2345_v7  ;;  %v1427_v58 = vadd.f32 %v2387_v5, %v2348_v9 }
 0x2aa   :  { %1545 = vst [vmem:[%s2571_s4 + $0x50] sm:$0xff] %v1513_v3  ;;  %1546 = vst [vmem:[%s2571_s4 + $0x58] sm:$0xff] %v1514_v15  ;;  %v1428_v19 = vadd.f32 %v2387_v5, %v2351_v17  ;;  %v1429_v4 = vadd.f32 %v2387_v5, %v2354_v50  ;;  %v1430_v7 = vadd.f32 %v2387_v5, %v2357_v54 }
 0x2ab   :  { %1547 = vst [vmem:[%s2571_s4 + $0x60] sm:$0xff] %v1515_v39  ;;  %1548 = vst [vmem:[%s2571_s4 + $0x68] sm:$0xff] %v1516_v43  ;;  %v1431_v30 = vadd.f32 %v2387_v5, %v2360_v14  ;;  %v1432_v21 = vadd.f32 %v2387_v5, %v2363_v18  ;;  %v1433_v22 = vadd.f32 %v2387_v5, %v2366_v20  ;;  %vm1457_vm3 = vcmp.ge.f32.partialorder %v1425_v55, 0.0 }
 0x2ac   :  { %1549 = vst [vmem:[%s2571_s4 + $0x70] sm:$0xff] %v1517_v41  ;;  %1550 = vst [vmem:[%s2571_s4 + $0x78] sm:$0xff] %v1518_v24  ;;  %v1434_v9 = vadd.f32 %v2387_v5, %v2369_v25  ;;  %v1435_v17 = vadd.f32 %v2387_v5, %v2372_v48  ;;  %v1436_v50 = vadd.f32 %v2387_v5, %v2375_v49  ;;  %vm1458_vm4 = vcmp.ge.f32.partialorder %v1426_v26, 0.0 }
 0x2ad   :  { %v1437_v54 = vadd.f32 %v2387_v5, %v2378_v53  ;;  %v1438_v14 = vadd.f32 %v2387_v5, %v2381_v13  ;;  %vm1459_vm5 = vcmp.ge.f32.partialorder %v1427_v58, 0.0  ;;  %vm1460_vm6 = vcmp.ge.f32.partialorder %v1428_v19, 0.0 }
 0x2ae   :  { %vm1461_vm7 = vcmp.ge.f32.partialorder %v1429_v4, 0.0  ;;  %vm1462_vm8 = vcmp.ge.f32.partialorder %v1430_v7, 0.0  ;;  %vm1463_vm9 = vcmp.ge.f32.partialorder %v1431_v30, 0.0  ;;  %vm1464_vm10 = vcmp.ge.f32.partialorder %v1432_v21, 0.0 }
 0x2af   :  { %vm1465_vm11 = vcmp.ge.f32.partialorder %v1433_v22, 0.0  ;;  %vm1466_vm12 = vcmp.ge.f32.partialorder %v1434_v9, 0.0  ;;  %vm1467_vm13 = vcmp.ge.f32.partialorder %v1435_v17, 0.0  ;;  %vm1468_vm14 = vcmp.ge.f32.partialorder %v1436_v50, 0.0 }
 0x2b0   :  { %vm1469_vm15 = vcmp.ge.f32.partialorder %v1437_v54, 0.0  ;;  %vm1470_vm0 = vcmp.ge.f32.partialorder %v1438_v14, 0.0  ;;  %v1487_v18 = vmul.f32 0.2, %v2392_v35  ;;  %v1488_v20 = vmul.f32 0.2, %v2395_v42 }
 0x2b1   :  { %v1489_v25 = vmul.f32 0.2, %v1425_v55  ;;  %v1490_v48 = vmul.f32 0.2, %v1426_v26  ;;  %v1491_v49 = vmul.f32 0.2, %v1427_v58 }
 0x2b2   :  { %v1492_v53 = vmul.f32 0.2, %v1428_v19  ;;  %v1493_v13 = vmul.f32 0.2, %v1429_v4  ;;  %v1494_v23 = vmul.f32 0.2, %v1430_v7  ;;  %v1519_v27 = vsel %vm1455_vm1, %v2392_v35, %v1487_v18 }
 0x2b3   :  { %v1495_v57 = vmul.f32 0.2, %v1431_v30  ;;  %v1496_v28 = vmul.f32 0.2, %v1432_v21  ;;  %v1497_v63 = vmul.f32 0.2, %v1433_v22  ;;  %v1520_v31 = vsel %vm1456_vm2, %v2395_v42, %v1488_v20 }
 0x2b4   :  { %v1498_v29 = vmul.f32 0.2, %v1434_v9  ;;  %1551 = vst [vmem:[%s2571_s4 + $0x80] sm:$0xff] %v1519_v27  ;;  %v1499_v0 = vmul.f32 0.2, %v1435_v17  ;;  %v1521_v33 = vsel %vm1457_vm3, %v1425_v55, %v1489_v25  ;;  %1552 = vst [vmem:[%s2571_s4 + $0x88] sm:$0xff] %v1520_v31  ;;  %v1522_v35 = vsel %vm1458_vm4, %v1426_v26, %v1490_v48 }
 0x2b5   :  { %v1500_v5 = vmul.f32 0.2, %v1436_v50  ;;  %v1501_v32 = vmul.f32 0.2, %v1437_v54  ;;  %v1502_v34 = vmul.f32 0.2, %v1438_v14  ;;  %v1523_v37 = vsel %vm1459_vm5, %v1427_v58, %v1491_v49 }
 0x2b6   :  { %v1524_v38 = vsel %vm1460_vm6, %v1428_v19, %v1492_v53  ;;  %1553 = vst [vmem:[%s2571_s4 + $0x90] sm:$0xff] %v1521_v33  ;;  %v1525_v40 = vsel %vm1461_vm7, %v1429_v4, %v1493_v13  ;;  %v1526_v42 = vsel %vm1462_vm8, %v1430_v7, %v1494_v23  ;;  %v1527_v44 = vsel %vm1463_vm9, %v1431_v30, %v1495_v57 }
 0x2b7   :  { %v1528_v45 = vsel %vm1464_vm10, %v1432_v21, %v1496_v28  ;;  %1554 = vst [vmem:[%s2571_s4 + $0x98] sm:$0xff] %v1522_v35  ;;  %1555 = vst [vmem:[%s2571_s4 + $0xa0] sm:$0xff] %v1523_v37  ;;  %v1529_v46 = vsel %vm1465_vm11, %v1433_v22, %v1497_v63  ;;  %v1530_v47 = vsel %vm1466_vm12, %v1434_v9, %v1498_v29 }
 0x2b8   :  { %1556 = vst [vmem:[%s2571_s4 + $0xa8] sm:$0xff] %v1524_v38  ;;  %v1531_v51 = vsel %vm1467_vm13, %v1435_v17, %v1499_v0  ;;  %v1532_v52 = vsel %vm1468_vm14, %v1436_v50, %v1500_v5  ;;  %1557 = vst [vmem:[%s2571_s4 + $0xb0] sm:$0xff] %v1525_v40  ;;  %v1533_v56 = vsel %vm1469_vm15, %v1437_v54, %v1501_v32 }
 0x2b9   :  { %1558 = vst [vmem:[%s2571_s4 + $0xb8] sm:$0xff] %v1526_v42  ;;  %1559 = vst [vmem:[%s2571_s4 + $0xc0] sm:$0xff] %v1527_v44  ;;  %v1534_v59 = vsel %vm1470_vm0, %v1438_v14, %v1502_v34 }
 0x2ba   :  { %1560 = vst [vmem:[%s2571_s4 + $0xc8] sm:$0xff] %v1528_v45  ;;  %1561 = vst [vmem:[%s2571_s4 + $0xd0] sm:$0xff] %v1529_v46 }
 0x2bb   :  { %1562 = vst [vmem:[%s2571_s4 + $0xd8] sm:$0xff] %v1530_v47  ;;  %1563 = vst [vmem:[%s2571_s4 + $0xe0] sm:$0xff] %v1531_v51 }
 0x2bc   :  { %1564 = vst [vmem:[%s2571_s4 + $0xe8] sm:$0xff] %v1532_v52  ;;  %1565 = vst [vmem:[%s2571_s4 + $0xf0] sm:$0xff] %v1533_v56 }
 0x2bd   :  { %1566 = vst [vmem:[%s2571_s4 + $0xf8] sm:$0xff] %v1534_v59 }

// kernel: discriminator_forward.8
= control target key start
LH: loop header
LB: loop body
LE: loop exit
PB: predicated region body
PF: predicated region fallthrough
CT: control target
= control target key end

     0   :  { %vm21_vm0 = vcmask 7168   ;;  %s1453_s3 = inlined_call_operand.vmem [shape: bf16[256,512], index: 3, kind: input, shape index: {}]   ;;  %s1454_s0 = inlined_call_operand.vmem [shape: bf16[32,256], index: 0, kind: input, shape index: {}]   ;;  %s1455_s1 = inlined_call_operand.vmem [shape: f32[32,1], index: 1, kind: input, shape index: {}]   ;;  %s1456_s2 = inlined_call_operand.vmem [shape: f32[32,1], index: 2, kind: input, shape index: {}]   ;;  %s1457_s4 = inlined_call_operand.vmem [shape: f32[32,512], index: 4, kind: output, shape index: {}]  }
   0x1   :  { %v928_v0 = vld [vmem:[%s1453_s3 + $0x4] ss:$16 sps:$4 sm:$0xff]   ;;  %v930_v1 = vld [vmem:[%s1453_s3 + $0xc] ss:$16 sps:$4 sm:$0xff]   ;;  %v932_v2 = vld [vmem:[%s1453_s3] ss:$16 sps:$4 sm:$0xff]  }
   0x2   :  { %438 = vmatprep.subr.bf16.mxu0 %v928_v0  ;;  %v933_v3 = vld [vmem:[%s1453_s3 + $0x8] ss:$16 sps:$4 sm:$0xff]   ;;  %491 = vmatprep.subr.bf16.mxu1 %v930_v1  ;;  %v934_v4 = vld [vmem:[%s1453_s3 + $0x24] ss:$16 sps:$4 sm:$0xff]   ;;  %v936_v5 = vld [vmem:[%s1453_s3 + $0x2c] ss:$16 sps:$4 sm:$0xff]  }
   0x3   :  { %439 = vmatpush1.bf16.msra.mxu0 %v932_v2  ;;  %492 = vmatpush1.bf16.msra.mxu1 %v933_v3  ;;  %v938_v6 = vld [vmem:[%s1453_s3 + $0x20] ss:$16 sps:$4 sm:$0xff]   ;;  %v939_v7 = vld [vmem:[%s1453_s3 + $0x28] ss:$16 sps:$4 sm:$0xff]   ;;  %v940_v8 = vld [vmem:[%s1453_s3 + $0x44] ss:$16 sps:$4 sm:$0xff]  }
   0x4   :  { %440 = vmatprep.subr.bf16.mxu0 %v934_v4  ;;  %493 = vmatprep.subr.bf16.mxu1 %v936_v5  ;;  %v942_v9 = vld [vmem:[%s1453_s3 + $0x4c] ss:$16 sps:$4 sm:$0xff]   ;;  %v944_v10 = vld [vmem:[%s1453_s3 + $0x40] ss:$16 sps:$4 sm:$0xff]   ;;  %v945_v11 = vld [vmem:[%s1453_s3 + $0x48] ss:$16 sps:$4 sm:$0xff]  }
   0x5   :  { %v946_v12 = vld [vmem:[%s1453_s3 + $0x64] ss:$16 sps:$4 sm:$0xff]   ;;  %v948_v13 = vld [vmem:[%s1453_s3 + $0x6c] ss:$16 sps:$4 sm:$0xff]   ;;  %v950_v14 = vld [vmem:[%s1453_s3 + $0x60] ss:$16 sps:$4 sm:$0xff]  }
   0x6   :  { %v951_v15 = vld [vmem:[%s1453_s3 + $0x68] ss:$16 sps:$4 sm:$0xff]   ;;  %v952_v16 = vld [vmem:[%s1453_s3 + $0x84] ss:$16 sps:$4 sm:$0xff]   ;;  %v954_v17 = vld [vmem:[%s1453_s3 + $0x8c] ss:$16 sps:$4 sm:$0xff]  }
   0x7   :  { %441 = vmatpush1.bf16.msra.mxu0 %v938_v6  ;;  %494 = vmatpush1.bf16.msra.mxu1 %v939_v7  ;;  %v956_v18 = vld [vmem:[%s1453_s3 + $0x80] ss:$16 sps:$4 sm:$0xff]   ;;  %v957_v19 = vld [vmem:[%s1453_s3 + $0x88] ss:$16 sps:$4 sm:$0xff]   ;;  %v958_v20 = vld [vmem:[%s1453_s3 + $0xa4] ss:$16 sps:$4 sm:$0xff]  }
   0x8   :  { %442 = vmatprep.subr.bf16.mxu0 %v940_v8  ;;  %495 = vmatprep.subr.bf16.mxu1 %v942_v9  ;;  %v960_v21 = vld [vmem:[%s1453_s3 + $0xac] ss:$16 sps:$4 sm:$0xff]   ;;  %v962_v22 = vld [vmem:[%s1453_s3 + $0xa0] ss:$16 sps:$4 sm:$0xff]   ;;  %v963_v23 = vld [vmem:[%s1453_s3 + $0xa8] ss:$16 sps:$4 sm:$0xff]  }
   0x9   :  { %v964_v24 = vld [vmem:[%s1453_s3 + $0xc4] ss:$16 sps:$4 sm:$0xff]   ;;  %v966_v25 = vld [vmem:[%s1453_s3 + $0xcc] ss:$16 sps:$4 sm:$0xff]   ;;  %v968_v26 = vld [vmem:[%s1453_s3 + $0xc0] ss:$16 sps:$4 sm:$0xff]  }
   0xa   :  { %v969_v27 = vld [vmem:[%s1453_s3 + $0xc8] ss:$16 sps:$4 sm:$0xff]   ;;  %v970_v28 = vld [vmem:[%s1453_s3 + $0xe4] ss:$16 sps:$4 sm:$0xff]   ;;  %v972_v29 = vld [vmem:[%s1453_s3 + $0xec] ss:$16 sps:$4 sm:$0xff]  }
   0xb   :  { %443 = vmatpush1.bf16.msra.mxu0 %v944_v10  ;;  %496 = vmatpush1.bf16.msra.mxu1 %v945_v11  ;;  %v974_v30 = vld [vmem:[%s1453_s3 + $0xe0] ss:$16 sps:$4 sm:$0xff]   ;;  %v975_v31 = vld [vmem:[%s1453_s3 + $0xe8] ss:$16 sps:$4 sm:$0xff]   ;;  %v976_v32 = vld [vmem:[%s1453_s3 + $0x104] ss:$16 sps:$4 sm:$0xff]  }
   0xc   :  { %444 = vmatprep.subr.bf16.mxu0 %v946_v12  ;;  %497 = vmatprep.subr.bf16.mxu1 %v948_v13  ;;  %v978_v33 = vld [vmem:[%s1453_s3 + $0x10c] ss:$16 sps:$4 sm:$0xff]   ;;  %v980_v34 = vld [vmem:[%s1453_s3 + $0x100] ss:$16 sps:$4 sm:$0xff]   ;;  %v981_v35 = vld [vmem:[%s1453_s3 + $0x108] ss:$16 sps:$4 sm:$0xff]  }
   0xd   :  { %v982_v36 = vld [vmem:[%s1453_s3 + $0x124] ss:$16 sps:$4 sm:$0xff]   ;;  %v984_v37 = vld [vmem:[%s1453_s3 + $0x12c] ss:$16 sps:$4 sm:$0xff]   ;;  %v986_v38 = vld [vmem:[%s1453_s3 + $0x120] ss:$16 sps:$4 sm:$0xff]  }
   0xe   :  { %v987_v39 = vld [vmem:[%s1453_s3 + $0x128] ss:$16 sps:$4 sm:$0xff]   ;;  %v988_v40 = vld [vmem:[%s1453_s3 + $0x144] ss:$16 sps:$4 sm:$0xff]   ;;  %v990_v41 = vld [vmem:[%s1453_s3 + $0x14c] ss:$16 sps:$4 sm:$0xff]  }
   0xf   :  { %445 = vmatpush1.bf16.msra.mxu0 %v950_v14  ;;  %498 = vmatpush1.bf16.msra.mxu1 %v951_v15  ;;  %v992_v42 = vld [vmem:[%s1453_s3 + $0x140] ss:$16 sps:$4 sm:$0xff]   ;;  %v993_v43 = vld [vmem:[%s1453_s3 + $0x148] ss:$16 sps:$4 sm:$0xff]   ;;  %v994_v44 = vld [vmem:[%s1453_s3 + $0x164] ss:$16 sps:$4 sm:$0xff]  }
  0x10   :  { %446 = vmatprep.subr.bf16.mxu0 %v952_v16  ;;  %499 = vmatprep.subr.bf16.mxu1 %v954_v17  ;;  %v996_v45 = vld [vmem:[%s1453_s3 + $0x16c] ss:$16 sps:$4 sm:$0xff]   ;;  %v998_v46 = vld [vmem:[%s1453_s3 + $0x160] ss:$16 sps:$4 sm:$0xff]   ;;  %v999_v48 = vld [vmem:[%s1453_s3 + $0x168] ss:$16 sps:$4 sm:$0xff]  }
  0x11   :  { %v1026_v47 = vld [vmem:[%s1454_s0 + $0x4] ss:$8 sps:$4 sm:$0xff]   ;;  %v1004_v51 = vld [vmem:[%s1453_s3 + $0x180] ss:$16 sps:$4 sm:$0xff]   ;;  %v1005_v52 = vld [vmem:[%s1453_s3 + $0x188] ss:$16 sps:$4 sm:$0xff]  }
  0x12   :  { %v1000_v49 = vld [vmem:[%s1453_s3 + $0x184] ss:$16 sps:$4 sm:$0xff]   ;;  %v1002_v50 = vld [vmem:[%s1453_s3 + $0x18c] ss:$16 sps:$4 sm:$0xff]   ;;  %470 = vmatprep.mubr.bf16.mxu0 %v1026_v47  ;;  %523 = vmatprep.mubr.bf16.mxu1 %v1026_v47  ;;  %v1010_v55 = vld [vmem:[%s1453_s3 + $0x1a0] ss:$16 sps:$4 sm:$0xff]  }
  0x13   :  { %447 = vmatpush1.bf16.msra.mxu0 %v956_v18  ;;  %500 = vmatpush1.bf16.msra.mxu1 %v957_v19  ;;  %v1006_v53 = vld [vmem:[%s1453_s3 + $0x1a4] ss:$16 sps:$4 sm:$0xff]   ;;  %v1008_v54 = vld [vmem:[%s1453_s3 + $0x1ac] ss:$16 sps:$4 sm:$0xff]   ;;  %v1011_v56 = vld [vmem:[%s1453_s3 + $0x1a8] ss:$16 sps:$4 sm:$0xff]  }
  0x14   :  { %448 = vmatprep.subr.bf16.mxu0 %v958_v20  ;;  %501 = vmatprep.subr.bf16.mxu1 %v960_v21  ;;  %v1012_v57 = vld [vmem:[%s1453_s3 + $0x1c4] ss:$16 sps:$4 sm:$0xff]   ;;  %v1014_v58 = vld [vmem:[%s1453_s3 + $0x1cc] ss:$16 sps:$4 sm:$0xff]   ;;  %v1016_v59 = vld [vmem:[%s1453_s3 + $0x1c0] ss:$16 sps:$4 sm:$0xff]  }
  0x15   :  { %v1017_v60 = vld [vmem:[%s1453_s3 + $0x1c8] ss:$16 sps:$4 sm:$0xff]   ;;  %v1018_v61 = vld [vmem:[%s1453_s3 + $0x1e4] ss:$16 sps:$4 sm:$0xff]   ;;  %v1020_v62 = vld [vmem:[%s1453_s3 + $0x1ec] ss:$16 sps:$4 sm:$0xff]  }
  0x16   :  { %v1022_v63 = vld [vmem:[%s1453_s3 + $0x1e0] ss:$16 sps:$4 sm:$0xff]   ;;  %v1023_v0 = vld [vmem:[%s1453_s3 + $0x1e8] ss:$16 sps:$4 sm:$0xff]   ;;  %v1027_v2 = vld [vmem:[%s1454_s0 + $0x14] ss:$8 sps:$4 sm:$0xff]  }
  0x17   :  { %449 = vmatpush1.bf16.msra.mxu0 %v962_v22  ;;  %502 = vmatpush1.bf16.msra.mxu1 %v963_v23  ;;  %v1024_v1 = vld [vmem:[%s1454_s0] ss:$8 sps:$4 sm:$0xff]   ;;  %v1029_v3 = vld [vmem:[%s1454_s0 + $0x10] ss:$8 sps:$4 sm:$0xff]   ;;  %v1038_v4 = vmov 0.0  }
  0x18   :  { %450 = vmatprep.subr.bf16.mxu0 %v964_v24  ;;  %503 = vmatprep.subr.bf16.mxu1 %v966_v25  ;;  %22 = vst.msk [vmem:[#allocation2] sm:$0xff] %vm21_vm0, %v1038_v4  ;;  %23 = vst.msk [vmem:[#allocation2 + $0x8] sm:$0xff] %vm21_vm0, %v1038_v4 }
  0x19   :  { %24 = vst.msk [vmem:[#allocation2 + $0x10] sm:$0xff] %vm21_vm0, %v1038_v4  ;;  %25 = vst.msk [vmem:[#allocation2 + $0x18] sm:$0xff] %vm21_vm0, %v1038_v4 }
  0x1a   :  { %26 = vst.msk [vmem:[#allocation3] sm:$0xff] %vm21_vm0, %v1038_v4  ;;  %27 = vst.msk [vmem:[#allocation3 + $0x8] sm:$0xff] %vm21_vm0, %v1038_v4 }
  0x1b   :  { %451 = vmatpush1.bf16.msra.mxu0 %v968_v26  ;;  %504 = vmatpush1.bf16.msra.mxu1 %v969_v27  ;;  %28 = vst.msk [vmem:[#allocation3 + $0x10] sm:$0xff] %vm21_vm0, %v1038_v4  ;;  %29 = vst.msk [vmem:[#allocation3 + $0x18] sm:$0xff] %vm21_vm0, %v1038_v4 }
  0x1c   :  { %452 = vmatprep.subr.bf16.mxu0 %v970_v28  ;;  %505 = vmatprep.subr.bf16.mxu1 %v972_v29 }
  0x1f   :  { %453 = vmatpush1.bf16.msra.mxu0 %v974_v30  ;;  %506 = vmatpush1.bf16.msra.mxu1 %v975_v31 }
  0x20   :  { %454 = vmatprep.subr.bf16.mxu0 %v976_v32  ;;  %507 = vmatprep.subr.bf16.mxu1 %v978_v33 }
  0x23   :  { %455 = vmatpush1.bf16.msra.mxu0 %v980_v34  ;;  %508 = vmatpush1.bf16.msra.mxu1 %v981_v35 }
  0x24   :  { %456 = vmatprep.subr.bf16.mxu0 %v982_v36  ;;  %509 = vmatprep.subr.bf16.mxu1 %v984_v37 }
  0x27   :  { %457 = vmatpush1.bf16.msra.mxu0 %v986_v38  ;;  %510 = vmatpush1.bf16.msra.mxu1 %v987_v39 }
  0x28   :  { %458 = vmatprep.subr.bf16.mxu0 %v988_v40  ;;  %511 = vmatprep.subr.bf16.mxu1 %v990_v41 }
  0x2b   :  { %459 = vmatpush1.bf16.msra.mxu0 %v992_v42  ;;  %512 = vmatpush1.bf16.msra.mxu1 %v993_v43 }
  0x2c   :  { %460 = vmatprep.subr.bf16.mxu0 %v994_v44  ;;  %513 = vmatprep.subr.bf16.mxu1 %v996_v45 }
  0x2f   :  { %461 = vmatpush1.bf16.msra.mxu0 %v998_v46  ;;  %514 = vmatpush1.bf16.msra.mxu1 %v999_v48 }
  0x30   :  { %462 = vmatprep.subr.bf16.mxu0 %v1000_v49  ;;  %515 = vmatprep.subr.bf16.mxu1 %v1002_v50 }
  0x33   :  { %463 = vmatpush1.bf16.msra.mxu0 %v1004_v51  ;;  %516 = vmatpush1.bf16.msra.mxu1 %v1005_v52 }
  0x34   :  { %464 = vmatprep.subr.bf16.mxu0 %v1006_v53  ;;  %517 = vmatprep.subr.bf16.mxu1 %v1008_v54 }
  0x37   :  { %465 = vmatpush1.bf16.msra.mxu0 %v1010_v55  ;;  %518 = vmatpush1.bf16.msra.mxu1 %v1011_v56 }
  0x38   :  { %466 = vmatprep.subr.bf16.mxu0 %v1012_v57  ;;  %519 = vmatprep.subr.bf16.mxu1 %v1014_v58 }
  0x3b   :  { %467 = vmatpush1.bf16.msra.mxu0 %v1016_v59  ;;  %520 = vmatpush1.bf16.msra.mxu1 %v1017_v60 }
  0x3c   :  { %468 = vmatprep.subr.bf16.mxu0 %v1018_v61  ;;  %521 = vmatprep.subr.bf16.mxu1 %v1020_v62  ;;  %v1039_v61 = vmov 0   ;;  %v544_v62 = vld [vmem:[#allocation2] sm:$0xff] }
  0x3d   :  { %927 = vset.pattern.permute.xlu1 %v1039_v61  ;;  %926 = vset.pattern.permute.xlu0 %v1039_v61 }
  0x3f   :  { %469 = vmatpush1.bf16.msra.mxu0 %v1022_v63  ;;  %522 = vmatpush1.bf16.msra.mxu1 %v1023_v0 }
  0x42   :  { %471 = vmatmul.mubr.bf16.vlgmr.msra.gmra.mrb[0].mxu0 %v1024_v1  ;;  %524 = vmatmul.mubr.bf16.vlgmr.msra.gmra.mrb[0].mxu1 %v1024_v1  ;;  %v578_v1 = vld [vmem:[#allocation3 + $0x8] sm:$0xff] }
  0x43   :  { %480 = vmatprep.mubr.bf16.mxu0 %v1027_v2  ;;  %533 = vmatprep.mubr.bf16.mxu1 %v1027_v2  ;;  %v545_v2 = vld [vmem:[#allocation2 + $0x8] sm:$0xff] }
  0x4a   :  { %481 = vmatmul.mubr.bf16.gmra.mrb[4].mxu0 %v1029_v3  ;;  %534 = vmatmul.mubr.bf16.gmra.mrb[4].mxu1 %v1029_v3 }
 0x115   :  { %v1277_v5 = vpop.f32.mrb[0].mxu0  ;;  %v1279_v6 = vpop.f32.mrb[0].mxu1 }
 0x116   :  { %v581_v7 = vmul.f32 %v1277_v5, %v1277_v5  ;;  %v1283_v8 = vpop.f32.mrb[1].mxu0  ;;  %v1285_v9 = vpop.f32.mrb[1].mxu1  ;;  %v583_v14 = vmul.f32 %v1279_v6, %v1279_v6 }
 0x117   :  { %v548_v10 = vadd.f32 %v1283_v8, %v1277_v5  ;;  %v582_v11 = vmul.f32 %v1283_v8, %v1283_v8  ;;  %v1291_v12 = vpop.f32.mrb[2].mxu0  ;;  %v1293_v13 = vpop.f32.mrb[2].mxu1  ;;  %v584_v26 = vmul.f32 %v1285_v9, %v1285_v9 }
 0x118   :  { %v585_v15 = vmul.f32 %v1291_v12, %v1291_v12  ;;  %v1299_v16 = vpop.f32.mrb[3].mxu0  ;;  %v1301_v17 = vpop.f32.mrb[3].mxu1  ;;  %v587_v22 = vmul.f32 %v1293_v13, %v1293_v13 }
 0x119   :  { %v553_v18 = vadd.f32 %v1299_v16, %v1291_v12  ;;  %v586_v19 = vmul.f32 %v1299_v16, %v1299_v16  ;;  %v549_v20 = vadd.f32 %v548_v10, %v1279_v6  ;;  %v597_v21 = vadd.f32 %v582_v11, %v581_v7  ;;  %v577_v11 = vld [vmem:[#allocation3] sm:$0xff] }
 0x11a   :  { %v588_v30 = vmul.f32 %v1301_v17, %v1301_v17 }
 0x11b   :  { %v550_v23 = vadd.f32 %v549_v20, %v1285_v9  ;;  %v602_v24 = vadd.f32 %v586_v19, %v585_v15  ;;  %v554_v25 = vadd.f32 %v553_v18, %v1293_v13  ;;  %v598_v27 = vadd.f32 %v597_v21, %v583_v14  ;;  %v546_v14 = vld [vmem:[#allocation2 + $0x10] sm:$0xff] }
 0x11c   :  { %v579_v21 = vld [vmem:[#allocation3 + $0x10] sm:$0xff] }
 0x11d   :  { %551 = vadd.xlane.f32.xlu0 %v550_v23  ;;  %v1314_v28 = vpop.f32.mrb[4].mxu0  ;;  %v1316_v29 = vpop.f32.mrb[4].mxu1  ;;  %v603_v31 = vadd.f32 %v602_v24, %v587_v22  ;;  %v555_v32 = vadd.f32 %v554_v25, %v1301_v17  ;;  %v599_v36 = vadd.f32 %v598_v27, %v584_v26  ;;  %v547_v22 = vld [vmem:[#allocation2 + $0x18] sm:$0xff] }
 0x11e   :  { %v589_v33 = vmul.f32 %v1314_v28, %v1314_v28  ;;  %v1323_v34 = vpop.f32.mrb[5].mxu0  ;;  %v1325_v35 = vpop.f32.mrb[5].mxu1  ;;  %v591_v42 = vmul.f32 %v1316_v29, %v1316_v29 }
 0x11f   :  { %v558_v37 = vadd.f32 %v1323_v34, %v1314_v28  ;;  %v590_v38 = vmul.f32 %v1323_v34, %v1323_v34  ;;  %v604_v39 = vadd.f32 %v603_v31, %v588_v30  ;;  %v1331_v40 = vpop.f32.mrb[6].mxu0  ;;  %v1333_v41 = vpop.f32.mrb[6].mxu1  ;;  %v592_v50 = vmul.f32 %v1325_v35, %v1325_v35  ;;  %v580_v30 = vld [vmem:[#allocation3 + $0x18] sm:$0xff] }
 0x120   :  { %v593_v43 = vmul.f32 %v1331_v40, %v1331_v40  ;;  %v1339_v44 = vpop.f32.mrb[7].mxu0  ;;  %v595_v45 = vmul.f32 %v1333_v41, %v1333_v41  ;;  %v1343_v46 = vpop.f32.mrb[7].mxu1 }
 0x121   :  { %605 = vadd.xlane.f32.xlu1 %v604_v39  ;;  %556 = vadd.xlane.f32.xlu0 %v555_v32  ;;  %v563_v47 = vadd.f32 %v1339_v44, %v1331_v40  ;;  %v594_v48 = vmul.f32 %v1339_v44, %v1339_v44  ;;  %v559_v49 = vadd.f32 %v558_v37, %v1316_v29 }
 0x122   :  { %v607_v51 = vadd.f32 %v590_v38, %v589_v33  ;;  %v596_v54 = vmul.f32 %v1343_v46, %v1343_v46 }
 0x123   :  { %v612_v52 = vadd.f32 %v594_v48, %v593_v43  ;;  %v560_v53 = vadd.f32 %v559_v49, %v1325_v35  ;;  %v564_v55 = vadd.f32 %v563_v47, %v1333_v41 }
 0x124   :  { %v608_v56 = vadd.f32 %v607_v51, %v591_v42 }
 0x125   :  { %600 = vadd.xlane.f32.xlu0 %v599_v36  ;;  %561 = vadd.xlane.f32.xlu1 %v560_v53  ;;  %v565_v57 = vadd.f32 %v564_v55, %v1343_v46  ;;  %v613_v58 = vadd.f32 %v612_v52, %v595_v45 }
 0x126   :  { %v609_v59 = vadd.f32 %v608_v56, %v592_v50 }
 0x127   :  { %v614_v60 = vadd.f32 %v613_v58, %v596_v54 }
 0x129   :  { %610 = vadd.xlane.f32.xlu0 %v609_v59  ;;  %566 = vadd.xlane.f32.xlu1 %v565_v57 }
 0x12d   :  { %615 = vadd.xlane.f32.xlu1 %v614_v60 }
 0x1aa   :  { %v552_v63 = vpop.xlane.xlu0 %551 }
 0x1ab   :  { %v568_v0 = vadd.f32 %v552_v63, %v544_v62 }
 0x1ad   :  { %573 = vst.msk [vmem:[#allocation2] sm:$0xff] %vm21_vm0, %v568_v0 }
 0x1ae   :  { %v606_v3 = vpop.xlane.xlu1 %605  ;;  %v557_v4 = vpop.xlane.xlu0 %556 }
 0x1af   :  { %v618_v7 = vadd.f32 %v606_v3, %v578_v1  ;;  %v569_v10 = vadd.f32 %v557_v4, %v545_v2  ;;  %v673_v3 = vld [vmem:[%s1455_s1 + $0x8] sm:$0xff] }
 0x1b1   :  { %622 = vst.msk [vmem:[#allocation3 + $0x8] sm:$0xff] %vm21_vm0, %v618_v7  ;;  %574 = vst.msk [vmem:[#allocation2 + $0x8] sm:$0xff] %vm21_vm0, %v569_v10 }
 0x1b2   :  { %v601_v15 = vpop.xlane.xlu0 %600  ;;  %v562_v18 = vpop.xlane.xlu1 %561 }
 0x1b3   :  { %v617_v19 = vadd.f32 %v601_v15, %v577_v11  ;;  %v570_v20 = vadd.f32 %v562_v18, %v546_v14  ;;  %v672_v11 = vld [vmem:[%s1455_s1] sm:$0xff] }
 0x1b4   :  { %v644_v25 = vld [vmem:[#allocation2] sm:$0xff] }
 0x1b5   :  { %621 = vst.msk [vmem:[#allocation3] sm:$0xff] %vm21_vm0, %v617_v19  ;;  %575 = vst.msk [vmem:[#allocation2 + $0x10] sm:$0xff] %vm21_vm0, %v570_v20  ;;  %v648_v36 = vmul.f32 0.001953125, %v644_v25  ;;  %v688_v20 = vld [vmem:[%s1456_s2] sm:$0xff] }
 0x1b6   :  { %v611_v23 = vpop.xlane.xlu0 %610  ;;  %v567_v24 = vpop.xlane.xlu1 %566 }
 0x1b7   :  { %v619_v26 = vadd.f32 %v611_v23, %v579_v21  ;;  %v571_v27 = vadd.f32 %v567_v24, %v547_v22  ;;  %v660_v49 = vmul.f32 %v648_v36, %v648_v36  ;;  %v689_v24 = vld [vmem:[%s1456_s2 + $0x8] sm:$0xff] }
 0x1b8   :  { %v645_v31 = vld [vmem:[#allocation2 + $0x8] sm:$0xff] }
 0x1b9   :  { %v653_v32 = vld [vmem:[#allocation3 + $0x8] sm:$0xff]  ;;  %623 = vst.msk [vmem:[#allocation3 + $0x10] sm:$0xff] %vm21_vm0, %v619_v26  ;;  %576 = vst.msk [vmem:[#allocation2 + $0x18] sm:$0xff] %vm21_vm0, %v571_v27  ;;  %v649_v33 = vmul.f32 0.001953125, %v645_v31  ;;  %v674_v27 = vld [vmem:[%s1455_s1 + $0x10] sm:$0xff] }
 0x1ba   :  { %v616_v37 = vpop.xlane.xlu1 %615  ;;  %v657_v39 = vmul.f32 0.001953125, %v653_v32  ;;  %v675_v32 = vld [vmem:[%s1455_s1 + $0x18] sm:$0xff] }
 0x1bb   :  { %v620_v38 = vadd.f32 %v616_v37, %v580_v30  ;;  %v661_v42 = vmul.f32 %v649_v33, %v649_v33  ;;  %v690_v37 = vld [vmem:[%s1456_s2 + $0x10] sm:$0xff] }
 0x1bc   :  { %v652_v43 = vld [vmem:[#allocation3] sm:$0xff]  ;;  %v646_v45 = vld [vmem:[#allocation2 + $0x10] sm:$0xff] }
 0x1bd   :  { %624 = vst.msk [vmem:[#allocation3 + $0x18] sm:$0xff] %vm21_vm0, %v620_v38  ;;  %v665_v47 = vsub.f32 %v657_v39, %v661_v42  ;;  %v656_v48 = vmul.f32 0.001953125, %v652_v43  ;;  %v650_v50 = vmul.f32 0.001953125, %v646_v45  ;;  %v691_v42 = vld [vmem:[%s1456_s2 + $0x18] sm:$0xff] }
 0x1bf   :  { %v669_v51 = vmax.f32 %v665_v47, 0.0  ;;  %v664_v52 = vsub.f32 %v656_v48, %v660_v49  ;;  %v662_v53 = vmul.f32 %v650_v50, %v650_v50 }
 0x1c0   :  { %v654_v54 = vld [vmem:[#allocation3 + $0x10] sm:$0xff]  ;;  %v647_v55 = vld [vmem:[#allocation2 + $0x18] sm:$0xff] }
 0x1c1   :  { %v677_v56 = vadd.f32 1e-05, %v669_v51  ;;  %v668_v57 = vmax.f32 %v664_v52, 0.0  ;;  %v658_v58 = vmul.f32 0.001953125, %v654_v54  ;;  %v651_v59 = vmul.f32 0.001953125, %v647_v55 }
 0x1c3   :  { %1030 = vrsqrt.f32 %v677_v56  ;;  %v676_v60 = vadd.f32 1e-05, %v668_v57  ;;  %v666_v61 = vsub.f32 %v658_v58, %v662_v53  ;;  %v663_v62 = vmul.f32 %v651_v59, %v651_v59 }
 0x1c4   :  { %v655_v63 = vld [vmem:[#allocation3 + $0x18] sm:$0xff] }
 0x1c5   :  { %1032 = vrsqrt.f32 %v676_v60  ;;  %v659_v0 = vmul.f32 0.001953125, %v655_v63  ;;  %v670_v1 = vmax.f32 %v666_v61, 0.0 }
 0x1c7   :  { %v667_v2 = vsub.f32 %v659_v0, %v663_v62  ;;  %v678_v4 = vadd.f32 1e-05, %v670_v1 }
 0x1c9   :  { %v671_v7 = vmax.f32 %v667_v2, 0.0  ;;  %1034 = vrsqrt.f32 %v678_v4 }
 0x1cb   :  { %v679_v18 = vadd.f32 1e-05, %v671_v7 }
 0x1cd   :  { %v1031_v10 = vpop.eup %1030  ;;  %1036 = vrsqrt.f32 %v679_v18 }
 0x1ce   :  { %v685_v14 = vmul.f32 %v1031_v10, %v673_v3 }
 0x1cf   :  { %v1033_v15 = vpop.eup %1032 }
 0x1d0   :  { %723 = vperm.xlu1 %927, %v685_v14   ;;  %v684_v19 = vmul.f32 %v1033_v15, %v672_v11  ;;  %v693_v23 = vmul.f32 %v685_v14, %v649_v33 }
 0x1d2   :  { %718 = vperm.xlu0 %926, %v684_v19   ;;  %v692_v21 = vmul.f32 %v684_v19, %v648_v36  ;;  %v697_v25 = vsub.f32 %v689_v24, %v693_v23 }
 0x1d3   :  { %v1035_v26 = vpop.eup %1034 }
 0x1d4   :  { %v696_v22 = vsub.f32 %v688_v20, %v692_v21  ;;  %v686_v30 = vmul.f32 %v1035_v26, %v674_v27 }
 0x1d6   :  { %754 = vperm.xlu1 %927, %v696_v22   ;;  %v694_v36 = vmul.f32 %v686_v30, %v650_v50 }
 0x1d7   :  { %v1037_v31 = vpop.eup %1036 }
 0x1d8   :  { %v687_v33 = vmul.f32 %v1037_v31, %v675_v32  ;;  %v698_v38 = vsub.f32 %v690_v37, %v694_v36 }
 0x1da   :  { %759 = vperm.xlu1 %927, %v697_v25   ;;  %v695_v39 = vmul.f32 %v687_v33, %v651_v59 }
 0x1dc   :  { %v699_v43 = vsub.f32 %v691_v42, %v695_v39 }
 0x1de   :  { %728 = vperm.xlu1 %927, %v686_v30  }
 0x1e2   :  { %733 = vperm.xlu1 %927, %v687_v33  }
 0x1e6   :  { %764 = vperm.xlu1 %927, %v698_v38  }
 0x1ea   :  { %769 = vperm.xlu1 %927, %v699_v43  }
 0x24f   :  { %v724_v45 = vpop.permute.xlu1 %723 }
 0x250   :  { %v740_v57 = vmul.f32 %v724_v45, %v1291_v12  ;;  %v741_v58 = vmul.f32 %v724_v45, %v1299_v16  ;;  %v742_v59 = vmul.f32 %v724_v45, %v1293_v13 }
 0x251   :  { %v719_v47 = vpop.permute.xlu0 %718 }
 0x252   :  { %v736_v48 = vmul.f32 %v719_v47, %v1277_v5  ;;  %v737_v49 = vmul.f32 %v719_v47, %v1283_v8  ;;  %v738_v50 = vmul.f32 %v719_v47, %v1279_v6  ;;  %v739_v51 = vmul.f32 %v719_v47, %v1285_v9 }
 0x253   :  { %v743_v5 = vmul.f32 %v724_v45, %v1301_v17 }
 0x255   :  { %v755_v52 = vpop.permute.xlu1 %754 }
 0x256   :  { %v772_v53 = vadd.f32 %v755_v52, %v736_v48  ;;  %v773_v54 = vadd.f32 %v755_v52, %v737_v49  ;;  %v774_v55 = vadd.f32 %v755_v52, %v738_v50  ;;  %v775_v56 = vadd.f32 %v755_v52, %v739_v51 }
 0x258   :  { %vm788_vm1 = vcmp.ge.f32.partialorder %v772_v53, 0.0  ;;  %vm789_vm2 = vcmp.ge.f32.partialorder %v773_v54, 0.0  ;;  %vm790_vm3 = vcmp.ge.f32.partialorder %v774_v55, 0.0  ;;  %vm791_vm4 = vcmp.ge.f32.partialorder %v775_v56, 0.0 }
 0x259   :  { %v804_v6 = vmul.f32 0.2, %v772_v53  ;;  %v805_v8 = vmul.f32 0.2, %v773_v54  ;;  %v806_v9 = vmul.f32 0.2, %v774_v55  ;;  %v760_v60 = vpop.permute.xlu1 %759 }
 0x25a   :  { %v807_v61 = vmul.f32 0.2, %v775_v56  ;;  %v776_v62 = vadd.f32 %v760_v60, %v740_v57  ;;  %v777_v63 = vadd.f32 %v760_v60, %v741_v58  ;;  %v778_v0 = vadd.f32 %v760_v60, %v742_v59 }
 0x25b   :  { %v820_v1 = vsel %vm788_vm1, %v772_v53, %v804_v6  ;;  %v821_v12 = vsel %vm789_vm2, %v773_v54, %v805_v8  ;;  %v822_v2 = vsel %vm790_vm3, %v774_v55, %v806_v9  ;;  %v779_v16 = vadd.f32 %v760_v60, %v743_v5 }
 0x25c   :  { %v823_v3 = vsel %vm791_vm4, %v775_v56, %v807_v61  ;;  %836 = vst [vmem:[%s1457_s4] sm:$0xff] %v820_v1  ;;  %837 = vst [vmem:[%s1457_s4 + $0x8] sm:$0xff] %v821_v12  ;;  %vm792_vm5 = vcmp.ge.f32.partialorder %v776_v62, 0.0  ;;  %vm793_vm6 = vcmp.ge.f32.partialorder %v777_v63, 0.0  ;;  %vm794_vm7 = vcmp.ge.f32.partialorder %v778_v0, 0.0 }
 0x25d   :  { %838 = vst [vmem:[%s1457_s4 + $0x10] sm:$0xff] %v822_v2  ;;  %839 = vst [vmem:[%s1457_s4 + $0x18] sm:$0xff] %v823_v3  ;;  %vm795_vm8 = vcmp.ge.f32.partialorder %v779_v16, 0.0  ;;  %v808_v13 = vmul.f32 0.2, %v776_v62  ;;  %v729_v4 = vpop.permute.xlu1 %728 }
 0x25e   :  { %v809_v17 = vmul.f32 0.2, %v777_v63  ;;  %v810_v7 = vmul.f32 0.2, %v778_v0  ;;  %v811_v10 = vmul.f32 0.2, %v779_v16  ;;  %v744_v20 = vmul.f32 %v729_v4, %v1314_v28 }
 0x25f   :  { %v824_v11 = vsel %vm792_vm5, %v776_v62, %v808_v13  ;;  %v745_v21 = vmul.f32 %v729_v4, %v1323_v34  ;;  %v746_v22 = vmul.f32 %v729_v4, %v1316_v29  ;;  %v747_v23 = vmul.f32 %v729_v4, %v1325_v35 }
 0x260   :  { %v825_v14 = vsel %vm793_vm6, %v777_v63, %v809_v17  ;;  %v826_v15 = vsel %vm794_vm7, %v778_v0, %v810_v7  ;;  %v827_v18 = vsel %vm795_vm8, %v779_v16, %v811_v10  ;;  %840 = vst [vmem:[%s1457_s4 + $0x20] sm:$0xff] %v824_v11 }
 0x261   :  { %841 = vst [vmem:[%s1457_s4 + $0x28] sm:$0xff] %v825_v14  ;;  %842 = vst [vmem:[%s1457_s4 + $0x30] sm:$0xff] %v826_v15  ;;  %v734_v19 = vpop.permute.xlu1 %733 }
 0x262   :  { %843 = vst [vmem:[%s1457_s4 + $0x38] sm:$0xff] %v827_v18  ;;  %v748_v31 = vmul.f32 %v734_v19, %v1331_v40  ;;  %v749_v32 = vmul.f32 %v734_v19, %v1339_v44  ;;  %v750_v33 = vmul.f32 %v734_v19, %v1333_v41  ;;  %v751_v35 = vmul.f32 %v734_v19, %v1343_v46 }
 0x265   :  { %v765_v24 = vpop.permute.xlu1 %764 }
 0x266   :  { %v780_v25 = vadd.f32 %v765_v24, %v744_v20  ;;  %v781_v26 = vadd.f32 %v765_v24, %v745_v21  ;;  %v782_v27 = vadd.f32 %v765_v24, %v746_v22  ;;  %v783_v30 = vadd.f32 %v765_v24, %v747_v23 }
 0x268   :  { %vm796_vm9 = vcmp.ge.f32.partialorder %v780_v25, 0.0  ;;  %vm797_vm10 = vcmp.ge.f32.partialorder %v781_v26, 0.0  ;;  %vm798_vm11 = vcmp.ge.f32.partialorder %v782_v27, 0.0  ;;  %vm799_vm12 = vcmp.ge.f32.partialorder %v783_v30, 0.0 }
 0x269   :  { %v812_v28 = vmul.f32 0.2, %v780_v25  ;;  %v813_v34 = vmul.f32 0.2, %v781_v26  ;;  %v814_v29 = vmul.f32 0.2, %v782_v27  ;;  %v770_v36 = vpop.permute.xlu1 %769 }
 0x26a   :  { %v815_v37 = vmul.f32 0.2, %v783_v30  ;;  %v784_v38 = vadd.f32 %v770_v36, %v748_v31  ;;  %v785_v39 = vadd.f32 %v770_v36, %v749_v32  ;;  %v786_v42 = vadd.f32 %v770_v36, %v750_v33 }
 0x26b   :  { %v828_v43 = vsel %vm796_vm9, %v780_v25, %v812_v28  ;;  %v829_v40 = vsel %vm797_vm10, %v781_v26, %v813_v34  ;;  %v830_v45 = vsel %vm798_vm11, %v782_v27, %v814_v29  ;;  %v787_v44 = vadd.f32 %v770_v36, %v751_v35 }
 0x26c   :  { %v831_v47 = vsel %vm799_vm12, %v783_v30, %v815_v37  ;;  %844 = vst [vmem:[%s1457_s4 + $0x40] sm:$0xff] %v828_v43  ;;  %845 = vst [vmem:[%s1457_s4 + $0x48] sm:$0xff] %v829_v40  ;;  %vm800_vm13 = vcmp.ge.f32.partialorder %v784_v38, 0.0  ;;  %vm801_vm14 = vcmp.ge.f32.partialorder %v785_v39, 0.0  ;;  %vm802_vm15 = vcmp.ge.f32.partialorder %v786_v42, 0.0 }
 0x26d   :  { %846 = vst [vmem:[%s1457_s4 + $0x50] sm:$0xff] %v830_v45  ;;  %847 = vst [vmem:[%s1457_s4 + $0x58] sm:$0xff] %v831_v47  ;;  %vm803_vm0 = vcmp.ge.f32.partialorder %v787_v44, 0.0  ;;  %v816_v41 = vmul.f32 0.2, %v784_v38 }
 0x26e   :  { %v817_v46 = vmul.f32 0.2, %v785_v39  ;;  %v818_v48 = vmul.f32 0.2, %v786_v42  ;;  %v819_v49 = vmul.f32 0.2, %v787_v44 }
 0x26f   :  { %v832_v50 = vsel %vm800_vm13, %v784_v38, %v816_v41 }
 0x270   :  { %v833_v51 = vsel %vm801_vm14, %v785_v39, %v817_v46  ;;  %v834_v52 = vsel %vm802_vm15, %v786_v42, %v818_v48  ;;  %v835_v53 = vsel %vm803_vm0, %v787_v44, %v819_v49  ;;  %848 = vst [vmem:[%s1457_s4 + $0x60] sm:$0xff] %v832_v50 }
 0x271   :  { %849 = vst [vmem:[%s1457_s4 + $0x68] sm:$0xff] %v833_v51  ;;  %850 = vst [vmem:[%s1457_s4 + $0x70] sm:$0xff] %v834_v52 }
 0x272   :  { %851 = vst [vmem:[%s1457_s4 + $0x78] sm:$0xff] %v835_v53 }

// kernel: discriminator_forward.9
= control target key start
LH: loop header
LB: loop body
LE: loop exit
PB: predicated region body
PF: predicated region fallthrough
CT: control target
= control target key end

     0   :  { %vm22_vm0 = vcmask 7168   ;;  %v1077_v48 = vmov 0.0   ;;  %s1435_s3 = inlined_call_operand.vmem [shape: bf16[512,128], index: 3, kind: input, shape index: {}]   ;;  %s1436_s0 = inlined_call_operand.vmem [shape: bf16[64,512], index: 0, kind: input, shape index: {}]   ;;  %s1437_s1 = inlined_call_operand.vmem [shape: f32[64,1], index: 1, kind: input, shape index: {}]   ;;  %s1438_s2 = inlined_call_operand.vmem [shape: f32[64,1], index: 2, kind: input, shape index: {}]   ;;  %s1439_s4 = inlined_call_operand.vmem [shape: f32[64,128], index: 4, kind: output, shape index: {}]  }
   0x1   :  { %v1005_v0 = vld [vmem:[%s1435_s3 + $0x40] sm:$0xff]   ;;  %v1009_v4 = vld [vmem:[%s1435_s3 + $0x48] sm:$0xff]   ;;  %v1013_v8 = vld [vmem:[%s1435_s3 + $0x50] sm:$0xff]   ;;  %23 = vst.msk [vmem:[#allocation2] sm:$0xff] %vm22_vm0, %v1077_v48 }
   0x2   :  { %v1006_v1 = vld [vmem:[%s1435_s3 + $0xc0] sm:$0xff]   ;;  %921 = vmatprep.subr.bf16.mxu0 %v1005_v0  ;;  %v1010_v5 = vld [vmem:[%s1435_s3 + $0xc8] sm:$0xff]   ;;  %v1014_v9 = vld [vmem:[%s1435_s3 + $0xd0] sm:$0xff]   ;;  %24 = vst.msk [vmem:[#allocation2 + $0x8] sm:$0xff] %vm22_vm0, %v1077_v48 }
   0x3   :  { %v1007_v2 = vld [vmem:[%s1435_s3] sm:$0xff]   ;;  %961 = vmatprep.subr.bf16.mxu1 %v1006_v1  ;;  %v1011_v6 = vld [vmem:[%s1435_s3 + $0x8] sm:$0xff]   ;;  %v1015_v10 = vld [vmem:[%s1435_s3 + $0x10] sm:$0xff]   ;;  %25 = vst.msk [vmem:[#allocation2 + $0x10] sm:$0xff] %vm22_vm0, %v1077_v48 }
   0x4   :  { %v1008_v3 = vld [vmem:[%s1435_s3 + $0x80] sm:$0xff]   ;;  %922 = vmatpush3.bf16.msra.mxu0 %v1007_v2  ;;  %v1012_v7 = vld [vmem:[%s1435_s3 + $0x88] sm:$0xff]   ;;  %v1016_v11 = vld [vmem:[%s1435_s3 + $0x90] sm:$0xff]   ;;  %26 = vst.msk [vmem:[#allocation2 + $0x18] sm:$0xff] %vm22_vm0, %v1077_v48 }
   0x5   :  { %962 = vmatpush3.bf16.msra.mxu1 %v1008_v3  ;;  %923 = vmatprep.subr.bf16.mxu0 %v1009_v4  ;;  %v1017_v12 = vld [vmem:[%s1435_s3 + $0x58] sm:$0xff]   ;;  %v1021_v16 = vld [vmem:[%s1435_s3 + $0x60] sm:$0xff]   ;;  %v1025_v20 = vld [vmem:[%s1435_s3 + $0x68] sm:$0xff]   ;;  %27 = vst.msk [vmem:[#allocation2 + $0x20] sm:$0xff] %vm22_vm0, %v1077_v48 }
   0x6   :  { %963 = vmatprep.subr.bf16.mxu1 %v1010_v5  ;;  %v1018_v13 = vld [vmem:[%s1435_s3 + $0xd8] sm:$0xff]   ;;  %v1022_v17 = vld [vmem:[%s1435_s3 + $0xe0] sm:$0xff]   ;;  %v1026_v21 = vld [vmem:[%s1435_s3 + $0xe8] sm:$0xff]   ;;  %28 = vst.msk [vmem:[#allocation2 + $0x28] sm:$0xff] %vm22_vm0, %v1077_v48 }
   0x7   :  { %v1019_v14 = vld [vmem:[%s1435_s3 + $0x18] sm:$0xff]   ;;  %v1023_v18 = vld [vmem:[%s1435_s3 + $0x20] sm:$0xff]   ;;  %v1027_v22 = vld [vmem:[%s1435_s3 + $0x28] sm:$0xff]   ;;  %29 = vst.msk [vmem:[#allocation2 + $0x30] sm:$0xff] %vm22_vm0, %v1077_v48 }
   0x8   :  { %924 = vmatpush3.bf16.msra.mxu0 %v1011_v6  ;;  %v1020_v15 = vld [vmem:[%s1435_s3 + $0x98] sm:$0xff]   ;;  %v1024_v19 = vld [vmem:[%s1435_s3 + $0xa0] sm:$0xff]   ;;  %v1028_v23 = vld [vmem:[%s1435_s3 + $0xa8] sm:$0xff]   ;;  %30 = vst.msk [vmem:[#allocation2 + $0x38] sm:$0xff] %vm22_vm0, %v1077_v48 }
   0x9   :  { %964 = vmatpush3.bf16.msra.mxu1 %v1012_v7  ;;  %925 = vmatprep.subr.bf16.mxu0 %v1013_v8  ;;  %v1029_v24 = vld [vmem:[%s1435_s3 + $0x70] sm:$0xff]   ;;  %v1033_v28 = vld [vmem:[%s1435_s3 + $0x78] sm:$0xff]   ;;  %31 = vst.msk [vmem:[#allocation3] sm:$0xff] %vm22_vm0, %v1077_v48  ;;  %32 = vst.msk [vmem:[#allocation3 + $0x8] sm:$0xff] %vm22_vm0, %v1077_v48 }
   0xa   :  { %965 = vmatprep.subr.bf16.mxu1 %v1014_v9  ;;  %v1030_v25 = vld [vmem:[%s1435_s3 + $0xf0] sm:$0xff]   ;;  %v1034_v29 = vld [vmem:[%s1435_s3 + $0xf8] sm:$0xff]   ;;  %33 = vst.msk [vmem:[#allocation3 + $0x10] sm:$0xff] %vm22_vm0, %v1077_v48  ;;  %34 = vst.msk [vmem:[#allocation3 + $0x18] sm:$0xff] %vm22_vm0, %v1077_v48 }
   0xb   :  { %v1031_v26 = vld [vmem:[%s1435_s3 + $0x30] sm:$0xff]   ;;  %v1035_v30 = vld [vmem:[%s1435_s3 + $0x38] sm:$0xff]   ;;  %35 = vst.msk [vmem:[#allocation3 + $0x20] sm:$0xff] %vm22_vm0, %v1077_v48  ;;  %36 = vst.msk [vmem:[#allocation3 + $0x28] sm:$0xff] %vm22_vm0, %v1077_v48 }
   0xc   :  { %926 = vmatpush3.bf16.msra.mxu0 %v1015_v10  ;;  %v1032_v27 = vld [vmem:[%s1435_s3 + $0xb0] sm:$0xff]   ;;  %v1036_v31 = vld [vmem:[%s1435_s3 + $0xb8] sm:$0xff]   ;;  %37 = vst.msk [vmem:[#allocation3 + $0x30] sm:$0xff] %vm22_vm0, %v1077_v48  ;;  %38 = vst.msk [vmem:[#allocation3 + $0x38] sm:$0xff] %vm22_vm0, %v1077_v48 }
   0xd   :  { %966 = vmatpush3.bf16.msra.mxu1 %v1016_v11  ;;  %927 = vmatprep.subr.bf16.mxu0 %v1017_v12  ;;  %v1037_v32 = vld [vmem:[%s1436_s0] ss:$16 sps:$4 sm:$0xff]   ;;  %v1039_v33 = vld [vmem:[%s1436_s0 + $0x4] ss:$16 sps:$4 sm:$0xff]   ;;  %v1040_v34 = vld [vmem:[%s1436_s0 + $0x8] ss:$16 sps:$4 sm:$0xff]  }
   0xe   :  { %967 = vmatprep.subr.bf16.mxu1 %v1018_v13  ;;  %v1042_v35 = vld [vmem:[%s1436_s0 + $0xc] ss:$16 sps:$4 sm:$0xff]   ;;  %423 = vmatprep.mubr.bf16.mxu0 %v1039_v33  ;;  %v1043_v36 = vld [vmem:[%s1436_s0 + $0x24] ss:$16 sps:$4 sm:$0xff]   ;;  %v1047_v38 = vld [vmem:[%s1436_s0 + $0x20] ss:$16 sps:$4 sm:$0xff]  }
   0xf   :  { %488 = vmatprep.mubr.bf16.mxu1 %v1042_v35  ;;  %v1045_v37 = vld [vmem:[%s1436_s0 + $0x2c] ss:$16 sps:$4 sm:$0xff]   ;;  %v1048_v39 = vld [vmem:[%s1436_s0 + $0x28] ss:$16 sps:$4 sm:$0xff]   ;;  %v1049_v40 = vld [vmem:[%s1436_s0 + $0x44] ss:$16 sps:$4 sm:$0xff]  }
  0x10   :  { %928 = vmatpush3.bf16.msra.mxu0 %v1019_v14  ;;  %v1051_v41 = vld [vmem:[%s1436_s0 + $0x4c] ss:$16 sps:$4 sm:$0xff]   ;;  %v1053_v42 = vld [vmem:[%s1436_s0 + $0x40] ss:$16 sps:$4 sm:$0xff]   ;;  %v1054_v43 = vld [vmem:[%s1436_s0 + $0x48] ss:$16 sps:$4 sm:$0xff]  }
  0x11   :  { %968 = vmatpush3.bf16.msra.mxu1 %v1020_v15  ;;  %929 = vmatprep.subr.bf16.mxu0 %v1021_v16  ;;  %v1055_v44 = vld [vmem:[%s1436_s0 + $0x64] ss:$16 sps:$4 sm:$0xff]   ;;  %v1057_v45 = vld [vmem:[%s1436_s0 + $0x6c] ss:$16 sps:$4 sm:$0xff]   ;;  %v1059_v46 = vld [vmem:[%s1436_s0 + $0x60] ss:$16 sps:$4 sm:$0xff]  }
  0x12   :  { %969 = vmatprep.subr.bf16.mxu1 %v1022_v17  ;;  %v1060_v47 = vld [vmem:[%s1436_s0 + $0x68] ss:$16 sps:$4 sm:$0xff]  }
  0x14   :  { %930 = vmatpush3.bf16.msra.mxu0 %v1023_v18 }
  0x15   :  { %970 = vmatpush3.bf16.msra.mxu1 %v1024_v19  ;;  %931 = vmatprep.subr.bf16.mxu0 %v1025_v20 }
  0x16   :  { %971 = vmatprep.subr.bf16.mxu1 %v1026_v21 }
  0x18   :  { %932 = vmatpush3.bf16.msra.mxu0 %v1027_v22 }
  0x19   :  { %972 = vmatpush3.bf16.msra.mxu1 %v1028_v23  ;;  %933 = vmatprep.subr.bf16.mxu0 %v1029_v24 }
  0x1a   :  { %973 = vmatprep.subr.bf16.mxu1 %v1030_v25 }
  0x1c   :  { %934 = vmatpush3.bf16.msra.mxu0 %v1031_v26 }
  0x1d   :  { %974 = vmatpush3.bf16.msra.mxu1 %v1032_v27  ;;  %935 = vmatprep.subr.bf16.mxu0 %v1033_v28 }
  0x1e   :  { %975 = vmatprep.subr.bf16.mxu1 %v1034_v29 }
  0x20   :  { %936 = vmatpush3.bf16.msra.mxu0 %v1035_v30 }
  0x21   :  { %976 = vmatpush3.bf16.msra.mxu1 %v1036_v31 }
  0x23   :  { %424 = vmatmul.mubr.bf16.vlgmr.msra.gmra.mrb[0].mxu0 %v1037_v32 }
  0x24   :  { %489 = vmatmul.mubr.bf16.vlgmr.msra.gmra.mrb[0].mxu1 %v1040_v34  ;;  %431 = vmatprep.mubr.bf16.mxu0 %v1043_v36 }
  0x25   :  { %496 = vmatprep.mubr.bf16.mxu1 %v1045_v37 }
  0x2b   :  { %432 = vmatmul.mubr.bf16.gmra.mrb[4].mxu0 %v1047_v38 }
  0x2c   :  { %497 = vmatmul.mubr.bf16.gmra.mrb[4].mxu1 %v1048_v39  ;;  %439 = vmatprep.mubr.bf16.mxu0 %v1049_v40 }
  0x2d   :  { %504 = vmatprep.mubr.bf16.mxu1 %v1051_v41 }
  0x33   :  { %440 = vmatmul.mubr.bf16.gmra.mrb[8].mxu0 %v1053_v42 }
  0x34   :  { %505 = vmatmul.mubr.bf16.gmra.mrb[8].mxu1 %v1054_v43  ;;  %447 = vmatprep.mubr.bf16.mxu0 %v1055_v44 }
  0x35   :  { %512 = vmatprep.mubr.bf16.mxu1 %v1057_v45 }
  0x3b   :  { %448 = vmatmul.mubr.bf16.gmra.mrb[12].mxu0 %v1059_v46 }
  0x3c   :  { %513 = vmatmul.mubr.bf16.gmra.mrb[12].mxu1 %v1060_v47 }
  0xf6   :  { %v937_v49 = vpop.f32.mrb[0].mxu0 }
  0xf7   :  { %v977_v50 = vpop.f32.mrb[0].mxu1  ;;  %v938_v51 = vpop.f32.mrb[1].mxu0 }
  0xf8   :  { %v939_v52 = vadd.f32 %v938_v51, %v937_v49  ;;  %v978_v53 = vpop.f32.mrb[1].mxu1  ;;  %v940_v54 = vpop.f32.mrb[2].mxu0  ;;  %v1078_v49 = vmov 0  }
  0xf9   :  { %v979_v55 = vadd.f32 %v978_v53, %v977_v50  ;;  %v980_v56 = vpop.f32.mrb[2].mxu1  ;;  %v941_v57 = vpop.f32.mrb[3].mxu0  ;;  %1004 = vset.pattern.permute.xlu1 %v1078_v49  ;;  %1003 = vset.pattern.permute.xlu0 %v1078_v49  ;;  %v521_v50 = vld [vmem:[#allocation2] sm:$0xff]  ;;  %v563_v53 = vld [vmem:[#allocation3 + $0x8] sm:$0xff] }
  0xfa   :  { %v942_v58 = vadd.f32 %v941_v57, %v940_v54  ;;  %v981_v59 = vpop.f32.mrb[3].mxu1  ;;  %v522_v54 = vld [vmem:[#allocation2 + $0x8] sm:$0xff] }
  0xfb   :  { %v1264_v60 = vadd.f32 %v979_v55, %v939_v52  ;;  %v982_v61 = vadd.f32 %v981_v59, %v980_v56  ;;  %v523_v59 = vld [vmem:[#allocation2 + $0x10] sm:$0xff] }
  0xfd   :  { %v1266_v62 = vadd.f32 %v982_v61, %v942_v58  ;;  %529 = vadd.xlane.f32.xlu0 %v1264_v60  ;;  %v570_v13 = vmul.f32 %v1264_v60, %v1264_v60  ;;  %v562_v61 = vld [vmem:[#allocation3] sm:$0xff] }
  0xfe   :  { %v943_v63 = vpop.f32.mrb[4].mxu0 }
  0xff   :  { %v983_v0 = vpop.f32.mrb[4].mxu1  ;;  %v944_v1 = vpop.f32.mrb[5].mxu0  ;;  %v571_v2 = vmul.f32 %v1266_v62, %v1266_v62 }
 0x100   :  { %v945_v3 = vadd.f32 %v944_v1, %v943_v63  ;;  %v984_v4 = vpop.f32.mrb[5].mxu1  ;;  %v946_v5 = vpop.f32.mrb[6].mxu0 }
 0x101   :  { %v985_v6 = vadd.f32 %v984_v4, %v983_v0  ;;  %580 = vadd.xlane.f32.xlu1 %v571_v2  ;;  %531 = vadd.xlane.f32.xlu0 %v1266_v62  ;;  %v986_v7 = vpop.f32.mrb[6].mxu1  ;;  %v947_v8 = vpop.f32.mrb[7].mxu0  ;;  %v564_v4 = vld [vmem:[#allocation3 + $0x10] sm:$0xff] }
 0x102   :  { %v948_v9 = vadd.f32 %v947_v8, %v946_v5  ;;  %v987_v10 = vpop.f32.mrb[7].mxu1 }
 0x103   :  { %v1272_v11 = vadd.f32 %v985_v6, %v945_v3  ;;  %v988_v12 = vadd.f32 %v987_v10, %v986_v7  ;;  %v524_v3 = vld [vmem:[#allocation2 + $0x18] sm:$0xff] }
 0x104   :  { %v565_v10 = vld [vmem:[#allocation3 + $0x18] sm:$0xff] }
 0x105   :  { %v1276_v14 = vadd.f32 %v988_v12, %v948_v9  ;;  %533 = vadd.xlane.f32.xlu1 %v1272_v11  ;;  %578 = vadd.xlane.f32.xlu0 %v570_v13  ;;  %v572_v15 = vmul.f32 %v1272_v11, %v1272_v11  ;;  %v525_v12 = vld [vmem:[#allocation2 + $0x20] sm:$0xff] }
 0x106   :  { %v949_v16 = vpop.f32.mrb[8].mxu0 }
 0x107   :  { %v989_v17 = vpop.f32.mrb[8].mxu1  ;;  %v950_v18 = vpop.f32.mrb[9].mxu0  ;;  %v573_v29 = vmul.f32 %v1276_v14, %v1276_v14 }
 0x108   :  { %v951_v19 = vadd.f32 %v950_v18, %v949_v16  ;;  %v990_v20 = vpop.f32.mrb[9].mxu1  ;;  %v952_v21 = vpop.f32.mrb[10].mxu0 }
 0x109   :  { %v991_v22 = vadd.f32 %v990_v20, %v989_v17  ;;  %535 = vadd.xlane.f32.xlu1 %v1276_v14  ;;  %582 = vadd.xlane.f32.xlu0 %v572_v15  ;;  %v992_v23 = vpop.f32.mrb[10].mxu1  ;;  %v953_v24 = vpop.f32.mrb[11].mxu0 }
 0x10a   :  { %v954_v25 = vadd.f32 %v953_v24, %v952_v21  ;;  %v993_v26 = vpop.f32.mrb[11].mxu1 }
 0x10b   :  { %v1282_v27 = vadd.f32 %v991_v22, %v951_v19  ;;  %v994_v28 = vadd.f32 %v993_v26, %v992_v23  ;;  %v526_v22 = vld [vmem:[#allocation2 + $0x28] sm:$0xff] }
 0x10d   :  { %v1286_v30 = vadd.f32 %v994_v28, %v954_v25  ;;  %584 = vadd.xlane.f32.xlu1 %v573_v29  ;;  %537 = vadd.xlane.f32.xlu0 %v1282_v27  ;;  %v574_v31 = vmul.f32 %v1282_v27, %v1282_v27  ;;  %v566_v25 = vld [vmem:[#allocation3 + $0x20] sm:$0xff] }
 0x10e   :  { %v955_v32 = vpop.f32.mrb[12].mxu0 }
 0x10f   :  { %v995_v33 = vpop.f32.mrb[12].mxu1  ;;  %v956_v34 = vpop.f32.mrb[13].mxu0  ;;  %v575_v41 = vmul.f32 %v1286_v30, %v1286_v30 }
 0x110   :  { %v957_v35 = vadd.f32 %v956_v34, %v955_v32  ;;  %v996_v36 = vpop.f32.mrb[13].mxu1  ;;  %v958_v37 = vpop.f32.mrb[14].mxu0 }
 0x111   :  { %v997_v38 = vadd.f32 %v996_v36, %v995_v33  ;;  %539 = vadd.xlane.f32.xlu1 %v1286_v30  ;;  %586 = vadd.xlane.f32.xlu0 %v574_v31  ;;  %v998_v39 = vpop.f32.mrb[14].mxu1  ;;  %v959_v40 = vpop.f32.mrb[15].mxu0 }
 0x112   :  { %v960_v42 = vadd.f32 %v959_v40, %v958_v37  ;;  %v999_v43 = vpop.f32.mrb[15].mxu1 }
 0x113   :  { %v1294_v44 = vadd.f32 %v997_v38, %v957_v35  ;;  %v1000_v45 = vadd.f32 %v999_v43, %v998_v39  ;;  %v567_v38 = vld [vmem:[#allocation3 + $0x28] sm:$0xff] }
 0x115   :  { %v1296_v46 = vadd.f32 %v1000_v45, %v960_v42  ;;  %588 = vadd.xlane.f32.xlu1 %v575_v41  ;;  %541 = vadd.xlane.f32.xlu0 %v1294_v44  ;;  %v576_v47 = vmul.f32 %v1294_v44, %v1294_v44  ;;  %v527_v41 = vld [vmem:[#allocation2 + $0x30] sm:$0xff] }
 0x117   :  { %v577_v48 = vmul.f32 %v1296_v46, %v1296_v46 }
 0x119   :  { %543 = vadd.xlane.f32.xlu1 %v1296_v46  ;;  %590 = vadd.xlane.f32.xlu0 %v576_v47 }
 0x11d   :  { %592 = vadd.xlane.f32.xlu1 %v577_v48 }
 0x18a   :  { %v530_v51 = vpop.xlane.xlu0 %529 }
 0x18b   :  { %v545_v52 = vadd.f32 %v530_v51, %v521_v50 }
 0x18d   :  { %554 = vst.msk [vmem:[#allocation2] sm:$0xff] %vm22_vm0, %v545_v52 }
 0x18e   :  { %v581_v55 = vpop.xlane.xlu1 %580  ;;  %v532_v56 = vpop.xlane.xlu0 %531 }
 0x18f   :  { %v595_v57 = vadd.f32 %v581_v55, %v563_v53  ;;  %v546_v58 = vadd.f32 %v532_v56, %v522_v54  ;;  %v528_v55 = vld [vmem:[#allocation2 + $0x38] sm:$0xff] }
 0x191   :  { %603 = vst.msk [vmem:[#allocation3 + $0x8] sm:$0xff] %vm22_vm0, %v595_v57  ;;  %555 = vst.msk [vmem:[#allocation2 + $0x8] sm:$0xff] %vm22_vm0, %v546_v58  ;;  %v568_v57 = vld [vmem:[#allocation3 + $0x30] sm:$0xff] }
 0x192   :  { %v534_v63 = vpop.xlane.xlu1 %533  ;;  %v579_v0 = vpop.xlane.xlu0 %578 }
 0x193   :  { %v547_v1 = vadd.f32 %v534_v63, %v523_v59  ;;  %v594_v2 = vadd.f32 %v579_v0, %v562_v61 }
 0x194   :  { %v621_v7 = vld [vmem:[#allocation2] sm:$0xff] }
 0x195   :  { %556 = vst.msk [vmem:[#allocation2 + $0x10] sm:$0xff] %vm22_vm0, %v547_v1  ;;  %602 = vst.msk [vmem:[#allocation3] sm:$0xff] %vm22_vm0, %v594_v2  ;;  %v1313_v17 = vmul.f32 0.0078125, %v621_v7 }
 0x196   :  { %v536_v5 = vpop.xlane.xlu1 %535  ;;  %v583_v6 = vpop.xlane.xlu0 %582 }
 0x197   :  { %v548_v8 = vadd.f32 %v536_v5, %v524_v3  ;;  %v596_v9 = vadd.f32 %v583_v6, %v564_v4  ;;  %v653_v32 = vmul.f32 %v1313_v17, %v1313_v17 }
 0x198   :  { %v622_v13 = vld [vmem:[#allocation2 + $0x8] sm:$0xff] }
 0x199   :  { %v638_v15 = vld [vmem:[#allocation3 + $0x8] sm:$0xff]  ;;  %557 = vst.msk [vmem:[#allocation2 + $0x18] sm:$0xff] %vm22_vm0, %v548_v8  ;;  %604 = vst.msk [vmem:[#allocation3 + $0x10] sm:$0xff] %vm22_vm0, %v596_v9  ;;  %v1311_v16 = vmul.f32 0.0078125, %v622_v13  ;;  %v569_v9 = vld [vmem:[#allocation3 + $0x38] sm:$0xff] }
 0x19a   :  { %v585_v18 = vpop.xlane.xlu1 %584  ;;  %v538_v19 = vpop.xlane.xlu0 %537  ;;  %v646_v23 = vmul.f32 0.0078125, %v638_v15 }
 0x19b   :  { %v597_v20 = vadd.f32 %v585_v18, %v565_v10  ;;  %v549_v21 = vadd.f32 %v538_v19, %v525_v12  ;;  %v654_v24 = vmul.f32 %v1311_v16, %v1311_v16 }
 0x19c   :  { %v637_v26 = vld [vmem:[#allocation3] sm:$0xff]  ;;  %v623_v28 = vld [vmem:[#allocation2 + $0x10] sm:$0xff] }
 0x19d   :  { %605 = vst.msk [vmem:[#allocation3 + $0x18] sm:$0xff] %vm22_vm0, %v597_v20  ;;  %558 = vst.msk [vmem:[#allocation2 + $0x20] sm:$0xff] %vm22_vm0, %v549_v21  ;;  %v662_v29 = vsub.f32 %v646_v23, %v654_v24  ;;  %v645_v31 = vmul.f32 0.0078125, %v637_v26  ;;  %v1321_v33 = vmul.f32 0.0078125, %v623_v28 }
 0x19e   :  { %v540_v34 = vpop.xlane.xlu1 %539  ;;  %v587_v35 = vpop.xlane.xlu0 %586 }
 0x19f   :  { %v550_v36 = vadd.f32 %v540_v34, %v526_v22  ;;  %v598_v37 = vadd.f32 %v587_v35, %v566_v25  ;;  %v670_v39 = vmax.f32 %v662_v29, 0.0  ;;  %v661_v40 = vsub.f32 %v645_v31, %v653_v32  ;;  %v678_v22 = vld [vmem:[%s1437_s1 + $0x8] sm:$0xff]  ;;  %v677_v31 = vld [vmem:[%s1437_s1] sm:$0xff] }
 0x1a0   :  { %v639_v42 = vld [vmem:[#allocation3 + $0x10] sm:$0xff]  ;;  %v655_v43 = vmul.f32 %v1321_v33, %v1321_v33  ;;  %v624_v45 = vld [vmem:[#allocation2 + $0x18] sm:$0xff] }
 0x1a1   :  { %559 = vst.msk [vmem:[#allocation2 + $0x28] sm:$0xff] %vm22_vm0, %v550_v36  ;;  %606 = vst.msk [vmem:[#allocation3 + $0x20] sm:$0xff] %vm22_vm0, %v598_v37  ;;  %v686_v47 = vadd.f32 1e-05, %v670_v39  ;;  %v669_v48 = vmax.f32 %v661_v40, 0.0  ;;  %v647_v49 = vmul.f32 0.0078125, %v639_v42 }
 0x1a2   :  { %v1327_v50 = vmul.f32 0.0078125, %v624_v45  ;;  %v589_v51 = vpop.xlane.xlu1 %588  ;;  %v542_v52 = vpop.xlane.xlu0 %541  ;;  %v709_v45 = vld [vmem:[%s1438_s2] sm:$0xff] }
 0x1a3   :  { %v599_v53 = vadd.f32 %v589_v51, %v567_v38  ;;  %v551_v54 = vadd.f32 %v542_v52, %v527_v41  ;;  %1061 = vrsqrt.f32 %v686_v47  ;;  %v685_v56 = vadd.f32 1e-05, %v669_v48 }
 0x1a4   :  { %v663_v58 = vsub.f32 %v647_v49, %v655_v43  ;;  %v640_v59 = vld [vmem:[#allocation3 + $0x18] sm:$0xff]  ;;  %v625_v61 = vld [vmem:[#allocation2 + $0x20] sm:$0xff]  ;;  %v656_v0 = vmul.f32 %v1327_v50, %v1327_v50  ;;  %v710_v43 = vld [vmem:[%s1438_s2 + $0x8] sm:$0xff] }
 0x1a5   :  { %607 = vst.msk [vmem:[#allocation3 + $0x28] sm:$0xff] %vm22_vm0, %v599_v53  ;;  %560 = vst.msk [vmem:[#allocation2 + $0x30] sm:$0xff] %vm22_vm0, %v551_v54  ;;  %1063 = vrsqrt.f32 %v685_v56  ;;  %v648_v63 = vmul.f32 0.0078125, %v640_v59  ;;  %v1333_v1 = vmul.f32 0.0078125, %v625_v61  ;;  %v679_v59 = vld [vmem:[%s1437_s1 + $0x10] sm:$0xff]  ;;  %v680_v61 = vld [vmem:[%s1437_s1 + $0x18] sm:$0xff] }
 0x1a6   :  { %v544_v2 = vpop.xlane.xlu1 %543  ;;  %v591_v3 = vpop.xlane.xlu0 %590  ;;  %v671_v4 = vmax.f32 %v663_v58, 0.0 }
 0x1a7   :  { %v552_v5 = vadd.f32 %v544_v2, %v528_v55  ;;  %v600_v6 = vadd.f32 %v591_v3, %v568_v57  ;;  %v664_v7 = vsub.f32 %v648_v63, %v656_v0  ;;  %v657_v8 = vmul.f32 %v1333_v1, %v1333_v1 }
 0x1a8   :  { %v687_v10 = vadd.f32 1e-05, %v671_v4  ;;  %v626_v12 = vld [vmem:[#allocation2 + $0x28] sm:$0xff]  ;;  %v641_v13 = vld [vmem:[#allocation3 + $0x20] sm:$0xff] }
 0x1a9   :  { %561 = vst.msk [vmem:[#allocation2 + $0x38] sm:$0xff] %vm22_vm0, %v552_v5  ;;  %608 = vst.msk [vmem:[#allocation3 + $0x30] sm:$0xff] %vm22_vm0, %v600_v6  ;;  %v672_v15 = vmax.f32 %v664_v7, 0.0  ;;  %v1339_v18 = vmul.f32 0.0078125, %v626_v12  ;;  %v649_v19 = vmul.f32 0.0078125, %v641_v13  ;;  %v712_v5 = vld [vmem:[%s1438_s2 + $0x18] sm:$0xff] }
 0x1aa   :  { %v593_v20 = vpop.xlane.xlu1 %592  ;;  %1065 = vrsqrt.f32 %v687_v10  ;;  %v711_v13 = vld [vmem:[%s1438_s2 + $0x10] sm:$0xff] }
 0x1ab   :  { %v601_v21 = vadd.f32 %v593_v20, %v569_v9  ;;  %v688_v23 = vadd.f32 1e-05, %v672_v15  ;;  %v658_v24 = vmul.f32 %v1339_v18, %v1339_v18  ;;  %v665_v25 = vsub.f32 %v649_v19, %v657_v8  ;;  %v682_v15 = vld [vmem:[%s1437_s1 + $0x28] sm:$0xff] }
 0x1ac   :  { %v642_v26 = vld [vmem:[#allocation3 + $0x28] sm:$0xff]  ;;  %v627_v28 = vld [vmem:[#allocation2 + $0x30] sm:$0xff] }
 0x1ad   :  { %v1062_v29 = vpop.eup %1061  ;;  %609 = vst.msk [vmem:[#allocation3 + $0x38] sm:$0xff] %vm22_vm0, %v601_v21  ;;  %1067 = vrsqrt.f32 %v688_v23  ;;  %v650_v32 = vmul.f32 0.0078125, %v642_v26  ;;  %v673_v35 = vmax.f32 %v665_v25, 0.0  ;;  %v1350_v38 = vmul.f32 0.0078125, %v627_v28  ;;  %v681_v23 = vld [vmem:[%s1437_s1 + $0x20] sm:$0xff]  ;;  %v684_v28 = vld [vmem:[%s1437_s1 + $0x38] sm:$0xff] }
 0x1ae   :  { %v702_v34 = vmul.f32 %v1062_v29, %v678_v22 }
 0x1af   :  { %v1064_v36 = vpop.eup %1063  ;;  %v666_v37 = vsub.f32 %v650_v32, %v658_v24  ;;  %v689_v51 = vadd.f32 1e-05, %v673_v35 }
 0x1b0   :  { %748 = vperm.xlu1 %1004, %v702_v34   ;;  %v701_v39 = vmul.f32 %v1064_v36, %v677_v31  ;;  %v718_v40 = vmul.f32 %v702_v34, %v1311_v16  ;;  %v628_v41 = vld [vmem:[#allocation2 + $0x38] sm:$0xff]  ;;  %v643_v42 = vld [vmem:[#allocation3 + $0x30] sm:$0xff]  ;;  %v659_v16 = vmul.f32 %v1350_v38, %v1350_v38 }
 0x1b1   :  { %v674_v47 = vmax.f32 %v666_v37, 0.0  ;;  %v636_v48 = vmul.f32 0.0078125, %v628_v41  ;;  %v651_v54 = vmul.f32 0.0078125, %v643_v42  ;;  %v716_v34 = vld [vmem:[%s1438_s2 + $0x38] sm:$0xff]  ;;  %v715_v42 = vld [vmem:[%s1438_s2 + $0x30] sm:$0xff] }
 0x1b2   :  { %743 = vperm.xlu0 %1003, %v701_v39   ;;  %v717_v49 = vmul.f32 %v701_v39, %v1313_v17  ;;  %v726_v56 = vsub.f32 %v710_v43, %v718_v40  ;;  %v683_v40 = vld [vmem:[%s1437_s1 + $0x30] sm:$0xff] }
 0x1b3   :  { %v690_v52 = vadd.f32 1e-05, %v674_v47  ;;  %v660_v53 = vmul.f32 %v636_v48, %v636_v48  ;;  %v667_v2 = vsub.f32 %v651_v54, %v659_v16 }
 0x1b4   :  { %v1066_v55 = vpop.eup %1065  ;;  %v725_v57 = vsub.f32 %v709_v45, %v717_v49  ;;  %v644_v58 = vld [vmem:[#allocation3 + $0x38] sm:$0xff] }
 0x1b5   :  { %1069 = vrsqrt.f32 %v690_v52  ;;  %v652_v17 = vmul.f32 0.0078125, %v644_v58  ;;  %v703_v3 = vmul.f32 %v1066_v55, %v679_v59  ;;  %v675_v9 = vmax.f32 %v667_v2, 0.0 }
 0x1b6   :  { %796 = vperm.xlu0 %1003, %v726_v56   ;;  %791 = vperm.xlu1 %1004, %v725_v57   ;;  %1071 = vrsqrt.f32 %v689_v51 }
 0x1b7   :  { %v1068_v63 = vpop.eup %1067  ;;  %v668_v0 = vsub.f32 %v652_v17, %v660_v53  ;;  %v719_v12 = vmul.f32 %v703_v3, %v1321_v33  ;;  %v691_v20 = vadd.f32 1e-05, %v675_v9  ;;  %v714_v33 = vld [vmem:[%s1438_s2 + $0x28] sm:$0xff] }
 0x1b8   :  { %v704_v4 = vmul.f32 %v1068_v63, %v680_v61 }
 0x1b9   :  { %v676_v6 = vmax.f32 %v668_v0, 0.0  ;;  %v727_v21 = vsub.f32 %v711_v13, %v719_v12 }
 0x1ba   :  { %753 = vperm.xlu1 %1004, %v703_v3   ;;  %v720_v7 = vmul.f32 %v704_v4, %v1327_v50 }
 0x1bb   :  { %v692_v8 = vadd.f32 1e-05, %v676_v6 }
 0x1bc   :  { %v728_v10 = vsub.f32 %v712_v5, %v720_v7 }
 0x1bd   :  { %1073 = vrsqrt.f32 %v692_v8 }
 0x1be   :  { %806 = vperm.xlu0 %1003, %v728_v10   ;;  %758 = vperm.xlu1 %1004, %v704_v4   ;;  %1075 = vrsqrt.f32 %v691_v20 }
 0x1bf   :  { %v1070_v19 = vpop.eup %1069 }
 0x1c0   :  { %v706_v50 = vmul.f32 %v1070_v19, %v682_v15  ;;  %v1072_v22 = vpop.eup %1071 }
 0x1c1   :  { %v705_v26 = vmul.f32 %v1072_v22, %v681_v23 }
 0x1c2   :  { %801 = vperm.xlu1 %1004, %v727_v21   ;;  %v722_v24 = vmul.f32 %v706_v50, %v1339_v18  ;;  %v713_v18 = vld [vmem:[%s1438_s2 + $0x20] sm:$0xff] }
 0x1c3   :  { %v721_v32 = vmul.f32 %v705_v26, %v1333_v1 }
 0x1c4   :  { %v730_v25 = vsub.f32 %v714_v33, %v722_v24 }
 0x1c5   :  { %v729_v37 = vsub.f32 %v713_v18, %v721_v32 }
 0x1c6   :  { %816 = vperm.xlu0 %1003, %v730_v25   ;;  %763 = vperm.xlu1 %1004, %v705_v26  }
 0x1c7   :  { %v1074_v29 = vpop.eup %1073 }
 0x1c8   :  { %v708_v31 = vmul.f32 %v1074_v29, %v684_v28  ;;  %v1076_v39 = vpop.eup %1075 }
 0x1c9   :  { %v707_v1 = vmul.f32 %v1076_v39, %v683_v40 }
 0x1ca   :  { %768 = vperm.xlu1 %1004, %v706_v50   ;;  %v724_v35 = vmul.f32 %v708_v31, %v636_v48 }
 0x1cb   :  { %v723_v41 = vmul.f32 %v707_v1, %v1350_v38 }
 0x1cc   :  { %v732_v36 = vsub.f32 %v716_v34, %v724_v35 }
 0x1cd   :  { %v731_v43 = vsub.f32 %v715_v42, %v723_v41 }
 0x1ce   :  { %826 = vperm.xlu0 %1003, %v732_v36   ;;  %811 = vperm.xlu1 %1004, %v729_v37  }
 0x1d2   :  { %773 = vperm.xlu1 %1004, %v707_v1  }
 0x1d6   :  { %778 = vperm.xlu1 %1004, %v708_v31  }
 0x1da   :  { %821 = vperm.xlu1 %1004, %v731_v43  }
 0x22f   :  { %v749_v45 = vpop.permute.xlu1 %748 }
 0x230   :  { %v782_v48 = vmul.f32 %v749_v45, %v1266_v62 }
 0x231   :  { %v744_v47 = vpop.permute.xlu0 %743 }
 0x232   :  { %v781_v49 = vmul.f32 %v744_v47, %v1264_v60 }
 0x235   :  { %v792_v51 = vpop.permute.xlu1 %791  ;;  %v797_v52 = vpop.permute.xlu0 %796 }
 0x236   :  { %v829_v53 = vadd.f32 %v792_v51, %v781_v49  ;;  %v830_v54 = vadd.f32 %v797_v52, %v782_v48 }
 0x238   :  { %vm837_vm1 = vcmp.ge.f32.partialorder %v829_v53, 0.0  ;;  %v845_v16 = vmul.f32 0.2, %v829_v53  ;;  %vm838_vm2 = vcmp.ge.f32.partialorder %v830_v54, 0.0  ;;  %v846_v38 = vmul.f32 0.2, %v830_v54 }
 0x239   :  { %v754_v55 = vpop.permute.xlu1 %753 }
 0x23a   :  { %v853_v56 = vsel %vm837_vm1, %v829_v53, %v845_v16  ;;  %v854_v57 = vsel %vm838_vm2, %v830_v54, %v846_v38  ;;  %v783_v59 = vmul.f32 %v754_v55, %v1272_v11 }
 0x23b   :  { %861 = vst [vmem:[%s1439_s4] sm:$0xff] %v853_v56  ;;  %862 = vst [vmem:[%s1439_s4 + $0x8] sm:$0xff] %v854_v57 }
 0x23d   :  { %v759_v60 = vpop.permute.xlu1 %758  ;;  %v807_v58 = vpop.permute.xlu0 %806 }
 0x23e   :  { %v784_v62 = vmul.f32 %v759_v60, %v1276_v14 }
 0x240   :  { %v832_v61 = vadd.f32 %v807_v58, %v784_v62 }
 0x241   :  { %v802_v17 = vpop.permute.xlu1 %801 }
 0x242   :  { %vm840_vm3 = vcmp.ge.f32.partialorder %v832_v61, 0.0  ;;  %v848_v63 = vmul.f32 0.2, %v832_v61  ;;  %v831_v0 = vadd.f32 %v802_v17, %v783_v59 }
 0x244   :  { %v856_v2 = vsel %vm840_vm3, %v832_v61, %v848_v63  ;;  %vm839_vm4 = vcmp.ge.f32.partialorder %v831_v0, 0.0  ;;  %v847_v3 = vmul.f32 0.2, %v831_v0 }
 0x245   :  { %864 = vst [vmem:[%s1439_s4 + $0x18] sm:$0xff] %v856_v2  ;;  %v764_v4 = vpop.permute.xlu1 %763  ;;  %v817_v6 = vpop.permute.xlu0 %816 }
 0x246   :  { %v855_v5 = vsel %vm839_vm4, %v831_v0, %v847_v3  ;;  %v785_v7 = vmul.f32 %v764_v4, %v1282_v27 }
 0x247   :  { %863 = vst [vmem:[%s1439_s4 + $0x10] sm:$0xff] %v855_v5 }
 0x249   :  { %v769_v14 = vpop.permute.xlu1 %768 }
 0x24a   :  { %v786_v11 = vmul.f32 %v769_v14, %v1286_v30 }
 0x24c   :  { %v834_v8 = vadd.f32 %v817_v6, %v786_v11 }
 0x24d   :  { %v812_v9 = vpop.permute.xlu1 %811  ;;  %v827_v21 = vpop.permute.xlu0 %826 }
 0x24e   :  { %vm842_vm5 = vcmp.ge.f32.partialorder %v834_v8, 0.0  ;;  %v850_v10 = vmul.f32 0.2, %v834_v8  ;;  %v833_v12 = vadd.f32 %v812_v9, %v785_v7 }
 0x250   :  { %v858_v13 = vsel %vm842_vm5, %v834_v8, %v850_v10  ;;  %vm841_vm6 = vcmp.ge.f32.partialorder %v833_v12, 0.0  ;;  %v849_v15 = vmul.f32 0.2, %v833_v12 }
 0x251   :  { %866 = vst [vmem:[%s1439_s4 + $0x28] sm:$0xff] %v858_v13  ;;  %v774_v19 = vpop.permute.xlu1 %773 }
 0x252   :  { %v857_v20 = vsel %vm841_vm6, %v833_v12, %v849_v15  ;;  %v787_v50 = vmul.f32 %v774_v19, %v1294_v44 }
 0x253   :  { %865 = vst [vmem:[%s1439_s4 + $0x20] sm:$0xff] %v857_v20 }
 0x255   :  { %v779_v30 = vpop.permute.xlu1 %778 }
 0x256   :  { %v788_v27 = vmul.f32 %v779_v30, %v1296_v46 }
 0x258   :  { %v836_v22 = vadd.f32 %v827_v21, %v788_v27 }
 0x259   :  { %v822_v33 = vpop.permute.xlu1 %821 }
 0x25a   :  { %vm844_vm7 = vcmp.ge.f32.partialorder %v836_v22, 0.0  ;;  %v852_v23 = vmul.f32 0.2, %v836_v22  ;;  %v835_v24 = vadd.f32 %v822_v33, %v787_v50 }
 0x25c   :  { %v860_v25 = vsel %vm844_vm7, %v836_v22, %v852_v23  ;;  %vm843_vm8 = vcmp.ge.f32.partialorder %v835_v24, 0.0  ;;  %v851_v26 = vmul.f32 0.2, %v835_v24 }
 0x25d   :  { %868 = vst [vmem:[%s1439_s4 + $0x38] sm:$0xff] %v860_v25 }
 0x25e   :  { %v859_v28 = vsel %vm843_vm8, %v835_v24, %v851_v26 }
 0x25f   :  { %867 = vst [vmem:[%s1439_s4 + $0x30] sm:$0xff] %v859_v28 }

// kernel: discriminator_forward.10
= control target key start
LH: loop header
LB: loop body
LE: loop exit
PB: predicated region body
PF: predicated region fallthrough
CT: control target
= control target key end

     0   :  { %vm22_vm0 = vcmask 7168   ;;  %vm1355_vm1 = vcmask 261120   ;;  %s3463_s3 = inlined_call_operand.vmem [shape: bf16[1024,32], index: 3, kind: input, shape index: {}]   ;;  %s3464_s0 = inlined_call_operand.vmem [shape: bf16[128,1024], index: 0, kind: input, shape index: {}]   ;;  %s3465_s4 = inlined_call_operand.vmem [shape: f32[128,32], index: 4, kind: output, shape index: {}]   ;;  %s3466_s1 = inlined_call_operand.vmem [shape: f32[128,1], index: 1, kind: input, shape index: {}]   ;;  %s3467_s2 = inlined_call_operand.vmem [shape: f32[128,1], index: 2, kind: input, shape index: {}]  }
   0x1   :  { %v2456_v0 = vld [vmem:[%s3463_s3 + $0x40] sm:$0xff]   ;;  %v2460_v4 = vld [vmem:[%s3463_s3 + $0x48] sm:$0xff]   ;;  %v2464_v8 = vld [vmem:[%s3463_s3 + $0x50] sm:$0xff]  }
   0x2   :  { %v2457_v1 = vld [vmem:[%s3463_s3 + $0xc0] sm:$0xff]   ;;  %2196 = vmatprep.subr.bf16.mxu0 %v2456_v0  ;;  %v2461_v5 = vld [vmem:[%s3463_s3 + $0xc8] sm:$0xff]   ;;  %v2465_v9 = vld [vmem:[%s3463_s3 + $0xd0] sm:$0xff]  }
   0x3   :  { %v2458_v2 = vld [vmem:[%s3463_s3] sm:$0xff]   ;;  %2260 = vmatprep.subr.bf16.mxu1 %v2457_v1  ;;  %v2462_v6 = vld [vmem:[%s3463_s3 + $0x8] sm:$0xff]   ;;  %v2466_v10 = vld [vmem:[%s3463_s3 + $0x10] sm:$0xff]  }
   0x4   :  { %v2459_v3 = vld [vmem:[%s3463_s3 + $0x80] sm:$0xff]   ;;  %2197 = vmatpush3.bf16.msra.mxu0 %v2458_v2  ;;  %v2463_v7 = vld [vmem:[%s3463_s3 + $0x88] sm:$0xff]   ;;  %v2467_v11 = vld [vmem:[%s3463_s3 + $0x90] sm:$0xff]  }
   0x5   :  { %2261 = vmatpush3.bf16.msra.mxu1 %v2459_v3  ;;  %2198 = vmatprep.subr.bf16.mxu0 %v2460_v4  ;;  %v2468_v12 = vld [vmem:[%s3463_s3 + $0x58] sm:$0xff]   ;;  %v2472_v16 = vld [vmem:[%s3463_s3 + $0x60] sm:$0xff]   ;;  %v2476_v20 = vld [vmem:[%s3463_s3 + $0x68] sm:$0xff]  }
   0x6   :  { %2262 = vmatprep.subr.bf16.mxu1 %v2461_v5  ;;  %v2469_v13 = vld [vmem:[%s3463_s3 + $0xd8] sm:$0xff]   ;;  %v2473_v17 = vld [vmem:[%s3463_s3 + $0xe0] sm:$0xff]   ;;  %v2477_v21 = vld [vmem:[%s3463_s3 + $0xe8] sm:$0xff]  }
   0x7   :  { %v2470_v14 = vld [vmem:[%s3463_s3 + $0x18] sm:$0xff]   ;;  %v2474_v18 = vld [vmem:[%s3463_s3 + $0x20] sm:$0xff]   ;;  %v2478_v22 = vld [vmem:[%s3463_s3 + $0x28] sm:$0xff]  }
   0x8   :  { %2199 = vmatpush3.bf16.msra.mxu0 %v2462_v6  ;;  %v2471_v15 = vld [vmem:[%s3463_s3 + $0x98] sm:$0xff]   ;;  %v2475_v19 = vld [vmem:[%s3463_s3 + $0xa0] sm:$0xff]   ;;  %v2479_v23 = vld [vmem:[%s3463_s3 + $0xa8] sm:$0xff]  }
   0x9   :  { %2263 = vmatpush3.bf16.msra.mxu1 %v2463_v7  ;;  %2200 = vmatprep.subr.bf16.mxu0 %v2464_v8  ;;  %v2480_v24 = vld [vmem:[%s3463_s3 + $0x70] sm:$0xff]   ;;  %v2484_v28 = vld [vmem:[%s3463_s3 + $0x78] sm:$0xff]   ;;  %v55_v32 = vld [vmem:[%s3464_s0] sm:$0xff] }
   0xa   :  { %2264 = vmatprep.subr.bf16.mxu1 %v2465_v9  ;;  %v2481_v25 = vld [vmem:[%s3463_s3 + $0xf0] sm:$0xff]   ;;  %v2485_v29 = vld [vmem:[%s3463_s3 + $0xf8] sm:$0xff]   ;;  %v59_v33 = vld [vmem:[%s3464_s0 + $0x20] sm:$0xff] }
   0xb   :  { %v2482_v26 = vld [vmem:[%s3463_s3 + $0x30] sm:$0xff]   ;;  %v2486_v30 = vld [vmem:[%s3463_s3 + $0x38] sm:$0xff]   ;;  %v56_v34 = vld [vmem:[%s3464_s0 + $0x8] sm:$0xff]  ;;  %v2068_v35 = vcombine.low %v55_v32, %v59_v33  ;;  %v2069_v36 = vcombine.high %v55_v32, %v59_v33 }
   0xc   :  { %2201 = vmatpush3.bf16.msra.mxu0 %v2466_v10  ;;  %v2483_v27 = vld [vmem:[%s3463_s3 + $0xb0] sm:$0xff]   ;;  %v2487_v31 = vld [vmem:[%s3463_s3 + $0xb8] sm:$0xff]   ;;  %v60_v37 = vld [vmem:[%s3464_s0 + $0x28] sm:$0xff] }
   0xd   :  { %2265 = vmatpush3.bf16.msra.mxu1 %v2467_v11  ;;  %2202 = vmatprep.subr.bf16.mxu0 %v2468_v12  ;;  %v2070_v38 = vcombine.low %v56_v34, %v60_v37  ;;  %v2071_v39 = vcombine.high %v56_v34, %v60_v37  ;;  %v2488_v40 = vld [vmem:[%s3463_s3 + $0x140] sm:$0xff]   ;;  %v64_v47 = vld [vmem:[%s3464_s0 + $0x48] sm:$0xff]  ;;  %v2496_v62 = vld [vmem:[%s3463_s3 + $0x150] sm:$0xff]  }
   0xe   :  { %2266 = vmatprep.subr.bf16.mxu1 %v2469_v13  ;;  %983 = vmatprep.mubr.bf16.mxu0 %v2069_v36  ;;  %v2489_v41 = vld [vmem:[%s3463_s3 + $0x100] sm:$0xff]   ;;  %v68_v48 = vld [vmem:[%s3464_s0 + $0x68] sm:$0xff]  ;;  %v2497_v63 = vld [vmem:[%s3463_s3 + $0x110] sm:$0xff]  }
   0xf   :  { %1080 = vmatprep.mubr.bf16.mxu1 %v2071_v39  ;;  %v2490_v42 = vld [vmem:[%s3463_s3 + $0x1c0] sm:$0xff]   ;;  %v2079_v49 = vcombine.high %v64_v47, %v68_v48  ;;  %v2492_v50 = vld [vmem:[%s3463_s3 + $0x148] sm:$0xff]   ;;  %v2078_v53 = vcombine.low %v64_v47, %v68_v48  ;;  %v2498_v0 = vld [vmem:[%s3463_s3 + $0x1d0] sm:$0xff]  }
  0x10   :  { %2203 = vmatpush3.bf16.msra.mxu0 %v2470_v14  ;;  %v2491_v43 = vld [vmem:[%s3463_s3 + $0x180] sm:$0xff]   ;;  %v2493_v52 = vld [vmem:[%s3463_s3 + $0x108] sm:$0xff]   ;;  %v2499_v1 = vld [vmem:[%s3463_s3 + $0x190] sm:$0xff]  }
  0x11   :  { %2267 = vmatpush3.bf16.msra.mxu1 %v2471_v15  ;;  %2204 = vmatprep.subr.bf16.mxu0 %v2472_v16  ;;  %v63_v44 = vld [vmem:[%s3464_s0 + $0x40] sm:$0xff]  ;;  %v2494_v54 = vld [vmem:[%s3463_s3 + $0x1c8] sm:$0xff]   ;;  %v2500_v10 = vld [vmem:[%s3463_s3 + $0x158] sm:$0xff]  }
  0x12   :  { %2268 = vmatprep.subr.bf16.mxu1 %v2473_v17  ;;  %v67_v45 = vld [vmem:[%s3464_s0 + $0x60] sm:$0xff]  ;;  %v2495_v55 = vld [vmem:[%s3463_s3 + $0x188] sm:$0xff]   ;;  %v2501_v11 = vld [vmem:[%s3463_s3 + $0x118] sm:$0xff]  }
  0x13   :  { %v2077_v46 = vcombine.high %v63_v44, %v67_v45  ;;  %v2076_v51 = vcombine.low %v63_v44, %v67_v45  ;;  %v71_v56 = vld [vmem:[%s3464_s0 + $0x80] sm:$0xff]  ;;  %v72_v58 = vld [vmem:[%s3464_s0 + $0x88] sm:$0xff]  ;;  %v2502_v12 = vld [vmem:[%s3463_s3 + $0x1d8] sm:$0xff]  }
  0x14   :  { %2205 = vmatpush3.bf16.msra.mxu0 %v2474_v18  ;;  %v75_v57 = vld [vmem:[%s3464_s0 + $0xa0] sm:$0xff]  ;;  %v76_v59 = vld [vmem:[%s3464_s0 + $0xa8] sm:$0xff]  ;;  %v2503_v13 = vld [vmem:[%s3463_s3 + $0x198] sm:$0xff]  }
  0x15   :  { %2269 = vmatpush3.bf16.msra.mxu1 %v2475_v19  ;;  %2206 = vmatprep.subr.bf16.mxu0 %v2476_v20  ;;  %v2085_v60 = vcombine.high %v71_v56, %v75_v57  ;;  %v2087_v61 = vcombine.high %v72_v58, %v76_v59  ;;  %v2084_v2 = vcombine.low %v71_v56, %v75_v57  ;;  %v79_v3 = vld [vmem:[%s3464_s0 + $0xc0] sm:$0xff]  ;;  %v80_v5 = vld [vmem:[%s3464_s0 + $0xc8] sm:$0xff]  ;;  %v2513_v39 = vld [vmem:[%s3463_s3 + $0x130] sm:$0xff]  }
  0x16   :  { %2270 = vmatprep.subr.bf16.mxu1 %v2477_v21  ;;  %v83_v4 = vld [vmem:[%s3464_s0 + $0xe0] sm:$0xff]  ;;  %v2086_v6 = vcombine.low %v72_v58, %v76_v59  ;;  %v84_v8 = vld [vmem:[%s3464_s0 + $0xe8] sm:$0xff]  ;;  %v2517_v48 = vld [vmem:[%s3463_s3 + $0x138] sm:$0xff]  }
  0x17   :  { %v2093_v7 = vcombine.high %v79_v3, %v83_v4  ;;  %v2095_v9 = vcombine.high %v80_v5, %v84_v8  ;;  %v87_v14 = vld [vmem:[%s3464_s0 + $0x100] sm:$0xff]  ;;  %v88_v16 = vld [vmem:[%s3464_s0 + $0x108] sm:$0xff]  ;;  %v2092_v19 = vcombine.low %v79_v3, %v83_v4  ;;  %v2094_v21 = vcombine.low %v80_v5, %v84_v8  ;;  %v66_v8 = vld [vmem:[%s3464_s0 + $0x58] sm:$0xff] }
  0x18   :  { %2207 = vmatpush3.bf16.msra.mxu0 %v2478_v22  ;;  %v91_v15 = vld [vmem:[%s3464_s0 + $0x120] sm:$0xff]  ;;  %v92_v17 = vld [vmem:[%s3464_s0 + $0x128] sm:$0xff] }
  0x19   :  { %2271 = vmatpush3.bf16.msra.mxu1 %v2479_v23  ;;  %2208 = vmatprep.subr.bf16.mxu0 %v2480_v24  ;;  %v2504_v18 = vld [vmem:[%s3463_s3 + $0x160] sm:$0xff]   ;;  %v2101_v22 = vcombine.high %v87_v14, %v91_v15  ;;  %v2103_v24 = vcombine.high %v88_v16, %v92_v17  ;;  %v2510_v32 = vld [vmem:[%s3463_s3 + $0x1e8] sm:$0xff]   ;;  %v2100_v34 = vcombine.low %v87_v14, %v91_v15  ;;  %v73_v14 = vld [vmem:[%s3464_s0 + $0x90] sm:$0xff] }
  0x1a   :  { %2272 = vmatprep.subr.bf16.mxu1 %v2481_v25  ;;  %v2505_v20 = vld [vmem:[%s3463_s3 + $0x120] sm:$0xff]   ;;  %v2511_v33 = vld [vmem:[%s3463_s3 + $0x1a8] sm:$0xff]   ;;  %v77_v15 = vld [vmem:[%s3464_s0 + $0xb0] sm:$0xff] }
  0x1b   :  { %v2506_v23 = vld [vmem:[%s3463_s3 + $0x1e0] sm:$0xff]   ;;  %v104_v44 = vld [vmem:[%s3464_s0 + $0x188] sm:$0xff] }
  0x1c   :  { %2209 = vmatpush3.bf16.msra.mxu0 %v2482_v26  ;;  %v2507_v25 = vld [vmem:[%s3463_s3 + $0x1a0] sm:$0xff]   ;;  %v108_v45 = vld [vmem:[%s3464_s0 + $0x1a8] sm:$0xff] }
  0x1d   :  { %2273 = vmatpush3.bf16.msra.mxu1 %v2483_v27  ;;  %2210 = vmatprep.subr.bf16.mxu0 %v2484_v28  ;;  %v95_v26 = vld [vmem:[%s3464_s0 + $0x140] sm:$0xff]  ;;  %v2508_v28 = vld [vmem:[%s3463_s3 + $0x168] sm:$0xff]   ;;  %v2118_v59 = vcombine.low %v104_v44, %v108_v45 }
  0x1e   :  { %2274 = vmatprep.subr.bf16.mxu1 %v2485_v29  ;;  %v99_v27 = vld [vmem:[%s3464_s0 + $0x160] sm:$0xff]  ;;  %v96_v29 = vld [vmem:[%s3464_s0 + $0x148] sm:$0xff] }
  0x1f   :  { %v2109_v36 = vcombine.high %v95_v26, %v99_v27  ;;  %v2108_v47 = vcombine.low %v95_v26, %v99_v27  ;;  %v112_v56 = vld [vmem:[%s3464_s0 + $0x1c8] sm:$0xff]  ;;  %v2088_v26 = vcombine.low %v73_v14, %v77_v15 }
  0x20   :  { %2211 = vmatpush3.bf16.msra.mxu0 %v2486_v30  ;;  %v100_v30 = vld [vmem:[%s3464_s0 + $0x168] sm:$0xff] }
  0x21   :  { %2275 = vmatpush3.bf16.msra.mxu1 %v2487_v31  ;;  %2324 = vmatprep.subr.bf16.mxu0 %v2488_v40  ;;  %v2509_v31 = vld [vmem:[%s3463_s3 + $0x128] sm:$0xff]   ;;  %v2111_v37 = vcombine.high %v96_v29, %v100_v30  ;;  %v2514_v40 = vld [vmem:[%s3463_s3 + $0x1f0] sm:$0xff]  }
  0x22   :  { %2388 = vmatprep.subr.bf16.mxu1 %v2490_v42  ;;  %v107_v42 = vld [vmem:[%s3464_s0 + $0x1a0] sm:$0xff]  ;;  %v116_v57 = vld [vmem:[%s3464_s0 + $0x1e8] sm:$0xff] }
  0x23   :  { %984 = vmatmul.mubr.bf16.vlgmr.msra.gmra.mrb[0].mxu0 %v2068_v35  ;;  %v2102_v35 = vcombine.low %v88_v16, %v92_v17  ;;  %v2126_v3 = vcombine.low %v112_v56, %v116_v57  ;;  %v74_v16 = vld [vmem:[%s3464_s0 + $0x98] sm:$0xff] }
  0x24   :  { %1081 = vmatmul.mubr.bf16.vlgmr.msra.gmra.mrb[0].mxu1 %v2070_v38  ;;  %2325 = vmatpush3.bf16.msra.mxu0 %v2489_v41  ;;  %v2512_v38 = vld [vmem:[%s3463_s3 + $0x170] sm:$0xff]   ;;  %v103_v41 = vld [vmem:[%s3464_s0 + $0x180] sm:$0xff]  ;;  %v78_v17 = vld [vmem:[%s3464_s0 + $0xb8] sm:$0xff] }
  0x25   :  { %2389 = vmatpush3.bf16.msra.mxu1 %v2491_v43  ;;  %991 = vmatprep.mubr.bf16.mxu0 %v2077_v46  ;;  %v2515_v43 = vld [vmem:[%s3463_s3 + $0x1b0] sm:$0xff]   ;;  %v2516_v46 = vld [vmem:[%s3463_s3 + $0x178] sm:$0xff]   ;;  %v2116_v58 = vcombine.low %v103_v41, %v107_v42  ;;  %v2090_v27 = vcombine.low %v74_v16, %v78_v17 }
  0x26   :  { %1088 = vmatprep.mubr.bf16.mxu1 %v2079_v49  ;;  %2326 = vmatprep.subr.bf16.mxu0 %v2492_v50  ;;  %v2110_v49 = vcombine.low %v96_v29, %v100_v30  ;;  %v2117_v50 = vcombine.high %v103_v41, %v107_v42  ;;  %v89_v30 = vld [vmem:[%s3464_s0 + $0x110] sm:$0xff]  ;;  %v102_v41 = vld [vmem:[%s3464_s0 + $0x178] sm:$0xff] }
  0x27   :  { %2390 = vmatprep.subr.bf16.mxu1 %v2494_v54  ;;  %v111_v54 = vld [vmem:[%s3464_s0 + $0x1c0] sm:$0xff] }
  0x28   :  { %2327 = vmatpush3.bf16.msra.mxu0 %v2493_v52  ;;  %v2119_v52 = vcombine.high %v104_v44, %v108_v45 }
  0x29   :  { %2391 = vmatpush3.bf16.msra.mxu1 %v2495_v55  ;;  %2328 = vmatprep.subr.bf16.mxu0 %v2496_v62  ;;  %v115_v55 = vld [vmem:[%s3464_s0 + $0x1e0] sm:$0xff]  ;;  %v57_v62 = vld [vmem:[%s3464_s0 + $0x10] sm:$0xff] }
  0x2a   :  { %2392 = vmatprep.subr.bf16.mxu1 %v2498_v0  ;;  %v58_v0 = vld [vmem:[%s3464_s0 + $0x18] sm:$0xff] }
  0x2b   :  { %992 = vmatmul.mubr.bf16.gmra.mrb[4].mxu0 %v2076_v51  ;;  %v2518_v51 = vld [vmem:[%s3463_s3 + $0x1f8] sm:$0xff]  }
  0x2c   :  { %1089 = vmatmul.mubr.bf16.gmra.mrb[4].mxu1 %v2078_v53  ;;  %999 = vmatprep.mubr.bf16.mxu0 %v2085_v60  ;;  %v2519_v53 = vld [vmem:[%s3463_s3 + $0x1b8] sm:$0xff]   ;;  %v2125_v60 = vcombine.high %v111_v54, %v115_v55 }
  0x2d   :  { %1096 = vmatprep.mubr.bf16.mxu1 %v2087_v61  ;;  %2329 = vmatpush3.bf16.msra.mxu0 %v2497_v63  ;;  %v2127_v61 = vcombine.high %v112_v56, %v116_v57  ;;  %v61_v63 = vld [vmem:[%s3464_s0 + $0x30] sm:$0xff]  ;;  %v114_v56 = vld [vmem:[%s3464_s0 + $0x1d8] sm:$0xff] }
  0x2e   :  { %2393 = vmatpush3.bf16.msra.mxu1 %v2499_v1  ;;  %2330 = vmatprep.subr.bf16.mxu0 %v2500_v10  ;;  %v62_v1 = vld [vmem:[%s3464_s0 + $0x38] sm:$0xff]  ;;  %v2073_v4 = vcombine.high %v57_v62, %v61_v63  ;;  %v2072_v10 = vcombine.low %v57_v62, %v61_v63 }
  0x2f   :  { %2394 = vmatprep.subr.bf16.mxu1 %v2502_v12  ;;  %v2075_v5 = vcombine.high %v58_v0, %v62_v1  ;;  %v118_v57 = vld [vmem:[%s3464_s0 + $0x1f8] sm:$0xff] }
  0x30   :  { %v2130_v63 = vcombine.low %v114_v56, %v118_v57 }
  0x31   :  { %2331 = vmatpush3.bf16.msra.mxu0 %v2501_v11  ;;  %v2074_v11 = vcombine.low %v58_v0, %v62_v1 }
  0x32   :  { %2395 = vmatpush3.bf16.msra.mxu1 %v2503_v13  ;;  %2332 = vmatprep.subr.bf16.mxu0 %v2504_v18 }
  0x33   :  { %1000 = vmatmul.mubr.bf16.gmra.mrb[8].mxu0 %v2084_v2  ;;  %2396 = vmatprep.subr.bf16.mxu1 %v2506_v23  ;;  %v2124_v2 = vcombine.low %v111_v54, %v115_v55  ;;  %v85_v23 = vld [vmem:[%s3464_s0 + $0xf0] sm:$0xff] }
  0x34   :  { %1097 = vmatmul.mubr.bf16.gmra.mrb[8].mxu1 %v2086_v6  ;;  %1007 = vmatprep.mubr.bf16.mxu0 %v2093_v7  ;;  %v65_v6 = vld [vmem:[%s3464_s0 + $0x50] sm:$0xff] }
  0x35   :  { %1104 = vmatprep.mubr.bf16.mxu1 %v2095_v9  ;;  %2333 = vmatpush3.bf16.msra.mxu0 %v2505_v20  ;;  %v69_v7 = vld [vmem:[%s3464_s0 + $0x70] sm:$0xff]  ;;  %v70_v9 = vld [vmem:[%s3464_s0 + $0x78] sm:$0xff]  ;;  %v2089_v20 = vcombine.high %v73_v14, %v77_v15 }
  0x36   :  { %2397 = vmatpush3.bf16.msra.mxu1 %v2507_v25  ;;  %2334 = vmatprep.subr.bf16.mxu0 %v2508_v28  ;;  %v2081_v12 = vcombine.high %v65_v6, %v69_v7  ;;  %v2083_v13 = vcombine.high %v66_v8, %v70_v9  ;;  %v2080_v18 = vcombine.low %v65_v6, %v69_v7  ;;  %v86_v25 = vld [vmem:[%s3464_s0 + $0xf8] sm:$0xff]  ;;  %v113_v54 = vld [vmem:[%s3464_s0 + $0x1d0] sm:$0xff] }
  0x37   :  { %2398 = vmatprep.subr.bf16.mxu1 %v2510_v32  ;;  %v90_v32 = vld [vmem:[%s3464_s0 + $0x118] sm:$0xff]  ;;  %v117_v55 = vld [vmem:[%s3464_s0 + $0x1f0] sm:$0xff] }
  0x38   :  { %v2128_v62 = vcombine.low %v113_v54, %v117_v55 }
  0x39   :  { %2335 = vmatpush3.bf16.msra.mxu0 %v2509_v31  ;;  %v93_v31 = vld [vmem:[%s3464_s0 + $0x130] sm:$0xff] }
  0x3a   :  { %2399 = vmatpush3.bf16.msra.mxu1 %v2511_v33  ;;  %2336 = vmatprep.subr.bf16.mxu0 %v2512_v38  ;;  %v94_v33 = vld [vmem:[%s3464_s0 + $0x138] sm:$0xff]  ;;  %v97_v38 = vld [vmem:[%s3464_s0 + $0x150] sm:$0xff]  ;;  %v2104_v42 = vcombine.low %v89_v30, %v93_v31 }
  0x3b   :  { %1008 = vmatmul.mubr.bf16.gmra.mrb[12].mxu0 %v2092_v19  ;;  %2400 = vmatprep.subr.bf16.mxu1 %v2514_v40  ;;  %v2082_v19 = vcombine.low %v66_v8, %v70_v9  ;;  %v98_v40 = vld [vmem:[%s3464_s0 + $0x158] sm:$0xff] }
  0x3c   :  { %1105 = vmatmul.mubr.bf16.gmra.mrb[12].mxu1 %v2094_v21  ;;  %1015 = vmatprep.mubr.bf16.mxu0 %v2101_v22  ;;  %v2091_v21 = vcombine.high %v74_v16, %v78_v17  ;;  %v81_v22 = vld [vmem:[%s3464_s0 + $0xd0] sm:$0xff]  ;;  %v2115_v45 = vcombine.high %v98_v40, %v102_v41 }
  0x3d   :  { %1112 = vmatprep.mubr.bf16.mxu1 %v2103_v24  ;;  %2337 = vmatpush3.bf16.msra.mxu0 %v2513_v39  ;;  %v82_v24 = vld [vmem:[%s3464_s0 + $0xd8] sm:$0xff]  ;;  %v2097_v28 = vcombine.high %v81_v22, %v85_v23  ;;  %v101_v39 = vld [vmem:[%s3464_s0 + $0x170] sm:$0xff] }
  0x3e   :  { %2401 = vmatpush3.bf16.msra.mxu1 %v2515_v43  ;;  %2338 = vmatprep.subr.bf16.mxu0 %v2516_v46  ;;  %v2099_v29 = vcombine.high %v82_v24, %v86_v25  ;;  %v2106_v43 = vcombine.low %v90_v32, %v94_v33  ;;  %v2113_v44 = vcombine.high %v97_v38, %v101_v39  ;;  %v105_v46 = vld [vmem:[%s3464_s0 + $0x190] sm:$0xff] }
  0x3f   :  { %2402 = vmatprep.subr.bf16.mxu1 %v2518_v51  ;;  %v2114_v51 = vcombine.low %v98_v40, %v102_v41 }
  0x41   :  { %2339 = vmatpush3.bf16.msra.mxu0 %v2517_v48  ;;  %v106_v48 = vld [vmem:[%s3464_s0 + $0x198] sm:$0xff] }
  0x42   :  { %2403 = vmatpush3.bf16.msra.mxu1 %v2519_v53 }
  0x43   :  { %1016 = vmatmul.mubr.bf16.gmra.mrb[16].mxu0 %v2100_v34  ;;  %v2096_v34 = vcombine.low %v81_v22, %v85_v23 }
  0x44   :  { %1113 = vmatmul.mubr.bf16.gmra.mrb[16].mxu1 %v2102_v35  ;;  %1023 = vmatprep.mubr.bf16.mxu0 %v2109_v36  ;;  %v2098_v35 = vcombine.low %v82_v24, %v86_v25  ;;  %v2105_v36 = vcombine.high %v89_v30, %v93_v31 }
  0x45   :  { %1120 = vmatprep.mubr.bf16.mxu1 %v2111_v37  ;;  %v2107_v37 = vcombine.high %v90_v32, %v94_v33 }
  0x4b   :  { %1024 = vmatmul.mubr.bf16.gmra.mrb[20].mxu0 %v2108_v47  ;;  %v109_v47 = vld [vmem:[%s3464_s0 + $0x1b0] sm:$0xff] }
  0x4c   :  { %1121 = vmatmul.mubr.bf16.gmra.mrb[20].mxu1 %v2110_v49  ;;  %1031 = vmatprep.mubr.bf16.mxu0 %v2117_v50  ;;  %v110_v49 = vld [vmem:[%s3464_s0 + $0x1b8] sm:$0xff]  ;;  %v2112_v50 = vcombine.low %v97_v38, %v101_v39 }
  0x4d   :  { %1128 = vmatprep.mubr.bf16.mxu1 %v2119_v52  ;;  %v2121_v52 = vcombine.high %v105_v46, %v109_v47  ;;  %v2123_v53 = vcombine.high %v106_v48, %v110_v49 }
  0x53   :  { %1032 = vmatmul.mubr.bf16.gmra.mrb[24].mxu0 %v2116_v58  ;;  %v2120_v58 = vcombine.low %v105_v46, %v109_v47 }
  0x54   :  { %1129 = vmatmul.mubr.bf16.gmra.mrb[24].mxu1 %v2118_v59  ;;  %1039 = vmatprep.mubr.bf16.mxu0 %v2125_v60  ;;  %v2122_v59 = vcombine.low %v106_v48, %v110_v49  ;;  %v2129_v60 = vcombine.high %v113_v54, %v117_v55 }
  0x55   :  { %1136 = vmatprep.mubr.bf16.mxu1 %v2127_v61  ;;  %v2131_v61 = vcombine.high %v114_v56, %v118_v57 }
  0x5b   :  { %1040 = vmatmul.mubr.bf16.gmra.mrb[28].mxu0 %v2124_v2 }
  0x5c   :  { %1137 = vmatmul.mubr.bf16.gmra.mrb[28].mxu1 %v2126_v3  ;;  %1177 = vmatprep.mubr.bf16.mxu0 %v2073_v4 }
  0x5d   :  { %1274 = vmatprep.mubr.bf16.mxu1 %v2075_v5 }
  0x63   :  { %1178 = vmatmul.mubr.bf16.vlgmr.msra.gmra.mrb[32].mxu0 %v2072_v10 }
  0x64   :  { %1275 = vmatmul.mubr.bf16.vlgmr.msra.gmra.mrb[32].mxu1 %v2074_v11  ;;  %1185 = vmatprep.mubr.bf16.mxu0 %v2081_v12 }
  0x65   :  { %1282 = vmatprep.mubr.bf16.mxu1 %v2083_v13 }
  0x6b   :  { %1186 = vmatmul.mubr.bf16.gmra.mrb[36].mxu0 %v2080_v18 }
  0x6c   :  { %1283 = vmatmul.mubr.bf16.gmra.mrb[36].mxu1 %v2082_v19  ;;  %1193 = vmatprep.mubr.bf16.mxu0 %v2089_v20  ;;  %v2552_v20 = vmov 0.0  }
  0x6d   :  { %1290 = vmatprep.mubr.bf16.mxu1 %v2091_v21  ;;  %23 = vst.msk [vmem:[#allocation2] sm:$0xff] %vm22_vm0, %v2552_v20  ;;  %24 = vst.msk [vmem:[#allocation2 + $0x8] sm:$0xff] %vm22_vm0, %v2552_v20 }
  0x6e   :  { %25 = vst.msk [vmem:[#allocation2 + $0x10] sm:$0xff] %vm22_vm0, %v2552_v20  ;;  %26 = vst.msk [vmem:[#allocation2 + $0x18] sm:$0xff] %vm22_vm0, %v2552_v20 }
  0x6f   :  { %27 = vst.msk [vmem:[#allocation2 + $0x20] sm:$0xff] %vm22_vm0, %v2552_v20  ;;  %28 = vst.msk [vmem:[#allocation2 + $0x28] sm:$0xff] %vm22_vm0, %v2552_v20 }
  0x70   :  { %29 = vst.msk [vmem:[#allocation2 + $0x30] sm:$0xff] %vm22_vm0, %v2552_v20  ;;  %30 = vst.msk [vmem:[#allocation2 + $0x38] sm:$0xff] %vm22_vm0, %v2552_v20 }
  0x71   :  { %31 = vst.msk [vmem:[#allocation2 + $0x40] sm:$0xff] %vm22_vm0, %v2552_v20  ;;  %32 = vst.msk [vmem:[#allocation2 + $0x48] sm:$0xff] %vm22_vm0, %v2552_v20 }
  0x72   :  { %33 = vst.msk [vmem:[#allocation2 + $0x50] sm:$0xff] %vm22_vm0, %v2552_v20  ;;  %34 = vst.msk [vmem:[#allocation2 + $0x58] sm:$0xff] %vm22_vm0, %v2552_v20 }
  0x73   :  { %1194 = vmatmul.mubr.bf16.gmra.mrb[40].mxu0 %v2088_v26  ;;  %35 = vst.msk [vmem:[#allocation2 + $0x60] sm:$0xff] %vm22_vm0, %v2552_v20  ;;  %36 = vst.msk [vmem:[#allocation2 + $0x68] sm:$0xff] %vm22_vm0, %v2552_v20 }
  0x74   :  { %1291 = vmatmul.mubr.bf16.gmra.mrb[40].mxu1 %v2090_v27  ;;  %1201 = vmatprep.mubr.bf16.mxu0 %v2097_v28  ;;  %37 = vst.msk [vmem:[#allocation2 + $0x70] sm:$0xff] %vm22_vm0, %v2552_v20  ;;  %38 = vst.msk [vmem:[#allocation2 + $0x78] sm:$0xff] %vm22_vm0, %v2552_v20 }
  0x75   :  { %1298 = vmatprep.mubr.bf16.mxu1 %v2099_v29  ;;  %39 = vst.msk [vmem:[#allocation3] sm:$0xff] %vm22_vm0, %v2552_v20  ;;  %40 = vst.msk [vmem:[#allocation3 + $0x8] sm:$0xff] %vm22_vm0, %v2552_v20 }
  0x76   :  { %41 = vst.msk [vmem:[#allocation3 + $0x10] sm:$0xff] %vm22_vm0, %v2552_v20  ;;  %42 = vst.msk [vmem:[#allocation3 + $0x18] sm:$0xff] %vm22_vm0, %v2552_v20 }
  0x77   :  { %43 = vst.msk [vmem:[#allocation3 + $0x20] sm:$0xff] %vm22_vm0, %v2552_v20  ;;  %44 = vst.msk [vmem:[#allocation3 + $0x28] sm:$0xff] %vm22_vm0, %v2552_v20 }
  0x78   :  { %45 = vst.msk [vmem:[#allocation3 + $0x30] sm:$0xff] %vm22_vm0, %v2552_v20  ;;  %46 = vst.msk [vmem:[#allocation3 + $0x38] sm:$0xff] %vm22_vm0, %v2552_v20 }
  0x79   :  { %47 = vst.msk [vmem:[#allocation3 + $0x40] sm:$0xff] %vm22_vm0, %v2552_v20  ;;  %48 = vst.msk [vmem:[#allocation3 + $0x48] sm:$0xff] %vm22_vm0, %v2552_v20 }
  0x7a   :  { %49 = vst.msk [vmem:[#allocation3 + $0x50] sm:$0xff] %vm22_vm0, %v2552_v20  ;;  %50 = vst.msk [vmem:[#allocation3 + $0x58] sm:$0xff] %vm22_vm0, %v2552_v20 }
  0x7b   :  { %1202 = vmatmul.mubr.bf16.gmra.mrb[44].mxu0 %v2096_v34  ;;  %51 = vst.msk [vmem:[#allocation3 + $0x60] sm:$0xff] %vm22_vm0, %v2552_v20  ;;  %52 = vst.msk [vmem:[#allocation3 + $0x68] sm:$0xff] %vm22_vm0, %v2552_v20 }
  0x7c   :  { %1299 = vmatmul.mubr.bf16.gmra.mrb[44].mxu1 %v2098_v35  ;;  %1209 = vmatprep.mubr.bf16.mxu0 %v2105_v36  ;;  %53 = vst.msk [vmem:[#allocation3 + $0x70] sm:$0xff] %vm22_vm0, %v2552_v20  ;;  %54 = vst.msk [vmem:[#allocation3 + $0x78] sm:$0xff] %vm22_vm0, %v2552_v20 }
  0x7d   :  { %1306 = vmatprep.mubr.bf16.mxu1 %v2107_v37 }
  0x83   :  { %1210 = vmatmul.mubr.bf16.gmra.mrb[48].mxu0 %v2104_v42 }
  0x84   :  { %1307 = vmatmul.mubr.bf16.gmra.mrb[48].mxu1 %v2106_v43  ;;  %1217 = vmatprep.mubr.bf16.mxu0 %v2113_v44 }
  0x85   :  { %1314 = vmatprep.mubr.bf16.mxu1 %v2115_v45 }
  0x8b   :  { %1218 = vmatmul.mubr.bf16.gmra.mrb[52].mxu0 %v2112_v50 }
  0x8c   :  { %1315 = vmatmul.mubr.bf16.gmra.mrb[52].mxu1 %v2114_v51  ;;  %1225 = vmatprep.mubr.bf16.mxu0 %v2121_v52 }
  0x8d   :  { %1322 = vmatprep.mubr.bf16.mxu1 %v2123_v53 }
  0x93   :  { %1226 = vmatmul.mubr.bf16.gmra.mrb[56].mxu0 %v2120_v58 }
  0x94   :  { %1323 = vmatmul.mubr.bf16.gmra.mrb[56].mxu1 %v2122_v59  ;;  %1233 = vmatprep.mubr.bf16.mxu0 %v2129_v60 }
  0x95   :  { %1330 = vmatprep.mubr.bf16.mxu1 %v2131_v61 }
  0x9b   :  { %1234 = vmatmul.mubr.bf16.gmra.mrb[60].mxu0 %v2128_v62 }
  0x9c   :  { %1331 = vmatmul.mubr.bf16.gmra.mrb[60].mxu1 %v2130_v63 }
  0xf6   :  { %v2212_v0 = vpop.f32.mrb[0].mxu0 }
  0xf7   :  { %v2276_v1 = vpop.f32.mrb[0].mxu1  ;;  %v2213_v2 = vpop.f32.mrb[1].mxu0 }
  0xf8   :  { %v2214_v3 = vadd.f32 %v2213_v2, %v2212_v0  ;;  %v2277_v4 = vpop.f32.mrb[1].mxu1  ;;  %v2215_v5 = vpop.f32.mrb[2].mxu0 }
  0xf9   :  { %v2278_v6 = vadd.f32 %v2277_v4, %v2276_v1  ;;  %v2279_v7 = vpop.f32.mrb[2].mxu1  ;;  %v2216_v8 = vpop.f32.mrb[3].mxu0 }
  0xfa   :  { %v2217_v9 = vadd.f32 %v2216_v8, %v2215_v5  ;;  %v2280_v10 = vpop.f32.mrb[3].mxu1 }
  0xfb   :  { %v2963_v11 = vadd.f32 %v2278_v6, %v2214_v3  ;;  %v2281_v12 = vadd.f32 %v2280_v10, %v2279_v7 }
  0xfd   :  { %v2965_v13 = vadd.f32 %v2281_v12, %v2217_v9 }
  0xfe   :  { %v2218_v14 = vpop.f32.mrb[4].mxu0 }
  0xff   :  { %v2282_v15 = vpop.f32.mrb[4].mxu1  ;;  %v2219_v16 = vpop.f32.mrb[5].mxu0 }
 0x100   :  { %v2220_v17 = vadd.f32 %v2219_v16, %v2218_v14  ;;  %v2283_v18 = vpop.f32.mrb[5].mxu1  ;;  %v2221_v19 = vpop.f32.mrb[6].mxu0 }
 0x101   :  { %v2284_v21 = vadd.f32 %v2283_v18, %v2282_v15  ;;  %v2285_v22 = vpop.f32.mrb[6].mxu1  ;;  %v2222_v23 = vpop.f32.mrb[7].mxu0 }
 0x102   :  { %v2223_v24 = vadd.f32 %v2222_v23, %v2221_v19  ;;  %v2286_v25 = vpop.f32.mrb[7].mxu1 }
 0x103   :  { %v2999_v26 = vadd.f32 %v2284_v21, %v2220_v17  ;;  %v2287_v27 = vadd.f32 %v2286_v25, %v2285_v22 }
 0x105   :  { %v3001_v28 = vadd.f32 %v2287_v27, %v2223_v24 }
 0x106   :  { %v2224_v29 = vpop.f32.mrb[8].mxu0 }
 0x107   :  { %v2288_v30 = vpop.f32.mrb[8].mxu1  ;;  %v2225_v31 = vpop.f32.mrb[9].mxu0 }
 0x108   :  { %v2226_v32 = vadd.f32 %v2225_v31, %v2224_v29  ;;  %v2289_v33 = vpop.f32.mrb[9].mxu1  ;;  %v2227_v34 = vpop.f32.mrb[10].mxu0 }
 0x109   :  { %v2290_v35 = vadd.f32 %v2289_v33, %v2288_v30  ;;  %v2291_v36 = vpop.f32.mrb[10].mxu1  ;;  %v2228_v37 = vpop.f32.mrb[11].mxu0 }
 0x10a   :  { %v2229_v38 = vadd.f32 %v2228_v37, %v2227_v34  ;;  %v2292_v39 = vpop.f32.mrb[11].mxu1 }
 0x10b   :  { %v3003_v40 = vadd.f32 %v2290_v35, %v2226_v32  ;;  %v2293_v41 = vadd.f32 %v2292_v39, %v2291_v36 }
 0x10d   :  { %v3005_v42 = vadd.f32 %v2293_v41, %v2229_v38 }
 0x10e   :  { %v2230_v43 = vpop.f32.mrb[12].mxu0 }
 0x10f   :  { %v2294_v44 = vpop.f32.mrb[12].mxu1  ;;  %v2231_v45 = vpop.f32.mrb[13].mxu0 }
 0x110   :  { %v2232_v46 = vadd.f32 %v2231_v45, %v2230_v43  ;;  %v2295_v47 = vpop.f32.mrb[13].mxu1  ;;  %v2233_v48 = vpop.f32.mrb[14].mxu0 }
 0x111   :  { %v2296_v49 = vadd.f32 %v2295_v47, %v2294_v44  ;;  %v2297_v50 = vpop.f32.mrb[14].mxu1  ;;  %v2234_v51 = vpop.f32.mrb[15].mxu0 }
 0x112   :  { %v2235_v52 = vadd.f32 %v2234_v51, %v2233_v48  ;;  %v2298_v53 = vpop.f32.mrb[15].mxu1 }
 0x113   :  { %v3007_v54 = vadd.f32 %v2296_v49, %v2232_v46  ;;  %v2299_v55 = vadd.f32 %v2298_v53, %v2297_v50 }
 0x115   :  { %v3009_v56 = vadd.f32 %v2299_v55, %v2235_v52 }
 0x116   :  { %v2236_v57 = vpop.f32.mrb[16].mxu0 }
 0x117   :  { %v2300_v58 = vpop.f32.mrb[16].mxu1  ;;  %v2237_v59 = vpop.f32.mrb[17].mxu0 }
 0x118   :  { %v2238_v60 = vadd.f32 %v2237_v59, %v2236_v57  ;;  %v2301_v61 = vpop.f32.mrb[17].mxu1  ;;  %v2239_v62 = vpop.f32.mrb[18].mxu0 }
 0x119   :  { %v2302_v63 = vadd.f32 %v2301_v61, %v2300_v58  ;;  %v2303_v0 = vpop.f32.mrb[18].mxu1  ;;  %v2240_v1 = vpop.f32.mrb[19].mxu0 }
 0x11a   :  { %v2241_v2 = vadd.f32 %v2240_v1, %v2239_v62  ;;  %v2304_v3 = vpop.f32.mrb[19].mxu1 }
 0x11b   :  { %v3011_v4 = vadd.f32 %v2302_v63, %v2238_v60  ;;  %v2305_v5 = vadd.f32 %v2304_v3, %v2303_v0 }
 0x11d   :  { %v3013_v6 = vadd.f32 %v2305_v5, %v2241_v2 }
 0x11e   :  { %v2242_v7 = vpop.f32.mrb[20].mxu0 }
 0x11f   :  { %v2306_v8 = vpop.f32.mrb[20].mxu1  ;;  %v2243_v9 = vpop.f32.mrb[21].mxu0 }
 0x120   :  { %v2244_v10 = vadd.f32 %v2243_v9, %v2242_v7  ;;  %v2307_v12 = vpop.f32.mrb[21].mxu1  ;;  %v2245_v14 = vpop.f32.mrb[22].mxu0 }
 0x121   :  { %v2308_v15 = vadd.f32 %v2307_v12, %v2306_v8  ;;  %v2309_v16 = vpop.f32.mrb[22].mxu1  ;;  %v2246_v17 = vpop.f32.mrb[23].mxu0 }
 0x122   :  { %v2247_v18 = vadd.f32 %v2246_v17, %v2245_v14  ;;  %v2310_v19 = vpop.f32.mrb[23].mxu1 }
 0x123   :  { %v3015_v20 = vadd.f32 %v2308_v15, %v2244_v10  ;;  %v2311_v21 = vadd.f32 %v2310_v19, %v2309_v16 }
 0x125   :  { %v3017_v22 = vadd.f32 %v2311_v21, %v2247_v18 }
 0x126   :  { %v2248_v23 = vpop.f32.mrb[24].mxu0 }
 0x127   :  { %v2312_v24 = vpop.f32.mrb[24].mxu1  ;;  %v2249_v25 = vpop.f32.mrb[25].mxu0 }
 0x128   :  { %v2250_v27 = vadd.f32 %v2249_v25, %v2248_v23  ;;  %v2313_v29 = vpop.f32.mrb[25].mxu1  ;;  %v2251_v30 = vpop.f32.mrb[26].mxu0 }
 0x129   :  { %v2314_v31 = vadd.f32 %v2313_v29, %v2312_v24  ;;  %v2315_v32 = vpop.f32.mrb[26].mxu1  ;;  %v2252_v33 = vpop.f32.mrb[27].mxu0 }
 0x12a   :  { %v2253_v34 = vadd.f32 %v2252_v33, %v2251_v30  ;;  %v2316_v35 = vpop.f32.mrb[27].mxu1 }
 0x12b   :  { %v3019_v36 = vadd.f32 %v2314_v31, %v2250_v27  ;;  %v2317_v37 = vadd.f32 %v2316_v35, %v2315_v32 }
 0x12d   :  { %v3021_v38 = vadd.f32 %v2317_v37, %v2253_v34 }
 0x12e   :  { %v2254_v39 = vpop.f32.mrb[28].mxu0 }
 0x12f   :  { %v2318_v41 = vpop.f32.mrb[28].mxu1  ;;  %v2255_v43 = vpop.f32.mrb[29].mxu0 }
 0x130   :  { %v2256_v44 = vadd.f32 %v2255_v43, %v2254_v39  ;;  %v2319_v45 = vpop.f32.mrb[29].mxu1  ;;  %v2257_v46 = vpop.f32.mrb[30].mxu0 }
 0x131   :  { %v2320_v47 = vadd.f32 %v2319_v45, %v2318_v41  ;;  %v2321_v48 = vpop.f32.mrb[30].mxu1  ;;  %v2258_v49 = vpop.f32.mrb[31].mxu0 }
 0x132   :  { %v2259_v50 = vadd.f32 %v2258_v49, %v2257_v46  ;;  %v2322_v51 = vpop.f32.mrb[31].mxu1 }
 0x133   :  { %v3023_v52 = vadd.f32 %v2320_v47, %v2256_v44  ;;  %v2323_v53 = vadd.f32 %v2322_v51, %v2321_v48 }
 0x135   :  { %v3025_v55 = vadd.f32 %v2323_v53, %v2259_v50 }
 0x136   :  { %v2340_v57 = vpop.f32.mrb[32].mxu0 }
 0x137   :  { %v2404_v58 = vpop.f32.mrb[32].mxu1  ;;  %v2341_v59 = vpop.f32.mrb[33].mxu0 }
 0x138   :  { %v2342_v60 = vadd.f32 %v2341_v59, %v2340_v57  ;;  %v2405_v61 = vpop.f32.mrb[33].mxu1  ;;  %v2343_v62 = vpop.f32.mrb[34].mxu0 }
 0x139   :  { %v2406_v63 = vadd.f32 %v2405_v61, %v2404_v58  ;;  %v2407_v0 = vpop.f32.mrb[34].mxu1  ;;  %v2344_v1 = vpop.f32.mrb[35].mxu0 }
 0x13a   :  { %v1180_v2 = vadd.f32 %v2342_v60, %v2963_v11  ;;  %v2345_v3 = vadd.f32 %v2344_v1, %v2343_v62  ;;  %v2408_v5 = vpop.f32.mrb[35].mxu1 }
 0x13b   :  { %v2409_v7 = vadd.f32 %v2408_v5, %v2407_v0 }
 0x13c   :  { %v1277_v8 = vadd.f32 %v2406_v63, %v1180_v2  ;;  %v1183_v9 = vadd.f32 %v2345_v3, %v2965_v13 }
 0x13e   :  { %1549 = vst.msk [vmem:[%s3465_s4] sm:$0xff] %vm1355_vm1, %v1277_v8  ;;  %v1280_v10 = vadd.f32 %v2409_v7, %v1183_v9  ;;  %v2346_v12 = vpop.f32.mrb[36].mxu0  ;;  %v1356_v14 = vsel %vm1355_vm1, %v1277_v8, 0.0  ;;  %v1453_v24 = vmul.f32 %v1277_v8, %v1277_v8 }
 0x13f   :  { %v2347_v15 = vpop.f32.mrb[37].mxu0  ;;  %1357 = vadd.xlane.f32.xlu0 %v1356_v14  ;;  %v2410_v16 = vpop.f32.mrb[36].mxu1 }
 0x140   :  { %1550 = vst.msk [vmem:[%s3465_s4 + $0x8] sm:$0xff] %vm1355_vm1, %v1280_v10  ;;  %v2348_v11 = vadd.f32 %v2347_v15, %v2346_v12  ;;  %v2349_v17 = vpop.f32.mrb[38].mxu0  ;;  %v2411_v13 = vpop.f32.mrb[37].mxu1  ;;  %v1454_v18 = vmul.f32 %v1280_v10, %v1280_v10  ;;  %v1359_v31 = vsel %vm1355_vm1, %v1280_v10, 0.0  ;;  %v1469_v39 = vsel %vm1355_vm1, %v1453_v24, 0.0 }
 0x141   :  { %v2350_v19 = vpop.f32.mrb[39].mxu0  ;;  %v2412_v21 = vadd.f32 %v2411_v13, %v2410_v16  ;;  %v2413_v23 = vpop.f32.mrb[38].mxu1 }
 0x142   :  { %v1188_v25 = vadd.f32 %v2348_v11, %v2999_v26  ;;  %v2351_v27 = vadd.f32 %v2350_v19, %v2349_v17  ;;  %v2414_v29 = vpop.f32.mrb[39].mxu1  ;;  %v1472_v30 = vsel %vm1355_vm1, %v1454_v18, 0.0 }
 0x143   :  { %v2415_v32 = vadd.f32 %v2414_v29, %v2413_v23  ;;  %1473 = vadd.xlane.f32.xlu1 %v1472_v30  ;;  %1360 = vadd.xlane.f32.xlu0 %v1359_v31 }
 0x144   :  { %v1191_v33 = vadd.f32 %v2351_v27, %v3001_v28  ;;  %v1285_v34 = vadd.f32 %v2412_v21, %v1188_v25 }
 0x146   :  { %1551 = vst.msk [vmem:[%s3465_s4 + $0x10] sm:$0xff] %vm1355_vm1, %v1285_v34  ;;  %v1288_v35 = vadd.f32 %v2415_v32, %v1191_v33  ;;  %v2352_v37 = vpop.f32.mrb[40].mxu0  ;;  %v1362_v26 = vsel %vm1355_vm1, %v1285_v34, 0.0  ;;  %v1455_v41 = vmul.f32 %v1285_v34, %v1285_v34 }
 0x147   :  { %v2353_v43 = vpop.f32.mrb[41].mxu0  ;;  %1363 = vadd.xlane.f32.xlu1 %v1362_v26  ;;  %1470 = vadd.xlane.f32.xlu0 %v1469_v39  ;;  %v2416_v44 = vpop.f32.mrb[40].mxu1 }
 0x148   :  { %1552 = vst.msk [vmem:[%s3465_s4 + $0x18] sm:$0xff] %vm1355_vm1, %v1288_v35  ;;  %v2354_v28 = vadd.f32 %v2353_v43, %v2352_v37  ;;  %v2355_v45 = vpop.f32.mrb[42].mxu0  ;;  %v2417_v46 = vpop.f32.mrb[41].mxu1  ;;  %v1365_v50 = vsel %vm1355_vm1, %v1288_v35, 0.0  ;;  %v1475_v58 = vsel %vm1355_vm1, %v1455_v41, 0.0  ;;  %v1456_v59 = vmul.f32 %v1288_v35, %v1288_v35 }
 0x149   :  { %v2356_v47 = vpop.f32.mrb[43].mxu0  ;;  %v2418_v48 = vadd.f32 %v2417_v46, %v2416_v44  ;;  %v2419_v49 = vpop.f32.mrb[42].mxu1 }
 0x14a   :  { %v1196_v51 = vadd.f32 %v2354_v28, %v3003_v40  ;;  %v2357_v53 = vadd.f32 %v2356_v47, %v2355_v45  ;;  %v2420_v57 = vpop.f32.mrb[43].mxu1  ;;  %v1478_v40 = vsel %vm1355_vm1, %v1456_v59, 0.0 }
 0x14b   :  { %v2421_v60 = vadd.f32 %v2420_v57, %v2419_v49  ;;  %1366 = vadd.xlane.f32.xlu1 %v1365_v50  ;;  %1476 = vadd.xlane.f32.xlu0 %v1475_v58 }
 0x14c   :  { %v1199_v61 = vadd.f32 %v2357_v53, %v3005_v42  ;;  %v1293_v62 = vadd.f32 %v2418_v48, %v1196_v51 }
 0x14e   :  { %1553 = vst.msk [vmem:[%s3465_s4 + $0x20] sm:$0xff] %vm1355_vm1, %v1293_v62  ;;  %v1296_v63 = vadd.f32 %v2421_v60, %v1199_v61  ;;  %v2358_v0 = vpop.f32.mrb[44].mxu0  ;;  %v1368_v1 = vsel %vm1355_vm1, %v1293_v62, 0.0  ;;  %v1457_v2 = vmul.f32 %v1293_v62, %v1293_v62 }
 0x14f   :  { %v2359_v3 = vpop.f32.mrb[45].mxu0  ;;  %1479 = vadd.xlane.f32.xlu1 %v1478_v40  ;;  %1369 = vadd.xlane.f32.xlu0 %v1368_v1  ;;  %v2422_v5 = vpop.f32.mrb[44].mxu1 }
 0x150   :  { %1554 = vst.msk [vmem:[%s3465_s4 + $0x28] sm:$0xff] %vm1355_vm1, %v1296_v63  ;;  %v2360_v42 = vadd.f32 %v2359_v3, %v2358_v0  ;;  %v2361_v7 = vpop.f32.mrb[46].mxu0  ;;  %v2423_v8 = vpop.f32.mrb[45].mxu1  ;;  %v1371_v14 = vsel %vm1355_vm1, %v1296_v63, 0.0  ;;  %v1481_v17 = vsel %vm1355_vm1, %v1457_v2, 0.0  ;;  %v1458_v13 = vmul.f32 %v1296_v63, %v1296_v63 }
 0x151   :  { %v2362_v9 = vpop.f32.mrb[47].mxu0  ;;  %v2424_v10 = vadd.f32 %v2423_v8, %v2422_v5  ;;  %v2425_v12 = vpop.f32.mrb[46].mxu1 }
 0x152   :  { %v1204_v15 = vadd.f32 %v2360_v42, %v3007_v54  ;;  %v2363_v16 = vadd.f32 %v2362_v9, %v2361_v7  ;;  %v2426_v11 = vpop.f32.mrb[47].mxu1  ;;  %v1484_v54 = vsel %vm1355_vm1, %v1458_v13, 0.0 }
 0x153   :  { %v2427_v18 = vadd.f32 %v2426_v11, %v2425_v12  ;;  %1372 = vadd.xlane.f32.xlu1 %v1371_v14  ;;  %1482 = vadd.xlane.f32.xlu0 %v1481_v17 }
 0x154   :  { %v1207_v19 = vadd.f32 %v2363_v16, %v3009_v56  ;;  %v1301_v21 = vadd.f32 %v2424_v10, %v1204_v15 }
 0x156   :  { %1555 = vst.msk [vmem:[%s3465_s4 + $0x30] sm:$0xff] %vm1355_vm1, %v1301_v21  ;;  %v1304_v23 = vadd.f32 %v2427_v18, %v1207_v19  ;;  %v2364_v24 = vpop.f32.mrb[48].mxu0  ;;  %v1374_v25 = vsel %vm1355_vm1, %v1301_v21, 0.0  ;;  %v1459_v27 = vmul.f32 %v1301_v21, %v1301_v21 }
 0x157   :  { %v2365_v29 = vpop.f32.mrb[49].mxu0  ;;  %1485 = vadd.xlane.f32.xlu1 %v1484_v54  ;;  %1375 = vadd.xlane.f32.xlu0 %v1374_v25  ;;  %v2428_v30 = vpop.f32.mrb[48].mxu1 }
 0x158   :  { %1556 = vst.msk [vmem:[%s3465_s4 + $0x38] sm:$0xff] %vm1355_vm1, %v1304_v23  ;;  %v2366_v56 = vadd.f32 %v2365_v29, %v2364_v24  ;;  %v2367_v31 = vpop.f32.mrb[50].mxu0  ;;  %v2429_v32 = vpop.f32.mrb[49].mxu1  ;;  %v1377_v37 = vsel %vm1355_vm1, %v1304_v23, 0.0  ;;  %v1487_v43 = vsel %vm1355_vm1, %v1459_v27, 0.0  ;;  %v1460_v44 = vmul.f32 %v1304_v23, %v1304_v23 }
 0x159   :  { %v2368_v33 = vpop.f32.mrb[51].mxu0  ;;  %v2430_v34 = vadd.f32 %v2429_v32, %v2428_v30  ;;  %v2431_v35 = vpop.f32.mrb[50].mxu1 }
 0x15a   :  { %v1212_v26 = vadd.f32 %v2366_v56, %v3011_v4  ;;  %v2369_v39 = vadd.f32 %v2368_v33, %v2367_v31  ;;  %v2432_v41 = vpop.f32.mrb[51].mxu1  ;;  %v1490_v4 = vsel %vm1355_vm1, %v1460_v44, 0.0 }
 0x15b   :  { %v2433_v28 = vadd.f32 %v2432_v41, %v2431_v35  ;;  %1378 = vadd.xlane.f32.xlu1 %v1377_v37  ;;  %1488 = vadd.xlane.f32.xlu0 %v1487_v43 }
 0x15c   :  { %v1215_v45 = vadd.f32 %v2369_v39, %v3013_v6  ;;  %v1309_v46 = vadd.f32 %v2430_v34, %v1212_v26 }
 0x15e   :  { %1557 = vst.msk [vmem:[%s3465_s4 + $0x40] sm:$0xff] %vm1355_vm1, %v1309_v46  ;;  %v1312_v47 = vadd.f32 %v2433_v28, %v1215_v45  ;;  %v2370_v48 = vpop.f32.mrb[52].mxu0  ;;  %v1380_v49 = vsel %vm1355_vm1, %v1309_v46, 0.0  ;;  %v1461_v50 = vmul.f32 %v1309_v46, %v1309_v46 }
 0x15f   :  { %v2371_v51 = vpop.f32.mrb[53].mxu0  ;;  %1491 = vadd.xlane.f32.xlu1 %v1490_v4  ;;  %1381 = vadd.xlane.f32.xlu0 %v1380_v49  ;;  %v2434_v53 = vpop.f32.mrb[52].mxu1 }
 0x160   :  { %1558 = vst.msk [vmem:[%s3465_s4 + $0x48] sm:$0xff] %vm1355_vm1, %v1312_v47  ;;  %v2372_v6 = vadd.f32 %v2371_v51, %v2370_v48  ;;  %v2373_v57 = vpop.f32.mrb[54].mxu0  ;;  %v2435_v58 = vpop.f32.mrb[53].mxu1  ;;  %v1383_v62 = vsel %vm1355_vm1, %v1312_v47, 0.0  ;;  %v1493_v1 = vsel %vm1355_vm1, %v1461_v50, 0.0  ;;  %v1462_v2 = vmul.f32 %v1312_v47, %v1312_v47 }
 0x161   :  { %v2374_v59 = vpop.f32.mrb[55].mxu0  ;;  %v2436_v60 = vadd.f32 %v2435_v58, %v2434_v53  ;;  %v2437_v61 = vpop.f32.mrb[54].mxu1  ;;  %v2553_v48 = vmov 0  }
 0x162   :  { %v1220_v63 = vadd.f32 %v2372_v6, %v3015_v20  ;;  %v2375_v0 = vadd.f32 %v2374_v59, %v2373_v57  ;;  %v2438_v40 = vpop.f32.mrb[55].mxu1  ;;  %v1496_v20 = vsel %vm1355_vm1, %v1462_v2, 0.0  ;;  %2455 = vset.pattern.permute.xlu1 %v2553_v48  ;;  %2454 = vset.pattern.permute.xlu0 %v2553_v48 }
 0x163   :  { %v2439_v3 = vadd.f32 %v2438_v40, %v2437_v61  ;;  %1384 = vadd.xlane.f32.xlu1 %v1383_v62  ;;  %1494 = vadd.xlane.f32.xlu0 %v1493_v1 }
 0x164   :  { %v1223_v5 = vadd.f32 %v2375_v0, %v3017_v22  ;;  %v1317_v42 = vadd.f32 %v2436_v60, %v1220_v63  ;;  %v1339_v60 = vld [vmem:[#allocation2] sm:$0xff]  ;;  %v1438_v63 = vld [vmem:[#allocation3 + $0x8] sm:$0xff] }
 0x165   :  { %v1340_v0 = vld [vmem:[#allocation2 + $0x8] sm:$0xff] }
 0x166   :  { %1559 = vst.msk [vmem:[%s3465_s4 + $0x50] sm:$0xff] %vm1355_vm1, %v1317_v42  ;;  %v1320_v7 = vadd.f32 %v2439_v3, %v1223_v5  ;;  %v2376_v8 = vpop.f32.mrb[56].mxu0  ;;  %v1386_v9 = vsel %vm1355_vm1, %v1317_v42, 0.0  ;;  %v1463_v10 = vmul.f32 %v1317_v42, %v1317_v42  ;;  %v1341_v5 = vld [vmem:[#allocation2 + $0x10] sm:$0xff]  ;;  %v1437_v42 = vld [vmem:[#allocation3] sm:$0xff] }
 0x167   :  { %v2377_v12 = vpop.f32.mrb[57].mxu0  ;;  %1497 = vadd.xlane.f32.xlu1 %v1496_v20  ;;  %1387 = vadd.xlane.f32.xlu0 %v1386_v9  ;;  %v2440_v14 = vpop.f32.mrb[56].mxu1 }
 0x168   :  { %1560 = vst.msk [vmem:[%s3465_s4 + $0x58] sm:$0xff] %vm1355_vm1, %v1320_v7  ;;  %v2378_v22 = vadd.f32 %v2377_v12, %v2376_v8  ;;  %v2379_v15 = vpop.f32.mrb[58].mxu0  ;;  %v2441_v16 = vpop.f32.mrb[57].mxu1  ;;  %v1389_v18 = vsel %vm1355_vm1, %v1320_v7, 0.0  ;;  %v1499_v24 = vsel %vm1355_vm1, %v1463_v10, 0.0  ;;  %v1464_v54 = vmul.f32 %v1320_v7, %v1320_v7  ;;  %v1342_v10 = vld [vmem:[#allocation2 + $0x18] sm:$0xff] }
 0x169   :  { %v2380_v11 = vpop.f32.mrb[59].mxu0  ;;  %v2442_v17 = vadd.f32 %v2441_v16, %v2440_v14  ;;  %v2443_v13 = vpop.f32.mrb[58].mxu1  ;;  %v1439_v12 = vld [vmem:[#allocation3 + $0x10] sm:$0xff] }
 0x16a   :  { %v1228_v19 = vadd.f32 %v2378_v22, %v3019_v36  ;;  %v2381_v21 = vadd.f32 %v2380_v11, %v2379_v15  ;;  %v2444_v23 = vpop.f32.mrb[59].mxu1  ;;  %v1502_v36 = vsel %vm1355_vm1, %v1464_v54, 0.0 }
 0x16b   :  { %v2445_v25 = vadd.f32 %v2444_v23, %v2443_v13  ;;  %1390 = vadd.xlane.f32.xlu1 %v1389_v18  ;;  %1500 = vadd.xlane.f32.xlu0 %v1499_v24  ;;  %v1343_v13 = vld [vmem:[#allocation2 + $0x20] sm:$0xff] }
 0x16c   :  { %v1231_v27 = vadd.f32 %v2381_v21, %v3021_v38  ;;  %v1325_v29 = vadd.f32 %v2442_v17, %v1228_v19  ;;  %v1440_v17 = vld [vmem:[#allocation3 + $0x18] sm:$0xff] }
 0x16e   :  { %1561 = vst.msk [vmem:[%s3465_s4 + $0x60] sm:$0xff] %vm1355_vm1, %v1325_v29  ;;  %v1328_v30 = vadd.f32 %v2445_v25, %v1231_v27  ;;  %v2382_v56 = vpop.f32.mrb[60].mxu0  ;;  %v1392_v31 = vsel %vm1355_vm1, %v1325_v29, 0.0  ;;  %v1465_v32 = vmul.f32 %v1325_v29, %v1325_v29  ;;  %v1344_v29 = vld [vmem:[#allocation2 + $0x28] sm:$0xff] }
 0x16f   :  { %v2383_v33 = vpop.f32.mrb[61].mxu0  ;;  %1503 = vadd.xlane.f32.xlu1 %v1502_v36  ;;  %1393 = vadd.xlane.f32.xlu0 %v1392_v31  ;;  %v2446_v34 = vpop.f32.mrb[60].mxu1  ;;  %v1441_v36 = vld [vmem:[#allocation3 + $0x20] sm:$0xff] }
 0x170   :  { %1562 = vst.msk [vmem:[%s3465_s4 + $0x68] sm:$0xff] %vm1355_vm1, %v1328_v30  ;;  %v2384_v38 = vadd.f32 %v2383_v33, %v2382_v56  ;;  %v2385_v35 = vpop.f32.mrb[62].mxu0  ;;  %v2447_v37 = vpop.f32.mrb[61].mxu1  ;;  %v1395_v43 = vsel %vm1355_vm1, %v1328_v30, 0.0  ;;  %v1505_v46 = vsel %vm1355_vm1, %v1465_v32, 0.0  ;;  %v1466_v47 = vmul.f32 %v1328_v30, %v1328_v30 }
 0x171   :  { %v2386_v26 = vpop.f32.mrb[63].mxu0  ;;  %v2448_v39 = vadd.f32 %v2447_v37, %v2446_v34  ;;  %v2449_v41 = vpop.f32.mrb[62].mxu1 }
 0x172   :  { %v1236_v44 = vadd.f32 %v2384_v38, %v3023_v52  ;;  %v2387_v28 = vadd.f32 %v2386_v26, %v2385_v35  ;;  %v2450_v45 = vpop.f32.mrb[63].mxu1  ;;  %v1508_v51 = vsel %vm1355_vm1, %v1466_v47, 0.0 }
 0x173   :  { %v2451_v4 = vadd.f32 %v2450_v45, %v2449_v41  ;;  %1396 = vadd.xlane.f32.xlu1 %v1395_v43  ;;  %1506 = vadd.xlane.f32.xlu0 %v1505_v46  ;;  %v1442_v43 = vld [vmem:[#allocation3 + $0x28] sm:$0xff]  ;;  %v1345_v45 = vld [vmem:[#allocation2 + $0x30] sm:$0xff] }
 0x174   :  { %v1239_v49 = vadd.f32 %v2387_v28, %v3025_v55  ;;  %v1333_v50 = vadd.f32 %v2448_v39, %v1236_v44 }
 0x176   :  { %1563 = vst.msk [vmem:[%s3465_s4 + $0x70] sm:$0xff] %vm1355_vm1, %v1333_v50  ;;  %v1336_v52 = vadd.f32 %v2451_v4, %v1239_v49  ;;  %v1398_v53 = vsel %vm1355_vm1, %v1333_v50, 0.0  ;;  %v1467_v6 = vmul.f32 %v1333_v50, %v1333_v50 }
 0x177   :  { %1509 = vadd.xlane.f32.xlu1 %v1508_v51  ;;  %1399 = vadd.xlane.f32.xlu0 %v1398_v53 }
 0x178   :  { %1564 = vst.msk [vmem:[%s3465_s4 + $0x78] sm:$0xff] %vm1355_vm1, %v1336_v52  ;;  %v1401_v55 = vsel %vm1355_vm1, %v1336_v52, 0.0  ;;  %v1511_v57 = vsel %vm1355_vm1, %v1467_v6, 0.0  ;;  %v1468_v58 = vmul.f32 %v1336_v52, %v1336_v52 }
 0x17a   :  { %v1514_v59 = vsel %vm1355_vm1, %v1468_v58, 0.0 }
 0x17b   :  { %1402 = vadd.xlane.f32.xlu1 %v1401_v55  ;;  %1512 = vadd.xlane.f32.xlu0 %v1511_v57  ;;  %v1346_v57 = vld [vmem:[#allocation2 + $0x38] sm:$0xff] }
 0x17f   :  { %1515 = vadd.xlane.f32.xlu1 %v1514_v59  ;;  %v1443_v59 = vld [vmem:[#allocation3 + $0x30] sm:$0xff] }
 0x1cc   :  { %v1358_v61 = vpop.xlane.xlu0 %1357 }
 0x1cd   :  { %v1404_v62 = vadd.f32 %v1358_v61, %v1339_v60 }
 0x1cf   :  { %1421 = vst.msk [vmem:[#allocation2] sm:$0xff] %vm22_vm0, %v1404_v62 }
 0x1d0   :  { %v1474_v40 = vpop.xlane.xlu1 %1473  ;;  %v1361_v1 = vpop.xlane.xlu0 %1360 }
 0x1d1   :  { %v1518_v2 = vadd.f32 %v1474_v40, %v1438_v63  ;;  %v1405_v3 = vadd.f32 %v1361_v1, %v1340_v0 }
 0x1d3   :  { %1534 = vst.msk [vmem:[#allocation3 + $0x8] sm:$0xff] %vm22_vm0, %v1518_v2  ;;  %1422 = vst.msk [vmem:[#allocation2 + $0x8] sm:$0xff] %vm22_vm0, %v1405_v3 }
 0x1d4   :  { %v1364_v7 = vpop.xlane.xlu1 %1363  ;;  %v1471_v8 = vpop.xlane.xlu0 %1470 }
 0x1d5   :  { %v1406_v20 = vadd.f32 %v1364_v7, %v1341_v5  ;;  %v1517_v9 = vadd.f32 %v1471_v8, %v1437_v42  ;;  %v1444_v7 = vld [vmem:[#allocation3 + $0x38] sm:$0xff] }
 0x1d6   :  { %v1568_v15 = vld [vmem:[#allocation2] sm:$0xff] }
 0x1d7   :  { %1423 = vst.msk [vmem:[#allocation2 + $0x10] sm:$0xff] %vm22_vm0, %v1406_v20  ;;  %1533 = vst.msk [vmem:[#allocation3] sm:$0xff] %vm22_vm0, %v1517_v9  ;;  %v3148_v23 = vmul.f32 0.03125, %v1568_v15  ;;  %v1347_v20 = vld [vmem:[#allocation2 + $0x40] sm:$0xff] }
 0x1d8   :  { %v1367_v14 = vpop.xlane.xlu1 %1366  ;;  %v1477_v22 = vpop.xlane.xlu0 %1476 }
 0x1d9   :  { %v1407_v16 = vadd.f32 %v1367_v14, %v1342_v10  ;;  %v1519_v11 = vadd.f32 %v1477_v22, %v1439_v12  ;;  %v1632_v38 = vmul.f32 %v3148_v23, %v3148_v23 }
 0x1da   :  { %v1569_v18 = vld [vmem:[#allocation2 + $0x8] sm:$0xff] }
 0x1db   :  { %v1601_v19 = vld [vmem:[#allocation3 + $0x8] sm:$0xff]  ;;  %1424 = vst.msk [vmem:[#allocation2 + $0x18] sm:$0xff] %vm22_vm0, %v1407_v16  ;;  %1535 = vst.msk [vmem:[#allocation3 + $0x10] sm:$0xff] %vm22_vm0, %v1519_v11  ;;  %v3146_v21 = vmul.f32 0.03125, %v1569_v18 }
 0x1dc   :  { %v1480_v24 = vpop.xlane.xlu1 %1479  ;;  %v1370_v54 = vpop.xlane.xlu0 %1369  ;;  %v1617_v30 = vmul.f32 0.03125, %v1601_v19  ;;  %v1681_v19 = vld [vmem:[%s3466_s1 + $0x8] sm:$0xff] }
 0x1dd   :  { %v1520_v25 = vadd.f32 %v1480_v24, %v1440_v17  ;;  %v1408_v27 = vadd.f32 %v1370_v54, %v1343_v13  ;;  %v1633_v56 = vmul.f32 %v3146_v21, %v3146_v21  ;;  %v1348_v54 = vld [vmem:[#allocation2 + $0x48] sm:$0xff] }
 0x1de   :  { %v1600_v31 = vld [vmem:[#allocation3] sm:$0xff]  ;;  %v1570_v32 = vld [vmem:[#allocation2 + $0x10] sm:$0xff] }
 0x1df   :  { %1536 = vst.msk [vmem:[#allocation3 + $0x18] sm:$0xff] %vm22_vm0, %v1520_v25  ;;  %1425 = vst.msk [vmem:[#allocation2 + $0x20] sm:$0xff] %vm22_vm0, %v1408_v27  ;;  %v1649_v33 = vsub.f32 %v1617_v30, %v1633_v56  ;;  %v1616_v34 = vmul.f32 0.03125, %v1600_v31  ;;  %v3156_v26 = vmul.f32 0.03125, %v1570_v32  ;;  %v1445_v25 = vld [vmem:[#allocation3 + $0x40] sm:$0xff] }
 0x1e0   :  { %v1373_v35 = vpop.xlane.xlu1 %1372  ;;  %v1483_v37 = vpop.xlane.xlu0 %1482  ;;  %v1680_v56 = vld [vmem:[%s3466_s1] sm:$0xff] }
 0x1e1   :  { %v1409_v39 = vadd.f32 %v1373_v35, %v1344_v29  ;;  %v1521_v41 = vadd.f32 %v1483_v37, %v1441_v36  ;;  %v1665_v44 = vmax.f32 %v1649_v33, 0.0  ;;  %v1648_v28 = vsub.f32 %v1616_v34, %v1632_v38 }
 0x1e2   :  { %v1602_v46 = vld [vmem:[#allocation3 + $0x10] sm:$0xff]  ;;  %v1571_v47 = vld [vmem:[#allocation2 + $0x18] sm:$0xff]  ;;  %v1634_v53 = vmul.f32 %v3156_v26, %v3156_v26 }
 0x1e3   :  { %1426 = vst.msk [vmem:[#allocation2 + $0x28] sm:$0xff] %vm22_vm0, %v1409_v39  ;;  %1537 = vst.msk [vmem:[#allocation3 + $0x20] sm:$0xff] %vm22_vm0, %v1521_v41  ;;  %v1697_v48 = vadd.f32 1e-05, %v1665_v44  ;;  %v1664_v4 = vmax.f32 %v1648_v28, 0.0  ;;  %v1618_v49 = vmul.f32 0.03125, %v1602_v46 }
 0x1e4   :  { %v3160_v50 = vmul.f32 0.03125, %v1571_v47  ;;  %v1486_v52 = vpop.xlane.xlu1 %1485  ;;  %v1376_v51 = vpop.xlane.xlu0 %1375  ;;  %v1446_v41 = vld [vmem:[#allocation3 + $0x48] sm:$0xff] }
 0x1e5   :  { %v1522_v6 = vadd.f32 %v1486_v52, %v1442_v43  ;;  %v1410_v55 = vadd.f32 %v1376_v51, %v1345_v45  ;;  %2520 = vrsqrt.f32 %v1697_v48  ;;  %v1696_v58 = vadd.f32 1e-05, %v1664_v4  ;;  %v1349_v45 = vld [vmem:[#allocation2 + $0x50] sm:$0xff]  ;;  %v1744_v52 = vld [vmem:[%s3467_s2] sm:$0xff] }
 0x1e6   :  { %v1650_v60 = vsub.f32 %v1618_v49, %v1634_v53  ;;  %v1603_v61 = vld [vmem:[#allocation3 + $0x18] sm:$0xff]  ;;  %v1572_v62 = vld [vmem:[#allocation2 + $0x20] sm:$0xff]  ;;  %v1635_v0 = vmul.f32 %v3160_v50, %v3160_v50  ;;  %v1745_v49 = vld [vmem:[%s3467_s2 + $0x8] sm:$0xff] }
 0x1e7   :  { %1538 = vst.msk [vmem:[#allocation3 + $0x28] sm:$0xff] %vm22_vm0, %v1522_v6  ;;  %1427 = vst.msk [vmem:[#allocation2 + $0x30] sm:$0xff] %vm22_vm0, %v1410_v55  ;;  %2522 = vrsqrt.f32 %v1696_v58  ;;  %v1619_v63 = vmul.f32 0.03125, %v1603_v61  ;;  %v3168_v3 = vmul.f32 0.03125, %v1572_v62  ;;  %v1350_v62 = vld [vmem:[#allocation2 + $0x58] sm:$0xff] }
 0x1e8   :  { %v1379_v40 = vpop.xlane.xlu1 %1378  ;;  %v1489_v1 = vpop.xlane.xlu0 %1488  ;;  %v1666_v2 = vmax.f32 %v1650_v60, 0.0 }
 0x1e9   :  { %v1411_v5 = vadd.f32 %v1379_v40, %v1346_v57  ;;  %v1523_v42 = vadd.f32 %v1489_v1, %v1443_v59  ;;  %v1651_v8 = vsub.f32 %v1619_v63, %v1635_v0  ;;  %v1636_v17 = vmul.f32 %v3168_v3, %v3168_v3  ;;  %v1447_v40 = vld [vmem:[#allocation3 + $0x50] sm:$0xff] }
 0x1ea   :  { %v1698_v9 = vadd.f32 1e-05, %v1666_v2  ;;  %v1573_v10 = vld [vmem:[#allocation2 + $0x28] sm:$0xff]  ;;  %v1604_v12 = vld [vmem:[#allocation3 + $0x20] sm:$0xff] }
 0x1eb   :  { %1428 = vst.msk [vmem:[#allocation2 + $0x38] sm:$0xff] %vm22_vm0, %v1411_v5  ;;  %1539 = vst.msk [vmem:[#allocation3 + $0x30] sm:$0xff] %vm22_vm0, %v1523_v42  ;;  %v1667_v14 = vmax.f32 %v1651_v8, 0.0  ;;  %v3172_v22 = vmul.f32 0.03125, %v1573_v10  ;;  %v1620_v15 = vmul.f32 0.03125, %v1604_v12  ;;  %v1683_v42 = vld [vmem:[%s3466_s1 + $0x18] sm:$0xff] }
 0x1ec   :  { %v1492_v16 = vpop.xlane.xlu1 %1491  ;;  %v1382_v11 = vpop.xlane.xlu0 %1381  ;;  %2524 = vrsqrt.f32 %v1698_v9 }
 0x1ed   :  { %v1524_v13 = vadd.f32 %v1492_v16, %v1444_v7  ;;  %v1412_v18 = vadd.f32 %v1382_v11, %v1347_v20  ;;  %v1699_v24 = vadd.f32 1e-05, %v1667_v14  ;;  %v1652_v29 = vsub.f32 %v1620_v15, %v1636_v17  ;;  %v1448_v11 = vld [vmem:[#allocation3 + $0x58] sm:$0xff] }
 0x1ee   :  { %v1605_v27 = vld [vmem:[#allocation3 + $0x28] sm:$0xff]  ;;  %v1637_v31 = vmul.f32 %v3172_v22, %v3172_v22  ;;  %v1574_v32 = vld [vmem:[#allocation2 + $0x30] sm:$0xff] }
 0x1ef   :  { %v2521_v30 = vpop.eup %2520  ;;  %1540 = vst.msk [vmem:[#allocation3 + $0x38] sm:$0xff] %vm22_vm0, %v1524_v13  ;;  %1429 = vst.msk [vmem:[#allocation2 + $0x40] sm:$0xff] %vm22_vm0, %v1412_v18  ;;  %2526 = vrsqrt.f32 %v1699_v24  ;;  %v1621_v36 = vmul.f32 0.03125, %v1605_v27  ;;  %v1668_v44 = vmax.f32 %v1652_v29, 0.0  ;;  %v3187_v48 = vmul.f32 0.03125, %v1574_v32  ;;  %v1351_v18 = vld [vmem:[#allocation2 + $0x60] sm:$0xff] }
 0x1f0   :  { %v1385_v33 = vpop.xlane.xlu1 %1384  ;;  %v1495_v34 = vpop.xlane.xlu0 %1494  ;;  %v1729_v38 = vmul.f32 %v2521_v30, %v1681_v19  ;;  %v1747_v27 = vld [vmem:[%s3467_s2 + $0x18] sm:$0xff] }
 0x1f1   :  { %v2523_v35 = vpop.eup %2522  ;;  %v1413_v37 = vadd.f32 %v1385_v33, %v1348_v54  ;;  %v1525_v39 = vadd.f32 %v1495_v34, %v1445_v25  ;;  %v1653_v43 = vsub.f32 %v1621_v36, %v1637_v31  ;;  %v1700_v61 = vadd.f32 1e-05, %v1668_v44 }
 0x1f2   :  { %1815 = vperm.xlu1 %2455, %v1729_v38   ;;  %v1728_v28 = vmul.f32 %v2523_v35, %v1680_v56  ;;  %v1761_v46 = vmul.f32 %v1729_v38, %v3146_v21  ;;  %v1575_v47 = vld [vmem:[#allocation2 + $0x38] sm:$0xff]  ;;  %v1606_v4 = vld [vmem:[#allocation3 + $0x30] sm:$0xff]  ;;  %v1638_v2 = vmul.f32 %v3187_v48, %v3187_v48 }
 0x1f3   :  { %1430 = vst.msk [vmem:[#allocation2 + $0x48] sm:$0xff] %vm22_vm0, %v1413_v37  ;;  %1541 = vst.msk [vmem:[#allocation3 + $0x40] sm:$0xff] %vm22_vm0, %v1525_v39  ;;  %v1669_v51 = vmax.f32 %v1653_v43, 0.0  ;;  %v3197_v53 = vmul.f32 0.03125, %v1575_v47  ;;  %v1622_v57 = vmul.f32 0.03125, %v1606_v4  ;;  %v1352_v37 = vld [vmem:[#allocation2 + $0x68] sm:$0xff] }
 0x1f4   :  { %v1498_v21 = vpop.xlane.xlu1 %1497  ;;  %1810 = vperm.xlu0 %2454, %v1728_v28   ;;  %v1388_v6 = vpop.xlane.xlu0 %1387  ;;  %v1760_v55 = vmul.f32 %v1728_v28, %v3148_v23  ;;  %v1777_v63 = vsub.f32 %v1745_v49, %v1761_v46  ;;  %v1682_v23 = vld [vmem:[%s3466_s1 + $0x10] sm:$0xff] }
 0x1f5   :  { %v1526_v58 = vadd.f32 %v1498_v21, %v1446_v41  ;;  %v1414_v59 = vadd.f32 %v1388_v6, %v1349_v45  ;;  %v1701_v60 = vadd.f32 1e-05, %v1669_v51  ;;  %v1639_v8 = vmul.f32 %v3197_v53, %v3197_v53  ;;  %v1449_v41 = vld [vmem:[#allocation3 + $0x60] sm:$0xff]  ;;  %v1685_v45 = vld [vmem:[%s3466_s1 + $0x28] sm:$0xff] }
 0x1f6   :  { %v1776_v0 = vsub.f32 %v1744_v52, %v1760_v55  ;;  %v1607_v1 = vld [vmem:[#allocation3 + $0x38] sm:$0xff]  ;;  %v2525_v5 = vpop.eup %2524  ;;  %v1576_v20 = vld [vmem:[#allocation2 + $0x40] sm:$0xff]  ;;  %v1654_v12 = vsub.f32 %v1622_v57, %v1638_v2  ;;  %v1450_v57 = vld [vmem:[#allocation3 + $0x68] sm:$0xff] }
 0x1f7   :  { %1542 = vst.msk [vmem:[#allocation3 + $0x48] sm:$0xff] %vm22_vm0, %v1526_v58  ;;  %1431 = vst.msk [vmem:[#allocation2 + $0x50] sm:$0xff] %vm22_vm0, %v1414_v59  ;;  %2528 = vrsqrt.f32 %v1701_v60  ;;  %v1623_v7 = vmul.f32 0.03125, %v1607_v1  ;;  %v1730_v13 = vmul.f32 %v2525_v5, %v1682_v23  ;;  %v3212_v54 = vmul.f32 0.03125, %v1576_v20  ;;  %v1353_v60 = vld [vmem:[#allocation2 + $0x70] sm:$0xff]  ;;  %v1684_v1 = vld [vmem:[%s3466_s1 + $0x20] sm:$0xff] }
 0x1f8   :  { %v1391_v9 = vpop.xlane.xlu1 %1390  ;;  %1911 = vperm.xlu0 %2454, %v1777_v63   ;;  %1906 = vperm.xlu1 %2455, %v1776_v0   ;;  %v1501_v10 = vpop.xlane.xlu0 %1500  ;;  %2530 = vrsqrt.f32 %v1700_v61  ;;  %v1670_v32 = vmax.f32 %v1654_v12, 0.0 }
 0x1f9   :  { %v2527_v14 = vpop.eup %2526  ;;  %v1415_v15 = vadd.f32 %v1391_v9, %v1350_v62  ;;  %v1527_v16 = vadd.f32 %v1501_v10, %v1447_v40  ;;  %v1655_v17 = vsub.f32 %v1623_v7, %v1639_v8  ;;  %v1762_v43 = vmul.f32 %v1730_v13, %v3156_v26  ;;  %v1749_v40 = vld [vmem:[%s3467_s2 + $0x28] sm:$0xff] }
 0x1fa   :  { %v1731_v19 = vmul.f32 %v2527_v14, %v1683_v42  ;;  %v1577_v24 = vld [vmem:[#allocation2 + $0x48] sm:$0xff]  ;;  %v1608_v25 = vld [vmem:[#allocation3 + $0x40] sm:$0xff]  ;;  %v1640_v28 = vmul.f32 %v3212_v54, %v3212_v54  ;;  %v1702_v49 = vadd.f32 1e-05, %v1670_v32 }
 0x1fb   :  { %1432 = vst.msk [vmem:[#allocation2 + $0x58] sm:$0xff] %vm22_vm0, %v1415_v15  ;;  %1543 = vst.msk [vmem:[#allocation3 + $0x50] sm:$0xff] %vm22_vm0, %v1527_v16  ;;  %v1671_v29 = vmax.f32 %v1655_v17, 0.0  ;;  %v3219_v30 = vmul.f32 0.03125, %v1577_v24  ;;  %v1624_v33 = vmul.f32 0.03125, %v1608_v25  ;;  %v1354_v15 = vld [vmem:[#allocation2 + $0x78] sm:$0xff] }
 0x1fc   :  { %v1504_v56 = vpop.xlane.xlu1 %1503  ;;  %1820 = vperm.xlu1 %2455, %v1730_v13   ;;  %v1394_v36 = vpop.xlane.xlu0 %1393  ;;  %v1763_v31 = vmul.f32 %v1731_v19, %v3160_v50  ;;  %v1746_v50 = vld [vmem:[%s3467_s2 + $0x10] sm:$0xff] }
 0x1fd   :  { %v1528_v34 = vadd.f32 %v1504_v56, %v1448_v11  ;;  %v1416_v38 = vadd.f32 %v1394_v36, %v1351_v18  ;;  %v1703_v35 = vadd.f32 1e-05, %v1671_v29  ;;  %v1641_v26 = vmul.f32 %v3219_v30, %v3219_v30  ;;  %v1451_v17 = vld [vmem:[#allocation3 + $0x70] sm:$0xff]  ;;  %v1687_v18 = vld [vmem:[%s3466_s1 + $0x38] sm:$0xff] }
 0x1fe   :  { %v1779_v39 = vsub.f32 %v1747_v27, %v1763_v31  ;;  %v1609_v44 = vld [vmem:[#allocation3 + $0x48] sm:$0xff]  ;;  %v1656_v52 = vsub.f32 %v1624_v33, %v1640_v28  ;;  %v1578_v51 = vld [vmem:[#allocation2 + $0x50] sm:$0xff]  ;;  %v1778_v59 = vsub.f32 %v1746_v50, %v1762_v43  ;;  %v1751_v43 = vld [vmem:[%s3467_s2 + $0x38] sm:$0xff] }
 0x1ff   :  { %1544 = vst.msk [vmem:[#allocation3 + $0x58] sm:$0xff] %vm22_vm0, %v1528_v34  ;;  %1433 = vst.msk [vmem:[#allocation2 + $0x60] sm:$0xff] %vm22_vm0, %v1416_v38  ;;  %2532 = vrsqrt.f32 %v1703_v35  ;;  %v1625_v46 = vmul.f32 0.03125, %v1609_v44  ;;  %v3245_v23 = vmul.f32 0.03125, %v1578_v51  ;;  %v1452_v38 = vld [vmem:[#allocation3 + $0x78] sm:$0xff]  ;;  %v1748_v44 = vld [vmem:[%s3467_s2 + $0x20] sm:$0xff] }
 0x200   :  { %v1397_v47 = vpop.xlane.xlu1 %1396  ;;  %1921 = vperm.xlu0 %2454, %v1779_v39   ;;  %1825 = vperm.xlu1 %2455, %v1731_v19   ;;  %v1507_v4 = vpop.xlane.xlu0 %1506  ;;  %2534 = vrsqrt.f32 %v1702_v49  ;;  %v1672_v20 = vmax.f32 %v1656_v52, 0.0 }
 0x201   :  { %v2529_v21 = vpop.eup %2528  ;;  %v1417_v6 = vadd.f32 %v1397_v47, %v1352_v37  ;;  %v1529_v55 = vadd.f32 %v1507_v4, %v1449_v41  ;;  %v1657_v58 = vsub.f32 %v1625_v46, %v1641_v26  ;;  %v1642_v24 = vmul.f32 %v3245_v23, %v3245_v23 }
 0x202   :  { %v1733_v61 = vmul.f32 %v2529_v21, %v1685_v45  ;;  %v1579_v62 = vld [vmem:[#allocation2 + $0x58] sm:$0xff]  ;;  %v1610_v63 = vld [vmem:[#allocation3 + $0x50] sm:$0xff]  ;;  %v2531_v0 = vpop.eup %2530  ;;  %v1704_v29 = vadd.f32 1e-05, %v1672_v20 }
 0x203   :  { %1434 = vst.msk [vmem:[#allocation2 + $0x68] sm:$0xff] %vm22_vm0, %v1417_v6  ;;  %1545 = vst.msk [vmem:[#allocation3 + $0x60] sm:$0xff] %vm22_vm0, %v1529_v55  ;;  %v1673_v2 = vmax.f32 %v1657_v58, 0.0  ;;  %v3243_v5 = vmul.f32 0.03125, %v1579_v62  ;;  %v1626_v14 = vmul.f32 0.03125, %v1610_v63  ;;  %v1732_v11 = vmul.f32 %v2531_v0, %v1684_v1 }
 0x204   :  { %v1510_v42 = vpop.xlane.xlu1 %1509  ;;  %1916 = vperm.xlu1 %2455, %v1778_v59   ;;  %v1400_v7 = vpop.xlane.xlu0 %1399  ;;  %v1765_v8 = vmul.f32 %v1733_v61, %v3172_v22 }
 0x205   :  { %v1530_v9 = vadd.f32 %v1510_v42, %v1450_v57  ;;  %v1418_v10 = vadd.f32 %v1400_v7, %v1353_v60  ;;  %v1705_v12 = vadd.f32 1e-05, %v1673_v2  ;;  %v1643_v19 = vmul.f32 %v3243_v5, %v3243_v5  ;;  %v1689_v57 = vld [vmem:[%s3466_s1 + $0x48] sm:$0xff] }
 0x206   :  { %v1781_v16 = vsub.f32 %v1749_v40, %v1765_v8  ;;  %v1611_v13 = vld [vmem:[#allocation3 + $0x58] sm:$0xff]  ;;  %v1580_v56 = vld [vmem:[#allocation2 + $0x60] sm:$0xff]  ;;  %v1658_v34 = vsub.f32 %v1626_v14, %v1642_v24  ;;  %v1764_v37 = vmul.f32 %v1732_v11, %v3168_v3  ;;  %v1753_v8 = vld [vmem:[%s3467_s2 + $0x48] sm:$0xff] }
 0x207   :  { %1546 = vst.msk [vmem:[#allocation3 + $0x68] sm:$0xff] %vm22_vm0, %v1530_v9  ;;  %1435 = vst.msk [vmem:[#allocation2 + $0x70] sm:$0xff] %vm22_vm0, %v1418_v10  ;;  %2536 = vrsqrt.f32 %v1705_v12  ;;  %v1627_v22 = vmul.f32 0.03125, %v1611_v13  ;;  %v3270_v45 = vmul.f32 0.03125, %v1580_v56  ;;  %v1688_v24 = vld [vmem:[%s3466_s1 + $0x40] sm:$0xff] }
 0x208   :  { %v1403_v25 = vpop.xlane.xlu1 %1402  ;;  %1931 = vperm.xlu0 %2454, %v1781_v16   ;;  %1830 = vperm.xlu1 %2455, %v1732_v11   ;;  %v1513_v27 = vpop.xlane.xlu0 %1512  ;;  %2538 = vrsqrt.f32 %v1704_v29  ;;  %v1674_v4 = vmax.f32 %v1658_v34, 0.0  ;;  %v1780_v21 = vsub.f32 %v1748_v44, %v1764_v37 }
 0x209   :  { %v2533_v36 = vpop.eup %2532  ;;  %v1419_v31 = vadd.f32 %v1403_v25, %v1354_v15  ;;  %v1531_v32 = vadd.f32 %v1513_v27, %v1451_v17  ;;  %v1659_v33 = vsub.f32 %v1627_v22, %v1643_v19  ;;  %v1644_v60 = vmul.f32 %v3270_v45, %v3270_v45  ;;  %v1691_v19 = vld [vmem:[%s3466_s1 + $0x58] sm:$0xff] }
 0x20a   :  { %v3257_v35 = vmul.f32 %v2533_v36, %v1687_v18  ;;  %v1581_v39 = vld [vmem:[#allocation2 + $0x68] sm:$0xff]  ;;  %v1612_v41 = vld [vmem:[#allocation3 + $0x60] sm:$0xff]  ;;  %v2535_v52 = vpop.eup %2534  ;;  %v1706_v0 = vadd.f32 1e-05, %v1674_v4 }
 0x20b   :  { %1436 = vst.msk [vmem:[#allocation2 + $0x78] sm:$0xff] %vm22_vm0, %v1419_v31  ;;  %1547 = vst.msk [vmem:[#allocation3 + $0x70] sm:$0xff] %vm22_vm0, %v1531_v32  ;;  %v1675_v28 = vmax.f32 %v1659_v33, 0.0  ;;  %v3268_v50 = vmul.f32 0.03125, %v1581_v39  ;;  %v1628_v49 = vmul.f32 0.03125, %v1612_v41  ;;  %v1757_v4 = vld [vmem:[%s3467_s2 + $0x68] sm:$0xff] }
 0x20c   :  { %v1516_v3 = vpop.xlane.xlu1 %1515  ;;  %1835 = vperm.xlu1 %2455, %v1733_v61   ;;  %v1767_v46 = vmul.f32 %v3257_v35, %v3197_v53  ;;  %v1686_v53 = vld [vmem:[%s3466_s1 + $0x30] sm:$0xff] }
 0x20d   :  { %v1532_v26 = vadd.f32 %v1516_v3, %v1452_v38  ;;  %v1707_v47 = vadd.f32 1e-05, %v1675_v28  ;;  %v1645_v59 = vmul.f32 %v3268_v50, %v3268_v50  ;;  %v1660_v40 = vsub.f32 %v1628_v49, %v1644_v60  ;;  %v1755_v38 = vld [vmem:[%s3467_s2 + $0x58] sm:$0xff]  ;;  %v1693_v28 = vld [vmem:[%s3466_s1 + $0x68] sm:$0xff]  ;;  %v1752_v3 = vld [vmem:[%s3467_s2 + $0x40] sm:$0xff] }
 0x20e   :  { %v1783_v51 = vsub.f32 %v1751_v43, %v1767_v46  ;;  %v1613_v6 = vld [vmem:[#allocation3 + $0x68] sm:$0xff]  ;;  %v1582_v55 = vld [vmem:[#allocation2 + $0x70] sm:$0xff]  ;;  %v1734_v2 = vmul.f32 %v2535_v52, %v1686_v53 }
 0x20f   :  { %1548 = vst.msk [vmem:[#allocation3 + $0x78] sm:$0xff] %vm22_vm0, %v1532_v26  ;;  %2540 = vrsqrt.f32 %v1707_v47  ;;  %v1629_v58 = vmul.f32 0.03125, %v1613_v6  ;;  %v3285_v61 = vmul.f32 0.03125, %v1582_v55  ;;  %v1676_v16 = vmax.f32 %v1660_v40, 0.0  ;;  %v1690_v46 = vld [vmem:[%s3466_s1 + $0x50] sm:$0xff]  ;;  %v1759_v40 = vld [vmem:[%s3467_s2 + $0x78] sm:$0xff] }
 0x210   :  { %1941 = vperm.xlu0 %2454, %v1783_v51   ;;  %1926 = vperm.xlu1 %2455, %v1780_v21   ;;  %2542 = vrsqrt.f32 %v1706_v0  ;;  %v1766_v13 = vmul.f32 %v1734_v2, %v3187_v48  ;;  %v1694_v52 = vld [vmem:[%s3466_s1 + $0x70] sm:$0xff] }
 0x211   :  { %v2537_v62 = vpop.eup %2536  ;;  %v1661_v63 = vsub.f32 %v1629_v58, %v1645_v59  ;;  %v1646_v14 = vmul.f32 %v3285_v61, %v3285_v61  ;;  %v1708_v36 = vadd.f32 1e-05, %v1676_v16  ;;  %v1754_v53 = vld [vmem:[%s3467_s2 + $0x50] sm:$0xff] }
 0x212   :  { %v1737_v1 = vmul.f32 %v2537_v62, %v1689_v57  ;;  %v1583_v42 = vld [vmem:[#allocation2 + $0x78] sm:$0xff]  ;;  %v1614_v7 = vld [vmem:[#allocation3 + $0x70] sm:$0xff]  ;;  %v2539_v11 = vpop.eup %2538 }
 0x213   :  { %v1677_v20 = vmax.f32 %v1661_v63, 0.0  ;;  %v3290_v9 = vmul.f32 0.03125, %v1583_v42  ;;  %v1630_v12 = vmul.f32 0.03125, %v1614_v7  ;;  %v1736_v33 = vmul.f32 %v2539_v11, %v1688_v24  ;;  %v1695_v57 = vld [vmem:[%s3466_s1 + $0x78] sm:$0xff] }
 0x214   :  { %1855 = vperm.xlu0 %2454, %v1737_v1   ;;  %1840 = vperm.xlu1 %2455, %v1734_v2   ;;  %v1769_v10 = vmul.f32 %v1737_v1, %v3219_v30  ;;  %v1750_v30 = vld [vmem:[%s3467_s2 + $0x30] sm:$0xff]  ;;  %v1795_v24 = vld [vmem:[%s3465_s4 + $0x18] sm:$0xff] }
 0x215   :  { %v1709_v15 = vadd.f32 1e-05, %v1677_v20  ;;  %v1662_v22 = vsub.f32 %v1630_v12, %v1646_v14  ;;  %v1647_v27 = vmul.f32 %v3290_v9, %v3290_v9  ;;  %v1782_v32 = vsub.f32 %v1750_v30, %v1766_v13  ;;  %v1793_v12 = vld [vmem:[%s3465_s4 + $0x8] sm:$0xff] }
 0x216   :  { %v1785_v17 = vsub.f32 %v1753_v8, %v1769_v10  ;;  %v1615_v18 = vld [vmem:[#allocation3 + $0x78] sm:$0xff]  ;;  %v1768_v43 = vmul.f32 %v1736_v33, %v3212_v54  ;;  %v1756_v8 = vld [vmem:[%s3467_s2 + $0x60] sm:$0xff] }
 0x217   :  { %2544 = vrsqrt.f32 %v1709_v15  ;;  %v1631_v25 = vmul.f32 0.03125, %v1615_v18  ;;  %v1678_v48 = vmax.f32 %v1662_v22, 0.0 }
 0x218   :  { %1951 = vperm.xlu0 %2454, %v1785_v17   ;;  %1845 = vperm.xlu1 %2455, %v3257_v35   ;;  %v1784_v47 = vsub.f32 %v1752_v3, %v1768_v43 }
 0x219   :  { %v2541_v29 = vpop.eup %2540  ;;  %v1663_v56 = vsub.f32 %v1631_v25, %v1647_v27  ;;  %v1710_v34 = vadd.f32 1e-05, %v1678_v48  ;;  %v1794_v48 = vld [vmem:[%s3465_s4 + $0x10] sm:$0xff] }
 0x21a   :  { %v1739_v31 = vmul.f32 %v2541_v29, %v1691_v19  ;;  %v2543_v44 = vpop.eup %2542 }
 0x21b   :  { %v1679_v37 = vmax.f32 %v1663_v56, 0.0  ;;  %2546 = vrsqrt.f32 %v1710_v34  ;;  %v1738_v54 = vmul.f32 %v2543_v44, %v1690_v46 }
 0x21c   :  { %1865 = vperm.xlu0 %2454, %v1739_v31   ;;  %1936 = vperm.xlu1 %2455, %v1782_v32   ;;  %v1771_v39 = vmul.f32 %v1739_v31, %v3243_v5  ;;  %2548 = vrsqrt.f32 %v1708_v36 }
 0x21d   :  { %v1711_v41 = vadd.f32 1e-05, %v1679_v37  ;;  %v1770_v6 = vmul.f32 %v1738_v54, %v3245_v23  ;;  %v1758_v23 = vld [vmem:[%s3467_s2 + $0x70] sm:$0xff] }
 0x21e   :  { %v1787_v35 = vsub.f32 %v1755_v38, %v1771_v39 }
 0x21f   :  { %2550 = vrsqrt.f32 %v1711_v41  ;;  %v1786_v63 = vsub.f32 %v1754_v53, %v1770_v6  ;;  %v1801_v6 = vld [vmem:[%s3465_s4 + $0x48] sm:$0xff] }
 0x220   :  { %1961 = vperm.xlu0 %2454, %v1787_v35   ;;  %1850 = vperm.xlu1 %2455, %v1736_v33   ;;  %v1797_v35 = vld [vmem:[%s3465_s4 + $0x28] sm:$0xff] }
 0x221   :  { %v2545_v5 = vpop.eup %2544 }
 0x222   :  { %v1741_v26 = vmul.f32 %v2545_v5, %v1693_v28  ;;  %v1796_v28 = vld [vmem:[%s3465_s4 + $0x20] sm:$0xff] }
 0x224   :  { %1875 = vperm.xlu0 %2454, %v1741_v26   ;;  %1946 = vperm.xlu1 %2455, %v1784_v47   ;;  %v1773_v49 = vmul.f32 %v1741_v26, %v3268_v50  ;;  %v1692_v50 = vld [vmem:[%s3466_s1 + $0x60] sm:$0xff] }
 0x225   :  { %v2547_v51 = vpop.eup %2546 }
 0x226   :  { %v1789_v21 = vsub.f32 %v1757_v4, %v1773_v49  ;;  %v2549_v55 = vpop.eup %2548  ;;  %v1742_v58 = vmul.f32 %v2547_v51, %v1694_v52 }
 0x227   :  { %v1740_v0 = vmul.f32 %v2549_v55, %v1692_v50 }
 0x228   :  { %1971 = vperm.xlu0 %2454, %v1789_v21   ;;  %1860 = vperm.xlu1 %2455, %v1738_v54   ;;  %v1774_v60 = vmul.f32 %v1742_v58, %v3285_v61 }
 0x229   :  { %v2551_v59 = vpop.eup %2550  ;;  %v1772_v7 = vmul.f32 %v1740_v0, %v3270_v45  ;;  %v1792_v45 = vld [vmem:[%s3465_s4] sm:$0xff] }
 0x22a   :  { %v1743_v62 = vmul.f32 %v2551_v59, %v1695_v57  ;;  %v1790_v1 = vsub.f32 %v1758_v23, %v1774_v60  ;;  %v1799_v57 = vld [vmem:[%s3465_s4 + $0x38] sm:$0xff]  ;;  %v1798_v59 = vld [vmem:[%s3465_s4 + $0x30] sm:$0xff] }
 0x22b   :  { %v1788_v61 = vsub.f32 %v1756_v8, %v1772_v7  ;;  %v1803_v7 = vld [vmem:[%s3465_s4 + $0x58] sm:$0xff] }
 0x22c   :  { %1885 = vperm.xlu0 %2454, %v1743_v62   ;;  %1956 = vperm.xlu1 %2455, %v1786_v63   ;;  %v1775_v2 = vmul.f32 %v1743_v62, %v3290_v9 }
 0x22e   :  { %v1791_v42 = vsub.f32 %v1759_v40, %v1775_v2 }
 0x230   :  { %1981 = vperm.xlu0 %2454, %v1791_v42   ;;  %1870 = vperm.xlu1 %2455, %v1740_v0  }
 0x234   :  { %1966 = vperm.xlu1 %2455, %v1788_v61  }
 0x238   :  { %1880 = vperm.xlu1 %2455, %v1742_v58  }
 0x23c   :  { %1976 = vperm.xlu1 %2455, %v1790_v1  }
 0x271   :  { %v1816_v20 = vpop.permute.xlu1 %1815 }
 0x272   :  { %v1889_v9 = vmul.f32 %v1816_v20, %v1793_v12 }
 0x273   :  { %v1811_v10 = vpop.permute.xlu0 %1810 }
 0x274   :  { %v1888_v14 = vmul.f32 %v1811_v10, %v1792_v45 }
 0x277   :  { %v1907_v15 = vpop.permute.xlu1 %1906  ;;  %v1912_v16 = vpop.permute.xlu0 %1911 }
 0x278   :  { %v1984_v11 = vadd.f32 %v1907_v15, %v1888_v14  ;;  %v1985_v17 = vadd.f32 %v1912_v16, %v1889_v9  ;;  %v1800_v14 = vld [vmem:[%s3465_s4 + $0x40] sm:$0xff] }
 0x27a   :  { %vm2000_vm2 = vcmp.ge.f32.partialorder %v1984_v11, 0.0  ;;  %v2016_v13 = vmul.f32 0.2, %v1984_v11  ;;  %vm2001_vm3 = vcmp.ge.f32.partialorder %v1985_v17, 0.0  ;;  %v2017_v18 = vmul.f32 0.2, %v1985_v17 }
 0x27b   :  { %v1821_v22 = vpop.permute.xlu1 %1820 }
 0x27c   :  { %v2032_v19 = vsel %vm2000_vm2, %v1984_v11, %v2016_v13  ;;  %v2033_v30 = vsel %vm2001_vm3, %v1985_v17, %v2017_v18  ;;  %v1890_v56 = vmul.f32 %v1821_v22, %v1794_v48  ;;  %v1805_v22 = vld [vmem:[%s3465_s4 + $0x68] sm:$0xff] }
 0x27d   :  { %2048 = vst.msk [vmem:[%s3465_s4] sm:$0xff] %vm1355_vm1, %v2032_v19  ;;  %2049 = vst.msk [vmem:[%s3465_s4 + $0x8] sm:$0xff] %vm1355_vm1, %v2033_v30 }
 0x27f   :  { %v1826_v25 = vpop.permute.xlu1 %1825  ;;  %v1922_v29 = vpop.permute.xlu0 %1921 }
 0x280   :  { %v1891_v27 = vmul.f32 %v1826_v25, %v1795_v24 }
 0x282   :  { %v1987_v36 = vadd.f32 %v1922_v29, %v1891_v27  ;;  %v1802_v29 = vld [vmem:[%s3465_s4 + $0x50] sm:$0xff] }
 0x283   :  { %v1917_v31 = vpop.permute.xlu1 %1916 }
 0x284   :  { %vm2003_vm4 = vcmp.ge.f32.partialorder %v1987_v36, 0.0  ;;  %v2019_v32 = vmul.f32 0.2, %v1987_v36  ;;  %v1986_v33 = vadd.f32 %v1917_v31, %v1890_v56 }
 0x286   :  { %v2035_v34 = vsel %vm2003_vm4, %v1987_v36, %v2019_v32  ;;  %vm2002_vm5 = vcmp.ge.f32.partialorder %v1986_v33, 0.0  ;;  %v2018_v38 = vmul.f32 0.2, %v1986_v33 }
 0x287   :  { %2051 = vst.msk [vmem:[%s3465_s4 + $0x18] sm:$0xff] %vm1355_vm1, %v2035_v34  ;;  %v1831_v37 = vpop.permute.xlu1 %1830  ;;  %v1932_v41 = vpop.permute.xlu0 %1931 }
 0x288   :  { %v2034_v39 = vsel %vm2002_vm5, %v1986_v33, %v2018_v38  ;;  %v1892_v3 = vmul.f32 %v1831_v37, %v1796_v28  ;;  %v1807_v38 = vld [vmem:[%s3465_s4 + $0x78] sm:$0xff]  ;;  %v1804_v28 = vld [vmem:[%s3465_s4 + $0x60] sm:$0xff] }
 0x289   :  { %2050 = vst.msk [vmem:[%s3465_s4 + $0x10] sm:$0xff] %vm1355_vm1, %v2034_v39 }
 0x28b   :  { %v1836_v43 = vpop.permute.xlu1 %1835 }
 0x28c   :  { %v1893_v44 = vmul.f32 %v1836_v43, %v1797_v35 }
 0x28e   :  { %v1989_v46 = vadd.f32 %v1932_v41, %v1893_v44 }
 0x28f   :  { %v1927_v5 = vpop.permute.xlu1 %1926  ;;  %v1942_v26 = vpop.permute.xlu0 %1941 }
 0x290   :  { %vm2005_vm6 = vcmp.ge.f32.partialorder %v1989_v46, 0.0  ;;  %v2021_v47 = vmul.f32 0.2, %v1989_v46  ;;  %v1988_v54 = vadd.f32 %v1927_v5, %v1892_v3 }
 0x292   :  { %v2037_v4 = vsel %vm2005_vm6, %v1989_v46, %v2021_v47  ;;  %vm2004_vm7 = vcmp.ge.f32.partialorder %v1988_v54, 0.0  ;;  %v2020_v49 = vmul.f32 0.2, %v1988_v54 }
 0x293   :  { %2053 = vst.msk [vmem:[%s3465_s4 + $0x28] sm:$0xff] %vm1355_vm1, %v2037_v4  ;;  %v1841_v52 = vpop.permute.xlu1 %1840  ;;  %v1856_v51 = vpop.permute.xlu0 %1855 }
 0x294   :  { %v2036_v21 = vsel %vm2004_vm7, %v1988_v54, %v2020_v49  ;;  %v1897_v55 = vmul.f32 %v1856_v51, %v1801_v6  ;;  %v1894_v60 = vmul.f32 %v1841_v52, %v1798_v59  ;;  %v1806_v52 = vld [vmem:[%s3465_s4 + $0x70] sm:$0xff] }
 0x295   :  { %2052 = vst.msk [vmem:[%s3465_s4 + $0x20] sm:$0xff] %vm1355_vm1, %v2036_v21 }
 0x297   :  { %v1846_v53 = vpop.permute.xlu1 %1845  ;;  %v1952_v50 = vpop.permute.xlu0 %1951 }
 0x298   :  { %v1895_v58 = vmul.f32 %v1846_v53, %v1799_v57  ;;  %v1993_v23 = vadd.f32 %v1952_v50, %v1897_v55 }
 0x29a   :  { %v1991_v62 = vadd.f32 %v1942_v26, %v1895_v58  ;;  %vm2009_vm8 = vcmp.ge.f32.partialorder %v1993_v23, 0.0  ;;  %v2025_v63 = vmul.f32 0.2, %v1993_v23 }
 0x29b   :  { %v1937_v0 = vpop.permute.xlu1 %1936  ;;  %v1866_v40 = vpop.permute.xlu0 %1865 }
 0x29c   :  { %vm2007_vm9 = vcmp.ge.f32.partialorder %v1991_v62, 0.0  ;;  %v2023_v1 = vmul.f32 0.2, %v1991_v62  ;;  %v2041_v2 = vsel %vm2009_vm8, %v1993_v23, %v2025_v63  ;;  %v1990_v42 = vadd.f32 %v1937_v0, %v1894_v60 }
 0x29d   :  { %2057 = vst.msk [vmem:[%s3465_s4 + $0x48] sm:$0xff] %vm1355_vm1, %v2041_v2  ;;  %v1899_v20 = vmul.f32 %v1866_v40, %v1803_v7 }
 0x29e   :  { %v2039_v8 = vsel %vm2007_vm9, %v1991_v62, %v2023_v1  ;;  %vm2006_vm10 = vcmp.ge.f32.partialorder %v1990_v42, 0.0  ;;  %v2022_v61 = vmul.f32 0.2, %v1990_v42 }
 0x29f   :  { %2055 = vst.msk [vmem:[%s3465_s4 + $0x38] sm:$0xff] %vm1355_vm1, %v2039_v8  ;;  %v1851_v10 = vpop.permute.xlu1 %1850  ;;  %v1962_v12 = vpop.permute.xlu0 %1961 }
 0x2a0   :  { %v2038_v45 = vsel %vm2006_vm10, %v1990_v42, %v2022_v61  ;;  %v1995_v9 = vadd.f32 %v1962_v12, %v1899_v20  ;;  %v1896_v15 = vmul.f32 %v1851_v10, %v1800_v14 }
 0x2a1   :  { %2054 = vst.msk [vmem:[%s3465_s4 + $0x30] sm:$0xff] %vm1355_vm1, %v2038_v45 }
 0x2a2   :  { %vm2011_vm11 = vcmp.ge.f32.partialorder %v1995_v9, 0.0  ;;  %v2027_v16 = vmul.f32 0.2, %v1995_v9 }
 0x2a3   :  { %v1947_v11 = vpop.permute.xlu1 %1946  ;;  %v1876_v17 = vpop.permute.xlu0 %1875 }
 0x2a4   :  { %v2043_v13 = vsel %vm2011_vm11, %v1995_v9, %v2027_v16  ;;  %v1992_v18 = vadd.f32 %v1947_v11, %v1896_v15  ;;  %v1901_v30 = vmul.f32 %v1876_v17, %v1805_v22 }
 0x2a5   :  { %2059 = vst.msk [vmem:[%s3465_s4 + $0x58] sm:$0xff] %vm1355_vm1, %v2043_v13 }
 0x2a6   :  { %vm2008_vm12 = vcmp.ge.f32.partialorder %v1992_v18, 0.0  ;;  %v2024_v19 = vmul.f32 0.2, %v1992_v18 }
 0x2a7   :  { %v1861_v24 = vpop.permute.xlu1 %1860  ;;  %v1972_v25 = vpop.permute.xlu0 %1971 }
 0x2a8   :  { %v2040_v27 = vsel %vm2008_vm12, %v1992_v18, %v2024_v19  ;;  %v1997_v48 = vadd.f32 %v1972_v25, %v1901_v30  ;;  %v1898_v56 = vmul.f32 %v1861_v24, %v1802_v29 }
 0x2a9   :  { %2056 = vst.msk [vmem:[%s3465_s4 + $0x40] sm:$0xff] %vm1355_vm1, %v2040_v27 }
 0x2aa   :  { %vm2013_vm13 = vcmp.ge.f32.partialorder %v1997_v48, 0.0  ;;  %v2029_v36 = vmul.f32 0.2, %v1997_v48 }
 0x2ab   :  { %v1957_v31 = vpop.permute.xlu1 %1956  ;;  %v1886_v32 = vpop.permute.xlu0 %1885 }
 0x2ac   :  { %v2045_v33 = vsel %vm2013_vm13, %v1997_v48, %v2029_v36  ;;  %v1994_v34 = vadd.f32 %v1957_v31, %v1898_v56  ;;  %v1903_v39 = vmul.f32 %v1886_v32, %v1807_v38 }
 0x2ad   :  { %2061 = vst.msk [vmem:[%s3465_s4 + $0x68] sm:$0xff] %vm1355_vm1, %v2045_v33 }
 0x2ae   :  { %vm2010_vm14 = vcmp.ge.f32.partialorder %v1994_v34, 0.0  ;;  %v2026_v37 = vmul.f32 0.2, %v1994_v34 }
 0x2af   :  { %v1871_v41 = vpop.permute.xlu1 %1870  ;;  %v1982_v35 = vpop.permute.xlu0 %1981 }
 0x2b0   :  { %v2042_v43 = vsel %vm2010_vm14, %v1994_v34, %v2026_v37  ;;  %v1999_v44 = vadd.f32 %v1982_v35, %v1903_v39  ;;  %v1900_v3 = vmul.f32 %v1871_v41, %v1804_v28 }
 0x2b1   :  { %2058 = vst.msk [vmem:[%s3465_s4 + $0x50] sm:$0xff] %vm1355_vm1, %v2042_v43 }
 0x2b2   :  { %vm2015_vm15 = vcmp.ge.f32.partialorder %v1999_v44, 0.0  ;;  %v2031_v46 = vmul.f32 0.2, %v1999_v44 }
 0x2b3   :  { %v1967_v5 = vpop.permute.xlu1 %1966 }
 0x2b4   :  { %v2047_v26 = vsel %vm2015_vm15, %v1999_v44, %v2031_v46  ;;  %v1996_v47 = vadd.f32 %v1967_v5, %v1900_v3 }
 0x2b5   :  { %2063 = vst.msk [vmem:[%s3465_s4 + $0x78] sm:$0xff] %vm1355_vm1, %v2047_v26 }
 0x2b6   :  { %vm2012_vm0 = vcmp.ge.f32.partialorder %v1996_v47, 0.0  ;;  %v2028_v54 = vmul.f32 0.2, %v1996_v47 }
 0x2b7   :  { %v1881_v4 = vpop.permute.xlu1 %1880 }
 0x2b8   :  { %v2044_v49 = vsel %vm2012_vm0, %v1996_v47, %v2028_v54  ;;  %v1902_v51 = vmul.f32 %v1881_v4, %v1806_v52 }
 0x2b9   :  { %2060 = vst.msk [vmem:[%s3465_s4 + $0x60] sm:$0xff] %vm1355_vm1, %v2044_v49 }
 0x2bb   :  { %v1977_v21 = vpop.permute.xlu1 %1976 }
 0x2bc   :  { %v1998_v6 = vadd.f32 %v1977_v21, %v1902_v51 }
 0x2be   :  { %vm2014_vm2 = vcmp.ge.f32.partialorder %v1998_v6, 0.0  ;;  %v2030_v55 = vmul.f32 0.2, %v1998_v6 }
 0x2c0   :  { %v2046_v57 = vsel %vm2014_vm2, %v1998_v6, %v2030_v55 }
 0x2c1   :  { %2062 = vst.msk [vmem:[%s3465_s4 + $0x70] sm:$0xff] %vm1355_vm1, %v2046_v57 }

// kernel: discriminator_forward.11
= control target key start
LH: loop header
LB: loop body
LE: loop exit
PB: predicated region body
PF: predicated region fallthrough
CT: control target
= control target key end

     0   :  { %v4417_v3 = vmov 0   ;;  %s5470_s0 = inlined_call_operand.vmem [shape: bf16[2048,1], index: 0, kind: input, shape index: {}]   ;;  %s5471_s1 = inlined_call_operand.vmem [shape: bf16[2048,2], index: 1, kind: input, shape index: {}]   ;;  %s5472_s2 = inlined_call_operand.hbm [shape: f32[1,2], index: 2, kind: output, shape index: {}]  }
   0x1   :  { %v4130_v0 = vld [vmem:[%s5470_s0 + $0x8] sm:$0xff]   ;;  %v3107_v1 = vld [vmem:[%s5470_s0] sm:$0xff]   ;;  %v4131_v2 = vld [vmem:[%s5470_s0 + $0x10] sm:$0xff]   ;;  %4392 = vset.pattern.permute.xlu1 %v4417_v3  ;;  %4386 = vset.pattern.permute.xlu0 %v4417_v3 }
   0x2   :  { %v3113_v4 = vunpack.c.h.bf16 %v4130_v0  ;;  %v3108_v5 = vunpack.c.l.bf16 %v3107_v1  ;;  %v3109_v6 = vunpack.c.h.bf16 %v3107_v1  ;;  %v3116_v8 = vunpack.c.l.bf16 %v4131_v2  ;;  %v4132_v9 = vld [vmem:[%s5470_s0 + $0x18] sm:$0xff]   ;;  %v4133_v12 = vld [vmem:[%s5470_s0 + $0x20] sm:$0xff]   ;;  %v4134_v15 = vld [vmem:[%s5470_s0 + $0x28] sm:$0xff]  }
   0x3   :  { %v3112_v10 = vunpack.c.l.bf16 %v4130_v0  ;;  %v3120_v11 = vunpack.c.l.bf16 %v4132_v9  ;;  %v3117_v13 = vunpack.c.h.bf16 %v4131_v2  ;;  %v3124_v14 = vunpack.c.l.bf16 %v4133_v12 }
   0x4   :  { %1053 = vperm.xlu1 %4392, %v3113_v4   ;;  %v4387_v7 = vpack.i.bf16 %v3109_v6, %v3108_v5  ;;  %v3121_v16 = vunpack.c.h.bf16 %v4132_v9 }
   0x6   :  { %4388 = vperm.xlu0 %4386, %v4387_v7  }
   0x8   :  { %1058 = vperm.xlu1 %4392, %v3116_v8  }
   0xa   :  { %1048 = vperm.xlu0 %4386, %v3112_v10  }
   0xc   :  { %1068 = vperm.xlu1 %4392, %v3120_v11  }
   0xe   :  { %1063 = vperm.xlu0 %4386, %v3117_v13  }
   0xf   :  { %7 = vsyncpa [#allocation3], 0  ;;  %v3128_v17 = vunpack.c.l.bf16 %v4134_v15  ;;  %v4135_v18 = vld [vmem:[%s5470_s0 + $0x30] sm:$0xff]   ;;  %v3125_v19 = vunpack.c.h.bf16 %v4133_v12  ;;  %v4136_v21 = vld [vmem:[%s5470_s0 + $0x38] sm:$0xff]   ;;  %v3129_v22 = vunpack.c.h.bf16 %v4134_v15  ;;  %vm2572_vm0 = vcmask 15360  }
  0x10   :  { %1078 = vperm.xlu1 %4392, %v3124_v14   ;;  %v3132_v20 = vunpack.c.l.bf16 %v4135_v18  ;;  %v3136_v23 = vunpack.c.l.bf16 %v4136_v21  ;;  %v4137_v24 = vld [vmem:[%s5470_s0 + $0x40] sm:$0xff]   ;;  %v3133_v25 = vunpack.c.h.bf16 %v4135_v18  ;;  %v4138_v27 = vld [vmem:[%s5470_s0 + $0x48] sm:$0xff]   ;;  %v3137_v28 = vunpack.c.h.bf16 %v4136_v21  ;;  %v4139_v30 = vld [vmem:[%s5470_s0 + $0x50] sm:$0xff]  }
  0x11   :  { %v3140_v26 = vunpack.c.l.bf16 %v4137_v24  ;;  %v3144_v29 = vunpack.c.l.bf16 %v4138_v27  ;;  %v3141_v31 = vunpack.c.h.bf16 %v4137_v24  ;;  %v3148_v32 = vunpack.c.l.bf16 %v4139_v30  ;;  %v4140_v33 = vld [vmem:[%s5470_s0 + $0x58] sm:$0xff]   ;;  %v4141_v36 = vld [vmem:[%s5470_s0 + $0x60] sm:$0xff]   ;;  %v4142_v39 = vld [vmem:[%s5470_s0 + $0x68] sm:$0xff]  }
  0x12   :  { %1073 = vperm.xlu0 %4386, %v3121_v16   ;;  %v3145_v34 = vunpack.c.h.bf16 %v4138_v27  ;;  %v3152_v35 = vunpack.c.l.bf16 %v4140_v33  ;;  %v3149_v37 = vunpack.c.h.bf16 %v4139_v30  ;;  %v3156_v38 = vunpack.c.l.bf16 %v4141_v36  ;;  %v4143_v42 = vld [vmem:[%s5470_s0 + $0x70] sm:$0xff]   ;;  %v4144_v45 = vld [vmem:[%s5470_s0 + $0x78] sm:$0xff]   ;;  %v4145_v48 = vld [vmem:[%s5470_s0 + $0x80] sm:$0xff]  }
  0x13   :  { %v3153_v40 = vunpack.c.h.bf16 %v4140_v33  ;;  %v3160_v41 = vunpack.c.l.bf16 %v4142_v39  ;;  %v3157_v43 = vunpack.c.h.bf16 %v4141_v36  ;;  %v3164_v44 = vunpack.c.l.bf16 %v4143_v42  ;;  %v4146_v51 = vld [vmem:[%s5470_s0 + $0x88] sm:$0xff]   ;;  %v4147_v54 = vld [vmem:[%s5470_s0 + $0x90] sm:$0xff]   ;;  %v4148_v57 = vld [vmem:[%s5470_s0 + $0x98] sm:$0xff]  }
  0x14   :  { %1088 = vperm.xlu1 %4392, %v3128_v17   ;;  %v3161_v46 = vunpack.c.h.bf16 %v4142_v39  ;;  %v3168_v47 = vunpack.c.l.bf16 %v4144_v45  ;;  %v3165_v49 = vunpack.c.h.bf16 %v4143_v42  ;;  %v3172_v50 = vunpack.c.l.bf16 %v4145_v48  ;;  %v4149_v60 = vld [vmem:[%s5470_s0 + $0xa0] sm:$0xff]   ;;  %v4150_v63 = vld [vmem:[%s5470_s0 + $0xa8] sm:$0xff]   ;;  %v4151_v2 = vld [vmem:[%s5470_s0 + $0xb0] sm:$0xff]  }
  0x15   :  { %v3169_v52 = vunpack.c.h.bf16 %v4144_v45  ;;  %v3176_v53 = vunpack.c.l.bf16 %v4146_v51  ;;  %v3173_v55 = vunpack.c.h.bf16 %v4145_v48  ;;  %v3180_v56 = vunpack.c.l.bf16 %v4147_v54  ;;  %v4152_v5 = vld [vmem:[%s5470_s0 + $0xb8] sm:$0xff]   ;;  %v4153_v8 = vld [vmem:[%s5470_s0 + $0xc0] sm:$0xff]   ;;  %v4154_v11 = vld [vmem:[%s5470_s0 + $0xc8] sm:$0xff]  }
  0x16   :  { %1083 = vperm.xlu0 %4386, %v3125_v19   ;;  %v3177_v58 = vunpack.c.h.bf16 %v4146_v51  ;;  %v3184_v59 = vunpack.c.l.bf16 %v4148_v57  ;;  %v3181_v61 = vunpack.c.h.bf16 %v4147_v54  ;;  %v3188_v62 = vunpack.c.l.bf16 %v4149_v60  ;;  %v4155_v14 = vld [vmem:[%s5470_s0 + $0xd0] sm:$0xff]   ;;  %v4156_v17 = vld [vmem:[%s5470_s0 + $0xd8] sm:$0xff]  }
  0x17   :  { %v3185_v0 = vunpack.c.h.bf16 %v4148_v57  ;;  %v3192_v1 = vunpack.c.l.bf16 %v4150_v63  ;;  %v3189_v3 = vunpack.c.h.bf16 %v4149_v60  ;;  %v3196_v4 = vunpack.c.l.bf16 %v4151_v2  ;;  %v4163_v39 = vld [vmem:[%s5470_s0 + $0x110] sm:$0xff]   ;;  %v4259_v60 = vld [vmem:[%s5471_s1 + $0x18] sm:$0xff]  }
  0x18   :  { %1098 = vperm.xlu1 %4392, %v3132_v20   ;;  %v3193_v6 = vunpack.c.h.bf16 %v4150_v63  ;;  %v3200_v7 = vunpack.c.l.bf16 %v4152_v5  ;;  %v3197_v9 = vunpack.c.h.bf16 %v4151_v2  ;;  %v3204_v10 = vunpack.c.l.bf16 %v4153_v8  ;;  %v4157_v20 = vld [vmem:[%s5470_s0 + $0xe0] sm:$0xff]   ;;  %v4258_v48 = vld [vmem:[%s5471_s1 + $0x10] sm:$0xff]  }
  0x19   :  { %v3201_v12 = vunpack.c.h.bf16 %v4152_v5  ;;  %v3208_v13 = vunpack.c.l.bf16 %v4154_v11  ;;  %v3205_v15 = vunpack.c.h.bf16 %v4153_v8  ;;  %v3212_v16 = vunpack.c.l.bf16 %v4155_v14  ;;  %v4165_v63 = vld [vmem:[%s5470_s0 + $0x120] sm:$0xff]  }
  0x1a   :  { %1093 = vperm.xlu0 %4386, %v3129_v22   ;;  %v3209_v18 = vunpack.c.h.bf16 %v4154_v11  ;;  %v3216_v19 = vunpack.c.l.bf16 %v4156_v17  ;;  %v3213_v21 = vunpack.c.h.bf16 %v4155_v14  ;;  %v3220_v22 = vunpack.c.l.bf16 %v4157_v20 }
  0x1b   :  { %v3217_v24 = vunpack.c.h.bf16 %v4156_v17  ;;  %v3221_v27 = vunpack.c.h.bf16 %v4157_v20  ;;  %v3244_v45 = vunpack.c.l.bf16 %v4163_v39  ;;  %v3628_v57 = vunpack.c.l.bf16 %v4258_v48 }
  0x1c   :  { %1108 = vperm.xlu1 %4392, %v3136_v23   ;;  %v4158_v23 = vld [vmem:[%s5470_s0 + $0xe8] sm:$0xff]   ;;  %v3632_v8 = vunpack.c.l.bf16 %v4259_v60  ;;  %vm3090_vm1 = vcmask 8192  }
  0x1d   :  { %v3225_v30 = vunpack.c.h.bf16 %v4158_v23 }
  0x1e   :  { %1103 = vperm.xlu0 %4386, %v3133_v25   ;;  %v3224_v25 = vunpack.c.l.bf16 %v4158_v23 }
  0x20   :  { %1118 = vperm.xlu1 %4392, %v3140_v26   ;;  %v4159_v26 = vld [vmem:[%s5470_s0 + $0xf0] sm:$0xff]  }
  0x21   :  { %v3229_v33 = vunpack.c.h.bf16 %v4159_v26 }
  0x22   :  { %1113 = vperm.xlu0 %4386, %v3137_v28   ;;  %v3228_v28 = vunpack.c.l.bf16 %v4159_v26  ;;  %v4261_v26 = vld [vmem:[%s5471_s1 + $0x28] sm:$0xff]  }
  0x24   :  { %1128 = vperm.xlu1 %4392, %v3144_v29   ;;  %v4160_v29 = vld [vmem:[%s5470_s0 + $0xf8] sm:$0xff]  }
  0x25   :  { %v3233_v36 = vunpack.c.h.bf16 %v4160_v29 }
  0x26   :  { %1123 = vperm.xlu0 %4386, %v3141_v31   ;;  %v3232_v31 = vunpack.c.l.bf16 %v4160_v29 }
  0x28   :  { %1138 = vperm.xlu1 %4392, %v3148_v32   ;;  %v4161_v32 = vld [vmem:[%s5470_s0 + $0x100] sm:$0xff]  }
  0x2a   :  { %1133 = vperm.xlu0 %4386, %v3145_v34   ;;  %v3236_v34 = vunpack.c.l.bf16 %v4161_v32 }
  0x2c   :  { %1148 = vperm.xlu1 %4392, %v3152_v35   ;;  %v4162_v35 = vld [vmem:[%s5470_s0 + $0x108] sm:$0xff]  }
  0x2e   :  { %1143 = vperm.xlu0 %4386, %v3149_v37   ;;  %v3240_v37 = vunpack.c.l.bf16 %v4162_v35 }
  0x30   :  { %1158 = vperm.xlu1 %4392, %v3156_v38   ;;  %v3619_v38 = vld [vmem:[%s5471_s1] sm:$0xff]  }
  0x32   :  { %1153 = vperm.xlu0 %4386, %v3153_v40   ;;  %v4257_v40 = vld [vmem:[%s5471_s1 + $0x8] sm:$0xff]  }
  0x34   :  { %1168 = vperm.xlu1 %4392, %v3160_v41   ;;  %v3237_v41 = vunpack.c.h.bf16 %v4161_v32 }
  0x36   :  { %1163 = vperm.xlu0 %4386, %v3157_v43   ;;  %v3620_v43 = vunpack.c.l.bf16 %v3619_v38 }
  0x38   :  { %1178 = vperm.xlu1 %4392, %v3164_v44   ;;  %v3621_v44 = vunpack.c.h.bf16 %v3619_v38 }
  0x3a   :  { %1173 = vperm.xlu0 %4386, %v3161_v46   ;;  %v3625_v46 = vunpack.c.h.bf16 %v4257_v40 }
  0x3c   :  { %1188 = vperm.xlu1 %4392, %v3168_v47  }
  0x3e   :  { %1183 = vperm.xlu0 %4386, %v3165_v49   ;;  %v4164_v49 = vld [vmem:[%s5470_s0 + $0x118] sm:$0xff]  }
  0x3f   :  { %v3249_v17 = vunpack.c.h.bf16 %v4164_v49 }
  0x40   :  { %1198 = vperm.xlu1 %4392, %v3172_v50  }
  0x42   :  { %1193 = vperm.xlu0 %4386, %v3169_v52   ;;  %v3624_v52 = vunpack.c.l.bf16 %v4257_v40  ;;  %v4262_v40 = vld [vmem:[%s5471_s1 + $0x30] sm:$0xff]  }
  0x44   :  { %1208 = vperm.xlu1 %4392, %v3176_v53   ;;  %v3241_v53 = vunpack.c.h.bf16 %v4162_v35 }
  0x46   :  { %1203 = vperm.xlu0 %4386, %v3173_v55  }
  0x48   :  { %1218 = vperm.xlu1 %4392, %v3180_v56  }
  0x4a   :  { %1213 = vperm.xlu0 %4386, %v3177_v58   ;;  %v3248_v58 = vunpack.c.l.bf16 %v4164_v49 }
  0x4c   :  { %1228 = vperm.xlu1 %4392, %v3184_v59  }
  0x4e   :  { %1223 = vperm.xlu0 %4386, %v3181_v61   ;;  %v3629_v61 = vunpack.c.h.bf16 %v4258_v48 }
  0x50   :  { %1238 = vperm.xlu1 %4392, %v3188_v62   ;;  %v3245_v62 = vunpack.c.h.bf16 %v4163_v39 }
  0x52   :  { %1233 = vperm.xlu0 %4386, %v3185_v0  }
  0x54   :  { %1248 = vperm.xlu1 %4392, %v3192_v1  }
  0x56   :  { %1243 = vperm.xlu0 %4386, %v3189_v3  }
  0x58   :  { %1258 = vperm.xlu1 %4392, %v3196_v4  }
  0x5a   :  { %1253 = vperm.xlu0 %4386, %v3193_v6  }
  0x5c   :  { %1268 = vperm.xlu1 %4392, %v3200_v7  }
  0x5e   :  { %1263 = vperm.xlu0 %4386, %v3197_v9   ;;  %v3252_v9 = vunpack.c.l.bf16 %v4165_v63 }
  0x60   :  { %1278 = vperm.xlu1 %4392, %v3204_v10  }
  0x62   :  { %1273 = vperm.xlu0 %4386, %v3201_v12   ;;  %v4260_v12 = vld [vmem:[%s5471_s1 + $0x20] sm:$0xff]  }
  0x64   :  { %1288 = vperm.xlu1 %4392, %v3208_v13   ;;  %v4166_v13 = vld [vmem:[%s5470_s0 + $0x128] sm:$0xff]  }
  0x65   :  { %v3256_v23 = vunpack.c.l.bf16 %v4166_v13 }
  0x66   :  { %1283 = vperm.xlu0 %4386, %v3205_v15  }
  0x68   :  { %1298 = vperm.xlu1 %4392, %v3212_v16   ;;  %v3633_v16 = vunpack.c.h.bf16 %v4259_v60 }
  0x6a   :  { %1293 = vperm.xlu0 %4386, %v3209_v18  }
  0x6c   :  { %1308 = vperm.xlu1 %4392, %v3216_v19  }
  0x6e   :  { %1303 = vperm.xlu0 %4386, %v3213_v21  }
  0x70   :  { %1318 = vperm.xlu1 %4392, %v3220_v22   ;;  %v3636_v22 = vunpack.c.l.bf16 %v4260_v12 }
  0x72   :  { %1313 = vperm.xlu0 %4386, %v3217_v24  }
  0x74   :  { %1328 = vperm.xlu1 %4392, %v3224_v25  }
  0x76   :  { %1323 = vperm.xlu0 %4386, %v3221_v27   ;;  %v4167_v27 = vld [vmem:[%s5470_s0 + $0x130] sm:$0xff]  }
  0x78   :  { %1338 = vperm.xlu1 %4392, %v3228_v28  }
  0x7a   :  { %1333 = vperm.xlu0 %4386, %v3225_v30   ;;  %v3637_v30 = vunpack.c.h.bf16 %v4260_v12 }
  0x7c   :  { %1348 = vperm.xlu1 %4392, %v3232_v31   ;;  %v3253_v31 = vunpack.c.h.bf16 %v4165_v63 }
  0x7e   :  { %1343 = vperm.xlu0 %4386, %v3229_v33  }
  0x80   :  { %1358 = vperm.xlu1 %4392, %v3236_v34  }
  0x82   :  { %1353 = vperm.xlu0 %4386, %v3233_v36   ;;  %v3640_v36 = vunpack.c.l.bf16 %v4261_v26 }
  0x83   :  { %v1054_v42 = vpop.permute.xlu1 %1053 }
  0x84   :  { %1368 = vperm.xlu1 %4392, %v3240_v37   ;;  %v2319_v0 = vmul.f32 %v3625_v46, %v1054_v42  ;;  %v3260_v37 = vunpack.c.l.bf16 %v4167_v27 }
  0x85   :  { %v4389_v47 = vpop.permute.xlu0 %4388 }
  0x86   :  { %v4391_v50 = vunpack.i.h.bf16 %v4389_v47  ;;  %v4390_v51 = vunpack.i.l.bf16 %v4389_v47  ;;  %1363 = vperm.xlu0 %4386, %v3237_v41   ;;  %v2578_v14 = vsel %vm2572_vm0, %v2319_v0, 0.0  ;;  %v4168_v41 = vld [vmem:[%s5470_s0 + $0x138] sm:$0xff]  }
  0x87   :  { %v1059_v54 = vpop.permute.xlu1 %1058 }
  0x88   :  { %v2317_v55 = vmul.f32 %v4391_v50, %v3621_v44  ;;  %v2316_v56 = vmul.f32 %v4390_v51, %v3620_v43  ;;  %1378 = vperm.xlu1 %4392, %v3244_v45   ;;  %v2320_v6 = vmul.f32 %v3628_v57, %v1059_v54  ;;  %v3641_v44 = vunpack.c.h.bf16 %v4261_v26  ;;  %v4263_v54 = vld [vmem:[%s5471_s1 + $0x38] sm:$0xff]  }
  0x89   :  { %v1049_v59 = vpop.permute.xlu0 %1048  ;;  %v3257_v45 = vunpack.c.h.bf16 %v4166_v13  ;;  %v3644_v50 = vunpack.c.l.bf16 %v4262_v40  ;;  %v3264_v51 = vunpack.c.l.bf16 %v4168_v41  ;;  %v3648_v0 = vunpack.c.l.bf16 %v4263_v54 }
  0x8a   :  { %v2574_v1 = vsel %vm2572_vm0, %v2317_v55, 0.0  ;;  %v2573_v2 = vsel %vm2572_vm0, %v2316_v56, 0.0  ;;  %v2318_v3 = vmul.f32 %v3624_v52, %v1049_v59  ;;  %1373 = vperm.xlu0 %4386, %v3241_v53   ;;  %v2580_v20 = vsel %vm2572_vm0, %v2320_v6, 0.0  ;;  %v4169_v55 = vld [vmem:[%s5470_s0 + $0x140] sm:$0xff]  }
  0x8b   :  { %v2575_v4 = vadd.f32 %v2574_v1, %v2573_v2  ;;  %v1069_v5 = vpop.permute.xlu1 %1068  ;;  %v3261_v59 = vunpack.c.h.bf16 %v4167_v27  ;;  %v3268_v1 = vunpack.c.l.bf16 %v4169_v55 }
  0x8c   :  { %v2576_v7 = vsel %vm2572_vm0, %v2318_v3, 0.0  ;;  %1388 = vperm.xlu1 %4392, %v3248_v58   ;;  %v2322_v21 = vmul.f32 %v3632_v8, %v1069_v5  ;;  %v3645_v58 = vunpack.c.h.bf16 %v4262_v40  ;;  %v4170_v5 = vld [vmem:[%s5470_s0 + $0x148] sm:$0xff]   ;;  %v3649_v8 = vunpack.c.h.bf16 %v4263_v54 }
  0x8d   :  { %v2577_v10 = vadd.f32 %v2576_v7, %v2575_v4  ;;  %v1064_v11 = vpop.permute.xlu0 %1063  ;;  %v4264_v4 = vld [vmem:[%s5471_s1 + $0x40] sm:$0xff]  }
  0x8e   :  { %v2321_v15 = vmul.f32 %v3629_v61, %v1064_v11  ;;  %1383 = vperm.xlu0 %4386, %v3245_v62   ;;  %v2584_v34 = vsel %vm2572_vm0, %v2322_v21, 0.0 }
  0x8f   :  { %v2579_v18 = vadd.f32 %v2578_v14, %v2577_v10  ;;  %v1079_v19 = vpop.permute.xlu1 %1078  ;;  %v3652_v14 = vunpack.c.l.bf16 %v4264_v4 }
  0x90   :  { %1398 = vperm.xlu1 %4392, %v3252_v9   ;;  %v2582_v28 = vsel %vm2572_vm0, %v2321_v15, 0.0  ;;  %v2324_v35 = vmul.f32 %v3636_v22, %v1079_v19  ;;  %v3265_v9 = vunpack.c.h.bf16 %v4168_v41  ;;  %v3272_v15 = vunpack.c.l.bf16 %v4170_v5  ;;  %v4171_v19 = vld [vmem:[%s5470_s0 + $0x150] sm:$0xff]  }
  0x91   :  { %v2581_v24 = vadd.f32 %v2580_v20, %v2579_v18  ;;  %v1074_v25 = vpop.permute.xlu0 %1073  ;;  %v4265_v18 = vld [vmem:[%s5471_s1 + $0x48] sm:$0xff]   ;;  %v3653_v22 = vunpack.c.h.bf16 %v4264_v4 }
  0x92   :  { %v2323_v29 = vmul.f32 %v3633_v16, %v1074_v25  ;;  %1393 = vperm.xlu0 %4386, %v3249_v17   ;;  %v2588_v48 = vsel %vm2572_vm0, %v2324_v35, 0.0 }
  0x93   :  { %v2583_v32 = vadd.f32 %v2582_v28, %v2581_v24  ;;  %v1089_v33 = vpop.permute.xlu1 %1088  ;;  %v3656_v28 = vunpack.c.l.bf16 %v4265_v18 }
  0x94   :  { %1408 = vperm.xlu1 %4392, %v3256_v23   ;;  %v2586_v42 = vsel %vm2572_vm0, %v2323_v29, 0.0  ;;  %v2326_v49 = vmul.f32 %v3640_v36, %v1089_v33  ;;  %v3269_v23 = vunpack.c.h.bf16 %v4169_v55  ;;  %v3276_v29 = vunpack.c.l.bf16 %v4171_v19  ;;  %v4172_v33 = vld [vmem:[%s5470_s0 + $0x158] sm:$0xff]  }
  0x95   :  { %v2585_v38 = vadd.f32 %v2584_v34, %v2583_v32  ;;  %v1084_v39 = vpop.permute.xlu0 %1083  ;;  %v4266_v32 = vld [vmem:[%s5471_s1 + $0x50] sm:$0xff]   ;;  %v3657_v36 = vunpack.c.h.bf16 %v4265_v18 }
  0x96   :  { %v2325_v43 = vmul.f32 %v3637_v30, %v1084_v39  ;;  %1403 = vperm.xlu0 %4386, %v3253_v31   ;;  %v2592_v62 = vsel %vm2572_vm0, %v2326_v49, 0.0 }
  0x97   :  { %v2587_v46 = vadd.f32 %v2586_v42, %v2585_v38  ;;  %v1099_v47 = vpop.permute.xlu1 %1098  ;;  %v3660_v42 = vunpack.c.l.bf16 %v4266_v32 }
  0x98   :  { %1418 = vperm.xlu1 %4392, %v3260_v37   ;;  %v2590_v56 = vsel %vm2572_vm0, %v2325_v43, 0.0  ;;  %v2328_v63 = vmul.f32 %v3644_v50, %v1099_v47  ;;  %v3273_v37 = vunpack.c.h.bf16 %v4170_v5  ;;  %v3280_v43 = vunpack.c.l.bf16 %v4172_v33  ;;  %v4173_v47 = vld [vmem:[%s5470_s0 + $0x160] sm:$0xff]  }
  0x99   :  { %v2589_v52 = vadd.f32 %v2588_v48, %v2587_v46  ;;  %v1094_v53 = vpop.permute.xlu0 %1093  ;;  %v4267_v46 = vld [vmem:[%s5471_s1 + $0x58] sm:$0xff]   ;;  %v3661_v50 = vunpack.c.h.bf16 %v4266_v32 }
  0x9a   :  { %v2327_v57 = vmul.f32 %v3641_v44, %v1094_v53  ;;  %1413 = vperm.xlu0 %4386, %v3257_v45   ;;  %v2596_v12 = vsel %vm2572_vm0, %v2328_v63, 0.0 }
  0x9b   :  { %v2591_v60 = vadd.f32 %v2590_v56, %v2589_v52  ;;  %v1109_v61 = vpop.permute.xlu1 %1108  ;;  %v3664_v56 = vunpack.c.l.bf16 %v4267_v46 }
  0x9c   :  { %1428 = vperm.xlu1 %4392, %v3264_v51   ;;  %v2594_v6 = vsel %vm2572_vm0, %v2327_v57, 0.0  ;;  %v2330_v13 = vmul.f32 %v3648_v0, %v1109_v61  ;;  %v3277_v51 = vunpack.c.h.bf16 %v4171_v19  ;;  %v3284_v57 = vunpack.c.l.bf16 %v4173_v47  ;;  %v4174_v61 = vld [vmem:[%s5470_s0 + $0x168] sm:$0xff]  }
  0x9d   :  { %v2593_v2 = vadd.f32 %v2592_v62, %v2591_v60  ;;  %v1104_v3 = vpop.permute.xlu0 %1103  ;;  %v4268_v60 = vld [vmem:[%s5471_s1 + $0x60] sm:$0xff]   ;;  %v3665_v0 = vunpack.c.h.bf16 %v4267_v46 }
  0x9e   :  { %v2329_v7 = vmul.f32 %v3645_v58, %v1104_v3  ;;  %1423 = vperm.xlu0 %4386, %v3261_v59   ;;  %v2600_v26 = vsel %vm2572_vm0, %v2330_v13, 0.0 }
  0x9f   :  { %v2595_v10 = vadd.f32 %v2594_v6, %v2593_v2  ;;  %v1119_v11 = vpop.permute.xlu1 %1118  ;;  %v3668_v6 = vunpack.c.l.bf16 %v4268_v60 }
  0xa0   :  { %1438 = vperm.xlu1 %4392, %v3268_v1   ;;  %v2598_v20 = vsel %vm2572_vm0, %v2329_v7, 0.0  ;;  %v2332_v27 = vmul.f32 %v3652_v14, %v1119_v11  ;;  %v3281_v1 = vunpack.c.h.bf16 %v4172_v33  ;;  %v3288_v7 = vunpack.c.l.bf16 %v4174_v61  ;;  %v4175_v11 = vld [vmem:[%s5470_s0 + $0x170] sm:$0xff]  }
  0xa1   :  { %v2597_v16 = vadd.f32 %v2596_v12, %v2595_v10  ;;  %v1114_v17 = vpop.permute.xlu0 %1113  ;;  %v4269_v10 = vld [vmem:[%s5471_s1 + $0x68] sm:$0xff]   ;;  %v3669_v14 = vunpack.c.h.bf16 %v4268_v60 }
  0xa2   :  { %v2331_v21 = vmul.f32 %v3649_v8, %v1114_v17  ;;  %1433 = vperm.xlu0 %4386, %v3265_v9   ;;  %v2604_v40 = vsel %vm2572_vm0, %v2332_v27, 0.0 }
  0xa3   :  { %v2599_v24 = vadd.f32 %v2598_v20, %v2597_v16  ;;  %v1129_v25 = vpop.permute.xlu1 %1128  ;;  %v3672_v20 = vunpack.c.l.bf16 %v4269_v10 }
  0xa4   :  { %1448 = vperm.xlu1 %4392, %v3272_v15   ;;  %v2602_v34 = vsel %vm2572_vm0, %v2331_v21, 0.0  ;;  %v2334_v41 = vmul.f32 %v3656_v28, %v1129_v25  ;;  %v3285_v15 = vunpack.c.h.bf16 %v4173_v47  ;;  %v3292_v21 = vunpack.c.l.bf16 %v4175_v11  ;;  %v4176_v25 = vld [vmem:[%s5470_s0 + $0x178] sm:$0xff]  }
  0xa5   :  { %v2601_v30 = vadd.f32 %v2600_v26, %v2599_v24  ;;  %v1124_v31 = vpop.permute.xlu0 %1123  ;;  %v4270_v24 = vld [vmem:[%s5471_s1 + $0x70] sm:$0xff]   ;;  %v3673_v28 = vunpack.c.h.bf16 %v4269_v10 }
  0xa6   :  { %v2333_v35 = vmul.f32 %v3653_v22, %v1124_v31  ;;  %1443 = vperm.xlu0 %4386, %v3269_v23   ;;  %v2608_v54 = vsel %vm2572_vm0, %v2334_v41, 0.0 }
  0xa7   :  { %v2603_v38 = vadd.f32 %v2602_v34, %v2601_v30  ;;  %v1139_v39 = vpop.permute.xlu1 %1138  ;;  %v3676_v34 = vunpack.c.l.bf16 %v4270_v24 }
  0xa8   :  { %1458 = vperm.xlu1 %4392, %v3276_v29   ;;  %v2606_v48 = vsel %vm2572_vm0, %v2333_v35, 0.0  ;;  %v2336_v55 = vmul.f32 %v3660_v42, %v1139_v39  ;;  %v3289_v29 = vunpack.c.h.bf16 %v4174_v61  ;;  %v3296_v35 = vunpack.c.l.bf16 %v4176_v25  ;;  %v4177_v39 = vld [vmem:[%s5470_s0 + $0x180] sm:$0xff]  }
  0xa9   :  { %v2605_v44 = vadd.f32 %v2604_v40, %v2603_v38  ;;  %v1134_v45 = vpop.permute.xlu0 %1133  ;;  %v4271_v38 = vld [vmem:[%s5471_s1 + $0x78] sm:$0xff]   ;;  %v3677_v42 = vunpack.c.h.bf16 %v4270_v24 }
  0xaa   :  { %v2335_v49 = vmul.f32 %v3657_v36, %v1134_v45  ;;  %1453 = vperm.xlu0 %4386, %v3273_v37   ;;  %v2612_v4 = vsel %vm2572_vm0, %v2336_v55, 0.0 }
  0xab   :  { %v2607_v52 = vadd.f32 %v2606_v48, %v2605_v44  ;;  %v1149_v53 = vpop.permute.xlu1 %1148  ;;  %v3680_v48 = vunpack.c.l.bf16 %v4271_v38 }
  0xac   :  { %1468 = vperm.xlu1 %4392, %v3280_v43   ;;  %v2610_v62 = vsel %vm2572_vm0, %v2335_v49, 0.0  ;;  %v2338_v5 = vmul.f32 %v3664_v56, %v1149_v53  ;;  %v3293_v43 = vunpack.c.h.bf16 %v4175_v11  ;;  %v3300_v49 = vunpack.c.l.bf16 %v4177_v39  ;;  %v4178_v53 = vld [vmem:[%s5470_s0 + $0x188] sm:$0xff]  }
  0xad   :  { %v2609_v58 = vadd.f32 %v2608_v54, %v2607_v52  ;;  %v1144_v59 = vpop.permute.xlu0 %1143  ;;  %v4272_v52 = vld [vmem:[%s5471_s1 + $0x80] sm:$0xff]   ;;  %v3681_v56 = vunpack.c.h.bf16 %v4271_v38 }
  0xae   :  { %v2337_v63 = vmul.f32 %v3661_v50, %v1144_v59  ;;  %1463 = vperm.xlu0 %4386, %v3277_v51   ;;  %v2616_v18 = vsel %vm2572_vm0, %v2338_v5, 0.0 }
  0xaf   :  { %v2611_v2 = vadd.f32 %v2610_v62, %v2609_v58  ;;  %v1159_v3 = vpop.permute.xlu1 %1158  ;;  %v3684_v62 = vunpack.c.l.bf16 %v4272_v52 }
  0xb0   :  { %1478 = vperm.xlu1 %4392, %v3284_v57   ;;  %v2614_v12 = vsel %vm2572_vm0, %v2337_v63, 0.0  ;;  %v2340_v19 = vmul.f32 %v3668_v6, %v1159_v3  ;;  %v3297_v57 = vunpack.c.h.bf16 %v4176_v25  ;;  %v3304_v63 = vunpack.c.l.bf16 %v4178_v53  ;;  %v4179_v3 = vld [vmem:[%s5470_s0 + $0x190] sm:$0xff]  }
  0xb1   :  { %v2613_v8 = vadd.f32 %v2612_v4, %v2611_v2  ;;  %v1154_v9 = vpop.permute.xlu0 %1153  ;;  %v4273_v2 = vld [vmem:[%s5471_s1 + $0x88] sm:$0xff]   ;;  %v3685_v6 = vunpack.c.h.bf16 %v4272_v52 }
  0xb2   :  { %v2339_v13 = vmul.f32 %v3665_v0, %v1154_v9  ;;  %1473 = vperm.xlu0 %4386, %v3281_v1   ;;  %v2620_v32 = vsel %vm2572_vm0, %v2340_v19, 0.0  ;;  %v3305_v19 = vunpack.c.h.bf16 %v4178_v53 }
  0xb3   :  { %v2615_v16 = vadd.f32 %v2614_v12, %v2613_v8  ;;  %v1169_v17 = vpop.permute.xlu1 %1168  ;;  %v3688_v12 = vunpack.c.l.bf16 %v4273_v2 }
  0xb4   :  { %1488 = vperm.xlu1 %4392, %v3288_v7   ;;  %v2618_v26 = vsel %vm2572_vm0, %v2339_v13, 0.0  ;;  %v2342_v33 = vmul.f32 %v3672_v20, %v1169_v17  ;;  %v3301_v7 = vunpack.c.h.bf16 %v4177_v39  ;;  %v3308_v13 = vunpack.c.l.bf16 %v4179_v3  ;;  %v4180_v17 = vld [vmem:[%s5470_s0 + $0x198] sm:$0xff]  }
  0xb5   :  { %v2617_v22 = vadd.f32 %v2616_v18, %v2615_v16  ;;  %v1164_v23 = vpop.permute.xlu0 %1163  ;;  %v4274_v16 = vld [vmem:[%s5471_s1 + $0x90] sm:$0xff]  }
  0xb6   :  { %v2341_v27 = vmul.f32 %v3669_v14, %v1164_v23  ;;  %1483 = vperm.xlu0 %4386, %v3285_v15   ;;  %v2624_v46 = vsel %vm2572_vm0, %v2342_v33, 0.0 }
  0xb7   :  { %v2619_v30 = vadd.f32 %v2618_v26, %v2617_v22  ;;  %v1179_v31 = vpop.permute.xlu1 %1178  ;;  %v3692_v26 = vunpack.c.l.bf16 %v4274_v16 }
  0xb8   :  { %1498 = vperm.xlu1 %4392, %v3292_v21   ;;  %v2622_v40 = vsel %vm2572_vm0, %v2341_v27, 0.0  ;;  %v2344_v47 = vmul.f32 %v3676_v34, %v1179_v31  ;;  %v3689_v21 = vunpack.c.h.bf16 %v4273_v2  ;;  %v3312_v27 = vunpack.c.l.bf16 %v4180_v17  ;;  %v4181_v31 = vld [vmem:[%s5470_s0 + $0x1a0] sm:$0xff]  }
  0xb9   :  { %v2621_v36 = vadd.f32 %v2620_v32, %v2619_v30  ;;  %v1174_v37 = vpop.permute.xlu0 %1173  ;;  %v4275_v30 = vld [vmem:[%s5471_s1 + $0x98] sm:$0xff]   ;;  %v3693_v34 = vunpack.c.h.bf16 %v4274_v16 }
  0xba   :  { %v2343_v41 = vmul.f32 %v3673_v28, %v1174_v37  ;;  %1493 = vperm.xlu0 %4386, %v3289_v29   ;;  %v2628_v60 = vsel %vm2572_vm0, %v2344_v47, 0.0 }
  0xbb   :  { %v2623_v44 = vadd.f32 %v2622_v40, %v2621_v36  ;;  %v1189_v45 = vpop.permute.xlu1 %1188  ;;  %v3696_v40 = vunpack.c.l.bf16 %v4275_v30 }
  0xbc   :  { %1508 = vperm.xlu1 %4392, %v3296_v35   ;;  %v2626_v54 = vsel %vm2572_vm0, %v2343_v41, 0.0  ;;  %v2346_v61 = vmul.f32 %v3680_v48, %v1189_v45  ;;  %v3309_v35 = vunpack.c.h.bf16 %v4179_v3  ;;  %v3316_v41 = vunpack.c.l.bf16 %v4181_v31  ;;  %v4182_v45 = vld [vmem:[%s5470_s0 + $0x1a8] sm:$0xff]  }
  0xbd   :  { %v2625_v50 = vadd.f32 %v2624_v46, %v2623_v44  ;;  %v1184_v51 = vpop.permute.xlu0 %1183  ;;  %v4276_v44 = vld [vmem:[%s5471_s1 + $0xa0] sm:$0xff]   ;;  %v3697_v48 = vunpack.c.h.bf16 %v4275_v30 }
  0xbe   :  { %v2345_v55 = vmul.f32 %v3677_v42, %v1184_v51  ;;  %1503 = vperm.xlu0 %4386, %v3293_v43   ;;  %v2632_v10 = vsel %vm2572_vm0, %v2346_v61, 0.0 }
  0xbf   :  { %v2627_v58 = vadd.f32 %v2626_v54, %v2625_v50  ;;  %v1199_v59 = vpop.permute.xlu1 %1198  ;;  %v3700_v54 = vunpack.c.l.bf16 %v4276_v44 }
  0xc0   :  { %1518 = vperm.xlu1 %4392, %v3300_v49   ;;  %v2630_v4 = vsel %vm2572_vm0, %v2345_v55, 0.0  ;;  %v2348_v11 = vmul.f32 %v3684_v62, %v1199_v59  ;;  %v3313_v49 = vunpack.c.h.bf16 %v4180_v17  ;;  %v3320_v55 = vunpack.c.l.bf16 %v4182_v45  ;;  %v4183_v59 = vld [vmem:[%s5470_s0 + $0x1b0] sm:$0xff]  }
  0xc1   :  { %v2629_v0 = vadd.f32 %v2628_v60, %v2627_v58  ;;  %v1194_v1 = vpop.permute.xlu0 %1193  ;;  %v4277_v58 = vld [vmem:[%s5471_s1 + $0xa8] sm:$0xff]   ;;  %v3701_v62 = vunpack.c.h.bf16 %v4276_v44 }
  0xc2   :  { %v2347_v5 = vmul.f32 %v3681_v56, %v1194_v1  ;;  %1513 = vperm.xlu0 %4386, %v3297_v57   ;;  %v2636_v24 = vsel %vm2572_vm0, %v2348_v11, 0.0 }
  0xc3   :  { %v2631_v8 = vadd.f32 %v2630_v4, %v2629_v0  ;;  %v1209_v9 = vpop.permute.xlu1 %1208  ;;  %v3704_v4 = vunpack.c.l.bf16 %v4277_v58 }
  0xc4   :  { %1528 = vperm.xlu1 %4392, %v3304_v63   ;;  %v2634_v18 = vsel %vm2572_vm0, %v2347_v5, 0.0  ;;  %v2350_v25 = vmul.f32 %v3688_v12, %v1209_v9  ;;  %v3317_v63 = vunpack.c.h.bf16 %v4181_v31  ;;  %v3324_v5 = vunpack.c.l.bf16 %v4183_v59  ;;  %v4184_v9 = vld [vmem:[%s5470_s0 + $0x1b8] sm:$0xff]  }
  0xc5   :  { %v2633_v14 = vadd.f32 %v2632_v10, %v2631_v8  ;;  %v1204_v15 = vpop.permute.xlu0 %1203  ;;  %v4278_v8 = vld [vmem:[%s5471_s1 + $0xb0] sm:$0xff]   ;;  %v3705_v12 = vunpack.c.h.bf16 %v4277_v58 }
  0xc6   :  { %v2349_v20 = vmul.f32 %v3685_v6, %v1204_v15  ;;  %1523 = vperm.xlu0 %4386, %v3301_v7   ;;  %v2640_v38 = vsel %vm2572_vm0, %v2350_v25, 0.0 }
  0xc7   :  { %v2635_v22 = vadd.f32 %v2634_v18, %v2633_v14  ;;  %v1219_v23 = vpop.permute.xlu1 %1218  ;;  %v3708_v18 = vunpack.c.l.bf16 %v4278_v8 }
  0xc8   :  { %1538 = vperm.xlu1 %4392, %v3308_v13   ;;  %v2638_v32 = vsel %vm2572_vm0, %v2349_v20, 0.0  ;;  %v2352_v39 = vmul.f32 %v3692_v26, %v1219_v23  ;;  %v3321_v13 = vunpack.c.h.bf16 %v4182_v45  ;;  %v4185_v23 = vld [vmem:[%s5470_s0 + $0x1c0] sm:$0xff]   ;;  %v3709_v26 = vunpack.c.h.bf16 %v4278_v8 }
  0xc9   :  { %v2637_v28 = vadd.f32 %v2636_v24, %v2635_v22  ;;  %v1214_v29 = vpop.permute.xlu0 %1213  ;;  %v4279_v22 = vld [vmem:[%s5471_s1 + $0xb8] sm:$0xff]  }
  0xca   :  { %v2351_v33 = vmul.f32 %v3689_v21, %v1214_v29  ;;  %1533 = vperm.xlu0 %4386, %v3305_v19   ;;  %v2644_v52 = vsel %vm2572_vm0, %v2352_v39, 0.0  ;;  %v3328_v19 = vunpack.c.l.bf16 %v4184_v9 }
  0xcb   :  { %v2639_v36 = vadd.f32 %v2638_v32, %v2637_v28  ;;  %v1229_v37 = vpop.permute.xlu1 %1228  ;;  %v3712_v32 = vunpack.c.l.bf16 %v4279_v22 }
  0xcc   :  { %1548 = vperm.xlu1 %4392, %v3312_v27   ;;  %v2642_v46 = vsel %vm2572_vm0, %v2351_v33, 0.0  ;;  %v2354_v53 = vmul.f32 %v3696_v40, %v1229_v37  ;;  %v3325_v27 = vunpack.c.h.bf16 %v4183_v59  ;;  %v3332_v33 = vunpack.c.l.bf16 %v4185_v23  ;;  %v4186_v37 = vld [vmem:[%s5470_s0 + $0x1c8] sm:$0xff]  }
  0xcd   :  { %v2641_v42 = vadd.f32 %v2640_v38, %v2639_v36  ;;  %v1224_v43 = vpop.permute.xlu0 %1223  ;;  %v4280_v36 = vld [vmem:[%s5471_s1 + $0xc0] sm:$0xff]   ;;  %v3713_v40 = vunpack.c.h.bf16 %v4279_v22 }
  0xce   :  { %v2353_v47 = vmul.f32 %v3693_v34, %v1224_v43  ;;  %1543 = vperm.xlu0 %4386, %v3309_v35   ;;  %v2648_v2 = vsel %vm2572_vm0, %v2354_v53, 0.0 }
  0xcf   :  { %v2643_v50 = vadd.f32 %v2642_v46, %v2641_v42  ;;  %v1239_v51 = vpop.permute.xlu1 %1238  ;;  %v3716_v46 = vunpack.c.l.bf16 %v4280_v36 }
  0xd0   :  { %1558 = vperm.xlu1 %4392, %v3316_v41   ;;  %v2646_v60 = vsel %vm2572_vm0, %v2353_v47, 0.0  ;;  %v2356_v3 = vmul.f32 %v3700_v54, %v1239_v51  ;;  %v3329_v41 = vunpack.c.h.bf16 %v4184_v9  ;;  %v3336_v47 = vunpack.c.l.bf16 %v4186_v37  ;;  %v4187_v51 = vld [vmem:[%s5470_s0 + $0x1d0] sm:$0xff]  }
  0xd1   :  { %v2645_v56 = vadd.f32 %v2644_v52, %v2643_v50  ;;  %v1234_v57 = vpop.permute.xlu0 %1233  ;;  %v4281_v50 = vld [vmem:[%s5471_s1 + $0xc8] sm:$0xff]   ;;  %v3717_v54 = vunpack.c.h.bf16 %v4280_v36 }
  0xd2   :  { %v2355_v61 = vmul.f32 %v3697_v48, %v1234_v57  ;;  %1553 = vperm.xlu0 %4386, %v3313_v49   ;;  %v2652_v16 = vsel %vm2572_vm0, %v2356_v3, 0.0 }
  0xd3   :  { %v2647_v0 = vadd.f32 %v2646_v60, %v2645_v56  ;;  %v1249_v1 = vpop.permute.xlu1 %1248  ;;  %v3720_v60 = vunpack.c.l.bf16 %v4281_v50 }
  0xd4   :  { %1568 = vperm.xlu1 %4392, %v3320_v55   ;;  %v2650_v10 = vsel %vm2572_vm0, %v2355_v61, 0.0  ;;  %v2358_v17 = vmul.f32 %v3704_v4, %v1249_v1  ;;  %v3333_v55 = vunpack.c.h.bf16 %v4185_v23  ;;  %v3340_v61 = vunpack.c.l.bf16 %v4187_v51  ;;  %v4188_v1 = vld [vmem:[%s5470_s0 + $0x1d8] sm:$0xff]  }
  0xd5   :  { %v2649_v6 = vadd.f32 %v2648_v2, %v2647_v0  ;;  %v1244_v7 = vpop.permute.xlu0 %1243  ;;  %v4282_v0 = vld [vmem:[%s5471_s1 + $0xd0] sm:$0xff]   ;;  %v3721_v4 = vunpack.c.h.bf16 %v4281_v50 }
  0xd6   :  { %v2357_v11 = vmul.f32 %v3701_v62, %v1244_v7  ;;  %1563 = vperm.xlu0 %4386, %v3317_v63   ;;  %v2656_v30 = vsel %vm2572_vm0, %v2358_v17, 0.0 }
  0xd7   :  { %v2651_v14 = vadd.f32 %v2650_v10, %v2649_v6  ;;  %v1259_v15 = vpop.permute.xlu1 %1258  ;;  %v3724_v10 = vunpack.c.l.bf16 %v4282_v0 }
  0xd8   :  { %1578 = vperm.xlu1 %4392, %v3324_v5   ;;  %v2654_v24 = vsel %vm2572_vm0, %v2357_v11, 0.0  ;;  %v2360_v31 = vmul.f32 %v3708_v18, %v1259_v15  ;;  %v3337_v5 = vunpack.c.h.bf16 %v4186_v37  ;;  %v3344_v11 = vunpack.c.l.bf16 %v4188_v1  ;;  %v4189_v15 = vld [vmem:[%s5470_s0 + $0x1e0] sm:$0xff]  }
  0xd9   :  { %v2653_v20 = vadd.f32 %v2652_v16, %v2651_v14  ;;  %v1254_v21 = vpop.permute.xlu0 %1253  ;;  %v4283_v14 = vld [vmem:[%s5471_s1 + $0xd8] sm:$0xff]   ;;  %v3725_v18 = vunpack.c.h.bf16 %v4282_v0 }
  0xda   :  { %v2359_v25 = vmul.f32 %v3705_v12, %v1254_v21  ;;  %1573 = vperm.xlu0 %4386, %v3321_v13   ;;  %v2660_v44 = vsel %vm2572_vm0, %v2360_v31, 0.0 }
  0xdb   :  { %v2655_v28 = vadd.f32 %v2654_v24, %v2653_v20  ;;  %v1269_v29 = vpop.permute.xlu1 %1268  ;;  %v3728_v24 = vunpack.c.l.bf16 %v4283_v14 }
  0xdc   :  { %1588 = vperm.xlu1 %4392, %v3328_v19   ;;  %v2658_v38 = vsel %vm2572_vm0, %v2359_v25, 0.0  ;;  %v2362_v45 = vmul.f32 %v3712_v32, %v1269_v29  ;;  %v3341_v19 = vunpack.c.h.bf16 %v4187_v51  ;;  %v3348_v25 = vunpack.c.l.bf16 %v4189_v15  ;;  %v4190_v29 = vld [vmem:[%s5470_s0 + $0x1e8] sm:$0xff]  }
  0xdd   :  { %v2657_v34 = vadd.f32 %v2656_v30, %v2655_v28  ;;  %v1264_v35 = vpop.permute.xlu0 %1263  ;;  %v4284_v28 = vld [vmem:[%s5471_s1 + $0xe0] sm:$0xff]   ;;  %v3729_v32 = vunpack.c.h.bf16 %v4283_v14 }
  0xde   :  { %v2361_v39 = vmul.f32 %v3709_v26, %v1264_v35  ;;  %1583 = vperm.xlu0 %4386, %v3325_v27   ;;  %v2664_v58 = vsel %vm2572_vm0, %v2362_v45, 0.0 }
  0xdf   :  { %v2659_v42 = vadd.f32 %v2658_v38, %v2657_v34  ;;  %v1279_v43 = vpop.permute.xlu1 %1278  ;;  %v3732_v38 = vunpack.c.l.bf16 %v4284_v28 }
  0xe0   :  { %1598 = vperm.xlu1 %4392, %v3332_v33   ;;  %v2662_v52 = vsel %vm2572_vm0, %v2361_v39, 0.0  ;;  %v2364_v59 = vmul.f32 %v3716_v46, %v1279_v43  ;;  %v3345_v33 = vunpack.c.h.bf16 %v4188_v1  ;;  %v3352_v39 = vunpack.c.l.bf16 %v4190_v29  ;;  %v4191_v43 = vld [vmem:[%s5470_s0 + $0x1f0] sm:$0xff]  }
  0xe1   :  { %v2661_v48 = vadd.f32 %v2660_v44, %v2659_v42  ;;  %v1274_v49 = vpop.permute.xlu0 %1273  ;;  %v4285_v42 = vld [vmem:[%s5471_s1 + $0xe8] sm:$0xff]   ;;  %v3733_v46 = vunpack.c.h.bf16 %v4284_v28 }
  0xe2   :  { %v2363_v53 = vmul.f32 %v3713_v40, %v1274_v49  ;;  %1593 = vperm.xlu0 %4386, %v3329_v41   ;;  %v2668_v8 = vsel %vm2572_vm0, %v2364_v59, 0.0 }
  0xe3   :  { %v2663_v56 = vadd.f32 %v2662_v52, %v2661_v48  ;;  %v1289_v57 = vpop.permute.xlu1 %1288  ;;  %v3736_v52 = vunpack.c.l.bf16 %v4285_v42 }
  0xe4   :  { %1608 = vperm.xlu1 %4392, %v3336_v47   ;;  %v2666_v2 = vsel %vm2572_vm0, %v2363_v53, 0.0  ;;  %v2366_v9 = vmul.f32 %v3720_v60, %v1289_v57  ;;  %v3349_v47 = vunpack.c.h.bf16 %v4189_v15  ;;  %v3356_v53 = vunpack.c.l.bf16 %v4191_v43  ;;  %v4192_v57 = vld [vmem:[%s5470_s0 + $0x1f8] sm:$0xff]  }
  0xe5   :  { %v2665_v62 = vadd.f32 %v2664_v58, %v2663_v56  ;;  %v1284_v63 = vpop.permute.xlu0 %1283  ;;  %v4286_v56 = vld [vmem:[%s5471_s1 + $0xf0] sm:$0xff]   ;;  %v3737_v60 = vunpack.c.h.bf16 %v4285_v42 }
  0xe6   :  { %v2365_v3 = vmul.f32 %v3717_v54, %v1284_v63  ;;  %1603 = vperm.xlu0 %4386, %v3333_v55   ;;  %v2672_v22 = vsel %vm2572_vm0, %v2366_v9, 0.0 }
  0xe7   :  { %v2667_v6 = vadd.f32 %v2666_v2, %v2665_v62  ;;  %v1299_v7 = vpop.permute.xlu1 %1298  ;;  %v3740_v2 = vunpack.c.l.bf16 %v4286_v56 }
  0xe8   :  { %1618 = vperm.xlu1 %4392, %v3340_v61   ;;  %v2670_v16 = vsel %vm2572_vm0, %v2365_v3, 0.0  ;;  %v2368_v23 = vmul.f32 %v3724_v10, %v1299_v7  ;;  %v3353_v61 = vunpack.c.h.bf16 %v4190_v29  ;;  %v3360_v3 = vunpack.c.l.bf16 %v4192_v57  ;;  %v4193_v7 = vld [vmem:[%s5470_s0 + $0x200] sm:$0xff]  }
  0xe9   :  { %v2669_v12 = vadd.f32 %v2668_v8, %v2667_v6  ;;  %v1294_v13 = vpop.permute.xlu0 %1293  ;;  %v4287_v6 = vld [vmem:[%s5471_s1 + $0xf8] sm:$0xff]   ;;  %v3741_v10 = vunpack.c.h.bf16 %v4286_v56 }
  0xea   :  { %v2367_v17 = vmul.f32 %v3721_v4, %v1294_v13  ;;  %1613 = vperm.xlu0 %4386, %v3337_v5   ;;  %v2676_v36 = vsel %vm2572_vm0, %v2368_v23, 0.0 }
  0xeb   :  { %v2671_v20 = vadd.f32 %v2670_v16, %v2669_v12  ;;  %v1309_v21 = vpop.permute.xlu1 %1308  ;;  %v3744_v16 = vunpack.c.l.bf16 %v4287_v6 }
  0xec   :  { %1628 = vperm.xlu1 %4392, %v3344_v11   ;;  %v2674_v30 = vsel %vm2572_vm0, %v2367_v17, 0.0  ;;  %v2370_v37 = vmul.f32 %v3728_v24, %v1309_v21  ;;  %v3357_v11 = vunpack.c.h.bf16 %v4191_v43  ;;  %v3364_v17 = vunpack.c.l.bf16 %v4193_v7  ;;  %v4194_v21 = vld [vmem:[%s5470_s0 + $0x208] sm:$0xff]  }
  0xed   :  { %v2673_v26 = vadd.f32 %v2672_v22, %v2671_v20  ;;  %v1304_v27 = vpop.permute.xlu0 %1303  ;;  %v4288_v20 = vld [vmem:[%s5471_s1 + $0x100] sm:$0xff]   ;;  %v3745_v24 = vunpack.c.h.bf16 %v4287_v6 }
  0xee   :  { %v2369_v31 = vmul.f32 %v3725_v18, %v1304_v27  ;;  %1623 = vperm.xlu0 %4386, %v3341_v19   ;;  %v2680_v50 = vsel %vm2572_vm0, %v2370_v37, 0.0 }
  0xef   :  { %v2675_v34 = vadd.f32 %v2674_v30, %v2673_v26  ;;  %v1319_v35 = vpop.permute.xlu1 %1318  ;;  %v3748_v30 = vunpack.c.l.bf16 %v4288_v20 }
  0xf0   :  { %1638 = vperm.xlu1 %4392, %v3348_v25   ;;  %v2678_v44 = vsel %vm2572_vm0, %v2369_v31, 0.0  ;;  %v2372_v51 = vmul.f32 %v3732_v38, %v1319_v35  ;;  %v3361_v25 = vunpack.c.h.bf16 %v4192_v57  ;;  %v3368_v31 = vunpack.c.l.bf16 %v4194_v21  ;;  %v4195_v35 = vld [vmem:[%s5470_s0 + $0x210] sm:$0xff]  }
  0xf1   :  { %v2677_v40 = vadd.f32 %v2676_v36, %v2675_v34  ;;  %v1314_v41 = vpop.permute.xlu0 %1313  ;;  %v4289_v34 = vld [vmem:[%s5471_s1 + $0x108] sm:$0xff]   ;;  %v3749_v38 = vunpack.c.h.bf16 %v4288_v20 }
  0xf2   :  { %v2371_v45 = vmul.f32 %v3729_v32, %v1314_v41  ;;  %1633 = vperm.xlu0 %4386, %v3345_v33   ;;  %v2684_v0 = vsel %vm2572_vm0, %v2372_v51, 0.0 }
  0xf3   :  { %v2679_v48 = vadd.f32 %v2678_v44, %v2677_v40  ;;  %v1329_v49 = vpop.permute.xlu1 %1328  ;;  %v3752_v44 = vunpack.c.l.bf16 %v4289_v34 }
  0xf4   :  { %1648 = vperm.xlu1 %4392, %v3352_v39   ;;  %v2682_v58 = vsel %vm2572_vm0, %v2371_v45, 0.0  ;;  %v2374_v1 = vmul.f32 %v3736_v52, %v1329_v49  ;;  %v3365_v39 = vunpack.c.h.bf16 %v4193_v7  ;;  %v3372_v45 = vunpack.c.l.bf16 %v4195_v35  ;;  %v4196_v49 = vld [vmem:[%s5470_s0 + $0x218] sm:$0xff]  }
  0xf5   :  { %v2681_v54 = vadd.f32 %v2680_v50, %v2679_v48  ;;  %v1324_v55 = vpop.permute.xlu0 %1323  ;;  %v4290_v48 = vld [vmem:[%s5471_s1 + $0x110] sm:$0xff]   ;;  %v3753_v52 = vunpack.c.h.bf16 %v4289_v34 }
  0xf6   :  { %v2373_v59 = vmul.f32 %v3733_v46, %v1324_v55  ;;  %1643 = vperm.xlu0 %4386, %v3349_v47   ;;  %v2688_v14 = vsel %vm2572_vm0, %v2374_v1, 0.0 }
  0xf7   :  { %v2683_v62 = vadd.f32 %v2682_v58, %v2681_v54  ;;  %v1339_v63 = vpop.permute.xlu1 %1338  ;;  %v3756_v58 = vunpack.c.l.bf16 %v4290_v48 }
  0xf8   :  { %1658 = vperm.xlu1 %4392, %v3356_v53   ;;  %v2686_v8 = vsel %vm2572_vm0, %v2373_v59, 0.0  ;;  %v2376_v15 = vmul.f32 %v3740_v2, %v1339_v63  ;;  %v3369_v53 = vunpack.c.h.bf16 %v4194_v21  ;;  %v3376_v59 = vunpack.c.l.bf16 %v4196_v49  ;;  %v4197_v63 = vld [vmem:[%s5470_s0 + $0x220] sm:$0xff]  }
  0xf9   :  { %v2685_v4 = vadd.f32 %v2684_v0, %v2683_v62  ;;  %v1334_v5 = vpop.permute.xlu0 %1333  ;;  %v4291_v62 = vld [vmem:[%s5471_s1 + $0x118] sm:$0xff]   ;;  %v3757_v2 = vunpack.c.h.bf16 %v4290_v48 }
  0xfa   :  { %v2375_v9 = vmul.f32 %v3737_v60, %v1334_v5  ;;  %1653 = vperm.xlu0 %4386, %v3353_v61   ;;  %v2692_v28 = vsel %vm2572_vm0, %v2376_v15, 0.0 }
  0xfb   :  { %v2687_v12 = vadd.f32 %v2686_v8, %v2685_v4  ;;  %v1349_v13 = vpop.permute.xlu1 %1348  ;;  %v3760_v8 = vunpack.c.l.bf16 %v4291_v62 }
  0xfc   :  { %1668 = vperm.xlu1 %4392, %v3360_v3   ;;  %v2690_v22 = vsel %vm2572_vm0, %v2375_v9, 0.0  ;;  %v2378_v29 = vmul.f32 %v3744_v16, %v1349_v13  ;;  %v3373_v3 = vunpack.c.h.bf16 %v4195_v35  ;;  %v3380_v9 = vunpack.c.l.bf16 %v4197_v63  ;;  %v4198_v13 = vld [vmem:[%s5470_s0 + $0x228] sm:$0xff]  }
  0xfd   :  { %v2689_v18 = vadd.f32 %v2688_v14, %v2687_v12  ;;  %v1344_v19 = vpop.permute.xlu0 %1343  ;;  %v4292_v12 = vld [vmem:[%s5471_s1 + $0x120] sm:$0xff]   ;;  %v3761_v16 = vunpack.c.h.bf16 %v4291_v62 }
  0xfe   :  { %v2377_v23 = vmul.f32 %v3741_v10, %v1344_v19  ;;  %1663 = vperm.xlu0 %4386, %v3357_v11   ;;  %v2696_v42 = vsel %vm2572_vm0, %v2378_v29, 0.0 }
  0xff   :  { %v2691_v26 = vadd.f32 %v2690_v22, %v2689_v18  ;;  %v1359_v27 = vpop.permute.xlu1 %1358  ;;  %v3764_v22 = vunpack.c.l.bf16 %v4292_v12 }
 0x100   :  { %1678 = vperm.xlu1 %4392, %v3364_v17   ;;  %v2694_v36 = vsel %vm2572_vm0, %v2377_v23, 0.0  ;;  %v2380_v43 = vmul.f32 %v3748_v30, %v1359_v27  ;;  %v3377_v17 = vunpack.c.h.bf16 %v4196_v49  ;;  %v3384_v23 = vunpack.c.l.bf16 %v4198_v13  ;;  %v4199_v27 = vld [vmem:[%s5470_s0 + $0x230] sm:$0xff]  }
 0x101   :  { %v2693_v32 = vadd.f32 %v2692_v28, %v2691_v26  ;;  %v1354_v33 = vpop.permute.xlu0 %1353  ;;  %v4293_v26 = vld [vmem:[%s5471_s1 + $0x128] sm:$0xff]   ;;  %v3765_v30 = vunpack.c.h.bf16 %v4292_v12 }
 0x102   :  { %v2379_v37 = vmul.f32 %v3745_v24, %v1354_v33  ;;  %1673 = vperm.xlu0 %4386, %v3361_v25   ;;  %v2700_v56 = vsel %vm2572_vm0, %v2380_v43, 0.0 }
 0x103   :  { %v2695_v40 = vadd.f32 %v2694_v36, %v2693_v32  ;;  %v1369_v41 = vpop.permute.xlu1 %1368  ;;  %v3768_v36 = vunpack.c.l.bf16 %v4293_v26 }
 0x104   :  { %1688 = vperm.xlu1 %4392, %v3368_v31   ;;  %v2698_v50 = vsel %vm2572_vm0, %v2379_v37, 0.0  ;;  %v2382_v57 = vmul.f32 %v3752_v44, %v1369_v41  ;;  %v3381_v31 = vunpack.c.h.bf16 %v4197_v63  ;;  %v3388_v37 = vunpack.c.l.bf16 %v4199_v27  ;;  %v4200_v41 = vld [vmem:[%s5470_s0 + $0x238] sm:$0xff]  }
 0x105   :  { %v2697_v46 = vadd.f32 %v2696_v42, %v2695_v40  ;;  %v1364_v47 = vpop.permute.xlu0 %1363  ;;  %v4294_v40 = vld [vmem:[%s5471_s1 + $0x130] sm:$0xff]   ;;  %v3769_v44 = vunpack.c.h.bf16 %v4293_v26 }
 0x106   :  { %v2381_v51 = vmul.f32 %v3749_v38, %v1364_v47  ;;  %1683 = vperm.xlu0 %4386, %v3365_v39   ;;  %v2704_v6 = vsel %vm2572_vm0, %v2382_v57, 0.0 }
 0x107   :  { %v2699_v54 = vadd.f32 %v2698_v50, %v2697_v46  ;;  %v1379_v55 = vpop.permute.xlu1 %1378  ;;  %v3772_v50 = vunpack.c.l.bf16 %v4294_v40 }
 0x108   :  { %1698 = vperm.xlu1 %4392, %v3372_v45   ;;  %v2702_v0 = vsel %vm2572_vm0, %v2381_v51, 0.0  ;;  %v2384_v7 = vmul.f32 %v3756_v58, %v1379_v55  ;;  %v3385_v45 = vunpack.c.h.bf16 %v4198_v13  ;;  %v3392_v51 = vunpack.c.l.bf16 %v4200_v41  ;;  %v4201_v55 = vld [vmem:[%s5470_s0 + $0x240] sm:$0xff]  }
 0x109   :  { %v2701_v60 = vadd.f32 %v2700_v56, %v2699_v54  ;;  %v1374_v61 = vpop.permute.xlu0 %1373  ;;  %v4295_v54 = vld [vmem:[%s5471_s1 + $0x138] sm:$0xff]   ;;  %v3773_v58 = vunpack.c.h.bf16 %v4294_v40 }
 0x10a   :  { %v2383_v1 = vmul.f32 %v3753_v52, %v1374_v61  ;;  %1693 = vperm.xlu0 %4386, %v3369_v53   ;;  %v2708_v20 = vsel %vm2572_vm0, %v2384_v7, 0.0 }
 0x10b   :  { %v2703_v4 = vadd.f32 %v2702_v0, %v2701_v60  ;;  %v1389_v5 = vpop.permute.xlu1 %1388  ;;  %v3776_v0 = vunpack.c.l.bf16 %v4295_v54 }
 0x10c   :  { %1708 = vperm.xlu1 %4392, %v3376_v59   ;;  %v2706_v14 = vsel %vm2572_vm0, %v2383_v1, 0.0  ;;  %v2386_v21 = vmul.f32 %v3760_v8, %v1389_v5  ;;  %v3389_v59 = vunpack.c.h.bf16 %v4199_v27  ;;  %v3396_v1 = vunpack.c.l.bf16 %v4201_v55  ;;  %v4202_v5 = vld [vmem:[%s5470_s0 + $0x248] sm:$0xff]  }
 0x10d   :  { %v2705_v10 = vadd.f32 %v2704_v6, %v2703_v4  ;;  %v1384_v11 = vpop.permute.xlu0 %1383  ;;  %v4296_v4 = vld [vmem:[%s5471_s1 + $0x140] sm:$0xff]   ;;  %v3777_v8 = vunpack.c.h.bf16 %v4295_v54 }
 0x10e   :  { %v2385_v15 = vmul.f32 %v3757_v2, %v1384_v11  ;;  %1703 = vperm.xlu0 %4386, %v3373_v3   ;;  %v2712_v34 = vsel %vm2572_vm0, %v2386_v21, 0.0 }
 0x10f   :  { %v2707_v18 = vadd.f32 %v2706_v14, %v2705_v10  ;;  %v1399_v19 = vpop.permute.xlu1 %1398  ;;  %v3780_v14 = vunpack.c.l.bf16 %v4296_v4 }
 0x110   :  { %1718 = vperm.xlu1 %4392, %v3380_v9   ;;  %v2710_v28 = vsel %vm2572_vm0, %v2385_v15, 0.0  ;;  %v2388_v35 = vmul.f32 %v3764_v22, %v1399_v19  ;;  %v3393_v9 = vunpack.c.h.bf16 %v4200_v41  ;;  %v3400_v15 = vunpack.c.l.bf16 %v4202_v5  ;;  %v4203_v19 = vld [vmem:[%s5470_s0 + $0x250] sm:$0xff]  }
 0x111   :  { %v2709_v24 = vadd.f32 %v2708_v20, %v2707_v18  ;;  %v1394_v25 = vpop.permute.xlu0 %1393  ;;  %v4297_v18 = vld [vmem:[%s5471_s1 + $0x148] sm:$0xff]   ;;  %v3781_v22 = vunpack.c.h.bf16 %v4296_v4 }
 0x112   :  { %v2387_v29 = vmul.f32 %v3761_v16, %v1394_v25  ;;  %1713 = vperm.xlu0 %4386, %v3377_v17   ;;  %v2716_v48 = vsel %vm2572_vm0, %v2388_v35, 0.0 }
 0x113   :  { %v2711_v32 = vadd.f32 %v2710_v28, %v2709_v24  ;;  %v1409_v33 = vpop.permute.xlu1 %1408  ;;  %v3784_v28 = vunpack.c.l.bf16 %v4297_v18 }
 0x114   :  { %1728 = vperm.xlu1 %4392, %v3384_v23   ;;  %v2714_v42 = vsel %vm2572_vm0, %v2387_v29, 0.0  ;;  %v2390_v49 = vmul.f32 %v3768_v36, %v1409_v33  ;;  %v3397_v23 = vunpack.c.h.bf16 %v4201_v55  ;;  %v3404_v29 = vunpack.c.l.bf16 %v4203_v19  ;;  %v4204_v33 = vld [vmem:[%s5470_s0 + $0x258] sm:$0xff]  }
 0x115   :  { %v2713_v38 = vadd.f32 %v2712_v34, %v2711_v32  ;;  %v1404_v39 = vpop.permute.xlu0 %1403  ;;  %v4298_v32 = vld [vmem:[%s5471_s1 + $0x150] sm:$0xff]   ;;  %v3785_v36 = vunpack.c.h.bf16 %v4297_v18 }
 0x116   :  { %v2389_v43 = vmul.f32 %v3765_v30, %v1404_v39  ;;  %1723 = vperm.xlu0 %4386, %v3381_v31   ;;  %v2720_v62 = vsel %vm2572_vm0, %v2390_v49, 0.0 }
 0x117   :  { %v2715_v46 = vadd.f32 %v2714_v42, %v2713_v38  ;;  %v1419_v47 = vpop.permute.xlu1 %1418  ;;  %v3788_v42 = vunpack.c.l.bf16 %v4298_v32 }
 0x118   :  { %1738 = vperm.xlu1 %4392, %v3388_v37   ;;  %v2718_v56 = vsel %vm2572_vm0, %v2389_v43, 0.0  ;;  %v2392_v63 = vmul.f32 %v3772_v50, %v1419_v47  ;;  %v3401_v37 = vunpack.c.h.bf16 %v4202_v5  ;;  %v3408_v43 = vunpack.c.l.bf16 %v4204_v33  ;;  %v4205_v47 = vld [vmem:[%s5470_s0 + $0x260] sm:$0xff]  }
 0x119   :  { %v2717_v52 = vadd.f32 %v2716_v48, %v2715_v46  ;;  %v1414_v53 = vpop.permute.xlu0 %1413  ;;  %v4299_v46 = vld [vmem:[%s5471_s1 + $0x158] sm:$0xff]   ;;  %v3789_v50 = vunpack.c.h.bf16 %v4298_v32 }
 0x11a   :  { %v2391_v57 = vmul.f32 %v3769_v44, %v1414_v53  ;;  %1733 = vperm.xlu0 %4386, %v3385_v45   ;;  %v2724_v12 = vsel %vm2572_vm0, %v2392_v63, 0.0 }
 0x11b   :  { %v2719_v60 = vadd.f32 %v2718_v56, %v2717_v52  ;;  %v1429_v61 = vpop.permute.xlu1 %1428  ;;  %v3792_v56 = vunpack.c.l.bf16 %v4299_v46 }
 0x11c   :  { %1748 = vperm.xlu1 %4392, %v3392_v51   ;;  %v2722_v6 = vsel %vm2572_vm0, %v2391_v57, 0.0  ;;  %v2394_v13 = vmul.f32 %v3776_v0, %v1429_v61  ;;  %v3405_v51 = vunpack.c.h.bf16 %v4203_v19  ;;  %v3412_v57 = vunpack.c.l.bf16 %v4205_v47  ;;  %v4206_v61 = vld [vmem:[%s5470_s0 + $0x268] sm:$0xff]  }
 0x11d   :  { %v2721_v2 = vadd.f32 %v2720_v62, %v2719_v60  ;;  %v1424_v3 = vpop.permute.xlu0 %1423  ;;  %v4300_v60 = vld [vmem:[%s5471_s1 + $0x160] sm:$0xff]   ;;  %v3793_v0 = vunpack.c.h.bf16 %v4299_v46 }
 0x11e   :  { %v2393_v7 = vmul.f32 %v3773_v58, %v1424_v3  ;;  %1743 = vperm.xlu0 %4386, %v3389_v59   ;;  %v2728_v26 = vsel %vm2572_vm0, %v2394_v13, 0.0 }
 0x11f   :  { %v2723_v10 = vadd.f32 %v2722_v6, %v2721_v2  ;;  %v1439_v11 = vpop.permute.xlu1 %1438  ;;  %v3796_v6 = vunpack.c.l.bf16 %v4300_v60 }
 0x120   :  { %1758 = vperm.xlu1 %4392, %v3396_v1   ;;  %v2726_v20 = vsel %vm2572_vm0, %v2393_v7, 0.0  ;;  %v2396_v27 = vmul.f32 %v3780_v14, %v1439_v11  ;;  %v3409_v1 = vunpack.c.h.bf16 %v4204_v33  ;;  %v3416_v7 = vunpack.c.l.bf16 %v4206_v61  ;;  %v4207_v11 = vld [vmem:[%s5470_s0 + $0x270] sm:$0xff]  }
 0x121   :  { %v2725_v16 = vadd.f32 %v2724_v12, %v2723_v10  ;;  %v1434_v17 = vpop.permute.xlu0 %1433  ;;  %v4301_v10 = vld [vmem:[%s5471_s1 + $0x168] sm:$0xff]   ;;  %v3797_v14 = vunpack.c.h.bf16 %v4300_v60 }
 0x122   :  { %v2395_v21 = vmul.f32 %v3777_v8, %v1434_v17  ;;  %1753 = vperm.xlu0 %4386, %v3393_v9   ;;  %v2732_v40 = vsel %vm2572_vm0, %v2396_v27, 0.0 }
 0x123   :  { %v2727_v24 = vadd.f32 %v2726_v20, %v2725_v16  ;;  %v1449_v25 = vpop.permute.xlu1 %1448  ;;  %v3800_v20 = vunpack.c.l.bf16 %v4301_v10 }
 0x124   :  { %1768 = vperm.xlu1 %4392, %v3400_v15   ;;  %v2730_v34 = vsel %vm2572_vm0, %v2395_v21, 0.0  ;;  %v2398_v41 = vmul.f32 %v3784_v28, %v1449_v25  ;;  %v3413_v15 = vunpack.c.h.bf16 %v4205_v47  ;;  %v3420_v21 = vunpack.c.l.bf16 %v4207_v11  ;;  %v4208_v25 = vld [vmem:[%s5470_s0 + $0x278] sm:$0xff]  }
 0x125   :  { %v2729_v30 = vadd.f32 %v2728_v26, %v2727_v24  ;;  %v1444_v31 = vpop.permute.xlu0 %1443  ;;  %v4302_v24 = vld [vmem:[%s5471_s1 + $0x170] sm:$0xff]   ;;  %v3801_v28 = vunpack.c.h.bf16 %v4301_v10 }
 0x126   :  { %v2397_v35 = vmul.f32 %v3781_v22, %v1444_v31  ;;  %1763 = vperm.xlu0 %4386, %v3397_v23   ;;  %v2736_v54 = vsel %vm2572_vm0, %v2398_v41, 0.0 }
 0x127   :  { %v2731_v38 = vadd.f32 %v2730_v34, %v2729_v30  ;;  %v1459_v39 = vpop.permute.xlu1 %1458  ;;  %v3804_v34 = vunpack.c.l.bf16 %v4302_v24 }
 0x128   :  { %1778 = vperm.xlu1 %4392, %v3404_v29   ;;  %v2734_v48 = vsel %vm2572_vm0, %v2397_v35, 0.0  ;;  %v2400_v55 = vmul.f32 %v3788_v42, %v1459_v39  ;;  %v3417_v29 = vunpack.c.h.bf16 %v4206_v61  ;;  %v3424_v35 = vunpack.c.l.bf16 %v4208_v25  ;;  %v4209_v39 = vld [vmem:[%s5470_s0 + $0x280] sm:$0xff]  }
 0x129   :  { %v2733_v44 = vadd.f32 %v2732_v40, %v2731_v38  ;;  %v1454_v45 = vpop.permute.xlu0 %1453  ;;  %v4303_v38 = vld [vmem:[%s5471_s1 + $0x178] sm:$0xff]   ;;  %v3805_v42 = vunpack.c.h.bf16 %v4302_v24 }
 0x12a   :  { %v2399_v49 = vmul.f32 %v3785_v36, %v1454_v45  ;;  %1773 = vperm.xlu0 %4386, %v3401_v37   ;;  %v2740_v4 = vsel %vm2572_vm0, %v2400_v55, 0.0 }
 0x12b   :  { %v2735_v52 = vadd.f32 %v2734_v48, %v2733_v44  ;;  %v1469_v53 = vpop.permute.xlu1 %1468  ;;  %v3808_v48 = vunpack.c.l.bf16 %v4303_v38 }
 0x12c   :  { %1788 = vperm.xlu1 %4392, %v3408_v43   ;;  %v2738_v62 = vsel %vm2572_vm0, %v2399_v49, 0.0  ;;  %v2402_v5 = vmul.f32 %v3792_v56, %v1469_v53  ;;  %v3421_v43 = vunpack.c.h.bf16 %v4207_v11  ;;  %v3428_v49 = vunpack.c.l.bf16 %v4209_v39  ;;  %v4210_v53 = vld [vmem:[%s5470_s0 + $0x288] sm:$0xff]  }
 0x12d   :  { %v2737_v58 = vadd.f32 %v2736_v54, %v2735_v52  ;;  %v1464_v59 = vpop.permute.xlu0 %1463  ;;  %v4304_v52 = vld [vmem:[%s5471_s1 + $0x180] sm:$0xff]   ;;  %v3809_v56 = vunpack.c.h.bf16 %v4303_v38 }
 0x12e   :  { %v2401_v63 = vmul.f32 %v3789_v50, %v1464_v59  ;;  %1783 = vperm.xlu0 %4386, %v3405_v51   ;;  %v2744_v18 = vsel %vm2572_vm0, %v2402_v5, 0.0 }
 0x12f   :  { %v2739_v2 = vadd.f32 %v2738_v62, %v2737_v58  ;;  %v1479_v3 = vpop.permute.xlu1 %1478  ;;  %v3812_v62 = vunpack.c.l.bf16 %v4304_v52 }
 0x130   :  { %1798 = vperm.xlu1 %4392, %v3412_v57   ;;  %v2742_v12 = vsel %vm2572_vm0, %v2401_v63, 0.0  ;;  %v2404_v19 = vmul.f32 %v3796_v6, %v1479_v3  ;;  %v3425_v57 = vunpack.c.h.bf16 %v4208_v25  ;;  %v3432_v63 = vunpack.c.l.bf16 %v4210_v53  ;;  %v4211_v3 = vld [vmem:[%s5470_s0 + $0x290] sm:$0xff]  }
 0x131   :  { %v2741_v8 = vadd.f32 %v2740_v4, %v2739_v2  ;;  %v1474_v9 = vpop.permute.xlu0 %1473  ;;  %v4305_v2 = vld [vmem:[%s5471_s1 + $0x188] sm:$0xff]   ;;  %v3813_v6 = vunpack.c.h.bf16 %v4304_v52 }
 0x132   :  { %v2403_v13 = vmul.f32 %v3793_v0, %v1474_v9  ;;  %1793 = vperm.xlu0 %4386, %v3409_v1   ;;  %v2748_v32 = vsel %vm2572_vm0, %v2404_v19, 0.0 }
 0x133   :  { %v2743_v16 = vadd.f32 %v2742_v12, %v2741_v8  ;;  %v1489_v17 = vpop.permute.xlu1 %1488  ;;  %v3816_v12 = vunpack.c.l.bf16 %v4305_v2 }
 0x134   :  { %1808 = vperm.xlu1 %4392, %v3416_v7   ;;  %v2746_v26 = vsel %vm2572_vm0, %v2403_v13, 0.0  ;;  %v2406_v33 = vmul.f32 %v3800_v20, %v1489_v17  ;;  %v3429_v7 = vunpack.c.h.bf16 %v4209_v39  ;;  %v3436_v13 = vunpack.c.l.bf16 %v4211_v3  ;;  %v4212_v17 = vld [vmem:[%s5470_s0 + $0x298] sm:$0xff]  }
 0x135   :  { %v2745_v22 = vadd.f32 %v2744_v18, %v2743_v16  ;;  %v1484_v23 = vpop.permute.xlu0 %1483  ;;  %v4306_v16 = vld [vmem:[%s5471_s1 + $0x190] sm:$0xff]   ;;  %v3817_v20 = vunpack.c.h.bf16 %v4305_v2 }
 0x136   :  { %v2405_v27 = vmul.f32 %v3797_v14, %v1484_v23  ;;  %1803 = vperm.xlu0 %4386, %v3413_v15   ;;  %v2752_v46 = vsel %vm2572_vm0, %v2406_v33, 0.0 }
 0x137   :  { %v2747_v30 = vadd.f32 %v2746_v26, %v2745_v22  ;;  %v1499_v31 = vpop.permute.xlu1 %1498  ;;  %v3820_v26 = vunpack.c.l.bf16 %v4306_v16 }
 0x138   :  { %1818 = vperm.xlu1 %4392, %v3420_v21   ;;  %v2750_v40 = vsel %vm2572_vm0, %v2405_v27, 0.0  ;;  %v2408_v47 = vmul.f32 %v3804_v34, %v1499_v31  ;;  %v3433_v21 = vunpack.c.h.bf16 %v4210_v53  ;;  %v3440_v27 = vunpack.c.l.bf16 %v4212_v17  ;;  %v4213_v31 = vld [vmem:[%s5470_s0 + $0x2a0] sm:$0xff]  }
 0x139   :  { %v2749_v36 = vadd.f32 %v2748_v32, %v2747_v30  ;;  %v1494_v37 = vpop.permute.xlu0 %1493  ;;  %v4307_v30 = vld [vmem:[%s5471_s1 + $0x198] sm:$0xff]   ;;  %v3821_v34 = vunpack.c.h.bf16 %v4306_v16 }
 0x13a   :  { %v2407_v41 = vmul.f32 %v3801_v28, %v1494_v37  ;;  %1813 = vperm.xlu0 %4386, %v3417_v29   ;;  %v2756_v60 = vsel %vm2572_vm0, %v2408_v47, 0.0 }
 0x13b   :  { %v2751_v44 = vadd.f32 %v2750_v40, %v2749_v36  ;;  %v1509_v45 = vpop.permute.xlu1 %1508  ;;  %v3824_v40 = vunpack.c.l.bf16 %v4307_v30 }
 0x13c   :  { %1828 = vperm.xlu1 %4392, %v3424_v35   ;;  %v2754_v54 = vsel %vm2572_vm0, %v2407_v41, 0.0  ;;  %v2410_v61 = vmul.f32 %v3808_v48, %v1509_v45  ;;  %v3437_v35 = vunpack.c.h.bf16 %v4211_v3  ;;  %v3444_v41 = vunpack.c.l.bf16 %v4213_v31  ;;  %v4214_v45 = vld [vmem:[%s5470_s0 + $0x2a8] sm:$0xff]  }
 0x13d   :  { %v2753_v50 = vadd.f32 %v2752_v46, %v2751_v44  ;;  %v1504_v51 = vpop.permute.xlu0 %1503  ;;  %v4308_v44 = vld [vmem:[%s5471_s1 + $0x1a0] sm:$0xff]   ;;  %v3825_v48 = vunpack.c.h.bf16 %v4307_v30 }
 0x13e   :  { %v2409_v55 = vmul.f32 %v3805_v42, %v1504_v51  ;;  %1823 = vperm.xlu0 %4386, %v3421_v43   ;;  %v2760_v10 = vsel %vm2572_vm0, %v2410_v61, 0.0 }
 0x13f   :  { %v2755_v58 = vadd.f32 %v2754_v54, %v2753_v50  ;;  %v1519_v59 = vpop.permute.xlu1 %1518  ;;  %v3828_v54 = vunpack.c.l.bf16 %v4308_v44 }
 0x140   :  { %1838 = vperm.xlu1 %4392, %v3428_v49   ;;  %v2758_v4 = vsel %vm2572_vm0, %v2409_v55, 0.0  ;;  %v2412_v11 = vmul.f32 %v3812_v62, %v1519_v59  ;;  %v3441_v49 = vunpack.c.h.bf16 %v4212_v17  ;;  %v3448_v55 = vunpack.c.l.bf16 %v4214_v45  ;;  %v4215_v59 = vld [vmem:[%s5470_s0 + $0x2b0] sm:$0xff]  }
 0x141   :  { %v2757_v0 = vadd.f32 %v2756_v60, %v2755_v58  ;;  %v1514_v1 = vpop.permute.xlu0 %1513  ;;  %v4309_v58 = vld [vmem:[%s5471_s1 + $0x1a8] sm:$0xff]   ;;  %v3829_v62 = vunpack.c.h.bf16 %v4308_v44 }
 0x142   :  { %v2411_v5 = vmul.f32 %v3809_v56, %v1514_v1  ;;  %1833 = vperm.xlu0 %4386, %v3425_v57   ;;  %v2764_v24 = vsel %vm2572_vm0, %v2412_v11, 0.0 }
 0x143   :  { %v2759_v8 = vadd.f32 %v2758_v4, %v2757_v0  ;;  %v1529_v9 = vpop.permute.xlu1 %1528  ;;  %v3832_v4 = vunpack.c.l.bf16 %v4309_v58 }
 0x144   :  { %1848 = vperm.xlu1 %4392, %v3432_v63   ;;  %v2762_v18 = vsel %vm2572_vm0, %v2411_v5, 0.0  ;;  %v2414_v25 = vmul.f32 %v3816_v12, %v1529_v9  ;;  %v3445_v63 = vunpack.c.h.bf16 %v4213_v31  ;;  %v3452_v5 = vunpack.c.l.bf16 %v4215_v59  ;;  %v4216_v9 = vld [vmem:[%s5470_s0 + $0x2b8] sm:$0xff]  }
 0x145   :  { %v2761_v14 = vadd.f32 %v2760_v10, %v2759_v8  ;;  %v1524_v15 = vpop.permute.xlu0 %1523  ;;  %v4310_v8 = vld [vmem:[%s5471_s1 + $0x1b0] sm:$0xff]   ;;  %v3833_v12 = vunpack.c.h.bf16 %v4309_v58 }
 0x146   :  { %v2413_v19 = vmul.f32 %v3813_v6, %v1524_v15  ;;  %1843 = vperm.xlu0 %4386, %v3429_v7   ;;  %v2768_v38 = vsel %vm2572_vm0, %v2414_v25, 0.0 }
 0x147   :  { %v2763_v22 = vadd.f32 %v2762_v18, %v2761_v14  ;;  %v1539_v23 = vpop.permute.xlu1 %1538  ;;  %v3836_v18 = vunpack.c.l.bf16 %v4310_v8 }
 0x148   :  { %1858 = vperm.xlu1 %4392, %v3436_v13   ;;  %v2766_v32 = vsel %vm2572_vm0, %v2413_v19, 0.0  ;;  %v2416_v39 = vmul.f32 %v3820_v26, %v1539_v23  ;;  %v3449_v13 = vunpack.c.h.bf16 %v4214_v45  ;;  %v3456_v19 = vunpack.c.l.bf16 %v4216_v9  ;;  %v4217_v23 = vld [vmem:[%s5470_s0 + $0x2c0] sm:$0xff]  }
 0x149   :  { %v2765_v28 = vadd.f32 %v2764_v24, %v2763_v22  ;;  %v1534_v29 = vpop.permute.xlu0 %1533  ;;  %v4311_v22 = vld [vmem:[%s5471_s1 + $0x1b8] sm:$0xff]   ;;  %v3837_v26 = vunpack.c.h.bf16 %v4310_v8 }
 0x14a   :  { %v2415_v33 = vmul.f32 %v3817_v20, %v1534_v29  ;;  %1853 = vperm.xlu0 %4386, %v3433_v21   ;;  %v2772_v52 = vsel %vm2572_vm0, %v2416_v39, 0.0 }
 0x14b   :  { %v2767_v36 = vadd.f32 %v2766_v32, %v2765_v28  ;;  %v1549_v37 = vpop.permute.xlu1 %1548  ;;  %v3840_v32 = vunpack.c.l.bf16 %v4311_v22 }
 0x14c   :  { %1868 = vperm.xlu1 %4392, %v3440_v27   ;;  %v2770_v46 = vsel %vm2572_vm0, %v2415_v33, 0.0  ;;  %v2418_v53 = vmul.f32 %v3824_v40, %v1549_v37  ;;  %v3453_v27 = vunpack.c.h.bf16 %v4215_v59  ;;  %v3460_v33 = vunpack.c.l.bf16 %v4217_v23  ;;  %v4218_v37 = vld [vmem:[%s5470_s0 + $0x2c8] sm:$0xff]  }
 0x14d   :  { %v2769_v42 = vadd.f32 %v2768_v38, %v2767_v36  ;;  %v1544_v43 = vpop.permute.xlu0 %1543  ;;  %v4312_v36 = vld [vmem:[%s5471_s1 + $0x1c0] sm:$0xff]   ;;  %v3841_v40 = vunpack.c.h.bf16 %v4311_v22 }
 0x14e   :  { %v2417_v47 = vmul.f32 %v3821_v34, %v1544_v43  ;;  %1863 = vperm.xlu0 %4386, %v3437_v35   ;;  %v2776_v2 = vsel %vm2572_vm0, %v2418_v53, 0.0 }
 0x14f   :  { %v2771_v50 = vadd.f32 %v2770_v46, %v2769_v42  ;;  %v1559_v51 = vpop.permute.xlu1 %1558  ;;  %v3844_v46 = vunpack.c.l.bf16 %v4312_v36 }
 0x150   :  { %1878 = vperm.xlu1 %4392, %v3444_v41   ;;  %v2774_v60 = vsel %vm2572_vm0, %v2417_v47, 0.0  ;;  %v2420_v3 = vmul.f32 %v3828_v54, %v1559_v51  ;;  %v3457_v41 = vunpack.c.h.bf16 %v4216_v9  ;;  %v3464_v47 = vunpack.c.l.bf16 %v4218_v37  ;;  %v4219_v51 = vld [vmem:[%s5470_s0 + $0x2d0] sm:$0xff]  }
 0x151   :  { %v2773_v56 = vadd.f32 %v2772_v52, %v2771_v50  ;;  %v1554_v57 = vpop.permute.xlu0 %1553  ;;  %v4313_v50 = vld [vmem:[%s5471_s1 + $0x1c8] sm:$0xff]   ;;  %v3845_v54 = vunpack.c.h.bf16 %v4312_v36 }
 0x152   :  { %v2419_v61 = vmul.f32 %v3825_v48, %v1554_v57  ;;  %1873 = vperm.xlu0 %4386, %v3441_v49   ;;  %v2780_v16 = vsel %vm2572_vm0, %v2420_v3, 0.0 }
 0x153   :  { %v2775_v0 = vadd.f32 %v2774_v60, %v2773_v56  ;;  %v1569_v1 = vpop.permute.xlu1 %1568  ;;  %v3848_v60 = vunpack.c.l.bf16 %v4313_v50 }
 0x154   :  { %1888 = vperm.xlu1 %4392, %v3448_v55   ;;  %v2778_v10 = vsel %vm2572_vm0, %v2419_v61, 0.0  ;;  %v2422_v17 = vmul.f32 %v3832_v4, %v1569_v1  ;;  %v3461_v55 = vunpack.c.h.bf16 %v4217_v23  ;;  %v3468_v61 = vunpack.c.l.bf16 %v4219_v51  ;;  %v4220_v1 = vld [vmem:[%s5470_s0 + $0x2d8] sm:$0xff]  }
 0x155   :  { %v2777_v6 = vadd.f32 %v2776_v2, %v2775_v0  ;;  %v1564_v7 = vpop.permute.xlu0 %1563  ;;  %v4314_v0 = vld [vmem:[%s5471_s1 + $0x1d0] sm:$0xff]   ;;  %v3849_v4 = vunpack.c.h.bf16 %v4313_v50 }
 0x156   :  { %v2421_v11 = vmul.f32 %v3829_v62, %v1564_v7  ;;  %1883 = vperm.xlu0 %4386, %v3445_v63   ;;  %v2784_v30 = vsel %vm2572_vm0, %v2422_v17, 0.0 }
 0x157   :  { %v2779_v14 = vadd.f32 %v2778_v10, %v2777_v6  ;;  %v1579_v15 = vpop.permute.xlu1 %1578  ;;  %v3852_v10 = vunpack.c.l.bf16 %v4314_v0 }
 0x158   :  { %1898 = vperm.xlu1 %4392, %v3452_v5   ;;  %v2782_v24 = vsel %vm2572_vm0, %v2421_v11, 0.0  ;;  %v2424_v31 = vmul.f32 %v3836_v18, %v1579_v15  ;;  %v3465_v5 = vunpack.c.h.bf16 %v4218_v37  ;;  %v3472_v11 = vunpack.c.l.bf16 %v4220_v1  ;;  %v4221_v15 = vld [vmem:[%s5470_s0 + $0x2e0] sm:$0xff]  }
 0x159   :  { %v2781_v20 = vadd.f32 %v2780_v16, %v2779_v14  ;;  %v1574_v21 = vpop.permute.xlu0 %1573  ;;  %v4315_v14 = vld [vmem:[%s5471_s1 + $0x1d8] sm:$0xff]   ;;  %v3853_v18 = vunpack.c.h.bf16 %v4314_v0 }
 0x15a   :  { %v2423_v25 = vmul.f32 %v3833_v12, %v1574_v21  ;;  %1893 = vperm.xlu0 %4386, %v3449_v13   ;;  %v2788_v44 = vsel %vm2572_vm0, %v2424_v31, 0.0 }
 0x15b   :  { %v2783_v28 = vadd.f32 %v2782_v24, %v2781_v20  ;;  %v1589_v29 = vpop.permute.xlu1 %1588  ;;  %v3856_v24 = vunpack.c.l.bf16 %v4315_v14 }
 0x15c   :  { %1908 = vperm.xlu1 %4392, %v3456_v19   ;;  %v2786_v38 = vsel %vm2572_vm0, %v2423_v25, 0.0  ;;  %v2426_v45 = vmul.f32 %v3840_v32, %v1589_v29  ;;  %v3469_v19 = vunpack.c.h.bf16 %v4219_v51  ;;  %v3476_v25 = vunpack.c.l.bf16 %v4221_v15  ;;  %v4222_v29 = vld [vmem:[%s5470_s0 + $0x2e8] sm:$0xff]  }
 0x15d   :  { %v2785_v34 = vadd.f32 %v2784_v30, %v2783_v28  ;;  %v1584_v35 = vpop.permute.xlu0 %1583  ;;  %v4316_v28 = vld [vmem:[%s5471_s1 + $0x1e0] sm:$0xff]   ;;  %v3857_v32 = vunpack.c.h.bf16 %v4315_v14 }
 0x15e   :  { %v2425_v39 = vmul.f32 %v3837_v26, %v1584_v35  ;;  %1903 = vperm.xlu0 %4386, %v3453_v27   ;;  %v2792_v58 = vsel %vm2572_vm0, %v2426_v45, 0.0 }
 0x15f   :  { %v2787_v42 = vadd.f32 %v2786_v38, %v2785_v34  ;;  %v1599_v43 = vpop.permute.xlu1 %1598  ;;  %v3860_v38 = vunpack.c.l.bf16 %v4316_v28 }
 0x160   :  { %1918 = vperm.xlu1 %4392, %v3460_v33   ;;  %v2790_v52 = vsel %vm2572_vm0, %v2425_v39, 0.0  ;;  %v2428_v59 = vmul.f32 %v3844_v46, %v1599_v43  ;;  %v3473_v33 = vunpack.c.h.bf16 %v4220_v1  ;;  %v3480_v39 = vunpack.c.l.bf16 %v4222_v29  ;;  %v4223_v43 = vld [vmem:[%s5470_s0 + $0x2f0] sm:$0xff]  }
 0x161   :  { %v2789_v48 = vadd.f32 %v2788_v44, %v2787_v42  ;;  %v1594_v49 = vpop.permute.xlu0 %1593  ;;  %v4317_v42 = vld [vmem:[%s5471_s1 + $0x1e8] sm:$0xff]   ;;  %v3861_v46 = vunpack.c.h.bf16 %v4316_v28 }
 0x162   :  { %v2427_v53 = vmul.f32 %v3841_v40, %v1594_v49  ;;  %1913 = vperm.xlu0 %4386, %v3457_v41   ;;  %v2796_v8 = vsel %vm2572_vm0, %v2428_v59, 0.0 }
 0x163   :  { %v2791_v56 = vadd.f32 %v2790_v52, %v2789_v48  ;;  %v1609_v57 = vpop.permute.xlu1 %1608  ;;  %v3864_v52 = vunpack.c.l.bf16 %v4317_v42 }
 0x164   :  { %1928 = vperm.xlu1 %4392, %v3464_v47   ;;  %v2794_v2 = vsel %vm2572_vm0, %v2427_v53, 0.0  ;;  %v2430_v9 = vmul.f32 %v3848_v60, %v1609_v57  ;;  %v3477_v47 = vunpack.c.h.bf16 %v4221_v15  ;;  %v3484_v53 = vunpack.c.l.bf16 %v4223_v43  ;;  %v4224_v57 = vld [vmem:[%s5470_s0 + $0x2f8] sm:$0xff]  }
 0x165   :  { %v2793_v62 = vadd.f32 %v2792_v58, %v2791_v56  ;;  %v1604_v63 = vpop.permute.xlu0 %1603  ;;  %v4318_v56 = vld [vmem:[%s5471_s1 + $0x1f0] sm:$0xff]   ;;  %v3865_v60 = vunpack.c.h.bf16 %v4317_v42 }
 0x166   :  { %v2429_v3 = vmul.f32 %v3845_v54, %v1604_v63  ;;  %1923 = vperm.xlu0 %4386, %v3461_v55   ;;  %v2800_v22 = vsel %vm2572_vm0, %v2430_v9, 0.0 }
 0x167   :  { %v2795_v6 = vadd.f32 %v2794_v2, %v2793_v62  ;;  %v1619_v7 = vpop.permute.xlu1 %1618  ;;  %v3868_v2 = vunpack.c.l.bf16 %v4318_v56 }
 0x168   :  { %1938 = vperm.xlu1 %4392, %v3468_v61   ;;  %v2798_v16 = vsel %vm2572_vm0, %v2429_v3, 0.0  ;;  %v2432_v23 = vmul.f32 %v3852_v10, %v1619_v7  ;;  %v3481_v61 = vunpack.c.h.bf16 %v4222_v29  ;;  %v3488_v3 = vunpack.c.l.bf16 %v4224_v57  ;;  %v4225_v7 = vld [vmem:[%s5470_s0 + $0x300] sm:$0xff]  }
 0x169   :  { %v2797_v12 = vadd.f32 %v2796_v8, %v2795_v6  ;;  %v1614_v13 = vpop.permute.xlu0 %1613  ;;  %v4319_v6 = vld [vmem:[%s5471_s1 + $0x1f8] sm:$0xff]   ;;  %v3869_v10 = vunpack.c.h.bf16 %v4318_v56 }
 0x16a   :  { %v2431_v17 = vmul.f32 %v3849_v4, %v1614_v13  ;;  %1933 = vperm.xlu0 %4386, %v3465_v5   ;;  %v2804_v36 = vsel %vm2572_vm0, %v2432_v23, 0.0 }
 0x16b   :  { %v2799_v20 = vadd.f32 %v2798_v16, %v2797_v12  ;;  %v1629_v21 = vpop.permute.xlu1 %1628  ;;  %v3872_v16 = vunpack.c.l.bf16 %v4319_v6 }
 0x16c   :  { %1948 = vperm.xlu1 %4392, %v3472_v11   ;;  %v2802_v30 = vsel %vm2572_vm0, %v2431_v17, 0.0  ;;  %v2434_v37 = vmul.f32 %v3856_v24, %v1629_v21  ;;  %v3485_v11 = vunpack.c.h.bf16 %v4223_v43  ;;  %v3492_v17 = vunpack.c.l.bf16 %v4225_v7  ;;  %v4226_v21 = vld [vmem:[%s5470_s0 + $0x308] sm:$0xff]  }
 0x16d   :  { %v2801_v26 = vadd.f32 %v2800_v22, %v2799_v20  ;;  %v1624_v27 = vpop.permute.xlu0 %1623  ;;  %v4320_v20 = vld [vmem:[%s5471_s1 + $0x200] sm:$0xff]   ;;  %v3873_v24 = vunpack.c.h.bf16 %v4319_v6 }
 0x16e   :  { %v2433_v31 = vmul.f32 %v3853_v18, %v1624_v27  ;;  %1943 = vperm.xlu0 %4386, %v3469_v19   ;;  %v2808_v50 = vsel %vm2572_vm0, %v2434_v37, 0.0 }
 0x16f   :  { %v2803_v34 = vadd.f32 %v2802_v30, %v2801_v26  ;;  %v1639_v35 = vpop.permute.xlu1 %1638  ;;  %v3876_v30 = vunpack.c.l.bf16 %v4320_v20 }
 0x170   :  { %1958 = vperm.xlu1 %4392, %v3476_v25   ;;  %v2806_v44 = vsel %vm2572_vm0, %v2433_v31, 0.0  ;;  %v2436_v51 = vmul.f32 %v3860_v38, %v1639_v35  ;;  %v3489_v25 = vunpack.c.h.bf16 %v4224_v57  ;;  %v3496_v31 = vunpack.c.l.bf16 %v4226_v21  ;;  %v4227_v35 = vld [vmem:[%s5470_s0 + $0x310] sm:$0xff]  }
 0x171   :  { %v2805_v40 = vadd.f32 %v2804_v36, %v2803_v34  ;;  %v1634_v41 = vpop.permute.xlu0 %1633  ;;  %v4321_v34 = vld [vmem:[%s5471_s1 + $0x208] sm:$0xff]   ;;  %v3877_v38 = vunpack.c.h.bf16 %v4320_v20 }
 0x172   :  { %v2435_v45 = vmul.f32 %v3857_v32, %v1634_v41  ;;  %1953 = vperm.xlu0 %4386, %v3473_v33   ;;  %v2812_v0 = vsel %vm2572_vm0, %v2436_v51, 0.0 }
 0x173   :  { %v2807_v48 = vadd.f32 %v2806_v44, %v2805_v40  ;;  %v1649_v49 = vpop.permute.xlu1 %1648  ;;  %v3880_v44 = vunpack.c.l.bf16 %v4321_v34 }
 0x174   :  { %1968 = vperm.xlu1 %4392, %v3480_v39   ;;  %v2810_v58 = vsel %vm2572_vm0, %v2435_v45, 0.0  ;;  %v2438_v1 = vmul.f32 %v3864_v52, %v1649_v49  ;;  %v3493_v39 = vunpack.c.h.bf16 %v4225_v7  ;;  %v3500_v45 = vunpack.c.l.bf16 %v4227_v35  ;;  %v4228_v49 = vld [vmem:[%s5470_s0 + $0x318] sm:$0xff]  }
 0x175   :  { %v2809_v54 = vadd.f32 %v2808_v50, %v2807_v48  ;;  %v1644_v55 = vpop.permute.xlu0 %1643  ;;  %v4322_v48 = vld [vmem:[%s5471_s1 + $0x210] sm:$0xff]   ;;  %v3881_v52 = vunpack.c.h.bf16 %v4321_v34 }
 0x176   :  { %v2437_v59 = vmul.f32 %v3861_v46, %v1644_v55  ;;  %1963 = vperm.xlu0 %4386, %v3477_v47   ;;  %v2816_v14 = vsel %vm2572_vm0, %v2438_v1, 0.0 }
 0x177   :  { %v2811_v62 = vadd.f32 %v2810_v58, %v2809_v54  ;;  %v1659_v63 = vpop.permute.xlu1 %1658  ;;  %v3884_v58 = vunpack.c.l.bf16 %v4322_v48 }
 0x178   :  { %1978 = vperm.xlu1 %4392, %v3484_v53   ;;  %v2814_v8 = vsel %vm2572_vm0, %v2437_v59, 0.0  ;;  %v2440_v15 = vmul.f32 %v3868_v2, %v1659_v63  ;;  %v3497_v53 = vunpack.c.h.bf16 %v4226_v21  ;;  %v3504_v59 = vunpack.c.l.bf16 %v4228_v49  ;;  %v4229_v63 = vld [vmem:[%s5470_s0 + $0x320] sm:$0xff]  }
 0x179   :  { %v2813_v4 = vadd.f32 %v2812_v0, %v2811_v62  ;;  %v1654_v5 = vpop.permute.xlu0 %1653  ;;  %v4323_v62 = vld [vmem:[%s5471_s1 + $0x218] sm:$0xff]   ;;  %v3885_v2 = vunpack.c.h.bf16 %v4322_v48 }
 0x17a   :  { %v2439_v9 = vmul.f32 %v3865_v60, %v1654_v5  ;;  %1973 = vperm.xlu0 %4386, %v3481_v61   ;;  %v2820_v28 = vsel %vm2572_vm0, %v2440_v15, 0.0 }
 0x17b   :  { %v2815_v12 = vadd.f32 %v2814_v8, %v2813_v4  ;;  %v1669_v13 = vpop.permute.xlu1 %1668  ;;  %v3888_v8 = vunpack.c.l.bf16 %v4323_v62 }
 0x17c   :  { %1988 = vperm.xlu1 %4392, %v3488_v3   ;;  %v2818_v22 = vsel %vm2572_vm0, %v2439_v9, 0.0  ;;  %v2442_v29 = vmul.f32 %v3872_v16, %v1669_v13  ;;  %v3501_v3 = vunpack.c.h.bf16 %v4227_v35  ;;  %v3508_v9 = vunpack.c.l.bf16 %v4229_v63  ;;  %v4230_v13 = vld [vmem:[%s5470_s0 + $0x328] sm:$0xff]  }
 0x17d   :  { %v2817_v18 = vadd.f32 %v2816_v14, %v2815_v12  ;;  %v1664_v19 = vpop.permute.xlu0 %1663  ;;  %v4324_v12 = vld [vmem:[%s5471_s1 + $0x220] sm:$0xff]   ;;  %v3889_v16 = vunpack.c.h.bf16 %v4323_v62 }
 0x17e   :  { %v2441_v23 = vmul.f32 %v3869_v10, %v1664_v19  ;;  %1983 = vperm.xlu0 %4386, %v3485_v11   ;;  %v2824_v42 = vsel %vm2572_vm0, %v2442_v29, 0.0 }
 0x17f   :  { %v2819_v26 = vadd.f32 %v2818_v22, %v2817_v18  ;;  %v1679_v27 = vpop.permute.xlu1 %1678  ;;  %v3892_v22 = vunpack.c.l.bf16 %v4324_v12 }
 0x180   :  { %1998 = vperm.xlu1 %4392, %v3492_v17   ;;  %v2822_v36 = vsel %vm2572_vm0, %v2441_v23, 0.0  ;;  %v2444_v43 = vmul.f32 %v3876_v30, %v1679_v27  ;;  %v3505_v17 = vunpack.c.h.bf16 %v4228_v49  ;;  %v3512_v23 = vunpack.c.l.bf16 %v4230_v13  ;;  %v4231_v27 = vld [vmem:[%s5470_s0 + $0x330] sm:$0xff]  }
 0x181   :  { %v2821_v32 = vadd.f32 %v2820_v28, %v2819_v26  ;;  %v1674_v33 = vpop.permute.xlu0 %1673  ;;  %v4325_v26 = vld [vmem:[%s5471_s1 + $0x228] sm:$0xff]   ;;  %v3893_v30 = vunpack.c.h.bf16 %v4324_v12 }
 0x182   :  { %v2443_v37 = vmul.f32 %v3873_v24, %v1674_v33  ;;  %1993 = vperm.xlu0 %4386, %v3489_v25   ;;  %v2828_v56 = vsel %vm2572_vm0, %v2444_v43, 0.0 }
 0x183   :  { %v2823_v40 = vadd.f32 %v2822_v36, %v2821_v32  ;;  %v1689_v41 = vpop.permute.xlu1 %1688  ;;  %v3896_v36 = vunpack.c.l.bf16 %v4325_v26 }
 0x184   :  { %2008 = vperm.xlu1 %4392, %v3496_v31   ;;  %v2826_v50 = vsel %vm2572_vm0, %v2443_v37, 0.0  ;;  %v2446_v57 = vmul.f32 %v3880_v44, %v1689_v41  ;;  %v3509_v31 = vunpack.c.h.bf16 %v4229_v63  ;;  %v3516_v37 = vunpack.c.l.bf16 %v4231_v27  ;;  %v4232_v41 = vld [vmem:[%s5470_s0 + $0x338] sm:$0xff]  }
 0x185   :  { %v2825_v46 = vadd.f32 %v2824_v42, %v2823_v40  ;;  %v1684_v47 = vpop.permute.xlu0 %1683  ;;  %v4326_v40 = vld [vmem:[%s5471_s1 + $0x230] sm:$0xff]   ;;  %v3897_v44 = vunpack.c.h.bf16 %v4325_v26 }
 0x186   :  { %v2445_v51 = vmul.f32 %v3877_v38, %v1684_v47  ;;  %2003 = vperm.xlu0 %4386, %v3493_v39   ;;  %v2832_v6 = vsel %vm2572_vm0, %v2446_v57, 0.0 }
 0x187   :  { %v2827_v54 = vadd.f32 %v2826_v50, %v2825_v46  ;;  %v1699_v55 = vpop.permute.xlu1 %1698  ;;  %v3900_v50 = vunpack.c.l.bf16 %v4326_v40 }
 0x188   :  { %2018 = vperm.xlu1 %4392, %v3500_v45   ;;  %v2830_v0 = vsel %vm2572_vm0, %v2445_v51, 0.0  ;;  %v2448_v7 = vmul.f32 %v3884_v58, %v1699_v55  ;;  %v3513_v45 = vunpack.c.h.bf16 %v4230_v13  ;;  %v3520_v51 = vunpack.c.l.bf16 %v4232_v41  ;;  %v4233_v55 = vld [vmem:[%s5470_s0 + $0x340] sm:$0xff]  }
 0x189   :  { %v2829_v60 = vadd.f32 %v2828_v56, %v2827_v54  ;;  %v1694_v61 = vpop.permute.xlu0 %1693  ;;  %v4327_v54 = vld [vmem:[%s5471_s1 + $0x238] sm:$0xff]   ;;  %v3901_v58 = vunpack.c.h.bf16 %v4326_v40 }
 0x18a   :  { %v2447_v1 = vmul.f32 %v3881_v52, %v1694_v61  ;;  %2013 = vperm.xlu0 %4386, %v3497_v53   ;;  %v2836_v20 = vsel %vm2572_vm0, %v2448_v7, 0.0 }
 0x18b   :  { %v2831_v4 = vadd.f32 %v2830_v0, %v2829_v60  ;;  %v1709_v5 = vpop.permute.xlu1 %1708  ;;  %v3904_v0 = vunpack.c.l.bf16 %v4327_v54 }
 0x18c   :  { %2028 = vperm.xlu1 %4392, %v3504_v59   ;;  %v2834_v14 = vsel %vm2572_vm0, %v2447_v1, 0.0  ;;  %v2450_v21 = vmul.f32 %v3888_v8, %v1709_v5  ;;  %v3517_v59 = vunpack.c.h.bf16 %v4231_v27  ;;  %v3524_v1 = vunpack.c.l.bf16 %v4233_v55  ;;  %v4234_v5 = vld [vmem:[%s5470_s0 + $0x348] sm:$0xff]  }
 0x18d   :  { %v2833_v10 = vadd.f32 %v2832_v6, %v2831_v4  ;;  %v1704_v11 = vpop.permute.xlu0 %1703  ;;  %v4328_v4 = vld [vmem:[%s5471_s1 + $0x240] sm:$0xff]   ;;  %v3905_v8 = vunpack.c.h.bf16 %v4327_v54 }
 0x18e   :  { %v2449_v15 = vmul.f32 %v3885_v2, %v1704_v11  ;;  %2023 = vperm.xlu0 %4386, %v3501_v3   ;;  %v2840_v34 = vsel %vm2572_vm0, %v2450_v21, 0.0 }
 0x18f   :  { %v2835_v18 = vadd.f32 %v2834_v14, %v2833_v10  ;;  %v1719_v19 = vpop.permute.xlu1 %1718  ;;  %v3908_v14 = vunpack.c.l.bf16 %v4328_v4 }
 0x190   :  { %2038 = vperm.xlu1 %4392, %v3508_v9   ;;  %v2838_v28 = vsel %vm2572_vm0, %v2449_v15, 0.0  ;;  %v2452_v35 = vmul.f32 %v3892_v22, %v1719_v19  ;;  %v3521_v9 = vunpack.c.h.bf16 %v4232_v41  ;;  %v3528_v15 = vunpack.c.l.bf16 %v4234_v5  ;;  %v4235_v19 = vld [vmem:[%s5470_s0 + $0x350] sm:$0xff]  }
 0x191   :  { %v2837_v24 = vadd.f32 %v2836_v20, %v2835_v18  ;;  %v1714_v25 = vpop.permute.xlu0 %1713  ;;  %v4329_v18 = vld [vmem:[%s5471_s1 + $0x248] sm:$0xff]   ;;  %v3909_v22 = vunpack.c.h.bf16 %v4328_v4 }
 0x192   :  { %v2451_v29 = vmul.f32 %v3889_v16, %v1714_v25  ;;  %2033 = vperm.xlu0 %4386, %v3505_v17   ;;  %v2844_v48 = vsel %vm2572_vm0, %v2452_v35, 0.0 }
 0x193   :  { %v2839_v32 = vadd.f32 %v2838_v28, %v2837_v24  ;;  %v1729_v33 = vpop.permute.xlu1 %1728  ;;  %v3912_v28 = vunpack.c.l.bf16 %v4329_v18 }
 0x194   :  { %2048 = vperm.xlu1 %4392, %v3512_v23   ;;  %v2842_v42 = vsel %vm2572_vm0, %v2451_v29, 0.0  ;;  %v2454_v49 = vmul.f32 %v3896_v36, %v1729_v33  ;;  %v3525_v23 = vunpack.c.h.bf16 %v4233_v55  ;;  %v3532_v29 = vunpack.c.l.bf16 %v4235_v19  ;;  %v4236_v33 = vld [vmem:[%s5470_s0 + $0x358] sm:$0xff]  }
 0x195   :  { %v2841_v38 = vadd.f32 %v2840_v34, %v2839_v32  ;;  %v1724_v39 = vpop.permute.xlu0 %1723  ;;  %v4330_v32 = vld [vmem:[%s5471_s1 + $0x250] sm:$0xff]   ;;  %v3913_v36 = vunpack.c.h.bf16 %v4329_v18 }
 0x196   :  { %v2453_v43 = vmul.f32 %v3893_v30, %v1724_v39  ;;  %2043 = vperm.xlu0 %4386, %v3509_v31   ;;  %v2848_v62 = vsel %vm2572_vm0, %v2454_v49, 0.0 }
 0x197   :  { %v2843_v46 = vadd.f32 %v2842_v42, %v2841_v38  ;;  %v1739_v47 = vpop.permute.xlu1 %1738  ;;  %v3916_v42 = vunpack.c.l.bf16 %v4330_v32 }
 0x198   :  { %2058 = vperm.xlu1 %4392, %v3516_v37   ;;  %v2846_v56 = vsel %vm2572_vm0, %v2453_v43, 0.0  ;;  %v2456_v63 = vmul.f32 %v3900_v50, %v1739_v47  ;;  %v3529_v37 = vunpack.c.h.bf16 %v4234_v5  ;;  %v3536_v43 = vunpack.c.l.bf16 %v4236_v33  ;;  %v4237_v47 = vld [vmem:[%s5470_s0 + $0x360] sm:$0xff]  }
 0x199   :  { %v2845_v52 = vadd.f32 %v2844_v48, %v2843_v46  ;;  %v1734_v53 = vpop.permute.xlu0 %1733  ;;  %v4331_v46 = vld [vmem:[%s5471_s1 + $0x258] sm:$0xff]   ;;  %v3917_v50 = vunpack.c.h.bf16 %v4330_v32 }
 0x19a   :  { %v2455_v57 = vmul.f32 %v3897_v44, %v1734_v53  ;;  %2053 = vperm.xlu0 %4386, %v3513_v45   ;;  %v2852_v12 = vsel %vm2572_vm0, %v2456_v63, 0.0 }
 0x19b   :  { %v2847_v60 = vadd.f32 %v2846_v56, %v2845_v52  ;;  %v1749_v61 = vpop.permute.xlu1 %1748  ;;  %v3920_v56 = vunpack.c.l.bf16 %v4331_v46 }
 0x19c   :  { %2068 = vperm.xlu1 %4392, %v3520_v51   ;;  %v2850_v6 = vsel %vm2572_vm0, %v2455_v57, 0.0  ;;  %v2458_v13 = vmul.f32 %v3904_v0, %v1749_v61  ;;  %v3533_v51 = vunpack.c.h.bf16 %v4235_v19  ;;  %v3540_v57 = vunpack.c.l.bf16 %v4237_v47  ;;  %v4238_v61 = vld [vmem:[%s5470_s0 + $0x368] sm:$0xff]  }
 0x19d   :  { %v2849_v2 = vadd.f32 %v2848_v62, %v2847_v60  ;;  %v1744_v3 = vpop.permute.xlu0 %1743  ;;  %v4332_v60 = vld [vmem:[%s5471_s1 + $0x260] sm:$0xff]   ;;  %v3921_v0 = vunpack.c.h.bf16 %v4331_v46 }
 0x19e   :  { %v2457_v7 = vmul.f32 %v3901_v58, %v1744_v3  ;;  %2063 = vperm.xlu0 %4386, %v3517_v59   ;;  %v2856_v26 = vsel %vm2572_vm0, %v2458_v13, 0.0 }
 0x19f   :  { %v2851_v10 = vadd.f32 %v2850_v6, %v2849_v2  ;;  %v1759_v11 = vpop.permute.xlu1 %1758  ;;  %v3924_v6 = vunpack.c.l.bf16 %v4332_v60 }
 0x1a0   :  { %2078 = vperm.xlu1 %4392, %v3524_v1   ;;  %v2854_v20 = vsel %vm2572_vm0, %v2457_v7, 0.0  ;;  %v2460_v27 = vmul.f32 %v3908_v14, %v1759_v11  ;;  %v3537_v1 = vunpack.c.h.bf16 %v4236_v33  ;;  %v3544_v7 = vunpack.c.l.bf16 %v4238_v61  ;;  %v4239_v11 = vld [vmem:[%s5470_s0 + $0x370] sm:$0xff]  }
 0x1a1   :  { %v2853_v16 = vadd.f32 %v2852_v12, %v2851_v10  ;;  %v1754_v17 = vpop.permute.xlu0 %1753  ;;  %v4333_v10 = vld [vmem:[%s5471_s1 + $0x268] sm:$0xff]   ;;  %v3925_v14 = vunpack.c.h.bf16 %v4332_v60 }
 0x1a2   :  { %v2459_v21 = vmul.f32 %v3905_v8, %v1754_v17  ;;  %2073 = vperm.xlu0 %4386, %v3521_v9   ;;  %v2860_v40 = vsel %vm2572_vm0, %v2460_v27, 0.0 }
 0x1a3   :  { %v2855_v24 = vadd.f32 %v2854_v20, %v2853_v16  ;;  %v1769_v25 = vpop.permute.xlu1 %1768  ;;  %v3928_v20 = vunpack.c.l.bf16 %v4333_v10 }
 0x1a4   :  { %2088 = vperm.xlu1 %4392, %v3528_v15   ;;  %v2858_v34 = vsel %vm2572_vm0, %v2459_v21, 0.0  ;;  %v2462_v41 = vmul.f32 %v3912_v28, %v1769_v25  ;;  %v3541_v15 = vunpack.c.h.bf16 %v4237_v47  ;;  %v3548_v21 = vunpack.c.l.bf16 %v4239_v11  ;;  %v4240_v25 = vld [vmem:[%s5470_s0 + $0x378] sm:$0xff]  }
 0x1a5   :  { %v2857_v30 = vadd.f32 %v2856_v26, %v2855_v24  ;;  %v1764_v31 = vpop.permute.xlu0 %1763  ;;  %v4334_v24 = vld [vmem:[%s5471_s1 + $0x270] sm:$0xff]   ;;  %v3929_v28 = vunpack.c.h.bf16 %v4333_v10 }
 0x1a6   :  { %v2461_v35 = vmul.f32 %v3909_v22, %v1764_v31  ;;  %2083 = vperm.xlu0 %4386, %v3525_v23   ;;  %v2864_v54 = vsel %vm2572_vm0, %v2462_v41, 0.0 }
 0x1a7   :  { %v2859_v38 = vadd.f32 %v2858_v34, %v2857_v30  ;;  %v1779_v39 = vpop.permute.xlu1 %1778  ;;  %v3932_v34 = vunpack.c.l.bf16 %v4334_v24 }
 0x1a8   :  { %2098 = vperm.xlu1 %4392, %v3532_v29   ;;  %v2862_v48 = vsel %vm2572_vm0, %v2461_v35, 0.0  ;;  %v2464_v55 = vmul.f32 %v3916_v42, %v1779_v39  ;;  %v3545_v29 = vunpack.c.h.bf16 %v4238_v61  ;;  %v3552_v35 = vunpack.c.l.bf16 %v4240_v25  ;;  %v4241_v39 = vld [vmem:[%s5470_s0 + $0x380] sm:$0xff]  }
 0x1a9   :  { %v2861_v44 = vadd.f32 %v2860_v40, %v2859_v38  ;;  %v1774_v45 = vpop.permute.xlu0 %1773  ;;  %v4335_v38 = vld [vmem:[%s5471_s1 + $0x278] sm:$0xff]   ;;  %v3933_v42 = vunpack.c.h.bf16 %v4334_v24 }
 0x1aa   :  { %v2463_v49 = vmul.f32 %v3913_v36, %v1774_v45  ;;  %2093 = vperm.xlu0 %4386, %v3529_v37   ;;  %v2868_v4 = vsel %vm2572_vm0, %v2464_v55, 0.0 }
 0x1ab   :  { %v2863_v52 = vadd.f32 %v2862_v48, %v2861_v44  ;;  %v1789_v53 = vpop.permute.xlu1 %1788  ;;  %v3936_v48 = vunpack.c.l.bf16 %v4335_v38 }
 0x1ac   :  { %2108 = vperm.xlu1 %4392, %v3536_v43   ;;  %v2866_v62 = vsel %vm2572_vm0, %v2463_v49, 0.0  ;;  %v2466_v5 = vmul.f32 %v3920_v56, %v1789_v53  ;;  %v3549_v43 = vunpack.c.h.bf16 %v4239_v11  ;;  %v3556_v49 = vunpack.c.l.bf16 %v4241_v39  ;;  %v4242_v53 = vld [vmem:[%s5470_s0 + $0x388] sm:$0xff]  }
 0x1ad   :  { %v2865_v58 = vadd.f32 %v2864_v54, %v2863_v52  ;;  %v1784_v59 = vpop.permute.xlu0 %1783  ;;  %v4336_v52 = vld [vmem:[%s5471_s1 + $0x280] sm:$0xff]   ;;  %v3937_v56 = vunpack.c.h.bf16 %v4335_v38 }
 0x1ae   :  { %v2465_v63 = vmul.f32 %v3917_v50, %v1784_v59  ;;  %2103 = vperm.xlu0 %4386, %v3533_v51   ;;  %v2872_v18 = vsel %vm2572_vm0, %v2466_v5, 0.0 }
 0x1af   :  { %v2867_v2 = vadd.f32 %v2866_v62, %v2865_v58  ;;  %v1799_v3 = vpop.permute.xlu1 %1798  ;;  %v3940_v62 = vunpack.c.l.bf16 %v4336_v52 }
 0x1b0   :  { %2118 = vperm.xlu1 %4392, %v3540_v57   ;;  %v2870_v12 = vsel %vm2572_vm0, %v2465_v63, 0.0  ;;  %v2468_v19 = vmul.f32 %v3924_v6, %v1799_v3  ;;  %v3553_v57 = vunpack.c.h.bf16 %v4240_v25  ;;  %v3560_v63 = vunpack.c.l.bf16 %v4242_v53  ;;  %v4243_v3 = vld [vmem:[%s5470_s0 + $0x390] sm:$0xff]  }
 0x1b1   :  { %v2869_v8 = vadd.f32 %v2868_v4, %v2867_v2  ;;  %v1794_v9 = vpop.permute.xlu0 %1793  ;;  %v4337_v2 = vld [vmem:[%s5471_s1 + $0x288] sm:$0xff]   ;;  %v3941_v6 = vunpack.c.h.bf16 %v4336_v52 }
 0x1b2   :  { %v2467_v13 = vmul.f32 %v3921_v0, %v1794_v9  ;;  %2113 = vperm.xlu0 %4386, %v3537_v1   ;;  %v2876_v32 = vsel %vm2572_vm0, %v2468_v19, 0.0 }
 0x1b3   :  { %v2871_v16 = vadd.f32 %v2870_v12, %v2869_v8  ;;  %v1809_v17 = vpop.permute.xlu1 %1808  ;;  %v3944_v12 = vunpack.c.l.bf16 %v4337_v2 }
 0x1b4   :  { %2128 = vperm.xlu1 %4392, %v3544_v7   ;;  %v2874_v26 = vsel %vm2572_vm0, %v2467_v13, 0.0  ;;  %v2470_v33 = vmul.f32 %v3928_v20, %v1809_v17  ;;  %v3557_v7 = vunpack.c.h.bf16 %v4241_v39  ;;  %v3564_v13 = vunpack.c.l.bf16 %v4243_v3  ;;  %v4244_v17 = vld [vmem:[%s5470_s0 + $0x398] sm:$0xff]  }
 0x1b5   :  { %v2873_v22 = vadd.f32 %v2872_v18, %v2871_v16  ;;  %v1804_v23 = vpop.permute.xlu0 %1803  ;;  %v4338_v16 = vld [vmem:[%s5471_s1 + $0x290] sm:$0xff]   ;;  %v3945_v20 = vunpack.c.h.bf16 %v4337_v2 }
 0x1b6   :  { %v2469_v27 = vmul.f32 %v3925_v14, %v1804_v23  ;;  %2123 = vperm.xlu0 %4386, %v3541_v15   ;;  %v2880_v46 = vsel %vm2572_vm0, %v2470_v33, 0.0 }
 0x1b7   :  { %v2875_v30 = vadd.f32 %v2874_v26, %v2873_v22  ;;  %v1819_v31 = vpop.permute.xlu1 %1818  ;;  %v3948_v26 = vunpack.c.l.bf16 %v4338_v16 }
 0x1b8   :  { %2138 = vperm.xlu1 %4392, %v3548_v21   ;;  %v2878_v40 = vsel %vm2572_vm0, %v2469_v27, 0.0  ;;  %v2472_v47 = vmul.f32 %v3932_v34, %v1819_v31  ;;  %v3561_v21 = vunpack.c.h.bf16 %v4242_v53  ;;  %v3568_v27 = vunpack.c.l.bf16 %v4244_v17  ;;  %v4245_v31 = vld [vmem:[%s5470_s0 + $0x3a0] sm:$0xff]  }
 0x1b9   :  { %v2877_v36 = vadd.f32 %v2876_v32, %v2875_v30  ;;  %v1814_v37 = vpop.permute.xlu0 %1813  ;;  %v4339_v30 = vld [vmem:[%s5471_s1 + $0x298] sm:$0xff]   ;;  %v3949_v34 = vunpack.c.h.bf16 %v4338_v16 }
 0x1ba   :  { %v2471_v41 = vmul.f32 %v3929_v28, %v1814_v37  ;;  %2133 = vperm.xlu0 %4386, %v3545_v29   ;;  %v2884_v60 = vsel %vm2572_vm0, %v2472_v47, 0.0 }
 0x1bb   :  { %v2879_v44 = vadd.f32 %v2878_v40, %v2877_v36  ;;  %v1829_v45 = vpop.permute.xlu1 %1828  ;;  %v3952_v40 = vunpack.c.l.bf16 %v4339_v30 }
 0x1bc   :  { %2148 = vperm.xlu1 %4392, %v3552_v35   ;;  %v2882_v54 = vsel %vm2572_vm0, %v2471_v41, 0.0  ;;  %v2474_v61 = vmul.f32 %v3936_v48, %v1829_v45  ;;  %v3565_v35 = vunpack.c.h.bf16 %v4243_v3  ;;  %v3572_v41 = vunpack.c.l.bf16 %v4245_v31  ;;  %v4246_v45 = vld [vmem:[%s5470_s0 + $0x3a8] sm:$0xff]  }
 0x1bd   :  { %v2881_v50 = vadd.f32 %v2880_v46, %v2879_v44  ;;  %v1824_v51 = vpop.permute.xlu0 %1823  ;;  %v4340_v44 = vld [vmem:[%s5471_s1 + $0x2a0] sm:$0xff]   ;;  %v3953_v48 = vunpack.c.h.bf16 %v4339_v30 }
 0x1be   :  { %v2473_v55 = vmul.f32 %v3933_v42, %v1824_v51  ;;  %2143 = vperm.xlu0 %4386, %v3549_v43   ;;  %v2888_v10 = vsel %vm2572_vm0, %v2474_v61, 0.0 }
 0x1bf   :  { %v2883_v58 = vadd.f32 %v2882_v54, %v2881_v50  ;;  %v1839_v59 = vpop.permute.xlu1 %1838  ;;  %v3956_v54 = vunpack.c.l.bf16 %v4340_v44 }
 0x1c0   :  { %2158 = vperm.xlu1 %4392, %v3556_v49   ;;  %v2886_v4 = vsel %vm2572_vm0, %v2473_v55, 0.0  ;;  %v2476_v11 = vmul.f32 %v3940_v62, %v1839_v59  ;;  %v3569_v49 = vunpack.c.h.bf16 %v4244_v17  ;;  %v3576_v55 = vunpack.c.l.bf16 %v4246_v45  ;;  %v4247_v59 = vld [vmem:[%s5470_s0 + $0x3b0] sm:$0xff]  }
 0x1c1   :  { %v2885_v0 = vadd.f32 %v2884_v60, %v2883_v58  ;;  %v1834_v1 = vpop.permute.xlu0 %1833  ;;  %v4341_v58 = vld [vmem:[%s5471_s1 + $0x2a8] sm:$0xff]   ;;  %v3957_v62 = vunpack.c.h.bf16 %v4340_v44 }
 0x1c2   :  { %v2475_v5 = vmul.f32 %v3937_v56, %v1834_v1  ;;  %2153 = vperm.xlu0 %4386, %v3553_v57   ;;  %v2892_v24 = vsel %vm2572_vm0, %v2476_v11, 0.0 }
 0x1c3   :  { %v2887_v8 = vadd.f32 %v2886_v4, %v2885_v0  ;;  %v1849_v9 = vpop.permute.xlu1 %1848  ;;  %v3960_v4 = vunpack.c.l.bf16 %v4341_v58 }
 0x1c4   :  { %2168 = vperm.xlu1 %4392, %v3560_v63   ;;  %v2890_v18 = vsel %vm2572_vm0, %v2475_v5, 0.0  ;;  %v2478_v25 = vmul.f32 %v3944_v12, %v1849_v9  ;;  %v3573_v63 = vunpack.c.h.bf16 %v4245_v31  ;;  %v3580_v5 = vunpack.c.l.bf16 %v4247_v59  ;;  %v4248_v9 = vld [vmem:[%s5470_s0 + $0x3b8] sm:$0xff]  }
 0x1c5   :  { %v2889_v14 = vadd.f32 %v2888_v10, %v2887_v8  ;;  %v1844_v15 = vpop.permute.xlu0 %1843  ;;  %v4342_v8 = vld [vmem:[%s5471_s1 + $0x2b0] sm:$0xff]   ;;  %v3961_v12 = vunpack.c.h.bf16 %v4341_v58 }
 0x1c6   :  { %v2477_v19 = vmul.f32 %v3941_v6, %v1844_v15  ;;  %2163 = vperm.xlu0 %4386, %v3557_v7   ;;  %v2896_v38 = vsel %vm2572_vm0, %v2478_v25, 0.0 }
 0x1c7   :  { %v2891_v22 = vadd.f32 %v2890_v18, %v2889_v14  ;;  %v1859_v23 = vpop.permute.xlu1 %1858  ;;  %v3964_v18 = vunpack.c.l.bf16 %v4342_v8 }
 0x1c8   :  { %2178 = vperm.xlu1 %4392, %v3564_v13   ;;  %v2894_v32 = vsel %vm2572_vm0, %v2477_v19, 0.0  ;;  %v2480_v39 = vmul.f32 %v3948_v26, %v1859_v23  ;;  %v3577_v13 = vunpack.c.h.bf16 %v4246_v45  ;;  %v3584_v19 = vunpack.c.l.bf16 %v4248_v9  ;;  %v4249_v23 = vld [vmem:[%s5470_s0 + $0x3c0] sm:$0xff]  }
 0x1c9   :  { %v2893_v28 = vadd.f32 %v2892_v24, %v2891_v22  ;;  %v1854_v29 = vpop.permute.xlu0 %1853  ;;  %v4343_v22 = vld [vmem:[%s5471_s1 + $0x2b8] sm:$0xff]   ;;  %v3965_v26 = vunpack.c.h.bf16 %v4342_v8 }
 0x1ca   :  { %v2479_v33 = vmul.f32 %v3945_v20, %v1854_v29  ;;  %2173 = vperm.xlu0 %4386, %v3561_v21   ;;  %v2900_v52 = vsel %vm2572_vm0, %v2480_v39, 0.0 }
 0x1cb   :  { %v2895_v36 = vadd.f32 %v2894_v32, %v2893_v28  ;;  %v1869_v37 = vpop.permute.xlu1 %1868  ;;  %v3968_v32 = vunpack.c.l.bf16 %v4343_v22 }
 0x1cc   :  { %2188 = vperm.xlu1 %4392, %v3568_v27   ;;  %v2898_v46 = vsel %vm2572_vm0, %v2479_v33, 0.0  ;;  %v2482_v53 = vmul.f32 %v3952_v40, %v1869_v37  ;;  %v3581_v27 = vunpack.c.h.bf16 %v4247_v59  ;;  %v3588_v33 = vunpack.c.l.bf16 %v4249_v23  ;;  %v4250_v37 = vld [vmem:[%s5470_s0 + $0x3c8] sm:$0xff]  }
 0x1cd   :  { %v2897_v42 = vadd.f32 %v2896_v38, %v2895_v36  ;;  %v1864_v43 = vpop.permute.xlu0 %1863  ;;  %v4344_v36 = vld [vmem:[%s5471_s1 + $0x2c0] sm:$0xff]   ;;  %v3969_v40 = vunpack.c.h.bf16 %v4343_v22 }
 0x1ce   :  { %v2481_v47 = vmul.f32 %v3949_v34, %v1864_v43  ;;  %2183 = vperm.xlu0 %4386, %v3565_v35   ;;  %v2904_v2 = vsel %vm2572_vm0, %v2482_v53, 0.0 }
 0x1cf   :  { %v2899_v50 = vadd.f32 %v2898_v46, %v2897_v42  ;;  %v1879_v51 = vpop.permute.xlu1 %1878  ;;  %v3972_v46 = vunpack.c.l.bf16 %v4344_v36 }
 0x1d0   :  { %2198 = vperm.xlu1 %4392, %v3572_v41   ;;  %v2902_v60 = vsel %vm2572_vm0, %v2481_v47, 0.0  ;;  %v2484_v3 = vmul.f32 %v3956_v54, %v1879_v51  ;;  %v3585_v41 = vunpack.c.h.bf16 %v4248_v9  ;;  %v3592_v47 = vunpack.c.l.bf16 %v4250_v37  ;;  %v4251_v51 = vld [vmem:[%s5470_s0 + $0x3d0] sm:$0xff]  }
 0x1d1   :  { %v2901_v56 = vadd.f32 %v2900_v52, %v2899_v50  ;;  %v1874_v57 = vpop.permute.xlu0 %1873  ;;  %v4345_v50 = vld [vmem:[%s5471_s1 + $0x2c8] sm:$0xff]   ;;  %v3973_v54 = vunpack.c.h.bf16 %v4344_v36 }
 0x1d2   :  { %v2483_v61 = vmul.f32 %v3953_v48, %v1874_v57  ;;  %2193 = vperm.xlu0 %4386, %v3569_v49   ;;  %v2908_v16 = vsel %vm2572_vm0, %v2484_v3, 0.0 }
 0x1d3   :  { %v2903_v0 = vadd.f32 %v2902_v60, %v2901_v56  ;;  %v1889_v1 = vpop.permute.xlu1 %1888  ;;  %v3976_v60 = vunpack.c.l.bf16 %v4345_v50 }
 0x1d4   :  { %2208 = vperm.xlu1 %4392, %v3576_v55   ;;  %v2906_v10 = vsel %vm2572_vm0, %v2483_v61, 0.0  ;;  %v2486_v17 = vmul.f32 %v3960_v4, %v1889_v1  ;;  %v3589_v55 = vunpack.c.h.bf16 %v4249_v23  ;;  %v3596_v61 = vunpack.c.l.bf16 %v4251_v51  ;;  %v4252_v1 = vld [vmem:[%s5470_s0 + $0x3d8] sm:$0xff]  }
 0x1d5   :  { %v2905_v6 = vadd.f32 %v2904_v2, %v2903_v0  ;;  %v1884_v7 = vpop.permute.xlu0 %1883  ;;  %v4346_v0 = vld [vmem:[%s5471_s1 + $0x2d0] sm:$0xff]   ;;  %v3977_v4 = vunpack.c.h.bf16 %v4345_v50 }
 0x1d6   :  { %v2485_v11 = vmul.f32 %v3957_v62, %v1884_v7  ;;  %2203 = vperm.xlu0 %4386, %v3573_v63   ;;  %v2912_v30 = vsel %vm2572_vm0, %v2486_v17, 0.0 }
 0x1d7   :  { %v2907_v14 = vadd.f32 %v2906_v10, %v2905_v6  ;;  %v1899_v15 = vpop.permute.xlu1 %1898  ;;  %v3980_v10 = vunpack.c.l.bf16 %v4346_v0 }
 0x1d8   :  { %2218 = vperm.xlu1 %4392, %v3580_v5   ;;  %v2910_v24 = vsel %vm2572_vm0, %v2485_v11, 0.0  ;;  %v2488_v31 = vmul.f32 %v3964_v18, %v1899_v15  ;;  %v3593_v5 = vunpack.c.h.bf16 %v4250_v37  ;;  %v3600_v11 = vunpack.c.l.bf16 %v4252_v1  ;;  %v4253_v15 = vld [vmem:[%s5470_s0 + $0x3e0] sm:$0xff]  }
 0x1d9   :  { %v2909_v20 = vadd.f32 %v2908_v16, %v2907_v14  ;;  %v1894_v21 = vpop.permute.xlu0 %1893  ;;  %v4347_v14 = vld [vmem:[%s5471_s1 + $0x2d8] sm:$0xff]   ;;  %v3981_v18 = vunpack.c.h.bf16 %v4346_v0 }
 0x1da   :  { %v2487_v25 = vmul.f32 %v3961_v12, %v1894_v21  ;;  %2213 = vperm.xlu0 %4386, %v3577_v13   ;;  %v2916_v44 = vsel %vm2572_vm0, %v2488_v31, 0.0 }
 0x1db   :  { %v2911_v28 = vadd.f32 %v2910_v24, %v2909_v20  ;;  %v1909_v29 = vpop.permute.xlu1 %1908  ;;  %v3984_v24 = vunpack.c.l.bf16 %v4347_v14 }
 0x1dc   :  { %2228 = vperm.xlu1 %4392, %v3584_v19   ;;  %v2914_v38 = vsel %vm2572_vm0, %v2487_v25, 0.0  ;;  %v2490_v45 = vmul.f32 %v3968_v32, %v1909_v29  ;;  %v3597_v19 = vunpack.c.h.bf16 %v4251_v51  ;;  %v3604_v25 = vunpack.c.l.bf16 %v4253_v15  ;;  %v4254_v29 = vld [vmem:[%s5470_s0 + $0x3e8] sm:$0xff]  }
 0x1dd   :  { %v2913_v34 = vadd.f32 %v2912_v30, %v2911_v28  ;;  %v1904_v35 = vpop.permute.xlu0 %1903  ;;  %v4348_v28 = vld [vmem:[%s5471_s1 + $0x2e0] sm:$0xff]   ;;  %v3985_v32 = vunpack.c.h.bf16 %v4347_v14 }
 0x1de   :  { %v2489_v39 = vmul.f32 %v3965_v26, %v1904_v35  ;;  %2223 = vperm.xlu0 %4386, %v3581_v27   ;;  %v2920_v58 = vsel %vm2572_vm0, %v2490_v45, 0.0 }
 0x1df   :  { %v2915_v42 = vadd.f32 %v2914_v38, %v2913_v34  ;;  %v1919_v43 = vpop.permute.xlu1 %1918  ;;  %v3988_v38 = vunpack.c.l.bf16 %v4348_v28 }
 0x1e0   :  { %2238 = vperm.xlu1 %4392, %v3588_v33   ;;  %v2918_v52 = vsel %vm2572_vm0, %v2489_v39, 0.0  ;;  %v2492_v59 = vmul.f32 %v3972_v46, %v1919_v43  ;;  %v3601_v33 = vunpack.c.h.bf16 %v4252_v1  ;;  %v3608_v39 = vunpack.c.l.bf16 %v4254_v29  ;;  %v4255_v43 = vld [vmem:[%s5470_s0 + $0x3f0] sm:$0xff]  }
 0x1e1   :  { %v2917_v48 = vadd.f32 %v2916_v44, %v2915_v42  ;;  %v1914_v49 = vpop.permute.xlu0 %1913  ;;  %v4349_v42 = vld [vmem:[%s5471_s1 + $0x2e8] sm:$0xff]   ;;  %v3989_v46 = vunpack.c.h.bf16 %v4348_v28 }
 0x1e2   :  { %v2491_v53 = vmul.f32 %v3969_v40, %v1914_v49  ;;  %2233 = vperm.xlu0 %4386, %v3585_v41   ;;  %v2924_v8 = vsel %vm2572_vm0, %v2492_v59, 0.0 }
 0x1e3   :  { %v2919_v56 = vadd.f32 %v2918_v52, %v2917_v48  ;;  %v1929_v57 = vpop.permute.xlu1 %1928  ;;  %v3992_v52 = vunpack.c.l.bf16 %v4349_v42 }
 0x1e4   :  { %2248 = vperm.xlu1 %4392, %v3592_v47   ;;  %v2922_v2 = vsel %vm2572_vm0, %v2491_v53, 0.0  ;;  %v2494_v9 = vmul.f32 %v3976_v60, %v1929_v57  ;;  %v3605_v47 = vunpack.c.h.bf16 %v4253_v15  ;;  %v3612_v53 = vunpack.c.l.bf16 %v4255_v43  ;;  %v4256_v57 = vld [vmem:[%s5470_s0 + $0x3f8] sm:$0xff]  }
 0x1e5   :  { %v2921_v62 = vadd.f32 %v2920_v58, %v2919_v56  ;;  %v1924_v63 = vpop.permute.xlu0 %1923  ;;  %v4350_v56 = vld [vmem:[%s5471_s1 + $0x2f0] sm:$0xff]   ;;  %v3993_v60 = vunpack.c.h.bf16 %v4349_v42 }
 0x1e6   :  { %v2493_v3 = vmul.f32 %v3973_v54, %v1924_v63  ;;  %2243 = vperm.xlu0 %4386, %v3589_v55   ;;  %v2928_v22 = vsel %vm2572_vm0, %v2494_v9, 0.0  ;;  %v3997_v9 = vunpack.c.h.bf16 %v4350_v56 }
 0x1e7   :  { %v2923_v6 = vadd.f32 %v2922_v2, %v2921_v62  ;;  %v1939_v7 = vpop.permute.xlu1 %1938  ;;  %v3996_v2 = vunpack.c.l.bf16 %v4350_v56 }
 0x1e8   :  { %2258 = vperm.xlu1 %4392, %v3596_v61   ;;  %v2926_v16 = vsel %vm2572_vm0, %v2493_v3, 0.0  ;;  %v2496_v23 = vmul.f32 %v3980_v10, %v1939_v7  ;;  %v3609_v61 = vunpack.c.h.bf16 %v4254_v29  ;;  %v3616_v3 = vunpack.c.l.bf16 %v4256_v57 }
 0x1e9   :  { %v2925_v12 = vadd.f32 %v2924_v8, %v2923_v6  ;;  %v1934_v13 = vpop.permute.xlu0 %1933  ;;  %v4351_v6 = vld [vmem:[%s5471_s1 + $0x2f8] sm:$0xff]   ;;  %v3613_v10 = vunpack.c.h.bf16 %v4255_v43 }
 0x1ea   :  { %v2495_v17 = vmul.f32 %v3977_v4, %v1934_v13  ;;  %2253 = vperm.xlu0 %4386, %v3593_v5   ;;  %v2932_v36 = vsel %vm2572_vm0, %v2496_v23, 0.0  ;;  %v4000_v15 = vunpack.c.l.bf16 %v4351_v6 }
 0x1eb   :  { %v2927_v20 = vadd.f32 %v2926_v16, %v2925_v12  ;;  %v1949_v21 = vpop.permute.xlu1 %1948 }
 0x1ec   :  { %2268 = vperm.xlu1 %4392, %v3600_v11   ;;  %v2930_v30 = vsel %vm2572_vm0, %v2495_v17, 0.0  ;;  %v2498_v37 = vmul.f32 %v3984_v24, %v1949_v21  ;;  %v4001_v21 = vunpack.c.h.bf16 %v4351_v6 }
 0x1ed   :  { %v2929_v26 = vadd.f32 %v2928_v22, %v2927_v20  ;;  %v1944_v27 = vpop.permute.xlu0 %1943  ;;  %v3617_v22 = vunpack.c.h.bf16 %v4256_v57 }
 0x1ee   :  { %v2497_v31 = vmul.f32 %v3981_v18, %v1944_v27  ;;  %2263 = vperm.xlu0 %4386, %v3597_v19   ;;  %v2936_v50 = vsel %vm2572_vm0, %v2498_v37, 0.0  ;;  %v4352_v18 = vld [vmem:[%s5471_s1 + $0x300] sm:$0xff]  }
 0x1ef   :  { %v2931_v34 = vadd.f32 %v2930_v30, %v2929_v26  ;;  %v1959_v35 = vpop.permute.xlu1 %1958  ;;  %v4004_v27 = vunpack.c.l.bf16 %v4352_v18  ;;  %v4353_v30 = vld [vmem:[%s5471_s1 + $0x308] sm:$0xff]  }
 0x1f0   :  { %2278 = vperm.xlu1 %4392, %v3604_v25   ;;  %v2934_v44 = vsel %vm2572_vm0, %v2497_v31, 0.0  ;;  %v2500_v51 = vmul.f32 %v3988_v38, %v1959_v35  ;;  %v4008_v38 = vunpack.c.l.bf16 %v4353_v30 }
 0x1f1   :  { %v2933_v40 = vadd.f32 %v2932_v36, %v2931_v34  ;;  %v1954_v41 = vpop.permute.xlu0 %1953 }
 0x1f2   :  { %v2499_v45 = vmul.f32 %v3985_v32, %v1954_v41  ;;  %2273 = vperm.xlu0 %4386, %v3601_v33   ;;  %v2940_v0 = vsel %vm2572_vm0, %v2500_v51, 0.0  ;;  %v4005_v33 = vunpack.c.h.bf16 %v4352_v18  ;;  %v4354_v41 = vld [vmem:[%s5471_s1 + $0x310] sm:$0xff]  }
 0x1f3   :  { %v2935_v48 = vadd.f32 %v2934_v44, %v2933_v40  ;;  %v1969_v49 = vpop.permute.xlu1 %1968  ;;  %v4009_v44 = vunpack.c.h.bf16 %v4353_v30 }
 0x1f4   :  { %2288 = vperm.xlu1 %4392, %v3608_v39   ;;  %v2938_v58 = vsel %vm2572_vm0, %v2499_v45, 0.0  ;;  %v2502_v1 = vmul.f32 %v3992_v52, %v1969_v49  ;;  %v4012_v49 = vunpack.c.l.bf16 %v4354_v41  ;;  %v4355_v52 = vld [vmem:[%s5471_s1 + $0x318] sm:$0xff]  }
 0x1f5   :  { %v2937_v54 = vadd.f32 %v2936_v50, %v2935_v48  ;;  %v1964_v55 = vpop.permute.xlu0 %1963 }
 0x1f6   :  { %v2501_v59 = vmul.f32 %v3989_v46, %v1964_v55  ;;  %2283 = vperm.xlu0 %4386, %v3605_v47   ;;  %v2944_v13 = vsel %vm2572_vm0, %v2502_v1, 0.0  ;;  %v4013_v55 = vunpack.c.h.bf16 %v4354_v41 }
 0x1f7   :  { %v2939_v62 = vadd.f32 %v2938_v58, %v2937_v54  ;;  %v1979_v63 = vpop.permute.xlu1 %1978 }
 0x1f8   :  { %2298 = vperm.xlu1 %4392, %v3612_v53   ;;  %v2942_v7 = vsel %vm2572_vm0, %v2501_v59, 0.0  ;;  %v2504_v14 = vmul.f32 %v3996_v2, %v1979_v63  ;;  %v4356_v63 = vld [vmem:[%s5471_s1 + $0x320] sm:$0xff]   ;;  %v4017_v2 = vunpack.c.h.bf16 %v4355_v52 }
 0x1f9   :  { %v2941_v4 = vadd.f32 %v2940_v0, %v2939_v62  ;;  %v1974_v5 = vpop.permute.xlu0 %1973 }
 0x1fa   :  { %v2503_v8 = vmul.f32 %v3993_v60, %v1974_v5  ;;  %2293 = vperm.xlu0 %4386, %v3609_v61   ;;  %v2948_v25 = vsel %vm2572_vm0, %v2504_v14, 0.0  ;;  %v4016_v60 = vunpack.c.l.bf16 %v4355_v52 }
 0x1fb   :  { %v2943_v11 = vadd.f32 %v2942_v7, %v2941_v4  ;;  %v1989_v12 = vpop.permute.xlu1 %1988  ;;  %v4020_v7 = vunpack.c.l.bf16 %v4356_v63 }
 0x1fc   :  { %2308 = vperm.xlu1 %4392, %v3616_v3   ;;  %v2946_v19 = vsel %vm2572_vm0, %v2503_v8, 0.0  ;;  %v2506_v26 = vmul.f32 %v4000_v15, %v1989_v12 }
 0x1fd   :  { %v2945_v16 = vadd.f32 %v2944_v13, %v2943_v11  ;;  %v1984_v17 = vpop.permute.xlu0 %1983  ;;  %v4021_v13 = vunpack.c.h.bf16 %v4356_v63 }
 0x1fe   :  { %v2505_v20 = vmul.f32 %v3997_v9, %v1984_v17  ;;  %2303 = vperm.xlu0 %4386, %v3613_v10   ;;  %v2952_v36 = vsel %vm2572_vm0, %v2506_v26, 0.0  ;;  %v4357_v10 = vld [vmem:[%s5471_s1 + $0x328] sm:$0xff]  }
 0x1ff   :  { %v2947_v23 = vadd.f32 %v2946_v19, %v2945_v16  ;;  %v1999_v24 = vpop.permute.xlu1 %1998  ;;  %v4024_v18 = vunpack.c.l.bf16 %v4357_v10 }
 0x200   :  { %v2950_v31 = vsel %vm2572_vm0, %v2505_v20, 0.0  ;;  %v2508_v37 = vmul.f32 %v4004_v27, %v1999_v24  ;;  %v4025_v24 = vunpack.c.h.bf16 %v4357_v10 }
 0x201   :  { %v2949_v28 = vadd.f32 %v2948_v25, %v2947_v23  ;;  %v1994_v29 = vpop.permute.xlu0 %1993 }
 0x202   :  { %v2507_v32 = vmul.f32 %v4001_v21, %v1994_v29  ;;  %2313 = vperm.xlu0 %4386, %v3617_v22   ;;  %v2956_v47 = vsel %vm2572_vm0, %v2508_v37, 0.0  ;;  %v4358_v21 = vld [vmem:[%s5471_s1 + $0x330] sm:$0xff]  }
 0x203   :  { %v2951_v34 = vadd.f32 %v2950_v31, %v2949_v28  ;;  %v2009_v35 = vpop.permute.xlu1 %2008  ;;  %v4028_v29 = vunpack.c.l.bf16 %v4358_v21 }
 0x204   :  { %v2954_v42 = vsel %vm2572_vm0, %v2507_v32, 0.0  ;;  %v2510_v48 = vmul.f32 %v4008_v38, %v2009_v35  ;;  %v4359_v32 = vld [vmem:[%s5471_s1 + $0x338] sm:$0xff]   ;;  %v4029_v35 = vunpack.c.h.bf16 %v4358_v21 }
 0x205   :  { %v2953_v39 = vadd.f32 %v2952_v36, %v2951_v34  ;;  %v2004_v40 = vpop.permute.xlu0 %2003 }
 0x206   :  { %v2509_v43 = vmul.f32 %v4005_v33, %v2004_v40  ;;  %v2960_v58 = vsel %vm2572_vm0, %v2510_v48, 0.0  ;;  %v4032_v40 = vunpack.c.l.bf16 %v4359_v32 }
 0x207   :  { %v2955_v45 = vadd.f32 %v2954_v42, %v2953_v39  ;;  %v2019_v46 = vpop.permute.xlu1 %2018 }
 0x208   :  { %v2958_v53 = vsel %vm2572_vm0, %v2509_v43, 0.0  ;;  %v2512_v59 = vmul.f32 %v4012_v49, %v2019_v46  ;;  %v4360_v43 = vld [vmem:[%s5471_s1 + $0x340] sm:$0xff]   ;;  %v4033_v46 = vunpack.c.h.bf16 %v4359_v32 }
 0x209   :  { %v2957_v50 = vadd.f32 %v2956_v47, %v2955_v45  ;;  %v2014_v51 = vpop.permute.xlu0 %2013 }
 0x20a   :  { %v2511_v54 = vmul.f32 %v4009_v44, %v2014_v51  ;;  %v2964_v5 = vsel %vm2572_vm0, %v2512_v59, 0.0  ;;  %v4036_v51 = vunpack.c.l.bf16 %v4360_v43 }
 0x20b   :  { %v2959_v56 = vadd.f32 %v2958_v53, %v2957_v50  ;;  %v2029_v57 = vpop.permute.xlu1 %2028 }
 0x20c   :  { %v2962_v0 = vsel %vm2572_vm0, %v2511_v54, 0.0  ;;  %v2514_v6 = vmul.f32 %v4016_v60, %v2029_v57  ;;  %v4361_v54 = vld [vmem:[%s5471_s1 + $0x348] sm:$0xff]   ;;  %v4037_v57 = vunpack.c.h.bf16 %v4360_v43 }
 0x20d   :  { %v2961_v61 = vadd.f32 %v2960_v58, %v2959_v56  ;;  %v2024_v62 = vpop.permute.xlu0 %2023 }
 0x20e   :  { %v2513_v1 = vmul.f32 %v4013_v55, %v2024_v62  ;;  %v2968_v16 = vsel %vm2572_vm0, %v2514_v6, 0.0  ;;  %v4040_v62 = vunpack.c.l.bf16 %v4361_v54 }
 0x20f   :  { %v2963_v3 = vadd.f32 %v2962_v0, %v2961_v61  ;;  %v2039_v4 = vpop.permute.xlu1 %2038 }
 0x210   :  { %v2966_v11 = vsel %vm2572_vm0, %v2513_v1, 0.0  ;;  %v2516_v17 = vmul.f32 %v4020_v7, %v2039_v4  ;;  %v4362_v1 = vld [vmem:[%s5471_s1 + $0x350] sm:$0xff]   ;;  %v4041_v4 = vunpack.c.h.bf16 %v4361_v54 }
 0x211   :  { %v2965_v8 = vadd.f32 %v2964_v5, %v2963_v3  ;;  %v2034_v9 = vpop.permute.xlu0 %2033 }
 0x212   :  { %v2515_v12 = vmul.f32 %v4017_v2, %v2034_v9  ;;  %v2972_v27 = vsel %vm2572_vm0, %v2516_v17, 0.0  ;;  %v4044_v9 = vunpack.c.l.bf16 %v4362_v1 }
 0x213   :  { %v2967_v14 = vadd.f32 %v2966_v11, %v2965_v8  ;;  %v2049_v15 = vpop.permute.xlu1 %2048 }
 0x214   :  { %v2970_v22 = vsel %vm2572_vm0, %v2515_v12, 0.0  ;;  %v2518_v28 = vmul.f32 %v4024_v18, %v2049_v15  ;;  %v4363_v12 = vld [vmem:[%s5471_s1 + $0x358] sm:$0xff]   ;;  %v4045_v15 = vunpack.c.h.bf16 %v4362_v1 }
 0x215   :  { %v2969_v19 = vadd.f32 %v2968_v16, %v2967_v14  ;;  %v2044_v20 = vpop.permute.xlu0 %2043 }
 0x216   :  { %v2517_v23 = vmul.f32 %v4021_v13, %v2044_v20  ;;  %v2976_v38 = vsel %vm2572_vm0, %v2518_v28, 0.0  ;;  %v4048_v20 = vunpack.c.l.bf16 %v4363_v12 }
 0x217   :  { %v2971_v25 = vadd.f32 %v2970_v22, %v2969_v19  ;;  %v2059_v26 = vpop.permute.xlu1 %2058 }
 0x218   :  { %v2974_v33 = vsel %vm2572_vm0, %v2517_v23, 0.0  ;;  %v2520_v39 = vmul.f32 %v4028_v29, %v2059_v26  ;;  %v4364_v23 = vld [vmem:[%s5471_s1 + $0x360] sm:$0xff]   ;;  %v4049_v26 = vunpack.c.h.bf16 %v4363_v12 }
 0x219   :  { %v2973_v30 = vadd.f32 %v2972_v27, %v2971_v25  ;;  %v2054_v31 = vpop.permute.xlu0 %2053 }
 0x21a   :  { %v2519_v34 = vmul.f32 %v4025_v24, %v2054_v31  ;;  %v2980_v49 = vsel %vm2572_vm0, %v2520_v39, 0.0  ;;  %v4052_v31 = vunpack.c.l.bf16 %v4364_v23 }
 0x21b   :  { %v2975_v36 = vadd.f32 %v2974_v33, %v2973_v30  ;;  %v2069_v37 = vpop.permute.xlu1 %2068 }
 0x21c   :  { %v2978_v44 = vsel %vm2572_vm0, %v2519_v34, 0.0  ;;  %v2522_v50 = vmul.f32 %v4032_v40, %v2069_v37  ;;  %v4365_v34 = vld [vmem:[%s5471_s1 + $0x368] sm:$0xff]   ;;  %v4053_v37 = vunpack.c.h.bf16 %v4364_v23 }
 0x21d   :  { %v2977_v41 = vadd.f32 %v2976_v38, %v2975_v36  ;;  %v2064_v42 = vpop.permute.xlu0 %2063 }
 0x21e   :  { %v2521_v45 = vmul.f32 %v4029_v35, %v2064_v42  ;;  %v2984_v60 = vsel %vm2572_vm0, %v2522_v50, 0.0  ;;  %v4056_v42 = vunpack.c.l.bf16 %v4365_v34 }
 0x21f   :  { %v2979_v47 = vadd.f32 %v2978_v44, %v2977_v41  ;;  %v2079_v48 = vpop.permute.xlu1 %2078 }
 0x220   :  { %v2982_v55 = vsel %vm2572_vm0, %v2521_v45, 0.0  ;;  %v2524_v61 = vmul.f32 %v4036_v51, %v2079_v48  ;;  %v4366_v45 = vld [vmem:[%s5471_s1 + $0x370] sm:$0xff]   ;;  %v4057_v48 = vunpack.c.h.bf16 %v4365_v34 }
 0x221   :  { %v2981_v52 = vadd.f32 %v2980_v49, %v2979_v47  ;;  %v2074_v53 = vpop.permute.xlu0 %2073 }
 0x222   :  { %v2523_v56 = vmul.f32 %v4033_v46, %v2074_v53  ;;  %v2988_v7 = vsel %vm2572_vm0, %v2524_v61, 0.0  ;;  %v4060_v53 = vunpack.c.l.bf16 %v4366_v45 }
 0x223   :  { %v2983_v58 = vadd.f32 %v2982_v55, %v2981_v52  ;;  %v2089_v59 = vpop.permute.xlu1 %2088 }
 0x224   :  { %v2986_v2 = vsel %vm2572_vm0, %v2523_v56, 0.0  ;;  %v2526_v8 = vmul.f32 %v4040_v62, %v2089_v59  ;;  %v4367_v56 = vld [vmem:[%s5471_s1 + $0x378] sm:$0xff]   ;;  %v4061_v59 = vunpack.c.h.bf16 %v4366_v45 }
 0x225   :  { %v2985_v63 = vadd.f32 %v2984_v60, %v2983_v58  ;;  %v2084_v0 = vpop.permute.xlu0 %2083 }
 0x226   :  { %v2525_v3 = vmul.f32 %v4037_v57, %v2084_v0  ;;  %v2992_v18 = vsel %vm2572_vm0, %v2526_v8, 0.0  ;;  %v4064_v0 = vunpack.c.l.bf16 %v4367_v56 }
 0x227   :  { %v2987_v5 = vadd.f32 %v2986_v2, %v2985_v63  ;;  %v2099_v6 = vpop.permute.xlu1 %2098 }
 0x228   :  { %v2990_v13 = vsel %vm2572_vm0, %v2525_v3, 0.0  ;;  %v2528_v19 = vmul.f32 %v4044_v9, %v2099_v6  ;;  %v4368_v3 = vld [vmem:[%s5471_s1 + $0x380] sm:$0xff]   ;;  %v4065_v6 = vunpack.c.h.bf16 %v4367_v56 }
 0x229   :  { %v2989_v10 = vadd.f32 %v2988_v7, %v2987_v5  ;;  %v2094_v11 = vpop.permute.xlu0 %2093 }
 0x22a   :  { %v2527_v14 = vmul.f32 %v4041_v4, %v2094_v11  ;;  %v2996_v29 = vsel %vm2572_vm0, %v2528_v19, 0.0  ;;  %v4068_v11 = vunpack.c.l.bf16 %v4368_v3 }
 0x22b   :  { %v2991_v16 = vadd.f32 %v2990_v13, %v2989_v10  ;;  %v2109_v17 = vpop.permute.xlu1 %2108 }
 0x22c   :  { %v2994_v24 = vsel %vm2572_vm0, %v2527_v14, 0.0  ;;  %v2530_v30 = vmul.f32 %v4048_v20, %v2109_v17  ;;  %v4369_v14 = vld [vmem:[%s5471_s1 + $0x388] sm:$0xff]   ;;  %v4069_v17 = vunpack.c.h.bf16 %v4368_v3 }
 0x22d   :  { %v2993_v21 = vadd.f32 %v2992_v18, %v2991_v16  ;;  %v2104_v22 = vpop.permute.xlu0 %2103 }
 0x22e   :  { %v2529_v25 = vmul.f32 %v4045_v15, %v2104_v22  ;;  %v3000_v40 = vsel %vm2572_vm0, %v2530_v30, 0.0  ;;  %v4072_v22 = vunpack.c.l.bf16 %v4369_v14 }
 0x22f   :  { %v2995_v27 = vadd.f32 %v2994_v24, %v2993_v21  ;;  %v2119_v28 = vpop.permute.xlu1 %2118 }
 0x230   :  { %v2998_v35 = vsel %vm2572_vm0, %v2529_v25, 0.0  ;;  %v2532_v41 = vmul.f32 %v4052_v31, %v2119_v28  ;;  %v4370_v25 = vld [vmem:[%s5471_s1 + $0x390] sm:$0xff]   ;;  %v4073_v28 = vunpack.c.h.bf16 %v4369_v14 }
 0x231   :  { %v2997_v32 = vadd.f32 %v2996_v29, %v2995_v27  ;;  %v2114_v33 = vpop.permute.xlu0 %2113 }
 0x232   :  { %v2531_v36 = vmul.f32 %v4049_v26, %v2114_v33  ;;  %v3004_v51 = vsel %vm2572_vm0, %v2532_v41, 0.0  ;;  %v4076_v33 = vunpack.c.l.bf16 %v4370_v25 }
 0x233   :  { %v2999_v38 = vadd.f32 %v2998_v35, %v2997_v32  ;;  %v2129_v39 = vpop.permute.xlu1 %2128 }
 0x234   :  { %v3002_v46 = vsel %vm2572_vm0, %v2531_v36, 0.0  ;;  %v2534_v52 = vmul.f32 %v4056_v42, %v2129_v39  ;;  %v4371_v36 = vld [vmem:[%s5471_s1 + $0x398] sm:$0xff]   ;;  %v4077_v39 = vunpack.c.h.bf16 %v4370_v25 }
 0x235   :  { %v3001_v43 = vadd.f32 %v3000_v40, %v2999_v38  ;;  %v2124_v44 = vpop.permute.xlu0 %2123 }
 0x236   :  { %v2533_v47 = vmul.f32 %v4053_v37, %v2124_v44  ;;  %v3008_v62 = vsel %vm2572_vm0, %v2534_v52, 0.0  ;;  %v4080_v44 = vunpack.c.l.bf16 %v4371_v36 }
 0x237   :  { %v3003_v49 = vadd.f32 %v3002_v46, %v3001_v43  ;;  %v2139_v50 = vpop.permute.xlu1 %2138 }
 0x238   :  { %v3006_v57 = vsel %vm2572_vm0, %v2533_v47, 0.0  ;;  %v2536_v63 = vmul.f32 %v4060_v53, %v2139_v50  ;;  %v4372_v47 = vld [vmem:[%s5471_s1 + $0x3a0] sm:$0xff]   ;;  %v4081_v50 = vunpack.c.h.bf16 %v4371_v36 }
 0x239   :  { %v3005_v54 = vadd.f32 %v3004_v51, %v3003_v49  ;;  %v2134_v55 = vpop.permute.xlu0 %2133 }
 0x23a   :  { %v2535_v58 = vmul.f32 %v4057_v48, %v2134_v55  ;;  %v3012_v9 = vsel %vm2572_vm0, %v2536_v63, 0.0  ;;  %v4084_v55 = vunpack.c.l.bf16 %v4372_v47 }
 0x23b   :  { %v3007_v60 = vadd.f32 %v3006_v57, %v3005_v54  ;;  %v2149_v61 = vpop.permute.xlu1 %2148 }
 0x23c   :  { %v3010_v4 = vsel %vm2572_vm0, %v2535_v58, 0.0  ;;  %v2538_v10 = vmul.f32 %v4064_v0, %v2149_v61  ;;  %v4373_v58 = vld [vmem:[%s5471_s1 + $0x3a8] sm:$0xff]   ;;  %v4085_v61 = vunpack.c.h.bf16 %v4372_v47 }
 0x23d   :  { %v3009_v1 = vadd.f32 %v3008_v62, %v3007_v60  ;;  %v2144_v2 = vpop.permute.xlu0 %2143 }
 0x23e   :  { %v2537_v5 = vmul.f32 %v4061_v59, %v2144_v2  ;;  %v3016_v20 = vsel %vm2572_vm0, %v2538_v10, 0.0  ;;  %v4088_v2 = vunpack.c.l.bf16 %v4373_v58 }
 0x23f   :  { %v3011_v7 = vadd.f32 %v3010_v4, %v3009_v1  ;;  %v2159_v8 = vpop.permute.xlu1 %2158 }
 0x240   :  { %v3014_v15 = vsel %vm2572_vm0, %v2537_v5, 0.0  ;;  %v2540_v21 = vmul.f32 %v4068_v11, %v2159_v8  ;;  %v4374_v5 = vld [vmem:[%s5471_s1 + $0x3b0] sm:$0xff]   ;;  %v4089_v8 = vunpack.c.h.bf16 %v4373_v58 }
 0x241   :  { %v3013_v12 = vadd.f32 %v3012_v9, %v3011_v7  ;;  %v2154_v13 = vpop.permute.xlu0 %2153 }
 0x242   :  { %v2539_v16 = vmul.f32 %v4065_v6, %v2154_v13  ;;  %v3020_v31 = vsel %vm2572_vm0, %v2540_v21, 0.0  ;;  %v4092_v13 = vunpack.c.l.bf16 %v4374_v5 }
 0x243   :  { %v3015_v18 = vadd.f32 %v3014_v15, %v3013_v12  ;;  %v2169_v19 = vpop.permute.xlu1 %2168 }
 0x244   :  { %v3018_v26 = vsel %vm2572_vm0, %v2539_v16, 0.0  ;;  %v2542_v32 = vmul.f32 %v4072_v22, %v2169_v19  ;;  %v4375_v16 = vld [vmem:[%s5471_s1 + $0x3b8] sm:$0xff]   ;;  %v4093_v19 = vunpack.c.h.bf16 %v4374_v5 }
 0x245   :  { %v3017_v23 = vadd.f32 %v3016_v20, %v3015_v18  ;;  %v2164_v24 = vpop.permute.xlu0 %2163 }
 0x246   :  { %v2541_v27 = vmul.f32 %v4069_v17, %v2164_v24  ;;  %v3024_v42 = vsel %vm2572_vm0, %v2542_v32, 0.0  ;;  %v4096_v24 = vunpack.c.l.bf16 %v4375_v16 }
 0x247   :  { %v3019_v29 = vadd.f32 %v3018_v26, %v3017_v23  ;;  %v2179_v30 = vpop.permute.xlu1 %2178 }
 0x248   :  { %v3022_v37 = vsel %vm2572_vm0, %v2541_v27, 0.0  ;;  %v2544_v43 = vmul.f32 %v4076_v33, %v2179_v30  ;;  %v4376_v27 = vld [vmem:[%s5471_s1 + $0x3c0] sm:$0xff]   ;;  %v4097_v30 = vunpack.c.h.bf16 %v4375_v16 }
 0x249   :  { %v3021_v34 = vadd.f32 %v3020_v31, %v3019_v29  ;;  %v2174_v35 = vpop.permute.xlu0 %2173 }
 0x24a   :  { %v2543_v38 = vmul.f32 %v4073_v28, %v2174_v35  ;;  %v3028_v53 = vsel %vm2572_vm0, %v2544_v43, 0.0  ;;  %v4100_v35 = vunpack.c.l.bf16 %v4376_v27 }
 0x24b   :  { %v3023_v40 = vadd.f32 %v3022_v37, %v3021_v34  ;;  %v2189_v41 = vpop.permute.xlu1 %2188 }
 0x24c   :  { %v3026_v48 = vsel %vm2572_vm0, %v2543_v38, 0.0  ;;  %v2546_v54 = vmul.f32 %v4080_v44, %v2189_v41  ;;  %v4377_v38 = vld [vmem:[%s5471_s1 + $0x3c8] sm:$0xff]   ;;  %v4101_v41 = vunpack.c.h.bf16 %v4376_v27 }
 0x24d   :  { %v3025_v45 = vadd.f32 %v3024_v42, %v3023_v40  ;;  %v2184_v46 = vpop.permute.xlu0 %2183 }
 0x24e   :  { %v2545_v49 = vmul.f32 %v4077_v39, %v2184_v46  ;;  %v3032_v0 = vsel %vm2572_vm0, %v2546_v54, 0.0  ;;  %v4104_v46 = vunpack.c.l.bf16 %v4377_v38 }
 0x24f   :  { %v3027_v51 = vadd.f32 %v3026_v48, %v3025_v45  ;;  %v2199_v52 = vpop.permute.xlu1 %2198 }
 0x250   :  { %v3030_v59 = vsel %vm2572_vm0, %v2545_v49, 0.0  ;;  %v2548_v1 = vmul.f32 %v4084_v55, %v2199_v52  ;;  %v4378_v49 = vld [vmem:[%s5471_s1 + $0x3d0] sm:$0xff]   ;;  %v4105_v52 = vunpack.c.h.bf16 %v4377_v38 }
 0x251   :  { %v3029_v56 = vadd.f32 %v3028_v53, %v3027_v51  ;;  %v2194_v57 = vpop.permute.xlu0 %2193 }
 0x252   :  { %v2547_v60 = vmul.f32 %v4081_v50, %v2194_v57  ;;  %v3036_v11 = vsel %vm2572_vm0, %v2548_v1, 0.0  ;;  %v4108_v57 = vunpack.c.l.bf16 %v4378_v49 }
 0x253   :  { %v3031_v62 = vadd.f32 %v3030_v59, %v3029_v56  ;;  %v2209_v63 = vpop.permute.xlu1 %2208 }
 0x254   :  { %v3034_v6 = vsel %vm2572_vm0, %v2547_v60, 0.0  ;;  %v2550_v12 = vmul.f32 %v4088_v2, %v2209_v63  ;;  %v4379_v60 = vld [vmem:[%s5471_s1 + $0x3d8] sm:$0xff]   ;;  %v4109_v63 = vunpack.c.h.bf16 %v4378_v49 }
 0x255   :  { %v3033_v3 = vadd.f32 %v3032_v0, %v3031_v62  ;;  %v2204_v4 = vpop.permute.xlu0 %2203 }
 0x256   :  { %v2549_v7 = vmul.f32 %v4085_v61, %v2204_v4  ;;  %v3040_v22 = vsel %vm2572_vm0, %v2550_v12, 0.0  ;;  %v4112_v4 = vunpack.c.l.bf16 %v4379_v60 }
 0x257   :  { %v3035_v9 = vadd.f32 %v3034_v6, %v3033_v3  ;;  %v2219_v10 = vpop.permute.xlu1 %2218 }
 0x258   :  { %v3038_v17 = vsel %vm2572_vm0, %v2549_v7, 0.0  ;;  %v2552_v23 = vmul.f32 %v4092_v13, %v2219_v10  ;;  %v4380_v7 = vld [vmem:[%s5471_s1 + $0x3e0] sm:$0xff]   ;;  %v4113_v10 = vunpack.c.h.bf16 %v4379_v60 }
 0x259   :  { %v3037_v14 = vadd.f32 %v3036_v11, %v3035_v9  ;;  %v2214_v15 = vpop.permute.xlu0 %2213 }
 0x25a   :  { %v2551_v18 = vmul.f32 %v4089_v8, %v2214_v15  ;;  %v3044_v33 = vsel %vm2572_vm0, %v2552_v23, 0.0  ;;  %v4116_v15 = vunpack.c.l.bf16 %v4380_v7 }
 0x25b   :  { %v3039_v20 = vadd.f32 %v3038_v17, %v3037_v14  ;;  %v2229_v21 = vpop.permute.xlu1 %2228 }
 0x25c   :  { %v3042_v28 = vsel %vm2572_vm0, %v2551_v18, 0.0  ;;  %v2554_v34 = vmul.f32 %v4096_v24, %v2229_v21  ;;  %v4381_v18 = vld [vmem:[%s5471_s1 + $0x3e8] sm:$0xff]   ;;  %v4117_v21 = vunpack.c.h.bf16 %v4380_v7 }
 0x25d   :  { %v3041_v25 = vadd.f32 %v3040_v22, %v3039_v20  ;;  %v2224_v26 = vpop.permute.xlu0 %2223 }
 0x25e   :  { %v2553_v29 = vmul.f32 %v4093_v19, %v2224_v26  ;;  %v3048_v44 = vsel %vm2572_vm0, %v2554_v34, 0.0  ;;  %v4120_v26 = vunpack.c.l.bf16 %v4381_v18 }
 0x25f   :  { %v3043_v31 = vadd.f32 %v3042_v28, %v3041_v25  ;;  %v2239_v32 = vpop.permute.xlu1 %2238 }
 0x260   :  { %v3046_v39 = vsel %vm2572_vm0, %v2553_v29, 0.0  ;;  %v2556_v45 = vmul.f32 %v4100_v35, %v2239_v32  ;;  %v4382_v29 = vld [vmem:[%s5471_s1 + $0x3f0] sm:$0xff]   ;;  %v4121_v32 = vunpack.c.h.bf16 %v4381_v18 }
 0x261   :  { %v3045_v36 = vadd.f32 %v3044_v33, %v3043_v31  ;;  %v2234_v37 = vpop.permute.xlu0 %2233 }
 0x262   :  { %v2555_v40 = vmul.f32 %v4097_v30, %v2234_v37  ;;  %v3052_v55 = vsel %vm2572_vm0, %v2556_v45, 0.0  ;;  %v4124_v37 = vunpack.c.l.bf16 %v4382_v29 }
 0x263   :  { %v3047_v42 = vadd.f32 %v3046_v39, %v3045_v36  ;;  %v2249_v43 = vpop.permute.xlu1 %2248 }
 0x264   :  { %v3050_v50 = vsel %vm2572_vm0, %v2555_v40, 0.0  ;;  %v2558_v56 = vmul.f32 %v4104_v46, %v2249_v43  ;;  %v4383_v40 = vld [vmem:[%s5471_s1 + $0x3f8] sm:$0xff]   ;;  %v4125_v43 = vunpack.c.h.bf16 %v4382_v29  ;;  %s4418_s1 = smov [#allocation2]  }
 0x265   :  { %v3049_v47 = vadd.f32 %v3048_v44, %v3047_v42  ;;  %v2244_v48 = vpop.permute.xlu0 %2243  ;;  %s3098_s14 = sshll.u32 %s4418_s1, 4  ;;  %s3099_s14 = int_to_ptr.vmem [resolvable:$true] %s3098_s14 }
 0x266   :  { %v2557_v51 = vmul.f32 %v4101_v41, %v2244_v48  ;;  %v3056_v2 = vsel %vm2572_vm0, %v2558_v56, 0.0  ;;  %s4393_s15 = scalar_lea.vmem %s3099_s14, 16  ;;  %s4397_s16 = scalar_lea.vmem %s3099_s14, 32 }
 0x267   :  { %v3051_v53 = vadd.f32 %v3050_v50, %v3049_v47  ;;  %v2259_v54 = vpop.permute.xlu1 %2258  ;;  %v4128_v47 = vunpack.c.l.bf16 %v4383_v40  ;;  %p4394_p0 = scmp.ne.s32.totalorder %s3099_s14, %s4393_s15  ;;  %p4398_p1 = scmp.lt.s32.totalorder %s3099_s14, %s3099_s14 }
 0x268   :  { %v3054_v61 = vsel %vm2572_vm0, %v2557_v51, 0.0  ;;  %v2560_v3 = vmul.f32 %v4108_v57, %v2259_v54  ;;  %p4399_p2 = scmp.lt.s32.totalorder %s4397_s16, %s4393_s15 }
 0x269   :  { %v3053_v58 = vadd.f32 %v3052_v55, %v3051_v53  ;;  %v2254_v59 = vpop.permute.xlu0 %2253  ;;  %v4129_v53 = vunpack.c.h.bf16 %v4383_v40 }
 0x26a   :  { %v2559_v62 = vmul.f32 %v4105_v52, %v2254_v59  ;;  %v3060_v13 = vsel %vm2572_vm0, %v2560_v3, 0.0  ;;  %p4400_p3 = por %p4399_p2, %p4398_p1 }
 0x26b   :  { %v3055_v0 = vadd.f32 %v3054_v61, %v3053_v58  ;;  %v2269_v1 = vpop.permute.xlu1 %2268 }
 0x26c   :  { %v3058_v8 = vsel %vm2572_vm0, %v2559_v62, 0.0  ;;  %v2562_v14 = vmul.f32 %v4112_v4, %v2269_v1  ;;  %p4401_p4 = pnand %p4400_p3, %p4394_p0 }
 0x26d   :  { %v3057_v5 = vadd.f32 %v3056_v2, %v3055_v0  ;;  %v2264_v6 = vpop.permute.xlu0 %2263 }
 0x26e   :  { %v2561_v9 = vmul.f32 %v4109_v63, %v2264_v6  ;;  %v3064_v24 = vsel %vm2572_vm0, %v2562_v14, 0.0 }
 0x26f   :  { %v3059_v11 = vadd.f32 %v3058_v8, %v3057_v5  ;;  %v2279_v12 = vpop.permute.xlu1 %2278 }
 0x270   :  { %v3062_v19 = vsel %vm2572_vm0, %v2561_v9, 0.0  ;;  %v2564_v25 = vmul.f32 %v4116_v15, %v2279_v12 }
 0x271   :  { %v3061_v16 = vadd.f32 %v3060_v13, %v3059_v11  ;;  %v2274_v17 = vpop.permute.xlu0 %2273 }
 0x272   :  { %v2563_v20 = vmul.f32 %v4113_v10, %v2274_v17  ;;  %v3068_v35 = vsel %vm2572_vm0, %v2564_v25, 0.0 }
 0x273   :  { %v3063_v22 = vadd.f32 %v3062_v19, %v3061_v16  ;;  %v2289_v23 = vpop.permute.xlu1 %2288 }
 0x274   :  { %v3066_v30 = vsel %vm2572_vm0, %v2563_v20, 0.0  ;;  %v2566_v36 = vmul.f32 %v4120_v26, %v2289_v23 }
 0x275   :  { %v3065_v27 = vadd.f32 %v3064_v24, %v3063_v22  ;;  %v2284_v28 = vpop.permute.xlu0 %2283 }
 0x276   :  { %v2565_v31 = vmul.f32 %v4117_v21, %v2284_v28  ;;  %v3072_v45 = vsel %vm2572_vm0, %v2566_v36, 0.0 }
 0x277   :  { %v3067_v33 = vadd.f32 %v3066_v30, %v3065_v27  ;;  %v2299_v34 = vpop.permute.xlu1 %2298 }
 0x278   :  { %v3070_v41 = vsel %vm2572_vm0, %v2565_v31, 0.0  ;;  %v2568_v46 = vmul.f32 %v4124_v37, %v2299_v34 }
 0x279   :  { %v3069_v38 = vadd.f32 %v3068_v35, %v3067_v33  ;;  %v2294_v39 = vpop.permute.xlu0 %2293 }
 0x27a   :  { %v2567_v42 = vmul.f32 %v4121_v32, %v2294_v39  ;;  %v3076_v55 = vsel %vm2572_vm0, %v2568_v46, 0.0 }
 0x27b   :  { %v3071_v44 = vadd.f32 %v3070_v41, %v3069_v38  ;;  %v2309_v49 = vpop.permute.xlu1 %2308 }
 0x27c   :  { %v3074_v51 = vsel %vm2572_vm0, %v2567_v42, 0.0  ;;  %v2570_v56 = vmul.f32 %v4128_v47, %v2309_v49 }
 0x27d   :  { %v3073_v48 = vadd.f32 %v3072_v45, %v3071_v44  ;;  %v2304_v50 = vpop.permute.xlu0 %2303 }
 0x27e   :  { %v2569_v52 = vmul.f32 %v4125_v43, %v2304_v50  ;;  %v3080_v62 = vsel %vm2572_vm0, %v2570_v56, 0.0 }
 0x27f   :  { %v3075_v54 = vadd.f32 %v3074_v51, %v3073_v48 }
 0x280   :  { %v3078_v59 = vsel %vm2572_vm0, %v2569_v52, 0.0 }
 0x281   :  { %v3077_v57 = vadd.f32 %v3076_v55, %v3075_v54  ;;  %v2314_v58 = vpop.permute.xlu0 %2313 }
 0x282   :  { %v2571_v60 = vmul.f32 %v4129_v53, %v2314_v58 }
 0x283   :  { %v3079_v61 = vadd.f32 %v3078_v59, %v3077_v57 }
 0x284   :  { %v3082_v0 = vsel %vm2572_vm0, %v2571_v60, 0.0 }
 0x285   :  { %v3081_v63 = vadd.f32 %v3080_v62, %v3079_v61 }
 0x287   :  { %v3083_v1 = vadd.f32 %v3082_v0, %v3081_v63 }
 0x289   :  { %v3084_v2 = vrot.slane %v3083_v1, 4 }
 0x28b   :  { %v3085_v3 = vadd.f32 %v3084_v2, %v3083_v1 }
 0x28d   :  { %v3086_v4 = vrot.slane %v3085_v3, 2 }
 0x28f   :  { %v3087_v5 = vadd.f32 %v3086_v4, %v3085_v3 }
 0x291   :  { %v3088_v6 = vrot.slane %v3087_v5, 1 }
 0x293   :  { %v3089_v7 = vadd.f32 %v3088_v6, %v3087_v5 }
 0x295   :  { %3091 = vst.msk [vmem:[#allocation2] sm:$0x1] %vm3090_vm1, %v3089_v7 }
 0x296   :  { %4404 = shalt.err (!%p4401_p4)
}
 0x297   :  { %s4405_s19 = scalar_lea.hbm %s5472_s2, 16 }
 0x298   :  { %p4406_p5 = scmp.ne.s32.totalorder %s5472_s2, %s4405_s19  ;;  %p4409_p6 = scmp.lt.u32.totalorder %s4405_s19, %s5472_s2 }
 0x29a   :  { %p4411_p7 = pnand %p4409_p6, %p4406_p5 }
 0x29c   :  { %4414 = shalt.err (!%p4411_p7)
}
 0x29d   :  { %3101 = dma.vmem_to_hbm [thread:$0]  %s3099_s14, 16, %s5472_s2, [#allocation3]  }
 0x29e   :  { %4415 = dma.done.wait [#allocation3], 16  }
 0x29f   :  { %4416 = vsyncadd [#allocation3], 4294967280 }
 0x2a0   :  { %3105 = vsyncpa [#allocation3], 1 }

</bundles_post_ra>
